<compile_context>
chip_gen: v5e
topology: v5e:2x2
jax: 0.10.0
libtpu: 0.0.40
codegen_flags: <defaults>
</compile_context>

<pallas_src>
import functools

import jax
import jax.numpy as jnp
from jax.experimental import pallas as pl
from jax.experimental.pallas import tpu as pltpu

LANE = 128                  # vreg lane width -> lane-dense output channels
MXU_DTYPE = jnp.bfloat16    # MXU operand dtype (accumulation is f32 in-kernel)


def _round_up(x, m):
    return (x + m - 1) // m * m


# ---------------------------------------------------------------------------
# Pallas kernel: tiled  out = act(patches @ w + b)
# ---------------------------------------------------------------------------
def _matmul_bias_act_kernel(p_ref, w_ref, b_ref, o_ref, *, apply_silu):
    acc = jnp.dot(p_ref[...], w_ref[...], preferred_element_type=jnp.float32)
    acc = acc + b_ref[...]                       # (1, Cout) broadcast, f32
    if apply_silu:                               # SiLU = x * sigmoid(x)
        acc = acc * (1.0 / (1.0 + jnp.exp(-acc)))
    o_ref[...] = acc.astype(o_ref.dtype)


def matmul_bias_act(patches, w2d, bias, *, apply_silu, out_dtype, tm=256):
    """patches:(M,K)  w2d:(K,Cout)  bias:(Cout,) -> (M,Cout).

    Wrappers guarantee K % 8 == 0 and Cout % 128 == 0 (lane-dense stores).
    Tiled over M only; weights + bias stay resident in VMEM across the grid.
    """
    M, K = patches.shape
    K2, Cout = w2d.shape
    assert K == K2 and K % 8 == 0 and Cout % LANE == 0
    tm = min(tm, M)
    if tm < M:
        assert tm % 8 == 0
    grid = (pl.cdiv(M, tm),)

    # VMEM budget: double-buffered patch/output tiles + resident weights/bias.
    in_b = jnp.dtype(MXU_DTYPE).itemsize
    out_b = jnp.dtype(out_dtype).itemsize
    est = (2 * tm * K * in_b + 2 * tm * Cout * out_b
           + 2 * K * Cout * in_b + 2 * Cout * 4)
    vmem_limit = int(min(max(2 * est, 16 << 20), 64 << 20))

    kernel = functools.partial(_matmul_bias_act_kernel, apply_silu=apply_silu)
    return pl.pallas_call(
        kernel,
        out_shape=jax.ShapeDtypeStruct((M, Cout), out_dtype),
        grid=grid,
        in_specs=[
            pl.BlockSpec((tm, K), lambda i: (i, 0)),      # streamed patches
            pl.BlockSpec((K, Cout), lambda i: (0, 0)),    # resident weights
            pl.BlockSpec((1, Cout), lambda i: (0, 0)),    # resident bias (f32)
        ],
        out_specs=pl.BlockSpec((tm, Cout), lambda i: (i, 0)),
        compiler_params=pltpu.CompilerParams(
            dimension_semantics=("parallel",),            # shard M tiles on v7x
            vmem_limit_bytes=vmem_limit),
    )(patches.astype(MXU_DTYPE), w2d.astype(MXU_DTYPE),
      bias.reshape(1, Cout).astype(jnp.float32))


# ---------------------------------------------------------------------------
# XLA glue: im2col (bf16, single fusion) and layer wrappers
# ---------------------------------------------------------------------------
# TODO(synk): fuse patch extraction into the Pallas kernel via halo DMA from a
# pl.ANY input to remove the k^2-amplified im2col HBM round trip entirely.
def _im2col(x, k, s, p):
    """NHWC -> (N*Ho*Wo, k*k*C) patches with (kh, kw, c) ordering."""
    N, H, W, C = x.shape
    Ho = (H + 2 * p - k) // s + 1
    Wo = (W + 2 * p - k) // s + 1
    if k == 1 and s == 1 and p == 0:
        return x.reshape(N * H * W, C), (N, Ho, Wo)
    xp = jnp.pad(x, ((0, 0), (p, p), (p, p), (0, 0)))
    cols = [xp[:, i:i + s * Ho:s, j:j + s * Wo:s, :]
            for i in range(k) for j in range(k)]
    patches = jnp.concatenate(cols, axis=-1)
    return patches.reshape(N * Ho * Wo, k * k * C), (N, Ho, Wo)


def conv_bn_silu(x, params, *, k, s, p, out_dtype=MXU_DTYPE, tm=256, eps=1e-5):
    """Ultralytics Conv: Conv2d(bias=False) + BatchNorm2d(eval) + SiLU, NHWC.

    Accepts an activation whose channel dim is zero-padded to a lane multiple
    and emits a lane-padded output.  Padded output channels stay exactly zero
    (SiLU(0 + 0) == 0), so the padding flows through the network for free.
    """
    w, gamma, beta, mean, var = params
    cout, cin = w.shape[0], w.shape[1]
    c_act = x.shape[-1]                              # possibly lane-padded cin
    scale = gamma / jnp.sqrt(var + eps)
    w_f = (w * scale[:, None, None, None]).astype(jnp.float32)   # fold BN
    b_f = (beta - mean * scale).astype(jnp.float32)
    if c_act > cin:                                  # match activation padding
        w_f = jnp.pad(w_f, ((0, 0), (0, c_act - cin), (0, 0), (0, 0)))
    # OIHW -> (kh, kw, cin, cout) -> (K, cout): matches im2col tap order.
    w2d = jnp.transpose(w_f, (2, 3, 1, 0)).reshape(k * k * c_act, cout)
    cout_p = _round_up(cout, LANE)                   # lane-dense output
    if cout_p > cout:
        w2d = jnp.pad(w2d, ((0, 0), (0, cout_p - cout)))
        b_f = jnp.pad(b_f, (0, cout_p - cout))
    patches, (N, Ho, Wo) = _im2col(x, k, s, p)
    K = patches.shape[1]
    Kp = _round_up(K, 8)                             # sublane-aligned K
    if Kp > K:
        patches = jnp.pad(patches, ((0, 0), (0, Kp - K)))
        w2d = jnp.pad(w2d, ((0, Kp - K), (0, 0)))
    out = matmul_bias_act(patches, w2d, b_f, apply_silu=True,
                          out_dtype=out_dtype, tm=tm)
    return out.reshape(N, Ho, Wo, cout_p)


def conv_transpose_2x2_s2(x, w_iohw, bias, *, tm=256):
    """nn.ConvTranspose2d(c, c, 2, 2, 0, bias=True): exact 2x upsample.

    With kernel 2 / stride 2 / pad 0 each input pixel owns one 2x2 output
    block, so the op is a single matmul (K = Cin, columns = 4*Cout) followed
    by an XLA pixel-shuffle reshape that fuses into the next layer's im2col.
    """
    N, H, W, c_act = x.shape
    cin, cout = w_iohw.shape[0], w_iohw.shape[1]
    w_p = w_iohw.astype(jnp.float32)
    b_p = bias.astype(jnp.float32)
    if c_act > cin:
        w_p = jnp.pad(w_p, ((0, c_act - cin), (0, 0), (0, 0), (0, 0)))
    cout_p = _round_up(cout, LANE)
    if cout_p > cout:
        w_p = jnp.pad(w_p, ((0, 0), (0, cout_p - cout), (0, 0), (0, 0)))
        b_p = jnp.pad(b_p, (0, cout_p - cout))
    # (cin, cout, kh, kw) -> (cin, kh, kw, cout) -> (cin, 4*cout)
    w2d = jnp.transpose(w_p, (0, 2, 3, 1)).reshape(c_act, 4 * cout_p)
    b4 = jnp.tile(b_p, 4)                            # bias per (kh, kw, cout)
    y = matmul_bias_act(x.reshape(N * H * W, c_act), w2d, b4,
                        apply_silu=False, out_dtype=MXU_DTYPE, tm=tm)
    y = y.reshape(N, H, W, 2, 2, cout_p)
    y = y.transpose(0, 1, 3, 2, 4, 5).reshape(N, 2 * H, 2 * W, cout_p)
    return y


# ---------------------------------------------------------------------------
# Proto forward (mirrors the PyTorch module; NCHW in/out)
# ---------------------------------------------------------------------------
def proto_forward(x_nchw, params, *, tm=256):
    c2 = params["cv3"][0].shape[0]
    x = jnp.transpose(x_nchw, (0, 2, 3, 1))                        # NCHW->NHWC
    x = conv_bn_silu(x, params["cv1"], k=3, s=1, p=1, tm=tm)       # cv1
    x = conv_transpose_2x2_s2(x, *params["upsample"], tm=tm)       # upsample
    x = conv_bn_silu(x, params["cv2"], k=3, s=1, p=1, tm=tm)       # cv2
    x = conv_bn_silu(x, params["cv3"], k=1, s=1, p=0,
                     out_dtype=jnp.float32, tm=tm)                 # cv3
    x = x[..., :c2]                                                # drop pad
    return jnp.transpose(x, (0, 3, 1, 2))                          # NHWC->NCHW


# ---------------------------------------------------------------------------
# Deterministic parameter init (shapes from Proto.__init__)
# ---------------------------------------------------------------------------
def init_params(key, c1, c_, c2):
    def conv_params(k, cout, cin, ksz):
        kw, kg, kb, km, kv = jax.random.split(k, 5)
        w = 0.1 * jax.random.normal(kw, (cout, cin, ksz, ksz), jnp.float32)
        gamma = 1.0 + 0.1 * jax.random.normal(kg, (cout,), jnp.float32)
        beta = 0.1 * jax.random.normal(kb, (cout,), jnp.float32)
        mean = 0.1 * jax.random.normal(km, (cout,), jnp.float32)
        var = 1.0 + 0.1 * jnp.abs(jax.random.normal(kv, (cout,), jnp.float32))
        return (w, gamma, beta, mean, var)

    k1, k2, k3, k4 = jax.random.split(key, 4)
    kdw, kdb = jax.random.split(k2)
    return {
        "cv1": conv_params(k1, c_, c1, 3),
        "upsample": (0.1 * jax.random.normal(kdw, (c_, c_, 2, 2), jnp.float32),
                     0.1 * jax.random.normal(kdb, (c_,), jnp.float32)),
        "cv2": conv_params(k3, c_, c_, 3),
        "cv3": conv_params(k4, c2, c_, 1),
    }


if __name__ == "__main__":
    c1, c_, c2 = 4, 32, 16                       # small stand-ins for (c1,256,32)
    key = jax.random.PRNGKey(0)
    kx, kp = jax.random.split(key)
    x = jax.random.normal(kx, (2, c1, 16, 16), jnp.float32)   # NCHW, as PyTorch
    params = init_params(kp, c1, c_, c2)

    fwd = jax.jit(proto_forward)
    out = jax.block_until_ready(fwd(x, params))

    # 16x16 -> cv1 16x16 -> upsample 32x32 -> cv2/cv3 32x32, channels -> c2
    assert out.shape == (2, c2, 32, 32), out.shape
    assert out.dtype == jnp.float32
    assert bool(jnp.all(jnp.isfinite(out)))
    print("KERNEL_OK")
</pallas_src>

<mosaic_0001>
module attributes {stable_mosaic.version = 11 : i64} {
  func.func @_matmul_bias_act_kernel(%arg0: i32, %arg1: memref<256x40xbf16, #tpu.memory_space<vmem>>, %arg2: memref<40x128xbf16, #tpu.memory_space<vmem>>, %arg3: memref<1x128xf32, #tpu.memory_space<vmem>>, %arg4: memref<256x128xbf16, #tpu.memory_space<vmem>>) attributes {dimension_semantics = [#tpu.dimension_semantics<parallel>], iteration_bounds = array<i64: 2>, scalar_prefetch = 0 : i64, scratch_operands = 0 : i64, tpu.core_type = #tpu.core_type<tc>, window_params = [{transform_indices = @transform_0, window_bounds = array<i64: 256, 40>}, {pipeline_mode = #tpu.pipeline_mode<synchronous>, transform_indices = @transform_1, window_bounds = array<i64: 40, 128>}, {pipeline_mode = #tpu.pipeline_mode<synchronous>, transform_indices = @transform_2, window_bounds = array<i64: 1, 128>}, {transform_indices = @transform_3, window_bounds = array<i64: 256, 128>}]} {
    %c0 = arith.constant 0 : index
    %c0_0 = arith.constant 0 : index
    %0 = vector.load %arg1[%c0, %c0_0] : memref<256x40xbf16, #tpu.memory_space<vmem>>, vector<256x40xbf16>
    %c0_1 = arith.constant 0 : index
    %c0_2 = arith.constant 0 : index
    %1 = vector.load %arg2[%c0_1, %c0_2] : memref<40x128xbf16, #tpu.memory_space<vmem>>, vector<40x128xbf16>
    %cst = arith.constant dense<0.000000e+00> : vector<256x128xf32>
    %2 = tpu.matmul %0, %1, %cst {dimension_numbers = #tpu.dot_dimension_numbers<[1], [0], [0], [1], [0, 0, 1, 1], [], []>} : vector<256x40xbf16>, vector<40x128xbf16>, vector<256x128xf32> -> vector<256x128xf32>
    %c0_3 = arith.constant 0 : index
    %c0_4 = arith.constant 0 : index
    %3 = vector.load %arg3[%c0_3, %c0_4] : memref<1x128xf32, #tpu.memory_space<vmem>>, vector<1x128xf32>
    %4 = vector.broadcast %3 : vector<1x128xf32> to vector<256x128xf32>
    %5 = arith.addf %2, %4 : vector<256x128xf32>
    %cst_5 = arith.constant 0.000000e+00 : f32
    %6 = vector.broadcast %cst_5 : f32 to vector<256x128xf32>
    %7 = arith.subf %6, %5 : vector<256x128xf32>
    %8 = math.exp %7 : vector<256x128xf32>
    %cst_6 = arith.constant 1.000000e+00 : f32
    %9 = vector.broadcast %cst_6 : f32 to vector<256x128xf32>
    %10 = arith.addf %9, %8 : vector<256x128xf32>
    %cst_7 = arith.constant 1.000000e+00 : f32
    %11 = vector.broadcast %cst_7 : f32 to vector<256x128xf32>
    %12 = arith.divf %11, %10 : vector<256x128xf32>
    %13 = arith.mulf %5, %12 : vector<256x128xf32>
    %14 = arith.truncf %13 : vector<256x128xf32> to vector<256x128xbf16>
    %c0_8 = arith.constant 0 : index
    %c0_9 = arith.constant 0 : index
    %15 = vector.load %arg4[%c0_8, %c0_9] : memref<256x128xbf16, #tpu.memory_space<vmem>>, vector<256x128xbf16>
    tpu.vector_store %arg4[%c0_8, %c0_9], %14 {strides = array<i32>} : memref<256x128xbf16, #tpu.memory_space<vmem>>, vector<256x128xbf16>,
    return
  }
  func.func @transform_0(%arg0: i32) -> (i32, i32) {
    %c0_i32 = arith.constant 0 : i32
    %c0_i32_0 = arith.constant 0 : i32
    return %arg0, %c0_i32 : i32, i32
  }
  func.func @transform_1(%arg0: i32) -> (i32, i32) {
    %c0_i32 = arith.constant 0 : i32
    %c0_i32_0 = arith.constant 0 : i32
    %c0_i32_1 = arith.constant 0 : i32
    return %c0_i32, %c0_i32_0 : i32, i32
  }
  func.func @transform_2(%arg0: i32) -> (i32, i32) {
    %c0_i32 = arith.constant 0 : i32
    %c0_i32_0 = arith.constant 0 : i32
    %c0_i32_1 = arith.constant 0 : i32
    return %c0_i32, %c0_i32_0 : i32, i32
  }
  func.func @transform_3(%arg0: i32) -> (i32, i32) {
    %c0_i32 = arith.constant 0 : i32
    %c0_i32_0 = arith.constant 0 : i32
    return %arg0, %c0_i32 : i32, i32
  }
}

module attributes {stable_mosaic.version = 11 : i64} {
  func.func @_matmul_bias_act_kernel(%arg0: i32, %arg1: memref<256x128xbf16, #tpu.memory_space<vmem>>, %arg2: memref<128x512xbf16, #tpu.memory_space<vmem>>, %arg3: memref<1x512xf32, #tpu.memory_space<vmem>>, %arg4: memref<256x512xbf16, #tpu.memory_space<vmem>>) attributes {dimension_semantics = [#tpu.dimension_semantics<parallel>], iteration_bounds = array<i64: 2>, scalar_prefetch = 0 : i64, scratch_operands = 0 : i64, tpu.core_type = #tpu.core_type<tc>, window_params = [{transform_indices = @transform_0, window_bounds = array<i64: 256, 128>}, {pipeline_mode = #tpu.pipeline_mode<synchronous>, transform_indices = @transform_1, window_bounds = array<i64: 128, 512>}, {pipeline_mode = #tpu.pipeline_mode<synchronous>, transform_indices = @transform_2, window_bounds = array<i64: 1, 512>}, {transform_indices = @transform_3, window_bounds = array<i64: 256, 512>}]} {
    %c0 = arith.constant 0 : index
    %c0_0 = arith.constant 0 : index
    %0 = vector.load %arg1[%c0, %c0_0] : memref<256x128xbf16, #tpu.memory_space<vmem>>, vector<256x128xbf16>
    %c0_1 = arith.constant 0 : index
    %c0_2 = arith.constant 0 : index
    %1 = vector.load %arg2[%c0_1, %c0_2] : memref<128x512xbf16, #tpu.memory_space<vmem>>, vector<128x512xbf16>
    %cst = arith.constant dense<0.000000e+00> : vector<256x512xf32>
    %2 = tpu.matmul %0, %1, %cst {dimension_numbers = #tpu.dot_dimension_numbers<[1], [0], [0], [1], [0, 0, 1, 1], [], []>} : vector<256x128xbf16>, vector<128x512xbf16>, vector<256x512xf32> -> vector<256x512xf32>
    %c0_3 = arith.constant 0 : index
    %c0_4 = arith.constant 0 : index
    %3 = vector.load %arg3[%c0_3, %c0_4] : memref<1x512xf32, #tpu.memory_space<vmem>>, vector<1x512xf32>
    %4 = vector.broadcast %3 : vector<1x512xf32> to vector<256x512xf32>
    %5 = arith.addf %2, %4 : vector<256x512xf32>
    %6 = arith.truncf %5 : vector<256x512xf32> to vector<256x512xbf16>
    %c0_5 = arith.constant 0 : index
    %c0_6 = arith.constant 0 : index
    %7 = vector.load %arg4[%c0_5, %c0_6] : memref<256x512xbf16, #tpu.memory_space<vmem>>, vector<256x512xbf16>
    tpu.vector_store %arg4[%c0_5, %c0_6], %6 {strides = array<i32>} : memref<256x512xbf16, #tpu.memory_space<vmem>>, vector<256x512xbf16>,
    return
  }
  func.func @transform_0(%arg0: i32) -> (i32, i32) {
    %c0_i32 = arith.constant 0 : i32
    %c0_i32_0 = arith.constant 0 : i32
    return %arg0, %c0_i32 : i32, i32
  }
  func.func @transform_1(%arg0: i32) -> (i32, i32) {
    %c0_i32 = arith.constant 0 : i32
    %c0_i32_0 = arith.constant 0 : i32
    %c0_i32_1 = arith.constant 0 : i32
    return %c0_i32, %c0_i32_0 : i32, i32
  }
  func.func @transform_2(%arg0: i32) -> (i32, i32) {
    %c0_i32 = arith.constant 0 : i32
    %c0_i32_0 = arith.constant 0 : i32
    %c0_i32_1 = arith.constant 0 : i32
    return %c0_i32, %c0_i32_0 : i32, i32
  }
  func.func @transform_3(%arg0: i32) -> (i32, i32) {
    %c0_i32 = arith.constant 0 : i32
    %c0_i32_0 = arith.constant 0 : i32
    return %arg0, %c0_i32 : i32, i32
  }
}

module attributes {stable_mosaic.version = 11 : i64} {
  func.func @_matmul_bias_act_kernel(%arg0: i32, %arg1: memref<256x1152xbf16, #tpu.memory_space<vmem>>, %arg2: memref<1152x128xbf16, #tpu.memory_space<vmem>>, %arg3: memref<1x128xf32, #tpu.memory_space<vmem>>, %arg4: memref<256x128xbf16, #tpu.memory_space<vmem>>) attributes {dimension_semantics = [#tpu.dimension_semantics<parallel>], iteration_bounds = array<i64: 8>, scalar_prefetch = 0 : i64, scratch_operands = 0 : i64, tpu.core_type = #tpu.core_type<tc>, window_params = [{transform_indices = @transform_0, window_bounds = array<i64: 256, 1152>}, {pipeline_mode = #tpu.pipeline_mode<synchronous>, transform_indices = @transform_1, window_bounds = array<i64: 1152, 128>}, {pipeline_mode = #tpu.pipeline_mode<synchronous>, transform_indices = @transform_2, window_bounds = array<i64: 1, 128>}, {transform_indices = @transform_3, window_bounds = array<i64: 256, 128>}]} {
    %c0 = arith.constant 0 : index
    %c0_0 = arith.constant 0 : index
    %0 = vector.load %arg1[%c0, %c0_0] : memref<256x1152xbf16, #tpu.memory_space<vmem>>, vector<256x1152xbf16>
    %c0_1 = arith.constant 0 : index
    %c0_2 = arith.constant 0 : index
    %1 = vector.load %arg2[%c0_1, %c0_2] : memref<1152x128xbf16, #tpu.memory_space<vmem>>, vector<1152x128xbf16>
    %cst = arith.constant dense<0.000000e+00> : vector<256x128xf32>
    %2 = tpu.matmul %0, %1, %cst {dimension_numbers = #tpu.dot_dimension_numbers<[1], [0], [0], [1], [0, 0, 1, 1], [], []>} : vector<256x1152xbf16>, vector<1152x128xbf16>, vector<256x128xf32> -> vector<256x128xf32>
    %c0_3 = arith.constant 0 : index
    %c0_4 = arith.constant 0 : index
    %3 = vector.load %arg3[%c0_3, %c0_4] : memref<1x128xf32, #tpu.memory_space<vmem>>, vector<1x128xf32>
    %4 = vector.broadcast %3 : vector<1x128xf32> to vector<256x128xf32>
    %5 = arith.addf %2, %4 : vector<256x128xf32>
    %cst_5 = arith.constant 0.000000e+00 : f32
    %6 = vector.broadcast %cst_5 : f32 to vector<256x128xf32>
    %7 = arith.subf %6, %5 : vector<256x128xf32>
    %8 = math.exp %7 : vector<256x128xf32>
    %cst_6 = arith.constant 1.000000e+00 : f32
    %9 = vector.broadcast %cst_6 : f32 to vector<256x128xf32>
    %10 = arith.addf %9, %8 : vector<256x128xf32>
    %cst_7 = arith.constant 1.000000e+00 : f32
    %11 = vector.broadcast %cst_7 : f32 to vector<256x128xf32>
    %12 = arith.divf %11, %10 : vector<256x128xf32>
    %13 = arith.mulf %5, %12 : vector<256x128xf32>
    %14 = arith.truncf %13 : vector<256x128xf32> to vector<256x128xbf16>
    %c0_8 = arith.constant 0 : index
    %c0_9 = arith.constant 0 : index
    %15 = vector.load %arg4[%c0_8, %c0_9] : memref<256x128xbf16, #tpu.memory_space<vmem>>, vector<256x128xbf16>
    tpu.vector_store %arg4[%c0_8, %c0_9], %14 {strides = array<i32>} : memref<256x128xbf16, #tpu.memory_space<vmem>>, vector<256x128xbf16>,
    return
  }
  func.func @transform_0(%arg0: i32) -> (i32, i32) {
    %c0_i32 = arith.constant 0 : i32
    %c0_i32_0 = arith.constant 0 : i32
    return %arg0, %c0_i32 : i32, i32
  }
  func.func @transform_1(%arg0: i32) -> (i32, i32) {
    %c0_i32 = arith.constant 0 : i32
    %c0_i32_0 = arith.constant 0 : i32
    %c0_i32_1 = arith.constant 0 : i32
    return %c0_i32, %c0_i32_0 : i32, i32
  }
  func.func @transform_2(%arg0: i32) -> (i32, i32) {
    %c0_i32 = arith.constant 0 : i32
    %c0_i32_0 = arith.constant 0 : i32
    %c0_i32_1 = arith.constant 0 : i32
    return %c0_i32, %c0_i32_0 : i32, i32
  }
  func.func @transform_3(%arg0: i32) -> (i32, i32) {
    %c0_i32 = arith.constant 0 : i32
    %c0_i32_0 = arith.constant 0 : i32
    return %arg0, %c0_i32 : i32, i32
  }
}

module attributes {stable_mosaic.version = 11 : i64} {
  func.func @_matmul_bias_act_kernel(%arg0: i32, %arg1: memref<256x128xbf16, #tpu.memory_space<vmem>>, %arg2: memref<128x128xbf16, #tpu.memory_space<vmem>>, %arg3: memref<1x128xf32, #tpu.memory_space<vmem>>, %arg4: memref<256x128xf32, #tpu.memory_space<vmem>>) attributes {dimension_semantics = [#tpu.dimension_semantics<parallel>], iteration_bounds = array<i64: 8>, scalar_prefetch = 0 : i64, scratch_operands = 0 : i64, tpu.core_type = #tpu.core_type<tc>, window_params = [{transform_indices = @transform_0, window_bounds = array<i64: 256, 128>}, {pipeline_mode = #tpu.pipeline_mode<synchronous>, transform_indices = @transform_1, window_bounds = array<i64: 128, 128>}, {pipeline_mode = #tpu.pipeline_mode<synchronous>, transform_indices = @transform_2, window_bounds = array<i64: 1, 128>}, {transform_indices = @transform_3, window_bounds = array<i64: 256, 128>}]} {
    %c0 = arith.constant 0 : index
    %c0_0 = arith.constant 0 : index
    %0 = vector.load %arg1[%c0, %c0_0] : memref<256x128xbf16, #tpu.memory_space<vmem>>, vector<256x128xbf16>
    %c0_1 = arith.constant 0 : index
    %c0_2 = arith.constant 0 : index
    %1 = vector.load %arg2[%c0_1, %c0_2] : memref<128x128xbf16, #tpu.memory_space<vmem>>, vector<128x128xbf16>
    %cst = arith.constant dense<0.000000e+00> : vector<256x128xf32>
    %2 = tpu.matmul %0, %1, %cst {dimension_numbers = #tpu.dot_dimension_numbers<[1], [0], [0], [1], [0, 0, 1, 1], [], []>} : vector<256x128xbf16>, vector<128x128xbf16>, vector<256x128xf32> -> vector<256x128xf32>
    %c0_3 = arith.constant 0 : index
    %c0_4 = arith.constant 0 : index
    %3 = vector.load %arg3[%c0_3, %c0_4] : memref<1x128xf32, #tpu.memory_space<vmem>>, vector<1x128xf32>
    %4 = vector.broadcast %3 : vector<1x128xf32> to vector<256x128xf32>
    %5 = arith.addf %2, %4 : vector<256x128xf32>
    %cst_5 = arith.constant 0.000000e+00 : f32
    %6 = vector.broadcast %cst_5 : f32 to vector<256x128xf32>
    %7 = arith.subf %6, %5 : vector<256x128xf32>
    %8 = math.exp %7 : vector<256x128xf32>
    %cst_6 = arith.constant 1.000000e+00 : f32
    %9 = vector.broadcast %cst_6 : f32 to vector<256x128xf32>
    %10 = arith.addf %9, %8 : vector<256x128xf32>
    %cst_7 = arith.constant 1.000000e+00 : f32
    %11 = vector.broadcast %cst_7 : f32 to vector<256x128xf32>
    %12 = arith.divf %11, %10 : vector<256x128xf32>
    %13 = arith.mulf %5, %12 : vector<256x128xf32>
    %c0_8 = arith.constant 0 : index
    %c0_9 = arith.constant 0 : index
    %14 = vector.load %arg4[%c0_8, %c0_9] : memref<256x128xf32, #tpu.memory_space<vmem>>, vector<256x128xf32>
    tpu.vector_store %arg4[%c0_8, %c0_9], %13 {strides = array<i32>} : memref<256x128xf32, #tpu.memory_space<vmem>>, vector<256x128xf32>,
    return
  }
  func.func @transform_0(%arg0: i32) -> (i32, i32) {
    %c0_i32 = arith.constant 0 : i32
    %c0_i32_0 = arith.constant 0 : i32
    return %arg0, %c0_i32 : i32, i32
  }
  func.func @transform_1(%arg0: i32) -> (i32, i32) {
    %c0_i32 = arith.constant 0 : i32
    %c0_i32_0 = arith.constant 0 : i32
    %c0_i32_1 = arith.constant 0 : i32
    return %c0_i32, %c0_i32_0 : i32, i32
  }
  func.func @transform_2(%arg0: i32) -> (i32, i32) {
    %c0_i32 = arith.constant 0 : i32
    %c0_i32_0 = arith.constant 0 : i32
    %c0_i32_1 = arith.constant 0 : i32
    return %c0_i32, %c0_i32_0 : i32, i32
  }
  func.func @transform_3(%arg0: i32) -> (i32, i32) {
    %c0_i32 = arith.constant 0 : i32
    %c0_i32_0 = arith.constant 0 : i32
    return %arg0, %c0_i32 : i32, i32
  }
}

</mosaic_0001>

<bundles_post_ra>
// kernel: tile.8
= control target key start
LH: loop header
LB: loop body
LE: loop exit
PB: predicated region body
PF: predicated region fallthrough
CT: control target
= control target key end

     0   :  { %s22_s0 = inlined_call_operand.vmem [shape: f32[128], index: 0, kind: input, shape index: {}]   ;;  %s23_s1 = inlined_call_operand.vmem [shape: f32[4,128], index: 1, kind: output, shape index: {}]  }
   0x1   :  { %v4_v0 = vld [vmem:[%s22_s0] ss:$0 sm:$0xff] }
   0x2   :  { %5 = vst [vmem:[%s23_s1] sm:$0xf] %v4_v0 }

// kernel: proto_forward.4
= control target key start
LH: loop header
LB: loop body
LE: loop exit
PB: predicated region body
PF: predicated region fallthrough
CT: control target
= control target key end

     0   :  { %s1600_s12 = smov 0   ;;  %s2538_s0 = inlined_call_operand.vmem [shape: bf16[512,40], index: 0, kind: input, shape index: {}]   ;;  %s2539_s1 = inlined_call_operand.vmem [shape: bf16[40,128], index: 1, kind: input, shape index: {}]   ;;  %s2540_s2 = inlined_call_operand.vmem [shape: f32[1,128], index: 2, kind: input, shape index: {}]   ;;  %s2541_s3 = inlined_call_operand.vmem [shape: bf16[512,128], index: 3, kind: output, shape index: {}]  }
   0x1 LB: > { %s1213_s13 = sadd.s32 4294967295, %s1578_s12   ;;  %p1217_p0 = scmp.ge.s32.totalorder %s1578_s12, 1  ;;  %s1578_s12 = sphi %s1600_s12, %s13_s12  }
   0x2   : > { %p138_p1 = scmp.lt.s32.totalorder %s1578_s12, 3 }
   0x4   : > { %p139_p2 = pnand %p1217_p0, %p138_p1 }
   0x5   : > { %s1218_s16 = sshll.u32 (!%p139_p2), %s1213_s13, 5 }
   0x6   : > { %142 = sbr.rel (%p139_p2) target bundleno = 325 (0x145), region = 32  ;;  %p163_p3 = scmp.lt.s32.totalorder (!%p139_p2), %s1218_s16, 63 }
   0xb   : > { %v211_v0 = vld [vmem:[%s2539_s1 + $0x10] sm:$0xf]  ;;  %vm360_vm0 = vcmask 1043456   ;;  %s2623_s16 = smov (!%p163_p3, %s1218_s16), 63  ;;  %v1329_v4 = vld [vmem:[%s2539_s1 + $0x8] sm:$0xff]  ;;  %v1328_v5 = vld [vmem:[%s2539_s1] sm:$0xff] }
   0xc   : > { %v305_v1 = vunpack.c.l.b16 %v211_v0  ;;  %s1219_s19 = sshll.u32 %s2623_s16, 2  ;;  %vm311_vm1 = vcmask 326656   ;;  %v1662_v22 = vld [vmem:[%s2540_s2] ss:$0 sm:$0xff] }
   0xd   : > { %s1625_s24 = scalar_lea.vmem %s2538_s0, %s1219_s19  ;;  %s1881_s29 = scalar_lea.vmem %s2541_s3, %s1219_s19 }
   0xe   : > { %v308_v2 = vpack.c.b16 %v305_v1, %v305_v1  ;;  %v1312_v6 = vld [vmem:[%s1625_s24] sm:$0xff]  ;;  %v1313_v10 = vld [vmem:[%s1625_s24 + $0x8] sm:$0xff]  ;;  %v1314_v14 = vld [vmem:[%s1625_s24 + $0x10] sm:$0xff] }
   0xf   : > { %v1316_v7 = vld [vmem:[%s1625_s24 + $0x20] sm:$0xff]  ;;  %v1317_v11 = vld [vmem:[%s1625_s24 + $0x28] sm:$0xff]  ;;  %v1318_v15 = vld [vmem:[%s1625_s24 + $0x30] sm:$0xff] }
  0x10   : > { %v362_v3 = vsel %vm360_vm0, %v308_v2, 0  ;;  %v1320_v8 = vld [vmem:[%s1625_s24 + $0x40] sm:$0xff]  ;;  %v1321_v12 = vld [vmem:[%s1625_s24 + $0x48] sm:$0xff]  ;;  %v1322_v16 = vld [vmem:[%s1625_s24 + $0x50] sm:$0xff] }
  0x11   : > { %369 = vmatpush.bf16.msra.mxu0 %v362_v3  ;;  %1425 = vmatpush.bf16.msra.mxu1 %v362_v3  ;;  %v1324_v9 = vld [vmem:[%s1625_s24 + $0x60] sm:$0xff]  ;;  %v1325_v13 = vld [vmem:[%s1625_s24 + $0x68] sm:$0xff]  ;;  %v1326_v17 = vld [vmem:[%s1625_s24 + $0x70] sm:$0xff] }
  0x12   : > { %1426 = vmatpush.bf16.msra.mxu2 %v362_v3  ;;  %1427 = vmatpush.bf16.msra.mxu3 %v362_v3  ;;  %v1315_v18 = vld [vmem:[%s1625_s24 + $0x18] sm:$0xff] }
  0x13   : > { %v1319_v19 = vld [vmem:[%s1625_s24 + $0x38] sm:$0xff] }
  0x14   : > { %v1323_v20 = vld [vmem:[%s1625_s24 + $0x58] sm:$0xff] }
  0x15   : > { %370 = vmatpush.bf16.msra.mxu0 %v1329_v4  ;;  %1428 = vmatpush.bf16.msra.mxu1 %v1329_v4  ;;  %v1327_v21 = vld [vmem:[%s1625_s24 + $0x78] sm:$0xff] }
  0x16   : > { %1429 = vmatpush.bf16.msra.mxu2 %v1329_v4  ;;  %1430 = vmatpush.bf16.msra.mxu3 %v1329_v4 }
  0x19   : > { %371 = vmatpush.bf16.msra.mxu0 %v1328_v5  ;;  %1431 = vmatpush.bf16.msra.mxu1 %v1328_v5 }
  0x1a   : > { %1432 = vmatpush.bf16.msra.mxu2 %v1328_v5  ;;  %1433 = vmatpush.bf16.msra.mxu3 %v1328_v5 }
  0x1c   : > { %1294 = vmatmul.msk.bf16.vlgmr.msra.gmra.mxu0 %vm311_vm1, %v1312_v6  ;;  %1298 = vmatmul.msk.bf16.vlgmr.msra.gmra.mxu1 %vm311_vm1, %v1316_v7 }
  0x1d   : > { %1302 = vmatmul.msk.bf16.vlgmr.msra.gmra.mxu2 %vm311_vm1, %v1320_v8  ;;  %1306 = vmatmul.msk.bf16.vlgmr.msra.gmra.mxu3 %vm311_vm1, %v1324_v9 }
  0x2c   : > { %1295 = vmatmul.msk.bf16.gmra.mxu0 %vm311_vm1, %v1313_v10  ;;  %1299 = vmatmul.msk.bf16.gmra.mxu1 %vm311_vm1, %v1317_v11 }
  0x2d   : > { %1303 = vmatmul.msk.bf16.gmra.mxu2 %vm311_vm1, %v1321_v12  ;;  %1307 = vmatmul.msk.bf16.gmra.mxu3 %vm311_vm1, %v1325_v13 }
  0x3c   : > { %1296 = vmatmul.msk.bf16.gmra.mxu0 %vm311_vm1, %v1314_v14  ;;  %1300 = vmatmul.msk.bf16.gmra.mxu1 %vm311_vm1, %v1318_v15 }
  0x3d   : > { %1304 = vmatmul.msk.bf16.gmra.mxu2 %vm311_vm1, %v1322_v16  ;;  %1308 = vmatmul.msk.bf16.gmra.mxu3 %vm311_vm1, %v1326_v17 }
  0x4c   : > { %1297 = vmatmul.msk.bf16.gmra.mxu0 %vm311_vm1, %v1315_v18  ;;  %1301 = vmatmul.msk.bf16.gmra.mxu1 %vm311_vm1, %v1319_v19 }
  0x4d   : > { %1305 = vmatmul.msk.bf16.gmra.mxu2 %vm311_vm1, %v1323_v20  ;;  %1309 = vmatmul.msk.bf16.gmra.mxu3 %vm311_vm1, %v1327_v21 }
  0x99   : > { %v373_v23 = vpop.f32.mrf.mxu0  ;;  %v393_v24 = vpop.f32.mrf.mxu1 }
  0x9a   : > { %v1665_v25 = vadd.f32 %v1662_v22, %v373_v23  ;;  %v1668_v26 = vadd.f32 %v1662_v22, %v393_v24 }
  0x9c   : > { %v453_v27 = vsub.f32 0.0, %v1665_v25  ;;  %v461_v28 = vsub.f32 0.0, %v1668_v26 }
  0x9e   : > { %v485_v29 = vmul.f32 1.442695, %v453_v27  ;;  %v501_v30 = vmul.f32 1.442695, %v461_v28 }
  0xa0   : > { %1443 = vpow2.f32 %v485_v29  ;;  %v413_v31 = vpop.f32.mrf.mxu2  ;;  %v433_v32 = vpop.f32.mrf.mxu3 }
  0xa1   : > { %1445 = vpow2.f32 %v501_v30  ;;  %v1673_v33 = vadd.f32 %v1662_v22, %v413_v31  ;;  %v1676_v34 = vadd.f32 %v1662_v22, %v433_v32  ;;  %v375_v35 = vpop.f32.mrf.mxu0  ;;  %v395_v36 = vpop.f32.mrf.mxu1 }
  0xa2   : > { %v1679_v37 = vadd.f32 %v1662_v22, %v375_v35  ;;  %v1682_v38 = vadd.f32 %v1662_v22, %v395_v36 }
  0xa3   : > { %v469_v39 = vsub.f32 0.0, %v1673_v33  ;;  %v477_v40 = vsub.f32 0.0, %v1676_v34 }
  0xa4   : > { %v454_v41 = vsub.f32 0.0, %v1679_v37  ;;  %v462_v42 = vsub.f32 0.0, %v1682_v38 }
  0xa5   : > { %v517_v43 = vmul.f32 1.442695, %v469_v39  ;;  %v533_v44 = vmul.f32 1.442695, %v477_v40 }
  0xa6   : > { %v1444_v45 = vpop.eup %1443  ;;  %v487_v48 = vmul.f32 1.442695, %v454_v41  ;;  %v503_v50 = vmul.f32 1.442695, %v462_v42 }
  0xa7   : > { %v1446_v46 = vpop.eup %1445  ;;  %v1688_v47 = vadd.f32 1.0, %v1444_v45  ;;  %1447 = vpow2.f32 %v517_v43 }
  0xa8   : > { %v1690_v49 = vadd.f32 1.0, %v1446_v46  ;;  %1449 = vpow2.f32 %v533_v44  ;;  %v415_v51 = vpop.f32.mrf.mxu2  ;;  %v435_v55 = vpop.f32.mrf.mxu3 }
  0xa9   : > { %1451 = vrcp.f32 %v1688_v47  ;;  %v1695_v52 = vadd.f32 %v1662_v22, %v415_v51  ;;  %v592_v59 = vand.u32 2147483648, %v1688_v47  ;;  %v590_v63 = vand.u32 2147483647, %v1688_v47  ;;  %v378_v1 = vpop.f32.mrf.mxu0  ;;  %v398_v2 = vpop.f32.mrf.mxu1 }
  0xaa   : > { %1453 = vrcp.f32 %v1690_v49  ;;  %v1712_v0 = vadd.f32 %v1662_v22, %v435_v55  ;;  %vm586_vm2 = vweird.f32 %v1688_v47  ;;  %v712_v5 = vand.u32 2147483648, %v1690_v49 }
  0xab   : > { %1455 = vpow2.f32 %v487_v48  ;;  %v470_v54 = vsub.f32 0.0, %v1695_v52  ;;  %vm706_vm3 = vweird.f32 %v1690_v49  ;;  %v710_v9 = vand.u32 2147483647, %v1690_v49 }
  0xac   : > { %1457 = vpow2.f32 %v503_v50  ;;  %v593_v10 = vor.u32 1.1754944e-38, %v592_v59  ;;  %v1722_v12 = vadd.f32 %v1662_v22, %v378_v1  ;;  %v1725_v13 = vadd.f32 %v1662_v22, %v398_v2 }
  0xad   : > { %v1448_v53 = vpop.eup %1447  ;;  %v519_v6 = vmul.f32 1.442695, %v470_v54  ;;  %vm1728_vm4 = vcmp.eq.f32.partialorder %v590_v63, 8.507059e+37  ;;  %v478_v18 = vsub.f32 0.0, %v1712_v0  ;;  %v713_v20 = vor.u32 1.1754944e-38, %v712_v5 }
  0xae   : > { %v1450_v56 = vpop.eup %1449  ;;  %v1698_v57 = vadd.f32 1.0, %v1448_v53  ;;  %vm1742_vm6 = vcmp.eq.f32.partialorder %v710_v9, 8.507059e+37  ;;  %v455_v31 = vsub.f32 0.0, %v1722_v12  ;;  %v463_v32 = vsub.f32 0.0, %v1725_v13 }
  0xaf   : > { %v1700_v58 = vpop.eup %1451  ;;  %v1703_v60 = vadd.f32 1.0, %v1450_v56  ;;  %v535_v39 = vmul.f32 1.442695, %v478_v18 }
  0xb0   : > { %v1705_v61 = vpop.eup %1453  ;;  %v582_v62 = vmul.f32 %v1700_v58, %v1688_v47  ;;  %1459 = vrcp.f32 %v1698_v57  ;;  %vm587_vm5 = vweird.f32 %v1700_v58  ;;  %v832_v27 = vand.u32 2147483648, %v1698_v57 }
  0xb1   : > { %v1456_v3 = vpop.eup %1455  ;;  %v702_v4 = vmul.f32 %v1705_v61, %v1690_v49  ;;  %1461 = vrcp.f32 %v1703_v60  ;;  %v952_v28 = vand.u32 2147483648, %v1703_v60  ;;  %v830_v30 = vand.u32 2147483647, %v1698_v57  ;;  %vm1763_vm8 = vmor %vm586_vm2, %vm587_vm5  ;;  %v380_v40 = vpop.f32.mrf.mxu0 }
  0xb2   : > { %v1458_v7 = vpop.eup %1457  ;;  %v583_v8 = vsub.f32 1.0, %v582_v62  ;;  %v1732_v16 = vadd.f32 1.0, %v1456_v3  ;;  %1463 = vpow2.f32 %v519_v6  ;;  %vm707_vm7 = vweird.f32 %v1705_v61 }
  0xb3   : > { %v703_v11 = vsub.f32 1.0, %v702_v4  ;;  %v1734_v17 = vadd.f32 1.0, %v1458_v7  ;;  %vm826_vm9 = vweird.f32 %v1698_v57  ;;  %v833_v45 = vor.u32 1.1754944e-38, %v832_v27  ;;  %vm1779_vm10 = vmor %vm706_vm3, %vm707_vm7 }
  0xb4   : > { %v584_v14 = vmul.f32 %v1700_v58, %v583_v8  ;;  %1465 = vrcp.f32 %v1732_v16  ;;  %v605_v43 = vand.u32 2147483647, %v1732_v16  ;;  %v950_v46 = vand.u32 2147483647, %v1703_v60  ;;  %v418_v8 = vpop.f32.mrf.mxu2 }
  0xb5   : > { %v704_v19 = vmul.f32 %v1705_v61, %v703_v11  ;;  %1467 = vrcp.f32 %v1734_v17  ;;  %v1775_v47 = vor.u32 1.1754944e-38, %v952_v28  ;;  %vm1785_vm12 = vcmp.eq.f32.partialorder %v830_v30, 8.507059e+37 }
  0xb6   : > { %v1739_v21 = vpop.eup %1459  ;;  %v585_v23 = vadd.f32 %v1700_v58, %v584_v14  ;;  %vm601_vm13 = vweird.f32 %v1732_v16  ;;  %v607_v54 = vand.u32 2147483648, %v1732_v16  ;;  %1469 = vpow2.f32 %v535_v39 }
  0xb7   : > { %v822_v29 = vmul.f32 %v1739_v21, %v1698_v57  ;;  %v1754_v35 = vpop.eup %1461  ;;  %v705_v36 = vadd.f32 %v1705_v61, %v704_v19  ;;  %vm827_vm11 = vweird.f32 %v1739_v21  ;;  %vm1800_vm14 = vcmp.eq.f32.partialorder %v605_v43, 8.507059e+37 }
  0xb8   : > { %v942_v42 = vmul.f32 %v1754_v35, %v1703_v60  ;;  %v589_v44 = vsel %vm1763_vm8, %v1700_v58, %v585_v23  ;;  %v1464_v48 = vpop.eup %1463  ;;  %vm946_vm15 = vweird.f32 %v1703_v60  ;;  %v727_v3 = vand.u32 2147483648, %v1734_v17  ;;  %vm1817_vm1 = vmor %vm826_vm9, %vm827_vm11 }
  0xb9   : > { %v823_v41 = vsub.f32 1.0, %v822_v29  ;;  %v709_v49 = vsel %vm1779_vm10, %v1705_v61, %v705_v36  ;;  %v1794_v58 = vadd.f32 1.0, %v1464_v48  ;;  %v594_v59 = vsel %vm1728_vm4, %v593_v10, %v589_v44  ;;  %v438_v29 = vpop.f32.mrf.mxu3 }
  0xba   : > { %v1466_v55 = vpop.eup %1465  ;;  %v943_v56 = vsub.f32 1.0, %v942_v42  ;;  %v725_v61 = vand.u32 2147483647, %v1734_v17  ;;  %v489_v4 = vmul.f32 1.442695, %v455_v31  ;;  %v714_v5 = vsel %vm1742_vm6, %v713_v20, %v709_v49 }
  0xbb   : > { %v824_v51 = vmul.f32 %v1739_v21, %v823_v41  ;;  %v597_v63 = vmul.f32 %v1466_v55, %v1732_v16  ;;  %v1468_v2 = vpop.eup %1467  ;;  %1471 = vrcp.f32 %v1794_v58  ;;  %vm721_vm0 = vweird.f32 %v1734_v17 }
  0xbc   : > { %v717_v7 = vmul.f32 %v1468_v2, %v1734_v17  ;;  %v1061_v9 = vmul.f32 %v594_v59, %v1665_v25  ;;  %v944_v11 = vmul.f32 %v1754_v35, %v943_v56  ;;  %vm947_vm2 = vweird.f32 %v1754_v35  ;;  %v1470_v19 = vpop.eup %1469  ;;  %v400_v59 = vpop.f32.mrf.mxu1 }
  0xbd   : > { %v825_v62 = vadd.f32 %v1739_v21, %v824_v51  ;;  %v598_v6 = vsub.f32 1.0, %v597_v63  ;;  %v608_v14 = vor.u32 1.1754944e-38, %v607_v54  ;;  %vm602_vm3 = vweird.f32 %v1466_v55  ;;  %vm1865_vm10 = vmor %vm946_vm15, %vm947_vm2 }
  0xbe   : > { %v718_v25 = vsub.f32 1.0, %v717_v7  ;;  %v1069_v20 = vmul.f32 %v714_v5, %v1668_v26  ;;  %vm1827_vm4 = vcmp.eq.f32.partialorder %v950_v46, 8.507059e+37  ;;  %vm1831_vm5 = vcmp.eq.f32.partialorder %v725_v61, 8.507059e+37  ;;  %vm603_vm8 = vmor %vm601_vm13, %vm602_vm3 }
  0xbf   : > { %v829_v15 = vsel %vm1817_vm1, %v1739_v21, %v825_v62  ;;  %v599_v18 = vmul.f32 %v1466_v55, %v598_v6  ;;  %v728_v24 = vor.u32 1.1754944e-38, %v727_v3  ;;  %1473 = vpow2.f32 %v489_v4 }
  0xc0   : > { %v719_v28 = vmul.f32 %v1468_v2, %v718_v25  ;;  %vm722_vm6 = vweird.f32 %v1468_v2  ;;  %vm841_vm7 = vweird.f32 %v1794_v58  ;;  %v1836_v21 = vadd.f32 1.0, %v1470_v19 }
  0xc1   : > { %v600_v27 = vadd.f32 %v1466_v55, %v599_v18  ;;  %v1472_v30 = vpop.eup %1471  ;;  %v834_v26 = vsel %vm1785_vm12, %v833_v45, %v829_v15  ;;  %v945_v31 = vadd.f32 %v1754_v35, %v944_v11  ;;  %v505_v36 = vmul.f32 1.442695, %v463_v32  ;;  %vm723_vm9 = vmor %vm721_vm0, %vm722_vm6  ;;  %v440_v15 = vpop.f32.mrf.mxu3 }
  0xc2   : > { %v1847_v39 = vadd.f32 %v1662_v22, %v418_v8  ;;  %v720_v42 = vadd.f32 %v1468_v2, %v719_v28  ;;  %v837_v43 = vmul.f32 %v1472_v30, %v1794_v58  ;;  %v845_v44 = vand.u32 2147483647, %v1794_v58 }
  0xc3   : > { %v604_v41 = vsel %vm603_vm8, %v1466_v55, %v600_v27  ;;  %v847_v16 = vand.u32 2147483648, %v1794_v58  ;;  %1475 = vrcp.f32 %v1836_v21  ;;  %v1859_v32 = vadd.f32 %v1662_v22, %v438_v29 }
  0xc4   : > { %v609_v45 = vsel %vm1800_vm14, %v608_v14, %v604_v41  ;;  %v724_v50 = vsel %vm723_vm9, %v1468_v2, %v720_v42  ;;  %v838_v17 = vsub.f32 1.0, %v837_v43  ;;  %v1871_v51 = vadd.f32 %v1662_v22, %v380_v40 }
  0xc5   : > { %v1062_v48 = vmul.f32 %v609_v45, %v1679_v37  ;;  %v1474_v53 = vpop.eup %1473  ;;  %v949_v54 = vsel %vm1865_vm10, %v1754_v35, %v945_v31  ;;  %v729_v37 = vsel %vm1831_vm5, %v728_v24, %v724_v50  ;;  %1477 = vpow2.f32 %v505_v36  ;;  %v420_v35 = vpop.f32.mrf.mxu2 }
  0xc6   : > { %v471_v60 = vsub.f32 0.0, %v1847_v39  ;;  %v1070_v49 = vmul.f32 %v729_v37, %v1682_v38  ;;  %v839_v56 = vmul.f32 %v1472_v30, %v838_v17  ;;  %vm842_vm11 = vweird.f32 %v1472_v30 }
  0xc7   : > { %v1333_v55 = vpack.c.bf16 %v1062_v48, %v1061_v9  ;;  %v1077_v62 = vmul.f32 %v834_v26, %v1673_v33  ;;  %v1888_v63 = vadd.f32 1.0, %v1474_v53  ;;  %v479_v2 = vsub.f32 0.0, %v1859_v32  ;;  %vm843_vm12 = vmor %vm841_vm7, %vm842_vm11 }
  0xc8   : > { %v521_v1 = vmul.f32 1.442695, %v471_v60  ;;  %v954_v61 = vsel %vm1827_vm4, %v1775_v47, %v949_v54  ;;  %v1353_v3 = vpack.c.bf16 %v1070_v49, %v1069_v20  ;;  %v840_v4 = vadd.f32 %v1472_v30, %v839_v56 }
  0xc9   : > { %1334 = vst [vmem:[%s1881_s29] sm:$0xff] %v1333_v55   ;;  %v456_v38 = vsub.f32 0.0, %v1871_v51  ;;  %v1476_v5 = vpop.eup %1475  ;;  %v848_v6 = vor.u32 1.1754944e-38, %v847_v16  ;;  %1479 = vrcp.f32 %v1888_v63  ;;  %v1900_v33 = vadd.f32 %v1662_v22, %v400_v59 }
  0xca   : > { %v1903_v7 = vadd.f32 %v1662_v22, %v420_v35  ;;  %1413 = vst [vmem:[%s1881_s29 + $0x20] sm:$0xff] %v1353_v3   ;;  %v844_v47 = vsel %vm843_vm12, %v1472_v30, %v840_v4  ;;  %vm846_vm13 = vcmp.eq.f32.partialorder %v845_v44, 8.507059e+37  ;;  %v957_v8 = vmul.f32 %v1476_v5, %v1836_v21 }
  0xcb   : > { %1481 = vpow2.f32 %v521_v1  ;;  %v1478_v9 = vpop.eup %1477  ;;  %v849_v10 = vsel %vm846_vm13, %v848_v6, %v844_v47  ;;  %v965_v58 = vand.u32 2147483647, %v1836_v21  ;;  %v967_v11 = vand.u32 2147483648, %v1836_v21 }
  0xcc   : > { %v537_v14 = vmul.f32 1.442695, %v479_v2  ;;  %v1078_v18 = vmul.f32 %v849_v10, %v1695_v52  ;;  %v958_v25 = vsub.f32 1.0, %v957_v8  ;;  %v1910_v19 = vadd.f32 1.0, %v1478_v9 }
  0xcd   : > { %v491_v20 = vmul.f32 1.442695, %v456_v38  ;;  %vm962_vm14 = vweird.f32 %v1476_v5  ;;  %v464_v57 = vsub.f32 0.0, %v1900_v33  ;;  %v472_v23 = vsub.f32 0.0, %v1903_v7 }
  0xce   : > { %1483 = vpow2.f32 %v537_v14  ;;  %v1373_v24 = vpack.c.bf16 %v1078_v18, %v1077_v62  ;;  %v959_v27 = vmul.f32 %v1476_v5, %v958_v25  ;;  %v1916_v28 = vadd.f32 %v1662_v22, %v440_v15 }
  0xcf   : > { %1485 = vrcp.f32 %v1910_v19  ;;  %v1918_v29 = vpop.eup %1479  ;;  %v507_v52 = vmul.f32 1.442695, %v464_v57  ;;  %v1085_v26 = vmul.f32 %v954_v61, %v1676_v34  ;;  %vm961_vm15 = vweird.f32 %v1836_v21  ;;  %v443_v57 = vpop.f32.mrf.mxu3 }
  0xd0   : > { %1487 = vpow2.f32 %v491_v20  ;;  %1417 = vst [vmem:[%s1881_s29 + $0x40] sm:$0xff] %v1373_v24   ;;  %v960_v31 = vadd.f32 %v1476_v5, %v959_v27  ;;  %v612_v36 = vmul.f32 %v1918_v29, %v1888_v63  ;;  %vm963_vm0 = vmor %vm961_vm15, %vm962_vm14  ;;  %v968_v40 = vor.u32 1.1754944e-38, %v967_v11 }
  0xd1   : > { %v1482_v30 = vpop.eup %1481  ;;  %1489 = vpow2.f32 %v507_v52  ;;  %v523_v42 = vmul.f32 1.442695, %v472_v23  ;;  %vm966_vm1 = vcmp.eq.f32.partialorder %v965_v58, 8.507059e+37  ;;  %v480_v45 = vsub.f32 0.0, %v1916_v28 }
  0xd2   : > { %v1926_v41 = vadd.f32 1.0, %v1482_v30  ;;  %v964_v43 = vsel %vm963_vm0, %v1476_v5, %v960_v31  ;;  %v613_v44 = vsub.f32 1.0, %v612_v36  ;;  %vm616_vm2 = vweird.f32 %v1888_v63 }
  0xd3   : > { %v969_v16 = vsel %vm966_vm1, %v968_v40, %v964_v43  ;;  %v620_v21 = vand.u32 2147483647, %v1888_v63  ;;  %v622_v17 = vand.u32 2147483648, %v1888_v63  ;;  %v740_v60 = vand.u32 2147483647, %v1910_v19 }
  0xd4   : > { %v1484_v34 = vpop.eup %1483  ;;  %1491 = vrcp.f32 %v1926_v41  ;;  %v1086_v48 = vmul.f32 %v969_v16, %v1712_v0  ;;  %v614_v50 = vmul.f32 %v1918_v29, %v613_v44  ;;  %v539_v55 = vmul.f32 1.442695, %v480_v45 }
  0xd5   : > { %v1932_v46 = vpop.eup %1485  ;;  %v1937_v53 = vadd.f32 1.0, %v1484_v34  ;;  %1493 = vpow2.f32 %v523_v42  ;;  %vm617_vm3 = vweird.f32 %v1918_v29  ;;  %vm1945_vm4 = vcmp.eq.f32.partialorder %v620_v21, 8.507059e+37 }
  0xd6   : > { %v1488_v54 = vpop.eup %1487  ;;  %v732_v37 = vmul.f32 %v1932_v46, %v1910_v19  ;;  %v1393_v49 = vpack.c.bf16 %v1086_v48, %v1085_v26  ;;  %v615_v56 = vadd.f32 %v1918_v29, %v614_v50  ;;  %v742_v62 = vand.u32 2147483648, %v1910_v19  ;;  %vm1959_vm5 = vmor %vm616_vm2, %vm617_vm3  ;;  %v403_v48 = vpop.f32.mrf.mxu1 }
  0xd7   : > { %1495 = vrcp.f32 %v1937_v53  ;;  %v1490_v0 = vpop.eup %1489  ;;  %v860_v1 = vand.u32 2147483647, %v1926_v41  ;;  %v862_v2 = vand.u32 2147483648, %v1926_v41  ;;  %v1953_v61 = vadd.f32 1.0, %v1488_v54 }
  0xd8   : > { %v733_v35 = vsub.f32 1.0, %v732_v37  ;;  %1421 = vst [vmem:[%s1881_s29 + $0x60] sm:$0xff] %v1393_v49   ;;  %v1955_v3 = vadd.f32 1.0, %v1490_v0  ;;  %1497 = vpow2.f32 %v539_v55  ;;  %v623_v5 = vor.u32 1.1754944e-38, %v622_v17  ;;  %v423_v37 = vpop.f32.mrf.mxu2 }
  0xd9   : > { %vm736_vm6 = vweird.f32 %v1910_v19  ;;  %vm1965_vm7 = vcmp.eq.f32.partialorder %v740_v60, 8.507059e+37  ;;  %v619_v8 = vsel %vm1959_vm5, %v1918_v29, %v615_v56  ;;  %vm737_vm8 = vweird.f32 %v1932_v46 }
  0xda   : > { %v1492_v4 = vpop.eup %1491  ;;  %v734_v6 = vmul.f32 %v1932_v46, %v733_v35  ;;  %1499 = vrcp.f32 %v1953_v61  ;;  %v743_v58 = vor.u32 1.1754944e-38, %v742_v62  ;;  %vm856_vm9 = vweird.f32 %v1926_v41  ;;  %vm1989_vm11 = vmor %vm736_vm6, %vm737_vm8 }
  0xdb   : > { %v852_v63 = vmul.f32 %v1492_v4, %v1926_v41  ;;  %v1494_v9 = vpop.eup %1493  ;;  %v982_v11 = vand.u32 2147483648, %v1937_v53  ;;  %vm1980_vm10 = vcmp.eq.f32.partialorder %v860_v1, 8.507059e+37  ;;  %v863_v25 = vor.u32 1.1754944e-38, %v862_v2 }
  0xdc   : > { %v735_v10 = vadd.f32 %v1932_v46, %v734_v6  ;;  %1501 = vrcp.f32 %v1955_v3  ;;  %v624_v20 = vsel %vm1945_vm4, %v623_v5, %v619_v8  ;;  %vm976_vm12 = vweird.f32 %v1937_v53 }
  0xdd   : > { %v1978_v14 = vpop.eup %1495  ;;  %v853_v15 = vsub.f32 1.0, %v852_v63  ;;  %v980_v24 = vand.u32 2147483647, %v1937_v53  ;;  %v635_v27 = vand.u32 2147483647, %v1953_v61  ;;  %vm857_vm13 = vweird.f32 %v1492_v4 }
  0xde   : > { %v972_v23 = vmul.f32 %v1978_v14, %v1937_v53  ;;  %v1498_v29 = vpop.eup %1497  ;;  %v739_v52 = vsel %vm1989_vm11, %v1932_v46, %v735_v10  ;;  %v637_v19 = vand.u32 2147483648, %v1953_v61  ;;  %v2002_v31 = vor.u32 1.1754944e-38, %v982_v11  ;;  %vm858_vm0 = vmor %vm856_vm9, %vm857_vm13  ;;  %v383_v46 = vpop.f32.mrf.mxu0 }
  0xdf   : > { %v854_v30 = vmul.f32 %v1492_v4, %v853_v15  ;;  %v755_v36 = vand.u32 2147483647, %v1955_v3  ;;  %v2005_v40 = vadd.f32 1.0, %v1494_v9  ;;  %v2008_v43 = vmul.f32 %v624_v20, %v1722_v12 }
  0xe0   : > { %v973_v26 = vsub.f32 1.0, %v972_v23  ;;  %v1500_v42 = vpop.eup %1499  ;;  %vm977_vm14 = vweird.f32 %v1978_v14  ;;  %vm631_vm15 = vweird.f32 %v1953_v61  ;;  %v744_v45 = vsel %vm1965_vm7, %v743_v58, %v739_v52 }
  0xe1   : > { %v855_v44 = vadd.f32 %v1492_v4, %v854_v30  ;;  %v627_v16 = vmul.f32 %v1500_v42, %v1953_v61  ;;  %vm2018_vm1 = vcmp.eq.f32.partialorder %v635_v27, 8.507059e+37  ;;  %vm751_vm2 = vweird.f32 %v1955_v3  ;;  %vm2054_vm5 = vmor %vm976_vm12, %vm977_vm14 }
  0xe2   : > { %v974_v34 = vmul.f32 %v1978_v14, %v973_v26  ;;  %v2023_v12 = vadd.f32 1.0, %v1498_v29  ;;  %v1502_v50 = vpop.eup %1501  ;;  %v638_v54 = vor.u32 1.1754944e-38, %v637_v19  ;;  %v757_v41 = vand.u32 2147483648, %v1955_v3 }
  0xe3   : > { %v859_v17 = vsel %vm858_vm0, %v1492_v4, %v855_v44  ;;  %1503 = vrcp.f32 %v2005_v40  ;;  %v628_v49 = vsub.f32 1.0, %v627_v16  ;;  %v747_v56 = vmul.f32 %v1502_v50, %v1955_v3  ;;  %v405_v3 = vpop.f32.mrf.mxu1 }
  0xe4   : > { %v864_v60 = vsel %vm1980_vm10, %v863_v25, %v859_v17  ;;  %v2030_v55 = vadd.f32 %v1978_v14, %v974_v34  ;;  %vm2033_vm3 = vcmp.eq.f32.partialorder %v755_v36, 8.507059e+37  ;;  %vm632_vm4 = vweird.f32 %v1500_v42 }
  0xe5   : > { %v877_v59 = vand.u32 2147483648, %v2005_v40  ;;  %v2039_v35 = vadd.f32 %v1662_v22, %v383_v46  ;;  %v2042_v62 = vadd.f32 %v1662_v22, %v403_v48  ;;  %v629_v1 = vmul.f32 %v1500_v42, %v628_v49  ;;  %vm633_vm9 = vmor %vm631_vm15, %vm632_vm4 }
  0xe6   : > { %v748_v2 = vsub.f32 1.0, %v747_v56  ;;  %v875_v4 = vand.u32 2147483647, %v2005_v40  ;;  %1505 = vrcp.f32 %v2023_v12  ;;  %v1071_v38 = vmul.f32 %v744_v45, %v1725_v13  ;;  %v385_v36 = vpop.f32.mrf.mxu0  ;;  %v425_v45 = vpop.f32.mrf.mxu2 }
  0xe7   : > { %v2048_v5 = vmul.f32 %v864_v60, %v1847_v39  ;;  %vm752_vm6 = vweird.f32 %v1502_v50  ;;  %v758_v47 = vor.u32 1.1754944e-38, %v757_v41  ;;  %v979_v8 = vsel %vm2054_vm5, %v1978_v14, %v2030_v55 }
  0xe8   : > { %v630_v63 = vadd.f32 %v1500_v42, %v629_v1  ;;  %v749_v13 = vmul.f32 %v1502_v50, %v748_v2  ;;  %vm871_vm7 = vweird.f32 %v2005_v40  ;;  %v878_v39 = vor.u32 1.1754944e-38, %v877_v59  ;;  %vm753_vm11 = vmor %vm751_vm2, %vm752_vm6 }
  0xe9   : > { %v1504_v9 = vpop.eup %1503  ;;  %vm2063_vm8 = vcmp.eq.f32.partialorder %v980_v24, 8.507059e+37  ;;  %v995_v53 = vand.u32 2147483647, %v2023_v12  ;;  %v457_v58 = vsub.f32 0.0, %v2039_v35  ;;  %v465_v11 = vsub.f32 0.0, %v2042_v62 }
  0xea   : > { %v2074_v14 = vadd.f32 %v1662_v22, %v423_v37  ;;  %v634_v15 = vsel %vm633_vm9, %v1500_v42, %v630_v63  ;;  %v750_v18 = vadd.f32 %v1502_v50, %v749_v13  ;;  %v867_v25 = vmul.f32 %v1504_v9, %v2005_v40 }
  0xeb   : > { %vm2077_vm10 = vcmp.eq.f32.partialorder %v875_v4, 8.507059e+37  ;;  %v997_v61 = vand.u32 2147483648, %v2023_v12  ;;  %v639_v23 = vsel %vm2018_vm1, %v638_v54, %v634_v15  ;;  %vm872_vm12 = vweird.f32 %v1504_v9 }
  0xec   : > { %v493_v24 = vmul.f32 1.442695, %v457_v58  ;;  %v509_v27 = vmul.f32 1.442695, %v465_v11  ;;  %v1506_v29 = vpop.eup %1505  ;;  %v1064_v52 = vmul.f32 %v639_v23, %v1871_v51  ;;  %v754_v30 = vsel %vm753_vm11, %v1502_v50, %v750_v18  ;;  %vm873_vm14 = vmor %vm871_vm7, %vm872_vm12 }
  0xed   : > { %v868_v19 = vsub.f32 1.0, %v867_v25  ;;  %v473_v26 = vsub.f32 0.0, %v2074_v14  ;;  %v759_v42 = vsel %vm2033_vm3, %v758_v47, %v754_v30  ;;  %v987_v44 = vmul.f32 %v1506_v29, %v2023_v12  ;;  %v445_v47 = vpop.f32.mrf.mxu3 }
  0xee   : > { %vm992_vm13 = vweird.f32 %v1506_v29  ;;  %1507 = vpow2.f32 %v493_v24  ;;  %v1338_v34 = vpack.c.bf16 %v1064_v52, %v2008_v43  ;;  %v1072_v16 = vmul.f32 %v759_v42, %v1900_v33  ;;  %v388_v30 = vpop.f32.mrf.mxu0 }
  0xef   : > { %v869_v51 = vmul.f32 %v1504_v9, %v868_v19  ;;  %1509 = vpow2.f32 %v509_v27  ;;  %v988_v21 = vsub.f32 1.0, %v987_v44  ;;  %v525_v46 = vmul.f32 1.442695, %v473_v26 }
  0xf0   : > { %v2095_v48 = vadd.f32 %v1662_v22, %v443_v57  ;;  %v2098_v50 = vadd.f32 %v1662_v22, %v385_v36  ;;  %1410 = vst [vmem:[%s1881_s29 + $0x8] sm:$0xff] %v1338_v34   ;;  %v1358_v17 = vpack.c.bf16 %v1072_v16, %v1071_v38  ;;  %v2102_v41 = vadd.f32 %v1662_v22, %v405_v3  ;;  %v408_v3 = vpop.f32.mrf.mxu1 }
  0xf1   : > { %v870_v54 = vadd.f32 %v1504_v9, %v869_v51  ;;  %v2105_v43 = vadd.f32 %v1662_v22, %v425_v45  ;;  %v989_v33 = vmul.f32 %v1506_v29, %v988_v21  ;;  %1511 = vpow2.f32 %v525_v46 }
  0xf2   : > { %v481_v37 = vsub.f32 0.0, %v2095_v48  ;;  %v458_v60 = vsub.f32 0.0, %v2098_v50  ;;  %v984_v55 = vsel %vm2063_vm8, %v2002_v31, %v979_v8  ;;  %1414 = vst [vmem:[%s1881_s29 + $0x28] sm:$0xff] %v1358_v17   ;;  %vm991_vm15 = vweird.f32 %v2023_v12 }
  0xf3   : > { %v874_v49 = vsel %vm873_vm14, %v1504_v9, %v870_v54  ;;  %vm2117_vm0 = vcmp.eq.f32.partialorder %v995_v53, 8.507059e+37  ;;  %v990_v59 = vadd.f32 %v1506_v29, %v989_v33  ;;  %v466_v2 = vsub.f32 0.0, %v2102_v41  ;;  %vm993_vm1 = vmor %vm991_vm15, %vm992_vm13 }
  0xf4   : > { %v1508_v40 = vpop.eup %1507  ;;  %v879_v0 = vsel %vm2077_vm10, %v878_v39, %v874_v49  ;;  %v541_v1 = vmul.f32 1.442695, %v481_v37  ;;  %v998_v31 = vor.u32 1.1754944e-38, %v997_v61  ;;  %v474_v12 = vsub.f32 0.0, %v2105_v43 }
  0xf5   : > { %v1510_v4 = vpop.eup %1509  ;;  %v1080_v38 = vmul.f32 %v879_v0, %v1903_v7  ;;  %v2126_v6 = vadd.f32 1.0, %v1508_v40  ;;  %v994_v8 = vsel %vm993_vm1, %v1506_v29, %v990_v59  ;;  %v495_v13 = vmul.f32 1.442695, %v458_v60 }
  0xf6   : > { %v2129_v63 = vadd.f32 1.0, %v1510_v4  ;;  %1513 = vpow2.f32 %v541_v1  ;;  %v1087_v39 = vmul.f32 %v984_v55, %v1859_v32  ;;  %v999_v7 = vsel %vm2117_vm0, %v998_v31, %v994_v8 }
  0xf7   : > { %v1378_v9 = vpack.c.bf16 %v1080_v38, %v2048_v5  ;;  %1515 = vrcp.f32 %v2126_v6  ;;  %v1512_v10 = vpop.eup %1511  ;;  %v1088_v53 = vmul.f32 %v999_v7, %v1916_v28  ;;  %v511_v58 = vmul.f32 1.442695, %v466_v2 }
  0xf8   : > { %1517 = vrcp.f32 %v2129_v63  ;;  %v2139_v11 = vadd.f32 %v1662_v22, %v445_v47  ;;  %v2142_v15 = vadd.f32 1.0, %v1512_v10  ;;  %v527_v5 = vmul.f32 1.442695, %v474_v12 }
  0xf9   : > { %1418 = vst [vmem:[%s1881_s29 + $0x48] sm:$0xff] %v1378_v9   ;;  %v1398_v32 = vpack.c.bf16 %v1088_v53, %v1087_v39  ;;  %1519 = vpow2.f32 %v495_v13  ;;  %v652_v25 = vand.u32 2147483648, %v2126_v6  ;;  %v772_v61 = vand.u32 2147483648, %v2129_v63 }
  0xfa   : > { %1521 = vrcp.f32 %v2142_v15  ;;  %v482_v28 = vsub.f32 0.0, %v2139_v11  ;;  %vm646_vm2 = vweird.f32 %v2126_v6  ;;  %v650_v27 = vand.u32 2147483647, %v2126_v6 }
  0xfb   : > { %1422 = vst [vmem:[%s1881_s29 + $0x68] sm:$0xff] %v1398_v32   ;;  %1523 = vpow2.f32 %v511_v58  ;;  %vm766_vm3 = vweird.f32 %v2129_v63  ;;  %v770_v52 = vand.u32 2147483647, %v2129_v63  ;;  %v653_v36 = vor.u32 1.1754944e-38, %v652_v25 }
  0xfc   : > { %v1514_v18 = vpop.eup %1513  ;;  %1525 = vpow2.f32 %v527_v5  ;;  %v890_v42 = vand.u32 2147483647, %v2142_v15  ;;  %v543_v44 = vmul.f32 1.442695, %v482_v28  ;;  %v773_v16 = vor.u32 1.1754944e-38, %v772_v61 }
  0xfd   : > { %v2148_v20 = vpop.eup %1515  ;;  %v2151_v57 = vadd.f32 1.0, %v1514_v18  ;;  %vm886_vm4 = vweird.f32 %v2142_v15  ;;  %vm2169_vm5 = vcmp.eq.f32.partialorder %v650_v27, 8.507059e+37  ;;  %v892_v33 = vand.u32 2147483648, %v2142_v15 }
  0xfe   : > { %v2153_v23 = vpop.eup %1517  ;;  %v642_v24 = vmul.f32 %v2148_v20, %v2126_v6  ;;  %v2176_v37 = vadd.f32 %v1662_v22, %v388_v30  ;;  %vm647_vm6 = vweird.f32 %v2148_v20  ;;  %vm2180_vm7 = vcmp.eq.f32.partialorder %v770_v52, 8.507059e+37  ;;  %v410_v52 = vpop.f32.mrf.mxu1 }
  0xff   : > { %v762_v29 = vmul.f32 %v2153_v23, %v2129_v63  ;;  %1527 = vrcp.f32 %v2151_v57  ;;  %v1520_v19 = vpop.eup %1519  ;;  %v2186_v49 = vadd.f32 %v1662_v22, %v408_v3  ;;  %vm2189_vm8 = vcmp.eq.f32.partialorder %v890_v42, 8.507059e+37  ;;  %vm2207_vm11 = vmor %vm646_vm2, %vm647_vm6 }
 0x100   : > { %v643_v26 = vsub.f32 1.0, %v642_v24  ;;  %v1522_v45 = vpop.eup %1521  ;;  %v2166_v51 = vadd.f32 1.0, %v1520_v19  ;;  %vm767_vm9 = vweird.f32 %v2153_v23  ;;  %v1012_v4 = vand.u32 2147483648, %v2151_v57 }
 0x101   : > { %v763_v34 = vsub.f32 1.0, %v762_v29  ;;  %v1524_v21 = vpop.eup %1523  ;;  %v882_v54 = vmul.f32 %v1522_v45, %v2142_v15  ;;  %vm887_vm10 = vweird.f32 %v1522_v45  ;;  %v459_v12 = vsub.f32 0.0, %v2176_v37  ;;  %vm2220_vm12 = vmor %vm766_vm3, %vm767_vm9 }
 0x102   : > { %v644_v46 = vmul.f32 %v2148_v20, %v643_v26  ;;  %1529 = vrcp.f32 %v2166_v51  ;;  %v1526_v56 = vpop.eup %1525  ;;  %v2198_v38 = vadd.f32 1.0, %v1524_v21  ;;  %v893_v8 = vor.u32 1.1754944e-38, %v892_v33  ;;  %vm2231_vm13 = vmor %vm886_vm4, %vm887_vm10  ;;  %v428_v33 = vpop.f32.mrf.mxu2 }
 0x103   : > { %v764_v60 = vmul.f32 %v2153_v23, %v763_v34  ;;  %v883_v0 = vsub.f32 1.0, %v882_v54  ;;  %1531 = vpow2.f32 %v543_v44  ;;  %v1010_v13 = vand.u32 2147483647, %v2151_v57 }
 0x104   : > { %v645_v40 = vadd.f32 %v2148_v20, %v644_v46  ;;  %v2212_v39 = vadd.f32 1.0, %v1526_v56  ;;  %v467_v9 = vsub.f32 0.0, %v2186_v49  ;;  %v665_v58 = vand.u32 2147483647, %v2166_v51 }
 0x105   : > { %v2193_v1 = vpop.eup %1527  ;;  %v765_v2 = vadd.f32 %v2153_v23, %v764_v60  ;;  %v884_v22 = vmul.f32 %v1522_v45, %v883_v0  ;;  %vm1006_vm14 = vweird.f32 %v2151_v57  ;;  %v2236_v63 = vor.u32 1.1754944e-38, %v1012_v4  ;;  %v2306_v4 = vld [vmem:[%s2540_s2] ss:$0 sm:$0xff] }
 0x106   : > { %v1002_v31 = vmul.f32 %v2193_v1, %v2151_v57  ;;  %v649_v7 = vsel %vm2207_vm11, %v2148_v20, %v645_v40  ;;  %v667_v25 = vand.u32 2147483648, %v2166_v51  ;;  %1533 = vrcp.f32 %v2198_v38 }
 0x107   : > { %v885_v6 = vadd.f32 %v1522_v45, %v884_v22  ;;  %v769_v5 = vsel %vm2220_vm12, %v2153_v23, %v765_v2  ;;  %vm661_vm15 = vweird.f32 %v2166_v51  ;;  %v497_v15 = vmul.f32 1.442695, %v459_v12 }
 0x108   : > { %v1003_v53 = vsub.f32 1.0, %v1002_v31  ;;  %v1530_v32 = vpop.eup %1529  ;;  %v654_v23 = vsel %vm2169_vm5, %v653_v36, %v649_v7  ;;  %vm1007_vm0 = vweird.f32 %v2193_v1  ;;  %1535 = vrcp.f32 %v2212_v39 }
 0x109   : > { %v1532_v28 = vpop.eup %1531  ;;  %v889_v20 = vsel %vm2231_vm13, %v1522_v45, %v885_v6  ;;  %v657_v61 = vmul.f32 %v1530_v32, %v2166_v51  ;;  %v774_v27 = vsel %vm2180_vm7, %v773_v16, %v769_v5  ;;  %vm2251_vm1 = vcmp.eq.f32.partialorder %v665_v58, 8.507059e+37  ;;  %vm2287_vm7 = vmor %vm1006_vm14, %vm1007_vm0 }
 0x10a   : > { %v1004_v24 = vmul.f32 %v2193_v1, %v1003_v53  ;;  %v785_v30 = vand.u32 2147483647, %v2198_v38  ;;  %v894_v19 = vsel %vm2189_vm8, %v893_v8, %v889_v20  ;;  %vm662_vm2 = vweird.f32 %v1530_v32 }
 0x10b   : > { %v658_v29 = vsub.f32 1.0, %v657_v61  ;;  %v668_v26 = vor.u32 1.1754944e-38, %v667_v25  ;;  %v2258_v36 = vadd.f32 1.0, %v1532_v28  ;;  %v787_v44 = vand.u32 2147483648, %v2198_v38  ;;  %vm663_vm5 = vmor %vm661_vm15, %vm662_vm2 }
 0x10c   : > { %1537 = vpow2.f32 %v497_v15  ;;  %v513_v3 = vmul.f32 1.442695, %v467_v9  ;;  %v1534_v45 = vpop.eup %1533  ;;  %v1065_v34 = vmul.f32 %v654_v23, %v2039_v35  ;;  %v2263_v16 = vmul.f32 %v774_v27, %v2042_v62 }
 0x10d   : > { %v659_v42 = vmul.f32 %v1530_v32, %v658_v29  ;;  %v2266_v21 = vadd.f32 %v2193_v1, %v1004_v24  ;;  %1539 = vrcp.f32 %v2258_v36  ;;  %v777_v17 = vmul.f32 %v1534_v45, %v2198_v38 }
 0x10e   : > { %vm781_vm3 = vweird.f32 %v2198_v38  ;;  %vm2271_vm4 = vcmp.eq.f32.partialorder %v785_v30, 8.507059e+37  ;;  %v1536_v60 = vpop.eup %1535  ;;  %v2276_v35 = vmul.f32 %v894_v19, %v2074_v14  ;;  %vm901_vm6 = vweird.f32 %v2212_v39 }
 0x10f   : > { %v660_v46 = vadd.f32 %v1530_v32, %v659_v42  ;;  %v905_v62 = vand.u32 2147483647, %v2212_v39  ;;  %1541 = vpow2.f32 %v513_v3  ;;  %vm2291_vm8 = vcmp.eq.f32.partialorder %v1010_v13, 8.507059e+37 }
 0x110   : > { %v778_v51 = vsub.f32 1.0, %v777_v17  ;;  %v788_v40 = vor.u32 1.1754944e-38, %v787_v44  ;;  %v897_v0 = vmul.f32 %v1536_v60, %v2212_v39  ;;  %v1009_v59 = vsel %vm2287_vm7, %v2193_v1, %v2266_v21  ;;  %v448_v1 = vpop.f32.mrf.mxu3 }
 0x111   : > { %v664_v56 = vsel %vm663_vm5, %v1530_v32, %v660_v46  ;;  %v907_v2 = vand.u32 2147483648, %v2212_v39  ;;  %v2309_v22 = vadd.f32 %v2306_v4, %v428_v33  ;;  %vm782_vm9 = vweird.f32 %v1534_v45  ;;  %v390_v32 = vpop.f32.mrf.mxu0  ;;  %v430_v46 = vpop.f32.mrf.mxu2 }
 0x112   : > { %v669_v57 = vsel %vm2251_vm1, %v668_v26, %v664_v56  ;;  %v1538_v31 = vpop.eup %1537  ;;  %v779_v47 = vmul.f32 %v1534_v45, %v778_v51  ;;  %v898_v8 = vsub.f32 1.0, %v897_v0  ;;  %vm902_vm10 = vweird.f32 %v1536_v60  ;;  %vm783_vm12 = vmor %vm781_vm3, %vm782_vm9 }
 0x113   : > { %v1066_v12 = vmul.f32 %v669_v57, %v2098_v50  ;;  %v1540_v13 = vpop.eup %1539  ;;  %vm2312_vm11 = vcmp.eq.f32.partialorder %v905_v62, 8.507059e+37  ;;  %v2316_v7 = vadd.f32 1.0, %v1538_v31  ;;  %v475_v10 = vsub.f32 0.0, %v2309_v22  ;;  %vm903_vm13 = vmor %vm901_vm6, %vm902_vm10 }
 0x114   : > { %v780_v53 = vadd.f32 %v1534_v45, %v779_v47  ;;  %v899_v58 = vmul.f32 %v1536_v60, %v898_v8  ;;  %v1017_v50 = vmul.f32 %v1540_v13, %v2258_v36  ;;  %v908_v18 = vor.u32 1.1754944e-38, %v907_v2 }
 0x115   : > { %v1343_v6 = vpack.c.bf16 %v1066_v12, %v1065_v34  ;;  %v1542_v5 = vpop.eup %1541  ;;  %v1025_v25 = vand.u32 2147483647, %v2258_v36  ;;  %v1027_v28 = vand.u32 2147483648, %v2258_v36  ;;  %1543 = vrcp.f32 %v2316_v7 }
 0x116   : > { %v784_v20 = vsel %vm783_vm12, %v1534_v45, %v780_v53  ;;  %v900_v61 = vadd.f32 %v1536_v60, %v899_v58  ;;  %v1018_v15 = vsub.f32 1.0, %v1017_v50  ;;  %v2327_v23 = vadd.f32 %v2306_v4, %v448_v1 }
 0x117   : > { %1411 = vst [vmem:[%s1881_s29 + $0x10] sm:$0xff] %v1343_v6   ;;  %v789_v24 = vsel %vm2271_vm4, %v788_v40, %v784_v20  ;;  %v2334_v38 = vadd.f32 1.0, %v1542_v5  ;;  %v529_v27 = vmul.f32 1.442695, %v475_v10  ;;  %v2337_v29 = vadd.f32 %v2306_v4, %v390_v32 }
 0x118   : > { %v1074_v30 = vmul.f32 %v789_v24, %v2102_v41  ;;  %v904_v19 = vsel %vm903_vm13, %v1536_v60, %v900_v61  ;;  %v1019_v26 = vmul.f32 %v1540_v13, %v1018_v15  ;;  %vm1022_vm14 = vweird.f32 %v1540_v13  ;;  %v450_v54 = vpop.f32.mrf.mxu3 }
 0x119   : > { %v1014_v42 = vsel %vm2291_vm8, %v2236_v63, %v1009_v59  ;;  %v909_v39 = vsel %vm2312_vm11, %v908_v18, %v904_v19  ;;  %vm1021_vm15 = vweird.f32 %v2258_v36  ;;  %1545 = vrcp.f32 %v2334_v38 }
 0x11a   : > { %v1363_v44 = vpack.c.bf16 %v1074_v30, %v2263_v16  ;;  %v1082_v3 = vmul.f32 %v909_v39, %v2105_v43  ;;  %v1020_v41 = vadd.f32 %v1540_v13, %v1019_v26  ;;  %v2350_v45 = vadd.f32 %v2306_v4, %v410_v52  ;;  %vm1023_vm0 = vmor %vm1021_vm15, %vm1022_vm14 }
 0x11b   : > { %v2352_v34 = vpop.eup %1543  ;;  %v1028_v63 = vor.u32 1.1754944e-38, %v1027_v28  ;;  %1547 = vpow2.f32 %v529_v27  ;;  %v483_v21 = vsub.f32 0.0, %v2327_v23  ;;  %v460_v36 = vsub.f32 0.0, %v2337_v29 }
 0x11c   : > { %1415 = vst [vmem:[%s1881_s29 + $0x30] sm:$0xff] %v1363_v44   ;;  %v1383_v16 = vpack.c.bf16 %v1082_v3, %v2276_v35  ;;  %v1024_v17 = vsel %vm1023_vm0, %v1540_v13, %v1020_v41  ;;  %vm1026_vm1 = vcmp.eq.f32.partialorder %v1025_v25, 8.507059e+37  ;;  %v672_v43 = vmul.f32 %v2352_v34, %v2316_v7 }
 0x11d   : > { %v1089_v33 = vmul.f32 %v1014_v42, %v2095_v48  ;;  %v1029_v60 = vsel %vm1026_vm1, %v1028_v63, %v1024_v17  ;;  %v545_v62 = vmul.f32 1.442695, %v483_v21  ;;  %v499_v55 = vmul.f32 1.442695, %v460_v36 }
 0x11e   : > { %1419 = vst [vmem:[%s1881_s29 + $0x50] sm:$0xff] %v1383_v16   ;;  %v1090_v14 = vmul.f32 %v1029_v60, %v2139_v11  ;;  %v673_v56 = vsub.f32 1.0, %v672_v43  ;;  %v468_v51 = vsub.f32 0.0, %v2350_v45  ;;  %v2365_v35 = vadd.f32 %v2306_v4, %v430_v46 }
 0x11f   : > { %v2367_v40 = vpop.eup %1545  ;;  %1549 = vpow2.f32 %v545_v62  ;;  %v2370_v0 = vadd.f32 %v2306_v4, %v450_v54  ;;  %vm676_vm2 = vweird.f32 %v2316_v7  ;;  %vm677_vm3 = vweird.f32 %v2352_v34 }
 0x120   : > { %v1403_v48 = vpack.c.bf16 %v1090_v14, %v1089_v33  ;;  %v674_v59 = vmul.f32 %v2352_v34, %v673_v56  ;;  %v792_v57 = vmul.f32 %v2367_v40, %v2334_v38  ;;  %1551 = vpow2.f32 %v499_v55  ;;  %vm2391_vm4 = vmor %vm676_vm2, %vm677_vm3 }
 0x121   : > { %v1548_v2 = vpop.eup %1547  ;;  %v515_v11 = vmul.f32 1.442695, %v468_v51  ;;  %v476_v31 = vsub.f32 0.0, %v2365_v35  ;;  %v484_v12 = vsub.f32 0.0, %v2370_v0  ;;  %v682_v6 = vand.u32 2147483648, %v2316_v7 }
 0x122   : > { %1423 = vst [vmem:[%s1881_s29 + $0x70] sm:$0xff] %v1403_v48   ;;  %v793_v47 = vsub.f32 1.0, %v792_v57  ;;  %v2378_v8 = vadd.f32 1.0, %v1548_v2  ;;  %v675_v13 = vadd.f32 %v2352_v34, %v674_v59  ;;  %v680_v53 = vand.u32 2147483647, %v2316_v7 }
 0x123   : > { %1553 = vpow2.f32 %v515_v11  ;;  %v531_v4 = vmul.f32 1.442695, %v476_v31  ;;  %v547_v1 = vmul.f32 1.442695, %v484_v12  ;;  %vm796_vm5 = vweird.f32 %v2334_v38 }
 0x124   : > { %v794_v9 = vmul.f32 %v2367_v40, %v793_v47  ;;  %1555 = vrcp.f32 %v2378_v8  ;;  %v679_v5 = vsel %vm2391_vm4, %v2352_v34, %v675_v13  ;;  %vm797_vm6 = vweird.f32 %v2367_v40 }
 0x125   : > { %v1550_v10 = vpop.eup %1549  ;;  %1557 = vpow2.f32 %v531_v4  ;;  %v683_v28 = vor.u32 1.1754944e-38, %v682_v6  ;;  %v800_v7 = vand.u32 2147483647, %v2334_v38  ;;  %v802_v20 = vand.u32 2147483648, %v2334_v38  ;;  %vm2413_vm8 = vmor %vm796_vm5, %vm797_vm6 }
 0x126   : > { %v2387_v58 = vadd.f32 1.0, %v1550_v10  ;;  %1559 = vpow2.f32 %v547_v1  ;;  %v1552_v50 = vpop.eup %1551  ;;  %v795_v18 = vadd.f32 %v2367_v40, %v794_v9  ;;  %vm681_vm7 = vcmp.eq.f32.partialorder %v680_v53, 8.507059e+37 }
 0x127   : > { %v2404_v61 = vadd.f32 1.0, %v1552_v50  ;;  %v922_v24 = vand.u32 2147483648, %v2378_v8  ;;  %v684_v30 = vsel %vm681_vm7, %v683_v28, %v679_v5  ;;  %vm801_vm9 = vcmp.eq.f32.partialorder %v800_v7, 8.507059e+37 }
 0x128   : > { %1561 = vrcp.f32 %v2387_v58  ;;  %v799_v39 = vsel %vm2413_vm8, %v2367_v40, %v795_v18  ;;  %v803_v44 = vor.u32 1.1754944e-38, %v802_v20  ;;  %v920_v38 = vand.u32 2147483647, %v2378_v8 }
 0x129   : > { %v1554_v25 = vpop.eup %1553  ;;  %1563 = vrcp.f32 %v2404_v61  ;;  %v2428_v34 = vmul.f32 %v684_v30, %v2176_v37  ;;  %vm916_vm10 = vweird.f32 %v2378_v8  ;;  %v2431_v63 = vor.u32 1.1754944e-38, %v922_v24 }
 0x12a   : > { %v2406_v15 = vpop.eup %1555  ;;  %v2409_v27 = vadd.f32 1.0, %v1554_v25  ;;  %v804_v46 = vsel %vm801_vm9, %v803_v44, %v799_v39  ;;  %vm1036_vm11 = vweird.f32 %v2387_v58  ;;  %v1042_v17 = vand.u32 2147483648, %v2387_v58 }
 0x12b   : > { %v1558_v52 = vpop.eup %1557  ;;  %v912_v26 = vmul.f32 %v2406_v15, %v2378_v8  ;;  %v1040_v43 = vand.u32 2147483647, %v2387_v58  ;;  %v695_v37 = vand.u32 2147483647, %v2404_v61  ;;  %v697_v54 = vand.u32 2147483648, %v2404_v61 }
 0x12c   : > { %v1560_v42 = vpop.eup %1559  ;;  %1565 = vrcp.f32 %v2409_v27  ;;  %v2433_v21 = vadd.f32 1.0, %v1558_v52  ;;  %v815_v55 = vand.u32 2147483647, %v2409_v27  ;;  %v2449_v56 = vmul.f32 %v804_v46, %v2186_v49 }
 0x12d   : > { %v913_v3 = vsub.f32 1.0, %v912_v26  ;;  %v2435_v36 = vadd.f32 1.0, %v1560_v42  ;;  %vm917_vm12 = vweird.f32 %v2406_v15  ;;  %v817_v40 = vand.u32 2147483648, %v2409_v27 }
 0x12e   : > { %v2425_v41 = vpop.eup %1561  ;;  %1567 = vrcp.f32 %v2433_v21  ;;  %v1043_v59 = vor.u32 1.1754944e-38, %v1042_v17  ;;  %vm691_vm13 = vweird.f32 %v2404_v61  ;;  %vm2457_vm14 = vcmp.eq.f32.partialorder %v695_v37, 8.507059e+37  ;;  %vm2481_vm5 = vmor %vm916_vm10, %vm917_vm12 }
 0x12f   : > { %v1032_v16 = vmul.f32 %v2425_v41, %v2387_v58  ;;  %v1564_v33 = vpop.eup %1563  ;;  %v914_v60 = vmul.f32 %v2406_v15, %v913_v3  ;;  %1569 = vrcp.f32 %v2435_v36  ;;  %v698_v49 = vor.u32 1.1754944e-38, %v697_v54 }
 0x130   : > { %v687_v51 = vmul.f32 %v1564_v33, %v2404_v61  ;;  %vm811_vm15 = vweird.f32 %v2409_v27  ;;  %vm2463_vm0 = vcmp.eq.f32.partialorder %v920_v38, 8.507059e+37  ;;  %vm1037_vm1 = vweird.f32 %v2425_v41 }
 0x131   : > { %v1033_v62 = vsub.f32 1.0, %v1032_v16  ;;  %v915_v31 = vadd.f32 %v2406_v15, %v914_v60  ;;  %vm2468_vm2 = vcmp.eq.f32.partialorder %v815_v55, 8.507059e+37  ;;  %vm2473_vm3 = vcmp.eq.f32.partialorder %v1040_v43, 8.507059e+37  ;;  %vm2491_vm8 = vmor %vm1036_vm11, %vm1037_vm1 }
 0x132   : > { %v1566_v14 = vpop.eup %1565  ;;  %v688_v2 = vsub.f32 1.0, %v687_v51  ;;  %vm692_vm4 = vweird.f32 %v1564_v33  ;;  %v818_v6 = vor.u32 1.1754944e-38, %v817_v40  ;;  %vm931_vm7 = vweird.f32 %v2433_v21 }
 0x133   : > { %v1034_v48 = vmul.f32 %v2425_v41, %v1033_v62  ;;  %v807_v57 = vmul.f32 %v1566_v14, %v2409_v27  ;;  %vm812_vm6 = vweird.f32 %v1566_v14  ;;  %v935_v8 = vand.u32 2147483647, %v2433_v21  ;;  %vm693_vm9 = vmor %vm691_vm13, %vm692_vm4 }
 0x134   : > { %v1568_v1 = vpop.eup %1567  ;;  %v689_v10 = vmul.f32 %v1564_v33, %v688_v2  ;;  %v937_v28 = vand.u32 2147483648, %v2433_v21  ;;  %v919_v20 = vsel %vm2481_vm5, %v2406_v15, %v915_v31  ;;  %v1055_v52 = vand.u32 2147483647, %v2435_v36  ;;  %vm813_vm10 = vmor %vm811_vm15, %vm812_vm6 }
 0x135   : > { %v808_v47 = vsub.f32 1.0, %v807_v57  ;;  %v1035_v13 = vadd.f32 %v2425_v41, %v1034_v48  ;;  %v1570_v53 = vpop.eup %1569  ;;  %v927_v5 = vmul.f32 %v1568_v1, %v2433_v21  ;;  %v1057_v42 = vand.u32 2147483648, %v2435_v36 }
 0x136   : > { %v690_v25 = vadd.f32 %v1564_v33, %v689_v10  ;;  %v1047_v7 = vmul.f32 %v1570_v53, %v2435_v36  ;;  %vm932_vm11 = vweird.f32 %v1568_v1  ;;  %vm1052_vm12 = vweird.f32 %v1570_v53 }
 0x137   : > { %v809_v32 = vmul.f32 %v1566_v14, %v808_v47  ;;  %v928_v58 = vsub.f32 1.0, %v927_v5  ;;  %v1039_v30 = vsel %vm2491_vm8, %v2425_v41, %v1035_v13  ;;  %vm936_vm13 = vcmp.eq.f32.partialorder %v935_v8, 8.507059e+37 }
 0x138   : > { %v694_v19 = vsel %vm693_vm9, %v1564_v33, %v690_v25  ;;  %v1048_v26 = vsub.f32 1.0, %v1047_v7  ;;  %vm1051_vm15 = vweird.f32 %v2435_v36  ;;  %v924_v46 = vsel %vm2463_vm0, %v2431_v63, %v919_v20 }
 0x139   : > { %v810_v24 = vadd.f32 %v1566_v14, %v809_v32  ;;  %v699_v61 = vsel %vm2457_vm14, %v698_v49, %v694_v19  ;;  %v929_v39 = vmul.f32 %v1568_v1, %v928_v58  ;;  %vm933_vm14 = vmor %vm931_vm7, %vm932_vm11  ;;  %v1044_v43 = vsel %vm2473_vm3, %v1043_v59, %v1039_v30 }
 0x13a   : > { %v1068_v44 = vmul.f32 %v699_v61, %v2337_v29  ;;  %v1049_v38 = vmul.f32 %v1570_v53, %v1048_v26  ;;  %v938_v29 = vor.u32 1.1754944e-38, %v937_v28  ;;  %vm1053_vm1 = vmor %vm1051_vm15, %vm1052_vm12  ;;  %v1058_v36 = vor.u32 1.1754944e-38, %v1057_v42 }
 0x13b   : > { %v814_v15 = vsel %vm813_vm10, %v1566_v14, %v810_v24  ;;  %v930_v41 = vadd.f32 %v1568_v1, %v929_v39  ;;  %vm1056_vm0 = vcmp.eq.f32.partialorder %v1055_v52, 8.507059e+37  ;;  %v1091_v60 = vmul.f32 %v1044_v43, %v2327_v23 }
 0x13c   : > { %v819_v3 = vsel %vm2468_vm2, %v818_v6, %v814_v15  ;;  %v1348_v16 = vpack.c.bf16 %v1068_v44, %v2428_v34  ;;  %v1050_v17 = vadd.f32 %v1570_v53, %v1049_v38  ;;  %v1083_v34 = vmul.f32 %v924_v46, %v2309_v22 }
 0x13d   : > { %v1076_v27 = vmul.f32 %v819_v3, %v2350_v45  ;;  %v934_v37 = vsel %vm933_vm14, %v1568_v1, %v930_v41 }
 0x13e   : > { %1412 = vst [vmem:[%s1881_s29 + $0x18] sm:$0xff] %v1348_v16   ;;  %v939_v54 = vsel %vm936_vm13, %v938_v29, %v934_v37  ;;  %v1054_v63 = vsel %vm1053_vm1, %v1570_v53, %v1050_v17 }
 0x13f   : > { %v1368_v45 = vpack.c.bf16 %v1076_v27, %v2449_v56  ;;  %v1084_v21 = vmul.f32 %v939_v54, %v2365_v35  ;;  %v1059_v33 = vsel %vm1056_vm0, %v1058_v36, %v1054_v63 }
 0x140   : > { %v1092_v62 = vmul.f32 %v1059_v33, %v2370_v0 }
 0x141   : > { %1416 = vst [vmem:[%s1881_s29 + $0x38] sm:$0xff] %v1368_v45   ;;  %v1388_v55 = vpack.c.bf16 %v1084_v21, %v1083_v34 }
 0x142   : > { %v1408_v14 = vpack.c.bf16 %v1092_v62, %v1091_v60 }
 0x143   : > { %1420 = vst [vmem:[%s1881_s29 + $0x58] sm:$0xff] %v1388_v55  }
 0x144   : > { %1424 = vst [vmem:[%s1881_s29 + $0x78] sm:$0xff] %v1408_v14  }
 0x145 PF: > { %s13_s12 = sadd.s32 1, %s1578_s12  }
 0x146   : > { %p10_p4 = scmp.ge.s32.totalorder %s13_s12, 4  }
 0x148   :  { %12 = sbr.rel (!%p10_p4) target bundleno = 1 (0x1), region = 62 }

// kernel: proto_forward.5
= control target key start
LH: loop header
LB: loop body
LE: loop exit
PB: predicated region body
PF: predicated region fallthrough
CT: control target
= control target key end

     0   :  { %s1337_s12 = smov 0   ;;  %s1775_s0 = inlined_call_operand.vmem [shape: bf16[512,128], index: 0, kind: input, shape index: {}]   ;;  %s1776_s1 = inlined_call_operand.vmem [shape: bf16[128,512], index: 1, kind: input, shape index: {}]   ;;  %s1777_s2 = inlined_call_operand.vmem [shape: f32[1,512], index: 2, kind: input, shape index: {}]   ;;  %s1778_s3 = inlined_call_operand.vmem [shape: bf16[512,512], index: 3, kind: output, shape index: {}]  }
   0x1 LB: > { %s1048_s13 = sadd.s32 4294967295, %s1315_s12   ;;  %p1052_p0 = scmp.ge.s32.totalorder %s1315_s12, 1  ;;  %s1315_s12 = sphi %s1337_s12, %s13_s12  }
   0x2   : > { %p138_p1 = scmp.lt.s32.totalorder %s1315_s12, 3 }
   0x4   : > { %p139_p2 = pnand %p1052_p0, %p138_p1 }
   0x5   : > { %s1053_s22 = sshll.u32 (!%p139_p2), %s1048_s13, 5 }
   0x6   : > { %142 = sbr.rel (%p139_p2) target bundleno = 432 (0x1b0), region = 32  ;;  %p164_p3 = scmp.lt.s32.totalorder (!%p139_p2), %s1053_s22, 63 }
   0xb   : > { %v1236_v0 = vld [vmem:[%s1776_s1 + $0xe0] sm:$0xf]  ;;  %v1299_v1 = vld [vmem:[%s1776_s1 + $0xec] sm:$0xf0]  ;;  %v1297_v2 = vld [vmem:[%s1776_s1 + $0xe4] sm:$0xf] }
   0xc   : > { %v1237_v3 = vor.u32 %v1299_v1, %v1236_v0  ;;  %v1238_v4 = vld [vmem:[%s1776_s1 + $0xf0] sm:$0xf0]  ;;  %v1244_v5 = vld [vmem:[%s1776_s1 + $0xe8] sm:$0xf]  ;;  %v1300_v6 = vld [vmem:[%s1776_s1 + $0xf4] sm:$0xf0] }
   0xd   : > { %v1241_v7 = vor.u32 %v1297_v2, %v1238_v4  ;;  %v1245_v8 = vor.u32 %v1300_v6, %v1244_v5  ;;  %v1298_v9 = vld [vmem:[%s1776_s1 + $0xec] sm:$0xf]  ;;  %v1246_v10 = vld [vmem:[%s1776_s1 + $0xf8] sm:$0xf0]  ;;  %v1220_v11 = vld [vmem:[%s1776_s1 + $0xc0] sm:$0xf] }
   0xe   : > { %506 = vmatpush.bf16.msra.mxu0 %v1237_v3  ;;  %v1249_v12 = vor.u32 %v1298_v9, %v1246_v10  ;;  %v1295_v13 = vld [vmem:[%s1776_s1 + $0xcc] sm:$0xf0]  ;;  %v1293_v14 = vld [vmem:[%s1776_s1 + $0xc4] sm:$0xf]  ;;  %v1222_v15 = vld [vmem:[%s1776_s1 + $0xd0] sm:$0xf0] }
   0xf   : > { %595 = vmatpush.bf16.msra.mxu1 %v1241_v7  ;;  %684 = vmatpush.bf16.msra.mxu2 %v1245_v8  ;;  %v1221_v16 = vor.u32 %v1295_v13, %v1220_v11  ;;  %v1225_v17 = vor.u32 %v1293_v14, %v1222_v15  ;;  %v1228_v18 = vld [vmem:[%s1776_s1 + $0xc8] sm:$0xf]  ;;  %v1296_v19 = vld [vmem:[%s1776_s1 + $0xd4] sm:$0xf0]  ;;  %v1294_v20 = vld [vmem:[%s1776_s1 + $0xcc] sm:$0xf] }
  0x10   : > { %773 = vmatpush.bf16.msra.mxu3 %v1249_v12  ;;  %v1229_v21 = vor.u32 %v1296_v19, %v1228_v18  ;;  %v1230_v22 = vld [vmem:[%s1776_s1 + $0xd8] sm:$0xf0]  ;;  %v1204_v23 = vld [vmem:[%s1776_s1 + $0xa0] sm:$0xf]  ;;  %v1291_v24 = vld [vmem:[%s1776_s1 + $0xac] sm:$0xf0] }
  0x11   : > { %v1233_v25 = vor.u32 %v1294_v20, %v1230_v22  ;;  %v1289_v26 = vld [vmem:[%s1776_s1 + $0xa4] sm:$0xf]  ;;  %v1206_v27 = vld [vmem:[%s1776_s1 + $0xb0] sm:$0xf0]  ;;  %v1212_v28 = vld [vmem:[%s1776_s1 + $0xa8] sm:$0xf]  ;;  %v1205_v29 = vor.u32 %v1291_v24, %v1204_v23 }
  0x12   : > { %507 = vmatpush.bf16.msra.mxu0 %v1221_v16  ;;  %v1292_v30 = vld [vmem:[%s1776_s1 + $0xb4] sm:$0xf0]  ;;  %v1290_v31 = vld [vmem:[%s1776_s1 + $0xac] sm:$0xf]  ;;  %v1214_v32 = vld [vmem:[%s1776_s1 + $0xb8] sm:$0xf0]  ;;  %v1209_v33 = vor.u32 %v1289_v26, %v1206_v27 }
  0x13   : > { %596 = vmatpush.bf16.msra.mxu1 %v1225_v17  ;;  %685 = vmatpush.bf16.msra.mxu2 %v1229_v21  ;;  %v1213_v34 = vor.u32 %v1292_v30, %v1212_v28  ;;  %v1188_v35 = vld [vmem:[%s1776_s1 + $0x80] sm:$0xf]  ;;  %v1287_v36 = vld [vmem:[%s1776_s1 + $0x8c] sm:$0xf0]  ;;  %v1285_v37 = vld [vmem:[%s1776_s1 + $0x84] sm:$0xf]  ;;  %v1217_v38 = vor.u32 %v1290_v31, %v1214_v32 }
  0x14   : > { %774 = vmatpush.bf16.msra.mxu3 %v1233_v25  ;;  %v1190_v39 = vld [vmem:[%s1776_s1 + $0x90] sm:$0xf0]  ;;  %v1196_v40 = vld [vmem:[%s1776_s1 + $0x88] sm:$0xf]  ;;  %v1288_v41 = vld [vmem:[%s1776_s1 + $0x94] sm:$0xf0]  ;;  %v1189_v44 = vor.u32 %v1287_v36, %v1188_v35 }
  0x15   : > { %v1286_v42 = vld [vmem:[%s1776_s1 + $0x8c] sm:$0xf]  ;;  %v1198_v43 = vld [vmem:[%s1776_s1 + $0x98] sm:$0xf0]  ;;  %v1193_v45 = vor.u32 %v1285_v37, %v1190_v39  ;;  %v1197_v46 = vor.u32 %v1288_v41, %v1196_v40  ;;  %v1172_v47 = vld [vmem:[%s1776_s1 + $0x60] sm:$0xf] }
  0x16   : > { %508 = vmatpush.bf16.msra.mxu0 %v1205_v29  ;;  %v1283_v48 = vld [vmem:[%s1776_s1 + $0x6c] sm:$0xf0]  ;;  %v1281_v49 = vld [vmem:[%s1776_s1 + $0x64] sm:$0xf]  ;;  %v1201_v50 = vor.u32 %v1286_v42, %v1198_v43  ;;  %v1174_v51 = vld [vmem:[%s1776_s1 + $0x70] sm:$0xf0] }
  0x17   : > { %597 = vmatpush.bf16.msra.mxu1 %v1209_v33  ;;  %686 = vmatpush.bf16.msra.mxu2 %v1213_v34  ;;  %v1180_v52 = vld [vmem:[%s1776_s1 + $0x68] sm:$0xf]  ;;  %v1284_v53 = vld [vmem:[%s1776_s1 + $0x74] sm:$0xf0]  ;;  %v1282_v54 = vld [vmem:[%s1776_s1 + $0x6c] sm:$0xf]  ;;  %v1173_v56 = vor.u32 %v1283_v48, %v1172_v47  ;;  %v1177_v57 = vor.u32 %v1281_v49, %v1174_v51 }
  0x18   : > { %775 = vmatpush.bf16.msra.mxu3 %v1217_v38  ;;  %v1182_v55 = vld [vmem:[%s1776_s1 + $0x78] sm:$0xf0]  ;;  %v1181_v58 = vor.u32 %v1284_v53, %v1180_v52  ;;  %v1156_v59 = vld [vmem:[%s1776_s1 + $0x40] sm:$0xf]  ;;  %v1279_v60 = vld [vmem:[%s1776_s1 + $0x4c] sm:$0xf0] }
  0x19   : > { %v1277_v61 = vld [vmem:[%s1776_s1 + $0x44] sm:$0xf]  ;;  %v1185_v62 = vor.u32 %v1282_v54, %v1182_v55  ;;  %v1158_v63 = vld [vmem:[%s1776_s1 + $0x50] sm:$0xf0]  ;;  %v1164_v0 = vld [vmem:[%s1776_s1 + $0x48] sm:$0xf]  ;;  %v1157_v4 = vor.u32 %v1279_v60, %v1156_v59 }
  0x1a   : > { %509 = vmatpush.bf16.msra.mxu0 %v1189_v44  ;;  %v1280_v1 = vld [vmem:[%s1776_s1 + $0x54] sm:$0xf0]  ;;  %v1278_v2 = vld [vmem:[%s1776_s1 + $0x4c] sm:$0xf]  ;;  %v1166_v3 = vld [vmem:[%s1776_s1 + $0x58] sm:$0xf0]  ;;  %v1161_v6 = vor.u32 %v1277_v61, %v1158_v63 }
  0x1b   : > { %598 = vmatpush.bf16.msra.mxu1 %v1193_v45  ;;  %687 = vmatpush.bf16.msra.mxu2 %v1197_v46  ;;  %v1140_v5 = vld [vmem:[%s1776_s1 + $0x20] sm:$0xf]  ;;  %v1165_v7 = vor.u32 %v1280_v1, %v1164_v0  ;;  %v1275_v8 = vld [vmem:[%s1776_s1 + $0x2c] sm:$0xf0]  ;;  %v1273_v9 = vld [vmem:[%s1776_s1 + $0x24] sm:$0xf]  ;;  %v1169_v11 = vor.u32 %v1278_v2, %v1166_v3 }
  0x1c   : > { %776 = vmatpush.bf16.msra.mxu3 %v1201_v50  ;;  %v1142_v10 = vld [vmem:[%s1776_s1 + $0x30] sm:$0xf0]  ;;  %v1148_v12 = vld [vmem:[%s1776_s1 + $0x28] sm:$0xf]  ;;  %v1276_v13 = vld [vmem:[%s1776_s1 + $0x34] sm:$0xf0]  ;;  %v1141_v16 = vor.u32 %v1275_v8, %v1140_v5 }
  0x1d   : > { %v1274_v14 = vld [vmem:[%s1776_s1 + $0x2c] sm:$0xf]  ;;  %v1150_v15 = vld [vmem:[%s1776_s1 + $0x38] sm:$0xf0]  ;;  %v1124_v17 = vld [vmem:[%s1776_s1] sm:$0xf]  ;;  %v1145_v18 = vor.u32 %v1273_v9, %v1142_v10  ;;  %v1149_v19 = vor.u32 %v1276_v13, %v1148_v12 }
  0x1e   : > { %510 = vmatpush.bf16.msra.mxu0 %v1173_v56  ;;  %v1271_v20 = vld [vmem:[%s1776_s1 + $0xc] sm:$0xf0]  ;;  %v1269_v21 = vld [vmem:[%s1776_s1 + $0x4] sm:$0xf]  ;;  %s1780_s22 = smov (!%p164_p3, %s1053_s22), 63  ;;  %v1153_v22 = vor.u32 %v1274_v14, %v1150_v15 }
  0x1f   : > { %599 = vmatpush.bf16.msra.mxu1 %v1177_v57  ;;  %688 = vmatpush.bf16.msra.mxu2 %v1181_v58  ;;  %v1126_v23 = vld [vmem:[%s1776_s1 + $0x10] sm:$0xf0]  ;;  %v1132_v24 = vld [vmem:[%s1776_s1 + $0x8] sm:$0xf]  ;;  %v1272_v25 = vld [vmem:[%s1776_s1 + $0x14] sm:$0xf0]  ;;  %v1125_v28 = vor.u32 %v1271_v20, %v1124_v17 }
  0x20   : > { %777 = vmatpush.bf16.msra.mxu3 %v1185_v62  ;;  %v1270_v26 = vld [vmem:[%s1776_s1 + $0xc] sm:$0xf]  ;;  %v1134_v27 = vld [vmem:[%s1776_s1 + $0x18] sm:$0xf0]  ;;  %s1054_s17 = sshll.u32 %s1780_s22, 2  ;;  %v1129_v29 = vor.u32 %v1269_v21, %v1126_v23  ;;  %v1133_v30 = vor.u32 %v1272_v25, %v1132_v24  ;;  %s1252_s24 = sshll.u32 %s1780_s22, 4 }
  0x21   : > { %s1545_s20 = scalar_lea.vmem %s1775_s0, %s1054_s17  ;;  %v1137_v31 = vor.u32 %v1270_v26, %v1134_v27  ;;  %v240_v40 = vld [vmem:[%s1777_s2] sm:$0xf]  ;;  %s1569_s27 = scalar_lea.vmem %s1778_s3, %s1252_s24 }
  0x22   : > { %511 = vmatpush.bf16.msra.mxu0 %v1157_v4  ;;  %v1253_v32 = vld [vmem:[%s1545_s20] sm:$0xff]  ;;  %v1254_v33 = vld [vmem:[%s1545_s20 + $0x8] sm:$0xff]  ;;  %v1255_v34 = vld [vmem:[%s1545_s20 + $0x10] sm:$0xff]  ;;  %v1558_v41 = vperm.slane %v240_v40, 0  ;;  %v1560_v42 = vperm.slane %v240_v40, 1  ;;  %v1571_v49 = vperm.slane %v240_v40, 2 }
  0x23   : > { %600 = vmatpush.bf16.msra.mxu1 %v1161_v6  ;;  %689 = vmatpush.bf16.msra.mxu2 %v1165_v7  ;;  %v1256_v35 = vld [vmem:[%s1545_s20 + $0x18] sm:$0xff]  ;;  %v1257_v36 = vld [vmem:[%s1545_s20 + $0x20] sm:$0xff]  ;;  %v1258_v37 = vld [vmem:[%s1545_s20 + $0x28] sm:$0xff]  ;;  %v1573_v50 = vperm.slane %v240_v40, 3 }
  0x24   : > { %778 = vmatpush.bf16.msra.mxu3 %v1169_v11  ;;  %v1259_v38 = vld [vmem:[%s1545_s20 + $0x30] sm:$0xff]  ;;  %v1260_v39 = vld [vmem:[%s1545_s20 + $0x38] sm:$0xff]  ;;  %v1261_v43 = vld [vmem:[%s1545_s20 + $0x40] sm:$0xff] }
  0x25   : > { %v1262_v62 = vld [vmem:[%s1545_s20 + $0x48] sm:$0xff]  ;;  %v1264_v40 = vld [vmem:[%s1545_s20 + $0x58] sm:$0xff] }
  0x26   : > { %512 = vmatpush.bf16.msra.mxu0 %v1141_v16 }
  0x27   : > { %601 = vmatpush.bf16.msra.mxu1 %v1145_v18  ;;  %690 = vmatpush.bf16.msra.mxu2 %v1149_v19  ;;  %v1263_v19 = vld [vmem:[%s1545_s20 + $0x50] sm:$0xff] }
  0x28   : > { %779 = vmatpush.bf16.msra.mxu3 %v1153_v22 }
  0x2a   : > { %513 = vmatpush.bf16.msra.mxu0 %v1125_v28 }
  0x2b   : > { %602 = vmatpush.bf16.msra.mxu1 %v1129_v29  ;;  %691 = vmatpush.bf16.msra.mxu2 %v1133_v30 }
  0x2c   : > { %780 = vmatpush.bf16.msra.mxu3 %v1137_v31 }
  0x2d   : > { %514 = vmatmul.bf16.vlgmr.msra.gmra.mxu0 %v1253_v32 }
  0x2e   : > { %603 = vmatmul.bf16.vlgmr.msra.gmra.mxu1 %v1253_v32  ;;  %692 = vmatmul.bf16.vlgmr.msra.gmra.mxu2 %v1253_v32 }
  0x2f   : > { %781 = vmatmul.bf16.vlgmr.msra.gmra.mxu3 %v1253_v32 }
  0x3d   : > { %519 = vmatmul.bf16.gmra.mxu0 %v1254_v33 }
  0x3e   : > { %608 = vmatmul.bf16.gmra.mxu1 %v1254_v33  ;;  %697 = vmatmul.bf16.gmra.mxu2 %v1254_v33 }
  0x3f   : > { %786 = vmatmul.bf16.gmra.mxu3 %v1254_v33 }
  0x4d   : > { %524 = vmatmul.bf16.gmra.mxu0 %v1255_v34 }
  0x4e   : > { %613 = vmatmul.bf16.gmra.mxu1 %v1255_v34  ;;  %702 = vmatmul.bf16.gmra.mxu2 %v1255_v34 }
  0x4f   : > { %791 = vmatmul.bf16.gmra.mxu3 %v1255_v34 }
  0x5d   : > { %529 = vmatmul.bf16.gmra.mxu0 %v1256_v35 }
  0x5e   : > { %618 = vmatmul.bf16.gmra.mxu1 %v1256_v35  ;;  %707 = vmatmul.bf16.gmra.mxu2 %v1256_v35 }
  0x5f   : > { %796 = vmatmul.bf16.gmra.mxu3 %v1256_v35 }
  0x6d   : > { %534 = vmatmul.bf16.gmra.mxu0 %v1257_v36 }
  0x6e   : > { %623 = vmatmul.bf16.gmra.mxu1 %v1257_v36  ;;  %712 = vmatmul.bf16.gmra.mxu2 %v1257_v36 }
  0x6f   : > { %801 = vmatmul.bf16.gmra.mxu3 %v1257_v36 }
  0x7d   : > { %539 = vmatmul.bf16.gmra.mxu0 %v1258_v37 }
  0x7e   : > { %628 = vmatmul.bf16.gmra.mxu1 %v1258_v37  ;;  %717 = vmatmul.bf16.gmra.mxu2 %v1258_v37 }
  0x7f   : > { %806 = vmatmul.bf16.gmra.mxu3 %v1258_v37 }
  0x8d   : > { %544 = vmatmul.bf16.gmra.mxu0 %v1259_v38 }
  0x8e   : > { %633 = vmatmul.bf16.gmra.mxu1 %v1259_v38  ;;  %722 = vmatmul.bf16.gmra.mxu2 %v1259_v38 }
  0x8f   : > { %811 = vmatmul.bf16.gmra.mxu3 %v1259_v38 }
  0x9d   : > { %549 = vmatmul.bf16.gmra.mxu0 %v1260_v39 }
  0x9e   : > { %638 = vmatmul.bf16.gmra.mxu1 %v1260_v39  ;;  %727 = vmatmul.bf16.gmra.mxu2 %v1260_v39 }
  0x9f   : > { %816 = vmatmul.bf16.gmra.mxu3 %v1260_v39 }
  0xaa   : > { %v515_v44 = vpop.f32.mrf.mxu0 }
  0xab   : > { %v516_v45 = vadd.f32 %v515_v44, %v1558_v41  ;;  %v604_v46 = vpop.f32.mrf.mxu1 }
  0xac   : > { %v605_v47 = vadd.f32 %v604_v46, %v1560_v42 }
  0xad   : > { %554 = vmatmul.bf16.gmra.mxu0 %v1261_v43 }
  0xae   : > { %v862_v48 = vpack.c.bf16 %v605_v47, %v516_v45  ;;  %643 = vmatmul.bf16.gmra.mxu1 %v1261_v43  ;;  %732 = vmatmul.bf16.gmra.mxu2 %v1261_v43 }
  0xaf   : > { %821 = vmatmul.bf16.gmra.mxu3 %v1261_v43 }
  0xb0   : > { %926 = vst [vmem:[%s1569_s27] sm:$0xff] %v862_v48 }
  0xb1   : > { %v693_v51 = vpop.f32.mrf.mxu2 }
  0xb2   : > { %v694_v52 = vadd.f32 %v693_v51, %v1571_v49  ;;  %v782_v53 = vpop.f32.mrf.mxu3  ;;  %v517_v54 = vpop.f32.mrf.mxu0 }
  0xb3   : > { %v783_v55 = vadd.f32 %v782_v53, %v1573_v50  ;;  %v518_v56 = vadd.f32 %v517_v54, %v1558_v41  ;;  %v606_v57 = vpop.f32.mrf.mxu1 }
  0xb4   : > { %v607_v58 = vadd.f32 %v606_v57, %v1560_v42 }
  0xb5   : > { %v863_v59 = vpack.c.bf16 %v783_v55, %v694_v52 }
  0xb6   : > { %v864_v60 = vpack.c.bf16 %v607_v58, %v518_v56 }
  0xb7   : > { %927 = vst [vmem:[%s1569_s27 + $0x8] sm:$0xff] %v863_v59 }
  0xb8   : > { %928 = vst [vmem:[%s1569_s27 + $0x10] sm:$0xff] %v864_v60 }
  0xb9   : > { %v695_v61 = vpop.f32.mrf.mxu2 }
  0xba   : > { %v696_v63 = vadd.f32 %v695_v61, %v1571_v49  ;;  %v784_v0 = vpop.f32.mrf.mxu3  ;;  %v520_v1 = vpop.f32.mrf.mxu0 }
  0xbb   : > { %v785_v2 = vadd.f32 %v784_v0, %v1573_v50  ;;  %v521_v3 = vadd.f32 %v520_v1, %v1558_v41  ;;  %v609_v4 = vpop.f32.mrf.mxu1  ;;  %v1265_v1 = vld [vmem:[%s1545_s20 + $0x60] sm:$0xff] }
  0xbc   : > { %v610_v5 = vadd.f32 %v609_v4, %v1560_v42 }
  0xbd   : > { %v865_v6 = vpack.c.bf16 %v785_v2, %v696_v63  ;;  %559 = vmatmul.bf16.gmra.mxu0 %v1262_v62 }
  0xbe   : > { %v866_v7 = vpack.c.bf16 %v610_v5, %v521_v3  ;;  %648 = vmatmul.bf16.gmra.mxu1 %v1262_v62  ;;  %737 = vmatmul.bf16.gmra.mxu2 %v1262_v62 }
  0xbf   : > { %929 = vst [vmem:[%s1569_s27 + $0x18] sm:$0xff] %v865_v6  ;;  %826 = vmatmul.bf16.gmra.mxu3 %v1262_v62 }
  0xc0   : > { %930 = vst [vmem:[%s1569_s27 + $0x20] sm:$0xff] %v866_v7 }
  0xc1   : > { %v698_v8 = vpop.f32.mrf.mxu2 }
  0xc2   : > { %v699_v9 = vadd.f32 %v698_v8, %v1571_v49  ;;  %v787_v10 = vpop.f32.mrf.mxu3  ;;  %v522_v11 = vpop.f32.mrf.mxu0 }
  0xc3   : > { %v788_v12 = vadd.f32 %v787_v10, %v1573_v50  ;;  %v523_v13 = vadd.f32 %v522_v11, %v1558_v41  ;;  %v611_v14 = vpop.f32.mrf.mxu1 }
  0xc4   : > { %v612_v15 = vadd.f32 %v611_v14, %v1560_v42 }
  0xc5   : > { %v867_v16 = vpack.c.bf16 %v788_v12, %v699_v9 }
  0xc6   : > { %v868_v17 = vpack.c.bf16 %v612_v15, %v523_v13 }
  0xc7   : > { %931 = vst [vmem:[%s1569_s27 + $0x28] sm:$0xff] %v867_v16 }
  0xc8   : > { %932 = vst [vmem:[%s1569_s27 + $0x30] sm:$0xff] %v868_v17 }
  0xc9   : > { %v700_v18 = vpop.f32.mrf.mxu2 }
  0xca   : > { %v701_v20 = vadd.f32 %v700_v18, %v1571_v49  ;;  %v789_v21 = vpop.f32.mrf.mxu3  ;;  %v525_v22 = vpop.f32.mrf.mxu0 }
  0xcb   : > { %v790_v23 = vadd.f32 %v789_v21, %v1573_v50  ;;  %v526_v24 = vadd.f32 %v525_v22, %v1558_v41  ;;  %v614_v25 = vpop.f32.mrf.mxu1  ;;  %v1266_v22 = vld [vmem:[%s1545_s20 + $0x68] sm:$0xff] }
  0xcc   : > { %v615_v26 = vadd.f32 %v614_v25, %v1560_v42 }
  0xcd   : > { %v869_v27 = vpack.c.bf16 %v790_v23, %v701_v20  ;;  %564 = vmatmul.bf16.gmra.mxu0 %v1263_v19 }
  0xce   : > { %v870_v28 = vpack.c.bf16 %v615_v26, %v526_v24  ;;  %653 = vmatmul.bf16.gmra.mxu1 %v1263_v19  ;;  %742 = vmatmul.bf16.gmra.mxu2 %v1263_v19 }
  0xcf   : > { %933 = vst [vmem:[%s1569_s27 + $0x38] sm:$0xff] %v869_v27  ;;  %831 = vmatmul.bf16.gmra.mxu3 %v1263_v19 }
  0xd0   : > { %934 = vst [vmem:[%s1569_s27 + $0x40] sm:$0xff] %v870_v28 }
  0xd1   : > { %v703_v29 = vpop.f32.mrf.mxu2 }
  0xd2   : > { %v704_v30 = vadd.f32 %v703_v29, %v1571_v49  ;;  %v792_v31 = vpop.f32.mrf.mxu3  ;;  %v527_v32 = vpop.f32.mrf.mxu0 }
  0xd3   : > { %v793_v33 = vadd.f32 %v792_v31, %v1573_v50  ;;  %v528_v34 = vadd.f32 %v527_v32, %v1558_v41  ;;  %v616_v35 = vpop.f32.mrf.mxu1 }
  0xd4   : > { %v617_v36 = vadd.f32 %v616_v35, %v1560_v42 }
  0xd5   : > { %v871_v37 = vpack.c.bf16 %v793_v33, %v704_v30 }
  0xd6   : > { %v872_v38 = vpack.c.bf16 %v617_v36, %v528_v34 }
  0xd7   : > { %935 = vst [vmem:[%s1569_s27 + $0x48] sm:$0xff] %v871_v37 }
  0xd8   : > { %936 = vst [vmem:[%s1569_s27 + $0x50] sm:$0xff] %v872_v38 }
  0xd9   : > { %v705_v39 = vpop.f32.mrf.mxu2 }
  0xda   : > { %v706_v43 = vadd.f32 %v705_v39, %v1571_v49  ;;  %v794_v44 = vpop.f32.mrf.mxu3  ;;  %v530_v45 = vpop.f32.mrf.mxu0 }
  0xdb   : > { %v795_v46 = vadd.f32 %v794_v44, %v1573_v50  ;;  %v531_v47 = vadd.f32 %v530_v45, %v1558_v41  ;;  %v619_v48 = vpop.f32.mrf.mxu1  ;;  %v1267_v45 = vld [vmem:[%s1545_s20 + $0x70] sm:$0xff] }
  0xdc   : > { %v620_v51 = vadd.f32 %v619_v48, %v1560_v42 }
  0xdd   : > { %v873_v52 = vpack.c.bf16 %v795_v46, %v706_v43  ;;  %569 = vmatmul.bf16.gmra.mxu0 %v1264_v40 }
  0xde   : > { %v874_v53 = vpack.c.bf16 %v620_v51, %v531_v47  ;;  %658 = vmatmul.bf16.gmra.mxu1 %v1264_v40  ;;  %747 = vmatmul.bf16.gmra.mxu2 %v1264_v40 }
  0xdf   : > { %937 = vst [vmem:[%s1569_s27 + $0x58] sm:$0xff] %v873_v52  ;;  %836 = vmatmul.bf16.gmra.mxu3 %v1264_v40 }
  0xe0   : > { %938 = vst [vmem:[%s1569_s27 + $0x60] sm:$0xff] %v874_v53 }
  0xe1   : > { %v708_v54 = vpop.f32.mrf.mxu2 }
  0xe2   : > { %v709_v55 = vadd.f32 %v708_v54, %v1571_v49  ;;  %v797_v56 = vpop.f32.mrf.mxu3  ;;  %v532_v57 = vpop.f32.mrf.mxu0 }
  0xe3   : > { %v798_v58 = vadd.f32 %v797_v56, %v1573_v50  ;;  %v533_v59 = vadd.f32 %v532_v57, %v1558_v41  ;;  %v621_v60 = vpop.f32.mrf.mxu1 }
  0xe4   : > { %v622_v61 = vadd.f32 %v621_v60, %v1560_v42 }
  0xe5   : > { %v875_v62 = vpack.c.bf16 %v798_v58, %v709_v55 }
  0xe6   : > { %v876_v63 = vpack.c.bf16 %v622_v61, %v533_v59 }
  0xe7   : > { %939 = vst [vmem:[%s1569_s27 + $0x68] sm:$0xff] %v875_v62 }
  0xe8   : > { %940 = vst [vmem:[%s1569_s27 + $0x70] sm:$0xff] %v876_v63 }
  0xe9   : > { %v710_v0 = vpop.f32.mrf.mxu2 }
  0xea   : > { %v711_v2 = vadd.f32 %v710_v0, %v1571_v49  ;;  %v799_v3 = vpop.f32.mrf.mxu3  ;;  %v535_v4 = vpop.f32.mrf.mxu0 }
  0xeb   : > { %v800_v5 = vadd.f32 %v799_v3, %v1573_v50  ;;  %v536_v6 = vadd.f32 %v535_v4, %v1558_v41  ;;  %v624_v7 = vpop.f32.mrf.mxu1  ;;  %v1268_v4 = vld [vmem:[%s1545_s20 + $0x78] sm:$0xff] }
  0xec   : > { %v625_v8 = vadd.f32 %v624_v7, %v1560_v42 }
  0xed   : > { %v877_v9 = vpack.c.bf16 %v800_v5, %v711_v2  ;;  %574 = vmatmul.bf16.gmra.mxu0 %v1265_v1 }
  0xee   : > { %v878_v10 = vpack.c.bf16 %v625_v8, %v536_v6  ;;  %663 = vmatmul.bf16.gmra.mxu1 %v1265_v1  ;;  %752 = vmatmul.bf16.gmra.mxu2 %v1265_v1 }
  0xef   : > { %941 = vst [vmem:[%s1569_s27 + $0x78] sm:$0xff] %v877_v9  ;;  %841 = vmatmul.bf16.gmra.mxu3 %v1265_v1 }
  0xf0   : > { %942 = vst [vmem:[%s1569_s27 + $0x80] sm:$0xff] %v878_v10 }
  0xf1   : > { %v713_v11 = vpop.f32.mrf.mxu2 }
  0xf2   : > { %v714_v12 = vadd.f32 %v713_v11, %v1571_v49  ;;  %v802_v13 = vpop.f32.mrf.mxu3  ;;  %v537_v14 = vpop.f32.mrf.mxu0 }
  0xf3   : > { %v803_v15 = vadd.f32 %v802_v13, %v1573_v50  ;;  %v538_v16 = vadd.f32 %v537_v14, %v1558_v41  ;;  %v626_v17 = vpop.f32.mrf.mxu1 }
  0xf4   : > { %v627_v18 = vadd.f32 %v626_v17, %v1560_v42 }
  0xf5   : > { %v879_v19 = vpack.c.bf16 %v803_v15, %v714_v12 }
  0xf6   : > { %v880_v20 = vpack.c.bf16 %v627_v18, %v538_v16 }
  0xf7   : > { %943 = vst [vmem:[%s1569_s27 + $0x88] sm:$0xff] %v879_v19 }
  0xf8   : > { %944 = vst [vmem:[%s1569_s27 + $0x90] sm:$0xff] %v880_v20 }
  0xf9   : > { %v715_v21 = vpop.f32.mrf.mxu2 }
  0xfa   : > { %v716_v23 = vadd.f32 %v715_v21, %v1571_v49  ;;  %v804_v24 = vpop.f32.mrf.mxu3  ;;  %v540_v25 = vpop.f32.mrf.mxu0 }
  0xfb   : > { %v805_v26 = vadd.f32 %v804_v24, %v1573_v50  ;;  %v541_v27 = vadd.f32 %v540_v25, %v1558_v41  ;;  %v629_v28 = vpop.f32.mrf.mxu1 }
  0xfc   : > { %v630_v29 = vadd.f32 %v629_v28, %v1560_v42 }
  0xfd   : > { %v881_v30 = vpack.c.bf16 %v805_v26, %v716_v23  ;;  %579 = vmatmul.bf16.gmra.mxu0 %v1266_v22 }
  0xfe   : > { %v882_v31 = vpack.c.bf16 %v630_v29, %v541_v27  ;;  %668 = vmatmul.bf16.gmra.mxu1 %v1266_v22  ;;  %757 = vmatmul.bf16.gmra.mxu2 %v1266_v22 }
  0xff   : > { %945 = vst [vmem:[%s1569_s27 + $0x98] sm:$0xff] %v881_v30  ;;  %846 = vmatmul.bf16.gmra.mxu3 %v1266_v22 }
 0x100   : > { %946 = vst [vmem:[%s1569_s27 + $0xa0] sm:$0xff] %v882_v31 }
 0x101   : > { %v718_v32 = vpop.f32.mrf.mxu2 }
 0x102   : > { %v719_v33 = vadd.f32 %v718_v32, %v1571_v49  ;;  %v807_v34 = vpop.f32.mrf.mxu3  ;;  %v542_v35 = vpop.f32.mrf.mxu0 }
 0x103   : > { %v808_v36 = vadd.f32 %v807_v34, %v1573_v50  ;;  %v543_v37 = vadd.f32 %v542_v35, %v1558_v41  ;;  %v631_v38 = vpop.f32.mrf.mxu1 }
 0x104   : > { %v632_v39 = vadd.f32 %v631_v38, %v1560_v42 }
 0x105   : > { %v883_v40 = vpack.c.bf16 %v808_v36, %v719_v33 }
 0x106   : > { %v884_v43 = vpack.c.bf16 %v632_v39, %v543_v37 }
 0x107   : > { %947 = vst [vmem:[%s1569_s27 + $0xa8] sm:$0xff] %v883_v40 }
 0x108   : > { %948 = vst [vmem:[%s1569_s27 + $0xb0] sm:$0xff] %v884_v43 }
 0x109   : > { %v720_v44 = vpop.f32.mrf.mxu2 }
 0x10a   : > { %v721_v46 = vadd.f32 %v720_v44, %v1571_v49  ;;  %v809_v47 = vpop.f32.mrf.mxu3  ;;  %v545_v48 = vpop.f32.mrf.mxu0 }
 0x10b   : > { %v810_v51 = vadd.f32 %v809_v47, %v1573_v50  ;;  %v546_v52 = vadd.f32 %v545_v48, %v1558_v41  ;;  %v634_v53 = vpop.f32.mrf.mxu1 }
 0x10c   : > { %v635_v54 = vadd.f32 %v634_v53, %v1560_v42 }
 0x10d   : > { %v885_v55 = vpack.c.bf16 %v810_v51, %v721_v46  ;;  %584 = vmatmul.bf16.gmra.mxu0 %v1267_v45 }
 0x10e   : > { %v886_v56 = vpack.c.bf16 %v635_v54, %v546_v52  ;;  %673 = vmatmul.bf16.gmra.mxu1 %v1267_v45  ;;  %762 = vmatmul.bf16.gmra.mxu2 %v1267_v45 }
 0x10f   : > { %949 = vst [vmem:[%s1569_s27 + $0xb8] sm:$0xff] %v885_v55  ;;  %851 = vmatmul.bf16.gmra.mxu3 %v1267_v45 }
 0x110   : > { %950 = vst [vmem:[%s1569_s27 + $0xc0] sm:$0xff] %v886_v56 }
 0x111   : > { %v723_v57 = vpop.f32.mrf.mxu2 }
 0x112   : > { %v724_v58 = vadd.f32 %v723_v57, %v1571_v49  ;;  %v812_v59 = vpop.f32.mrf.mxu3  ;;  %v547_v60 = vpop.f32.mrf.mxu0 }
 0x113   : > { %v813_v61 = vadd.f32 %v812_v59, %v1573_v50  ;;  %v548_v62 = vadd.f32 %v547_v60, %v1558_v41  ;;  %v636_v63 = vpop.f32.mrf.mxu1 }
 0x114   : > { %v637_v0 = vadd.f32 %v636_v63, %v1560_v42 }
 0x115   : > { %v887_v1 = vpack.c.bf16 %v813_v61, %v724_v58 }
 0x116   : > { %v888_v2 = vpack.c.bf16 %v637_v0, %v548_v62 }
 0x117   : > { %951 = vst [vmem:[%s1569_s27 + $0xc8] sm:$0xff] %v887_v1 }
 0x118   : > { %952 = vst [vmem:[%s1569_s27 + $0xd0] sm:$0xff] %v888_v2 }
 0x119   : > { %v725_v3 = vpop.f32.mrf.mxu2 }
 0x11a   : > { %v726_v5 = vadd.f32 %v725_v3, %v1571_v49  ;;  %v814_v6 = vpop.f32.mrf.mxu3  ;;  %v550_v7 = vpop.f32.mrf.mxu0 }
 0x11b   : > { %v815_v8 = vadd.f32 %v814_v6, %v1573_v50  ;;  %v551_v9 = vadd.f32 %v550_v7, %v1558_v41  ;;  %v639_v10 = vpop.f32.mrf.mxu1 }
 0x11c   : > { %v640_v11 = vadd.f32 %v639_v10, %v1560_v42 }
 0x11d   : > { %v889_v12 = vpack.c.bf16 %v815_v8, %v726_v5  ;;  %589 = vmatmul.bf16.gmra.mxu0 %v1268_v4 }
 0x11e   : > { %v890_v13 = vpack.c.bf16 %v640_v11, %v551_v9  ;;  %678 = vmatmul.bf16.gmra.mxu1 %v1268_v4  ;;  %767 = vmatmul.bf16.gmra.mxu2 %v1268_v4 }
 0x11f   : > { %953 = vst [vmem:[%s1569_s27 + $0xd8] sm:$0xff] %v889_v12  ;;  %856 = vmatmul.bf16.gmra.mxu3 %v1268_v4 }
 0x120   : > { %954 = vst [vmem:[%s1569_s27 + $0xe0] sm:$0xff] %v890_v13 }
 0x121   : > { %v728_v14 = vpop.f32.mrf.mxu2 }
 0x122   : > { %v729_v15 = vadd.f32 %v728_v14, %v1571_v49  ;;  %v817_v16 = vpop.f32.mrf.mxu3  ;;  %v552_v17 = vpop.f32.mrf.mxu0 }
 0x123   : > { %v818_v18 = vadd.f32 %v817_v16, %v1573_v50  ;;  %v553_v19 = vadd.f32 %v552_v17, %v1558_v41  ;;  %v641_v20 = vpop.f32.mrf.mxu1 }
 0x124   : > { %v642_v21 = vadd.f32 %v641_v20, %v1560_v42 }
 0x125   : > { %v891_v22 = vpack.c.bf16 %v818_v18, %v729_v15 }
 0x126   : > { %v892_v23 = vpack.c.bf16 %v642_v21, %v553_v19 }
 0x127   : > { %955 = vst [vmem:[%s1569_s27 + $0xe8] sm:$0xff] %v891_v22 }
 0x128   : > { %956 = vst [vmem:[%s1569_s27 + $0xf0] sm:$0xff] %v892_v23 }
 0x129   : > { %v730_v24 = vpop.f32.mrf.mxu2 }
 0x12a   : > { %v731_v25 = vadd.f32 %v730_v24, %v1571_v49  ;;  %v819_v26 = vpop.f32.mrf.mxu3  ;;  %v555_v27 = vpop.f32.mrf.mxu0 }
 0x12b   : > { %v820_v28 = vadd.f32 %v819_v26, %v1573_v50  ;;  %v556_v29 = vadd.f32 %v555_v27, %v1558_v41  ;;  %v644_v30 = vpop.f32.mrf.mxu1 }
 0x12c   : > { %v645_v31 = vadd.f32 %v644_v30, %v1560_v42 }
 0x12d   : > { %v893_v32 = vpack.c.bf16 %v820_v28, %v731_v25 }
 0x12e   : > { %v894_v33 = vpack.c.bf16 %v645_v31, %v556_v29 }
 0x12f   : > { %957 = vst [vmem:[%s1569_s27 + $0xf8] sm:$0xff] %v893_v32 }
 0x130   : > { %958 = vst [vmem:[%s1569_s27 + $0x100] sm:$0xff] %v894_v33 }
 0x131   : > { %v733_v34 = vpop.f32.mrf.mxu2 }
 0x132   : > { %v734_v35 = vadd.f32 %v733_v34, %v1571_v49  ;;  %v822_v36 = vpop.f32.mrf.mxu3  ;;  %v557_v37 = vpop.f32.mrf.mxu0 }
 0x133   : > { %v823_v38 = vadd.f32 %v822_v36, %v1573_v50  ;;  %v558_v39 = vadd.f32 %v557_v37, %v1558_v41  ;;  %v646_v40 = vpop.f32.mrf.mxu1 }
 0x134   : > { %v647_v43 = vadd.f32 %v646_v40, %v1560_v42 }
 0x135   : > { %v895_v44 = vpack.c.bf16 %v823_v38, %v734_v35 }
 0x136   : > { %v896_v45 = vpack.c.bf16 %v647_v43, %v558_v39 }
 0x137   : > { %959 = vst [vmem:[%s1569_s27 + $0x108] sm:$0xff] %v895_v44 }
 0x138   : > { %960 = vst [vmem:[%s1569_s27 + $0x110] sm:$0xff] %v896_v45 }
 0x139   : > { %v735_v46 = vpop.f32.mrf.mxu2 }
 0x13a   : > { %v736_v47 = vadd.f32 %v735_v46, %v1571_v49  ;;  %v824_v48 = vpop.f32.mrf.mxu3  ;;  %v560_v51 = vpop.f32.mrf.mxu0 }
 0x13b   : > { %v825_v52 = vadd.f32 %v824_v48, %v1573_v50  ;;  %v561_v53 = vadd.f32 %v560_v51, %v1558_v41  ;;  %v649_v54 = vpop.f32.mrf.mxu1 }
 0x13c   : > { %v650_v55 = vadd.f32 %v649_v54, %v1560_v42 }
 0x13d   : > { %v897_v56 = vpack.c.bf16 %v825_v52, %v736_v47 }
 0x13e   : > { %v898_v57 = vpack.c.bf16 %v650_v55, %v561_v53 }
 0x13f   : > { %961 = vst [vmem:[%s1569_s27 + $0x118] sm:$0xff] %v897_v56 }
 0x140   : > { %962 = vst [vmem:[%s1569_s27 + $0x120] sm:$0xff] %v898_v57 }
 0x141   : > { %v738_v58 = vpop.f32.mrf.mxu2 }
 0x142   : > { %v739_v59 = vadd.f32 %v738_v58, %v1571_v49  ;;  %v827_v60 = vpop.f32.mrf.mxu3  ;;  %v562_v61 = vpop.f32.mrf.mxu0 }
 0x143   : > { %v828_v62 = vadd.f32 %v827_v60, %v1573_v50  ;;  %v563_v63 = vadd.f32 %v562_v61, %v1558_v41  ;;  %v651_v0 = vpop.f32.mrf.mxu1 }
 0x144   : > { %v652_v1 = vadd.f32 %v651_v0, %v1560_v42 }
 0x145   : > { %v899_v2 = vpack.c.bf16 %v828_v62, %v739_v59 }
 0x146   : > { %v900_v3 = vpack.c.bf16 %v652_v1, %v563_v63 }
 0x147   : > { %963 = vst [vmem:[%s1569_s27 + $0x128] sm:$0xff] %v899_v2 }
 0x148   : > { %964 = vst [vmem:[%s1569_s27 + $0x130] sm:$0xff] %v900_v3 }
 0x149   : > { %v740_v4 = vpop.f32.mrf.mxu2 }
 0x14a   : > { %v741_v5 = vadd.f32 %v740_v4, %v1571_v49  ;;  %v829_v6 = vpop.f32.mrf.mxu3  ;;  %v565_v7 = vpop.f32.mrf.mxu0 }
 0x14b   : > { %v830_v8 = vadd.f32 %v829_v6, %v1573_v50  ;;  %v566_v9 = vadd.f32 %v565_v7, %v1558_v41  ;;  %v654_v10 = vpop.f32.mrf.mxu1 }
 0x14c   : > { %v655_v11 = vadd.f32 %v654_v10, %v1560_v42 }
 0x14d   : > { %v901_v12 = vpack.c.bf16 %v830_v8, %v741_v5 }
 0x14e   : > { %v902_v13 = vpack.c.bf16 %v655_v11, %v566_v9 }
 0x14f   : > { %965 = vst [vmem:[%s1569_s27 + $0x138] sm:$0xff] %v901_v12 }
 0x150   : > { %966 = vst [vmem:[%s1569_s27 + $0x140] sm:$0xff] %v902_v13 }
 0x151   : > { %v743_v14 = vpop.f32.mrf.mxu2 }
 0x152   : > { %v744_v15 = vadd.f32 %v743_v14, %v1571_v49  ;;  %v832_v16 = vpop.f32.mrf.mxu3  ;;  %v567_v17 = vpop.f32.mrf.mxu0 }
 0x153   : > { %v833_v18 = vadd.f32 %v832_v16, %v1573_v50  ;;  %v568_v19 = vadd.f32 %v567_v17, %v1558_v41  ;;  %v656_v20 = vpop.f32.mrf.mxu1 }
 0x154   : > { %v657_v21 = vadd.f32 %v656_v20, %v1560_v42 }
 0x155   : > { %v903_v22 = vpack.c.bf16 %v833_v18, %v744_v15 }
 0x156   : > { %v904_v23 = vpack.c.bf16 %v657_v21, %v568_v19 }
 0x157   : > { %967 = vst [vmem:[%s1569_s27 + $0x148] sm:$0xff] %v903_v22 }
 0x158   : > { %968 = vst [vmem:[%s1569_s27 + $0x150] sm:$0xff] %v904_v23 }
 0x159   : > { %v745_v24 = vpop.f32.mrf.mxu2 }
 0x15a   : > { %v746_v25 = vadd.f32 %v745_v24, %v1571_v49  ;;  %v834_v26 = vpop.f32.mrf.mxu3  ;;  %v570_v27 = vpop.f32.mrf.mxu0 }
 0x15b   : > { %v835_v28 = vadd.f32 %v834_v26, %v1573_v50  ;;  %v571_v29 = vadd.f32 %v570_v27, %v1558_v41  ;;  %v659_v30 = vpop.f32.mrf.mxu1 }
 0x15c   : > { %v660_v31 = vadd.f32 %v659_v30, %v1560_v42 }
 0x15d   : > { %v905_v32 = vpack.c.bf16 %v835_v28, %v746_v25 }
 0x15e   : > { %v906_v33 = vpack.c.bf16 %v660_v31, %v571_v29 }
 0x15f   : > { %969 = vst [vmem:[%s1569_s27 + $0x158] sm:$0xff] %v905_v32 }
 0x160   : > { %970 = vst [vmem:[%s1569_s27 + $0x160] sm:$0xff] %v906_v33 }
 0x161   : > { %v748_v34 = vpop.f32.mrf.mxu2 }
 0x162   : > { %v749_v35 = vadd.f32 %v748_v34, %v1571_v49  ;;  %v837_v36 = vpop.f32.mrf.mxu3  ;;  %v572_v37 = vpop.f32.mrf.mxu0 }
 0x163   : > { %v838_v38 = vadd.f32 %v837_v36, %v1573_v50  ;;  %v573_v39 = vadd.f32 %v572_v37, %v1558_v41  ;;  %v661_v40 = vpop.f32.mrf.mxu1 }
 0x164   : > { %v662_v43 = vadd.f32 %v661_v40, %v1560_v42 }
 0x165   : > { %v907_v44 = vpack.c.bf16 %v838_v38, %v749_v35 }
 0x166   : > { %v908_v45 = vpack.c.bf16 %v662_v43, %v573_v39 }
 0x167   : > { %971 = vst [vmem:[%s1569_s27 + $0x168] sm:$0xff] %v907_v44 }
 0x168   : > { %972 = vst [vmem:[%s1569_s27 + $0x170] sm:$0xff] %v908_v45 }
 0x169   : > { %v750_v46 = vpop.f32.mrf.mxu2 }
 0x16a   : > { %v751_v47 = vadd.f32 %v750_v46, %v1571_v49  ;;  %v839_v48 = vpop.f32.mrf.mxu3  ;;  %v575_v51 = vpop.f32.mrf.mxu0 }
 0x16b   : > { %v840_v52 = vadd.f32 %v839_v48, %v1573_v50  ;;  %v576_v53 = vadd.f32 %v575_v51, %v1558_v41  ;;  %v664_v54 = vpop.f32.mrf.mxu1 }
 0x16c   : > { %v665_v55 = vadd.f32 %v664_v54, %v1560_v42 }
 0x16d   : > { %v909_v56 = vpack.c.bf16 %v840_v52, %v751_v47 }
 0x16e   : > { %v910_v57 = vpack.c.bf16 %v665_v55, %v576_v53 }
 0x16f   : > { %973 = vst [vmem:[%s1569_s27 + $0x178] sm:$0xff] %v909_v56 }
 0x170   : > { %974 = vst [vmem:[%s1569_s27 + $0x180] sm:$0xff] %v910_v57 }
 0x171   : > { %v753_v58 = vpop.f32.mrf.mxu2 }
 0x172   : > { %v754_v59 = vadd.f32 %v753_v58, %v1571_v49  ;;  %v842_v60 = vpop.f32.mrf.mxu3  ;;  %v577_v61 = vpop.f32.mrf.mxu0 }
 0x173   : > { %v843_v62 = vadd.f32 %v842_v60, %v1573_v50  ;;  %v578_v63 = vadd.f32 %v577_v61, %v1558_v41  ;;  %v666_v0 = vpop.f32.mrf.mxu1 }
 0x174   : > { %v667_v1 = vadd.f32 %v666_v0, %v1560_v42 }
 0x175   : > { %v911_v2 = vpack.c.bf16 %v843_v62, %v754_v59 }
 0x176   : > { %v912_v3 = vpack.c.bf16 %v667_v1, %v578_v63 }
 0x177   : > { %975 = vst [vmem:[%s1569_s27 + $0x188] sm:$0xff] %v911_v2 }
 0x178   : > { %976 = vst [vmem:[%s1569_s27 + $0x190] sm:$0xff] %v912_v3 }
 0x179   : > { %v755_v4 = vpop.f32.mrf.mxu2 }
 0x17a   : > { %v756_v5 = vadd.f32 %v755_v4, %v1571_v49  ;;  %v844_v6 = vpop.f32.mrf.mxu3  ;;  %v580_v7 = vpop.f32.mrf.mxu0 }
 0x17b   : > { %v845_v8 = vadd.f32 %v844_v6, %v1573_v50  ;;  %v581_v9 = vadd.f32 %v580_v7, %v1558_v41  ;;  %v669_v10 = vpop.f32.mrf.mxu1 }
 0x17c   : > { %v670_v11 = vadd.f32 %v669_v10, %v1560_v42 }
 0x17d   : > { %v913_v12 = vpack.c.bf16 %v845_v8, %v756_v5 }
 0x17e   : > { %v914_v13 = vpack.c.bf16 %v670_v11, %v581_v9 }
 0x17f   : > { %977 = vst [vmem:[%s1569_s27 + $0x198] sm:$0xff] %v913_v12 }
 0x180   : > { %978 = vst [vmem:[%s1569_s27 + $0x1a0] sm:$0xff] %v914_v13 }
 0x181   : > { %v758_v14 = vpop.f32.mrf.mxu2 }
 0x182   : > { %v759_v15 = vadd.f32 %v758_v14, %v1571_v49  ;;  %v847_v16 = vpop.f32.mrf.mxu3  ;;  %v582_v17 = vpop.f32.mrf.mxu0 }
 0x183   : > { %v848_v18 = vadd.f32 %v847_v16, %v1573_v50  ;;  %v583_v19 = vadd.f32 %v582_v17, %v1558_v41  ;;  %v671_v20 = vpop.f32.mrf.mxu1 }
 0x184   : > { %v672_v21 = vadd.f32 %v671_v20, %v1560_v42 }
 0x185   : > { %v915_v22 = vpack.c.bf16 %v848_v18, %v759_v15 }
 0x186   : > { %v916_v23 = vpack.c.bf16 %v672_v21, %v583_v19 }
 0x187   : > { %979 = vst [vmem:[%s1569_s27 + $0x1a8] sm:$0xff] %v915_v22 }
 0x188   : > { %980 = vst [vmem:[%s1569_s27 + $0x1b0] sm:$0xff] %v916_v23 }
 0x189   : > { %v760_v24 = vpop.f32.mrf.mxu2 }
 0x18a   : > { %v761_v25 = vadd.f32 %v760_v24, %v1571_v49  ;;  %v849_v26 = vpop.f32.mrf.mxu3  ;;  %v585_v27 = vpop.f32.mrf.mxu0 }
 0x18b   : > { %v850_v28 = vadd.f32 %v849_v26, %v1573_v50  ;;  %v586_v29 = vadd.f32 %v585_v27, %v1558_v41  ;;  %v674_v30 = vpop.f32.mrf.mxu1 }
 0x18c   : > { %v675_v31 = vadd.f32 %v674_v30, %v1560_v42 }
 0x18d   : > { %v917_v32 = vpack.c.bf16 %v850_v28, %v761_v25 }
 0x18e   : > { %v918_v33 = vpack.c.bf16 %v675_v31, %v586_v29 }
 0x18f   : > { %981 = vst [vmem:[%s1569_s27 + $0x1b8] sm:$0xff] %v917_v32 }
 0x190   : > { %982 = vst [vmem:[%s1569_s27 + $0x1c0] sm:$0xff] %v918_v33 }
 0x191   : > { %v763_v34 = vpop.f32.mrf.mxu2 }
 0x192   : > { %v764_v35 = vadd.f32 %v763_v34, %v1571_v49  ;;  %v852_v36 = vpop.f32.mrf.mxu3  ;;  %v587_v37 = vpop.f32.mrf.mxu0 }
 0x193   : > { %v853_v38 = vadd.f32 %v852_v36, %v1573_v50  ;;  %v588_v39 = vadd.f32 %v587_v37, %v1558_v41  ;;  %v676_v40 = vpop.f32.mrf.mxu1 }
 0x194   : > { %v677_v43 = vadd.f32 %v676_v40, %v1560_v42 }
 0x195   : > { %v919_v44 = vpack.c.bf16 %v853_v38, %v764_v35 }
 0x196   : > { %v920_v45 = vpack.c.bf16 %v677_v43, %v588_v39 }
 0x197   : > { %983 = vst [vmem:[%s1569_s27 + $0x1c8] sm:$0xff] %v919_v44 }
 0x198   : > { %984 = vst [vmem:[%s1569_s27 + $0x1d0] sm:$0xff] %v920_v45 }
 0x199   : > { %v765_v46 = vpop.f32.mrf.mxu2 }
 0x19a   : > { %v766_v47 = vadd.f32 %v765_v46, %v1571_v49  ;;  %v854_v48 = vpop.f32.mrf.mxu3  ;;  %v590_v51 = vpop.f32.mrf.mxu0 }
 0x19b   : > { %v855_v52 = vadd.f32 %v854_v48, %v1573_v50  ;;  %v591_v53 = vadd.f32 %v590_v51, %v1558_v41  ;;  %v679_v54 = vpop.f32.mrf.mxu1 }
 0x19c   : > { %v680_v55 = vadd.f32 %v679_v54, %v1560_v42 }
 0x19d   : > { %v921_v56 = vpack.c.bf16 %v855_v52, %v766_v47 }
 0x19e   : > { %v922_v57 = vpack.c.bf16 %v680_v55, %v591_v53 }
 0x19f   : > { %985 = vst [vmem:[%s1569_s27 + $0x1d8] sm:$0xff] %v921_v56 }
 0x1a0   : > { %986 = vst [vmem:[%s1569_s27 + $0x1e0] sm:$0xff] %v922_v57 }
 0x1a1   : > { %v768_v58 = vpop.f32.mrf.mxu2 }
 0x1a2   : > { %v769_v59 = vadd.f32 %v768_v58, %v1571_v49  ;;  %v857_v60 = vpop.f32.mrf.mxu3  ;;  %v592_v61 = vpop.f32.mrf.mxu0 }
 0x1a3   : > { %v858_v62 = vadd.f32 %v857_v60, %v1573_v50  ;;  %v593_v63 = vadd.f32 %v592_v61, %v1558_v41  ;;  %v681_v0 = vpop.f32.mrf.mxu1 }
 0x1a4   : > { %v682_v1 = vadd.f32 %v681_v0, %v1560_v42 }
 0x1a5   : > { %v923_v2 = vpack.c.bf16 %v858_v62, %v769_v59 }
 0x1a6   : > { %v924_v3 = vpack.c.bf16 %v682_v1, %v593_v63 }
 0x1a7   : > { %987 = vst [vmem:[%s1569_s27 + $0x1e8] sm:$0xff] %v923_v2 }
 0x1a8   : > { %988 = vst [vmem:[%s1569_s27 + $0x1f0] sm:$0xff] %v924_v3 }
 0x1a9   : > { %v770_v4 = vpop.f32.mrf.mxu2 }
 0x1aa   : > { %v771_v5 = vadd.f32 %v770_v4, %v1571_v49  ;;  %v859_v6 = vpop.f32.mrf.mxu3 }
 0x1ab   : > { %v860_v7 = vadd.f32 %v859_v6, %v1573_v50 }
 0x1ad   : > { %v925_v8 = vpack.c.bf16 %v860_v7, %v771_v5 }
 0x1af   : > { %989 = vst [vmem:[%s1569_s27 + $0x1f8] sm:$0xff] %v925_v8 }
 0x1b0 PF: > { %s13_s12 = sadd.s32 1, %s1315_s12  }
 0x1b1   : > { %p10_p4 = scmp.ge.s32.totalorder %s13_s12, 4  }
 0x1b3   :  { %12 = sbr.rel (!%p10_p4) target bundleno = 1 (0x1), region = 62 }

// kernel: proto_forward.7
= control target key start
LH: loop header
LB: loop body
LE: loop exit
PB: predicated region body
PF: predicated region fallthrough
CT: control target
= control target key end

     0   :  { %s1508_s12 = smov 0   ;;  %s2196_s0 = inlined_call_operand.vmem [shape: bf16[2048,128], index: 0, kind: input, shape index: {}]   ;;  %s2197_s1 = inlined_call_operand.vmem [shape: bf16[128,128], index: 1, kind: input, shape index: {}]   ;;  %s2198_s2 = inlined_call_operand.vmem [shape: f32[1,128], index: 2, kind: input, shape index: {}]   ;;  %s2199_s3 = inlined_call_operand.vmem [shape: f32[2048,128], index: 3, kind: output, shape index: {}]  }
   0x1 LB: > { %s1187_s13 = sadd.s32 4294967295, %s1486_s12   ;;  %p1191_p0 = scmp.ge.s32.totalorder %s1486_s12, 1  ;;  %s1486_s12 = sphi %s1508_s12, %s13_s12  }
   0x2   : > { %p138_p1 = scmp.lt.s32.totalorder %s1486_s12, 9 }
   0x4   : > { %p139_p2 = pnand %p1191_p0, %p138_p1 }
   0x5   : > { %s1192_s22 = sshll.u32 (!%p139_p2), %s1187_s13, 5 }
   0x6   : > { %142 = sbr.rel (%p139_p2) target bundleno = 342 (0x156), region = 32  ;;  %p163_p3 = scmp.lt.s32.totalorder (!%p139_p2), %s1192_s22, 255 }
   0xb   : > { %v1317_v0 = vld [vmem:[%s2197_s1 + $0x38] sm:$0xff]  ;;  %v1316_v1 = vld [vmem:[%s2197_s1 + $0x30] sm:$0xff]  ;;  %v1315_v2 = vld [vmem:[%s2197_s1 + $0x28] sm:$0xff]  ;;  %s2247_s22 = smov (!%p163_p3, %s1192_s22), 255 }
   0xc   : > { %370 = vmatpush.bf16.msra.mxu0 %v1317_v0  ;;  %1318 = vmatpush.bf16.msra.mxu1 %v1317_v0  ;;  %v1314_v3 = vld [vmem:[%s2197_s1 + $0x20] sm:$0xff]  ;;  %v1313_v4 = vld [vmem:[%s2197_s1 + $0x18] sm:$0xff]  ;;  %v1312_v5 = vld [vmem:[%s2197_s1 + $0x10] sm:$0xff]  ;;  %s1193_s29 = sshll.u32 %s2247_s22, 2  ;;  %s1195_s10 = sshll.u32 %s2247_s22, 3 }
   0xd   : > { %1319 = vmatpush.bf16.msra.mxu2 %v1317_v0  ;;  %1320 = vmatpush.bf16.msra.mxu3 %v1317_v0  ;;  %v1311_v6 = vld [vmem:[%s2197_s1 + $0x8] sm:$0xff]  ;;  %v1310_v7 = vld [vmem:[%s2197_s1] sm:$0xff]  ;;  %s1546_s7 = scalar_lea.vmem %s2196_s0, %s1193_s29  ;;  %s1664_s14 = scalar_lea.vmem %s2199_s3, %s1195_s10 }
   0xe   : > { %v1294_v8 = vld [vmem:[%s1546_s7] sm:$0xff]  ;;  %v1295_v12 = vld [vmem:[%s1546_s7 + $0x8] sm:$0xff]  ;;  %v1296_v16 = vld [vmem:[%s1546_s7 + $0x10] sm:$0xff] }
   0xf   : > { %v1298_v9 = vld [vmem:[%s1546_s7 + $0x20] sm:$0xff]  ;;  %v1299_v13 = vld [vmem:[%s1546_s7 + $0x28] sm:$0xff]  ;;  %v1300_v17 = vld [vmem:[%s1546_s7 + $0x30] sm:$0xff] }
  0x10   : > { %371 = vmatpush.bf16.msra.mxu0 %v1316_v1  ;;  %1321 = vmatpush.bf16.msra.mxu1 %v1316_v1  ;;  %v1302_v10 = vld [vmem:[%s1546_s7 + $0x40] sm:$0xff]  ;;  %v1303_v14 = vld [vmem:[%s1546_s7 + $0x48] sm:$0xff]  ;;  %v1304_v18 = vld [vmem:[%s1546_s7 + $0x50] sm:$0xff] }
  0x11   : > { %1322 = vmatpush.bf16.msra.mxu2 %v1316_v1  ;;  %1323 = vmatpush.bf16.msra.mxu3 %v1316_v1  ;;  %v1306_v11 = vld [vmem:[%s1546_s7 + $0x60] sm:$0xff]  ;;  %v1307_v15 = vld [vmem:[%s1546_s7 + $0x68] sm:$0xff]  ;;  %v1308_v19 = vld [vmem:[%s1546_s7 + $0x70] sm:$0xff] }
  0x12   : > { %v1297_v20 = vld [vmem:[%s1546_s7 + $0x18] sm:$0xff]  ;;  %v1567_v24 = vld [vmem:[%s2198_s2] ss:$0 sm:$0xff] }
  0x13   : > { %v1301_v21 = vld [vmem:[%s1546_s7 + $0x38] sm:$0xff] }
  0x14   : > { %372 = vmatpush.bf16.msra.mxu0 %v1315_v2  ;;  %1324 = vmatpush.bf16.msra.mxu1 %v1315_v2  ;;  %v1305_v22 = vld [vmem:[%s1546_s7 + $0x58] sm:$0xff] }
  0x15   : > { %1325 = vmatpush.bf16.msra.mxu2 %v1315_v2  ;;  %1326 = vmatpush.bf16.msra.mxu3 %v1315_v2  ;;  %v1309_v23 = vld [vmem:[%s1546_s7 + $0x78] sm:$0xff] }
  0x18   : > { %373 = vmatpush.bf16.msra.mxu0 %v1314_v3  ;;  %1327 = vmatpush.bf16.msra.mxu1 %v1314_v3 }
  0x19   : > { %1328 = vmatpush.bf16.msra.mxu2 %v1314_v3  ;;  %1329 = vmatpush.bf16.msra.mxu3 %v1314_v3 }
  0x1c   : > { %374 = vmatpush.bf16.msra.mxu0 %v1313_v4  ;;  %1330 = vmatpush.bf16.msra.mxu1 %v1313_v4 }
  0x1d   : > { %1331 = vmatpush.bf16.msra.mxu2 %v1313_v4  ;;  %1332 = vmatpush.bf16.msra.mxu3 %v1313_v4 }
  0x20   : > { %375 = vmatpush.bf16.msra.mxu0 %v1312_v5  ;;  %1333 = vmatpush.bf16.msra.mxu1 %v1312_v5 }
  0x21   : > { %1334 = vmatpush.bf16.msra.mxu2 %v1312_v5  ;;  %1335 = vmatpush.bf16.msra.mxu3 %v1312_v5 }
  0x24   : > { %376 = vmatpush.bf16.msra.mxu0 %v1311_v6  ;;  %1336 = vmatpush.bf16.msra.mxu1 %v1311_v6 }
  0x25   : > { %1337 = vmatpush.bf16.msra.mxu2 %v1311_v6  ;;  %1338 = vmatpush.bf16.msra.mxu3 %v1311_v6 }
  0x28   : > { %377 = vmatpush.bf16.msra.mxu0 %v1310_v7  ;;  %1339 = vmatpush.bf16.msra.mxu1 %v1310_v7 }
  0x29   : > { %1340 = vmatpush.bf16.msra.mxu2 %v1310_v7  ;;  %1341 = vmatpush.bf16.msra.mxu3 %v1310_v7 }
  0x2b   : > { %378 = vmatmul.bf16.vlgmr.msra.gmra.mxu0 %v1294_v8  ;;  %398 = vmatmul.bf16.vlgmr.msra.gmra.mxu1 %v1298_v9 }
  0x2c   : > { %418 = vmatmul.bf16.vlgmr.msra.gmra.mxu2 %v1302_v10  ;;  %438 = vmatmul.bf16.vlgmr.msra.gmra.mxu3 %v1306_v11 }
  0x3b   : > { %383 = vmatmul.bf16.gmra.mxu0 %v1295_v12  ;;  %403 = vmatmul.bf16.gmra.mxu1 %v1299_v13 }
  0x3c   : > { %423 = vmatmul.bf16.gmra.mxu2 %v1303_v14  ;;  %443 = vmatmul.bf16.gmra.mxu3 %v1307_v15 }
  0x4b   : > { %388 = vmatmul.bf16.gmra.mxu0 %v1296_v16  ;;  %408 = vmatmul.bf16.gmra.mxu1 %v1300_v17 }
  0x4c   : > { %428 = vmatmul.bf16.gmra.mxu2 %v1304_v18  ;;  %448 = vmatmul.bf16.gmra.mxu3 %v1308_v19 }
  0x5b   : > { %393 = vmatmul.bf16.gmra.mxu0 %v1297_v20  ;;  %413 = vmatmul.bf16.gmra.mxu1 %v1301_v21 }
  0x5c   : > { %433 = vmatmul.bf16.gmra.mxu2 %v1305_v22  ;;  %453 = vmatmul.bf16.gmra.mxu3 %v1309_v23 }
  0xa8   : > { %v379_v25 = vpop.f32.mrf.mxu0  ;;  %v399_v26 = vpop.f32.mrf.mxu1 }
  0xa9   : > { %v1570_v27 = vadd.f32 %v1567_v24, %v379_v25  ;;  %v1573_v28 = vadd.f32 %v1567_v24, %v399_v26 }
  0xab   : > { %v459_v29 = vsub.f32 0.0, %v1570_v27  ;;  %v467_v30 = vsub.f32 0.0, %v1573_v28 }
  0xad   : > { %v491_v31 = vmul.f32 1.442695, %v459_v29  ;;  %v507_v32 = vmul.f32 1.442695, %v467_v30 }
  0xaf   : > { %1351 = vpow2.f32 %v491_v31  ;;  %v419_v33 = vpop.f32.mrf.mxu2  ;;  %v439_v34 = vpop.f32.mrf.mxu3 }
  0xb0   : > { %1353 = vpow2.f32 %v507_v32  ;;  %v1578_v35 = vadd.f32 %v1567_v24, %v419_v33  ;;  %v1581_v36 = vadd.f32 %v1567_v24, %v439_v34  ;;  %v381_v37 = vpop.f32.mrf.mxu0  ;;  %v401_v38 = vpop.f32.mrf.mxu1 }
  0xb1   : > { %v1584_v39 = vadd.f32 %v1567_v24, %v381_v37  ;;  %v1587_v40 = vadd.f32 %v1567_v24, %v401_v38 }
  0xb2   : > { %v475_v41 = vsub.f32 0.0, %v1578_v35  ;;  %v483_v42 = vsub.f32 0.0, %v1581_v36 }
  0xb3   : > { %v460_v43 = vsub.f32 0.0, %v1584_v39  ;;  %v468_v44 = vsub.f32 0.0, %v1587_v40 }
  0xb4   : > { %v523_v45 = vmul.f32 1.442695, %v475_v41  ;;  %v539_v46 = vmul.f32 1.442695, %v483_v42 }
  0xb5   : > { %v1352_v47 = vpop.eup %1351  ;;  %v493_v50 = vmul.f32 1.442695, %v460_v43  ;;  %v509_v52 = vmul.f32 1.442695, %v468_v44 }
  0xb6   : > { %v1354_v48 = vpop.eup %1353  ;;  %v1593_v49 = vadd.f32 1.0, %v1352_v47  ;;  %1355 = vpow2.f32 %v523_v45 }
  0xb7   : > { %v1595_v51 = vadd.f32 1.0, %v1354_v48  ;;  %1357 = vpow2.f32 %v539_v46  ;;  %v421_v53 = vpop.f32.mrf.mxu2  ;;  %v441_v55 = vpop.f32.mrf.mxu3 }
  0xb8   : > { %1359 = vrcp.f32 %v1593_v49  ;;  %v1600_v54 = vadd.f32 %v1567_v24, %v421_v53  ;;  %v384_v56 = vpop.f32.mrf.mxu0  ;;  %v596_v57 = vand.u32 2147483647, %v1593_v49  ;;  %v598_v58 = vand.u32 2147483648, %v1593_v49  ;;  %v404_v59 = vpop.f32.mrf.mxu1 }
  0xb9   : > { %1361 = vrcp.f32 %v1595_v51  ;;  %v716_v61 = vand.u32 2147483647, %v1595_v51  ;;  %v718_v62 = vand.u32 2147483648, %v1595_v51  ;;  %v1610_v2 = vadd.f32 %v1567_v24, %v441_v55 }
  0xba   : > { %1363 = vpow2.f32 %v493_v50  ;;  %v476_v63 = vsub.f32 0.0, %v1600_v54  ;;  %v1613_v3 = vadd.f32 %v1567_v24, %v384_v56  ;;  %vm592_vm0 = vweird.f32 %v1593_v49 }
  0xbb   : > { %1365 = vpow2.f32 %v509_v52  ;;  %vm712_vm1 = vweird.f32 %v1595_v51  ;;  %v1620_v6 = vadd.f32 %v1567_v24, %v404_v59  ;;  %vm1623_vm2 = vcmp.eq.f32.partialorder %v596_v57, 8.507059e+37 }
  0xbc   : > { %v1356_v60 = vpop.eup %1355  ;;  %v599_v10 = vor.u32 1.1754944e-38, %v598_v58  ;;  %vm1629_vm3 = vcmp.eq.f32.partialorder %v716_v61, 8.507059e+37  ;;  %v719_v14 = vor.u32 1.1754944e-38, %v718_v62  ;;  %v525_v15 = vmul.f32 1.442695, %v476_v63 }
  0xbd   : > { %v1358_v0 = vpop.eup %1357  ;;  %v1607_v1 = vadd.f32 1.0, %v1356_v60  ;;  %v484_v18 = vsub.f32 0.0, %v1610_v2  ;;  %v461_v19 = vsub.f32 0.0, %v1613_v3  ;;  %v469_v22 = vsub.f32 0.0, %v1620_v6 }
  0xbe   : > { %v1360_v4 = vpop.eup %1359  ;;  %v1617_v5 = vadd.f32 1.0, %v1358_v0 }
  0xbf   : > { %v1362_v7 = vpop.eup %1361  ;;  %v588_v8 = vmul.f32 %v1360_v4, %v1593_v49  ;;  %1367 = vrcp.f32 %v1607_v1  ;;  %vm593_vm4 = vweird.f32 %v1360_v4  ;;  %v836_v21 = vand.u32 2147483647, %v1607_v1 }
  0xc0   : > { %v1364_v11 = vpop.eup %1363  ;;  %v708_v12 = vmul.f32 %v1362_v7, %v1595_v51  ;;  %1369 = vrcp.f32 %v1617_v5  ;;  %v838_v25 = vand.u32 2147483648, %v1607_v1  ;;  %vm713_vm5 = vweird.f32 %v1362_v7  ;;  %vm594_vm7 = vmor %vm592_vm0, %vm593_vm4 }
  0xc1   : > { %v1366_v16 = vpop.eup %1365  ;;  %v589_v17 = vsub.f32 1.0, %v588_v8  ;;  %v1639_v26 = vadd.f32 1.0, %v1364_v11  ;;  %v956_v31 = vand.u32 2147483647, %v1617_v5  ;;  %1371 = vpow2.f32 %v525_v15  ;;  %vm714_vm10 = vmor %vm712_vm1, %vm713_vm5 }
  0xc2   : > { %v709_v20 = vsub.f32 1.0, %v708_v12  ;;  %v1641_v29 = vadd.f32 1.0, %v1366_v16  ;;  %vm832_vm6 = vweird.f32 %v1607_v1  ;;  %v958_v34 = vand.u32 2147483648, %v1617_v5 }
  0xc3   : > { %v590_v23 = vmul.f32 %v1360_v4, %v589_v17  ;;  %1373 = vrcp.f32 %v1639_v26  ;;  %vm1652_vm8 = vcmp.eq.f32.partialorder %v836_v21, 8.507059e+37  ;;  %vm952_vm9 = vweird.f32 %v1617_v5 }
  0xc4   : > { %v710_v30 = vmul.f32 %v1362_v7, %v709_v20  ;;  %v839_v44 = vor.u32 1.1754944e-38, %v838_v25  ;;  %1375 = vrcp.f32 %v1641_v29  ;;  %v541_v45 = vmul.f32 1.442695, %v484_v18  ;;  %v424_v18 = vpop.f32.mrf.mxu2 }
  0xc5   : > { %v1368_v32 = vpop.eup %1367  ;;  %v591_v33 = vadd.f32 %v1360_v4, %v590_v23  ;;  %vm1669_vm11 = vcmp.eq.f32.partialorder %v956_v31, 8.507059e+37  ;;  %v959_v53 = vor.u32 1.1754944e-38, %v958_v34  ;;  %v611_v55 = vand.u32 2147483647, %v1639_v26  ;;  %v386_v31 = vpop.f32.mrf.mxu0 }
  0xc6   : > { %v711_v37 = vadd.f32 %v1362_v7, %v710_v30  ;;  %v828_v38 = vmul.f32 %v1368_v32, %v1607_v1  ;;  %v1370_v42 = vpop.eup %1369  ;;  %vm833_vm12 = vweird.f32 %v1368_v32  ;;  %vm607_vm13 = vweird.f32 %v1639_v26 }
  0xc7   : > { %v595_v43 = vsel %vm594_vm7, %v1360_v4, %v591_v33  ;;  %v948_v49 = vmul.f32 %v1370_v42, %v1617_v5  ;;  %v1372_v56 = vpop.eup %1371  ;;  %v613_v61 = vand.u32 2147483648, %v1639_v26  ;;  %1377 = vpow2.f32 %v541_v45  ;;  %vm834_vm15 = vmor %vm832_vm6, %vm833_vm12 }
  0xc8   : > { %v600_v46 = vsel %vm1623_vm2, %v599_v10, %v595_v43  ;;  %v715_v47 = vsel %vm714_vm10, %v1362_v7, %v711_v37  ;;  %v829_v48 = vsub.f32 1.0, %v828_v38  ;;  %v1681_v62 = vadd.f32 1.0, %v1372_v56 }
  0xc9   : > { %v1067_v51 = vmul.f32 %v600_v46, %v1570_v27  ;;  %v720_v52 = vsel %vm1629_vm3, %v719_v14, %v715_v47  ;;  %v949_v59 = vsub.f32 1.0, %v948_v49  ;;  %v1374_v60 = vpop.eup %1373  ;;  %vm953_vm14 = vweird.f32 %v1370_v42  ;;  %v406_v49 = vpop.f32.mrf.mxu1 }
  0xca   : > { %v1075_v57 = vmul.f32 %v720_v52, %v1573_v28  ;;  %v830_v58 = vmul.f32 %v1368_v32, %v829_v48  ;;  %v603_v0 = vmul.f32 %v1374_v60, %v1639_v26  ;;  %v1376_v4 = vpop.eup %1375  ;;  %vm1687_vm0 = vcmp.eq.f32.partialorder %v611_v55, 8.507059e+37  ;;  %vm954_vm2 = vmor %vm952_vm9, %vm953_vm14 }
  0xcb   : > { %1099 = vst [vmem:[%s1664_s14] sm:$0xff] %v1067_v51  ;;  %v950_v63 = vmul.f32 %v1370_v42, %v949_v59  ;;  %vm727_vm1 = vweird.f32 %v1641_v29  ;;  %1379 = vrcp.f32 %v1681_v62  ;;  %v495_v7 = vmul.f32 1.442695, %v461_v19 }
  0xcc   : > { %1107 = vst [vmem:[%s1664_s14 + $0x40] sm:$0xff] %v1075_v57  ;;  %v831_v27 = vadd.f32 %v1368_v32, %v830_v58  ;;  %v604_v10 = vsub.f32 1.0, %v603_v0  ;;  %v723_v11 = vmul.f32 %v1376_v4, %v1641_v29  ;;  %vm608_vm3 = vweird.f32 %v1374_v60 }
  0xcd   : > { %v951_v9 = vadd.f32 %v1370_v42, %v950_v63  ;;  %v731_v1 = vand.u32 2147483647, %v1641_v29  ;;  %v733_v13 = vand.u32 2147483648, %v1641_v29  ;;  %v1378_v19 = vpop.eup %1377  ;;  %v614_v21 = vor.u32 1.1754944e-38, %v613_v61  ;;  %vm609_vm5 = vmor %vm607_vm13, %vm608_vm3 }
  0xce   : > { %v835_v8 = vsel %vm834_vm15, %v1368_v32, %v831_v27  ;;  %v605_v16 = vmul.f32 %v1374_v60, %v604_v10  ;;  %v724_v17 = vsub.f32 1.0, %v723_v11  ;;  %vm728_vm4 = vweird.f32 %v1376_v4  ;;  %v426_v11 = vpop.f32.mrf.mxu2 }
  0xcf   : > { %v840_v12 = vsel %vm1652_vm8, %v839_v44, %v835_v8  ;;  %v955_v15 = vsel %vm954_vm2, %v1370_v42, %v951_v9  ;;  %1381 = vpow2.f32 %v495_v7  ;;  %v1705_v30 = vadd.f32 1.0, %v1378_v19  ;;  %vm729_vm7 = vmor %vm727_vm1, %vm728_vm4 }
  0xd0   : > { %v1083_v14 = vmul.f32 %v840_v12, %v1578_v35  ;;  %v960_v20 = vsel %vm1669_vm11, %v959_v53, %v955_v15  ;;  %v606_v23 = vadd.f32 %v1374_v60, %v605_v16  ;;  %v725_v25 = vmul.f32 %v1376_v4, %v724_v17  ;;  %v444_v35 = vpop.f32.mrf.mxu3 }
  0xd1   : > { %v1091_v5 = vmul.f32 %v960_v20, %v1581_v36  ;;  %v1380_v32 = vpop.eup %1379  ;;  %vm1710_vm6 = vcmp.eq.f32.partialorder %v731_v1, 8.507059e+37  ;;  %v734_v34 = vor.u32 1.1754944e-38, %v733_v13  ;;  %v511_v37 = vmul.f32 1.442695, %v469_v22 }
  0xd2   : > { %1115 = vst [vmem:[%s1664_s14 + $0x80] sm:$0xff] %v1083_v14  ;;  %v1717_v36 = vadd.f32 %v1567_v24, %v424_v18  ;;  %v610_v38 = vsel %vm609_vm5, %v1374_v60, %v606_v23  ;;  %v726_v41 = vadd.f32 %v1376_v4, %v725_v25  ;;  %v843_v42 = vmul.f32 %v1380_v32, %v1681_v62 }
  0xd3   : > { %1123 = vst [vmem:[%s1664_s14 + $0xc0] sm:$0xff] %v1091_v5  ;;  %v851_v43 = vand.u32 2147483647, %v1681_v62  ;;  %v615_v26 = vsel %vm1687_vm0, %v614_v21, %v610_v38  ;;  %1383 = vrcp.f32 %v1705_v30  ;;  %v1729_v22 = vadd.f32 %v1567_v24, %v444_v35 }
  0xd4   : > { %v1732_v44 = vadd.f32 %v1567_v24, %v386_v31  ;;  %v1068_v45 = vmul.f32 %v615_v26, %v1584_v39  ;;  %v730_v46 = vsel %vm729_vm7, %v1376_v4, %v726_v41  ;;  %v844_v47 = vsub.f32 1.0, %v843_v42 }
  0xd5   : > { %v853_v48 = vand.u32 2147483648, %v1681_v62  ;;  %v1382_v50 = vpop.eup %1381  ;;  %v735_v29 = vsel %vm1710_vm6, %v734_v34, %v730_v46  ;;  %vm847_vm8 = vweird.f32 %v1681_v62  ;;  %1385 = vpow2.f32 %v511_v37  ;;  %v389_v37 = vpop.f32.mrf.mxu0 }
  0xd6   : > { %v477_v51 = vsub.f32 0.0, %v1717_v36  ;;  %1100 = vst [vmem:[%s1664_s14 + $0x8] sm:$0xff] %v1068_v45  ;;  %v1076_v52 = vmul.f32 %v735_v29, %v1587_v40  ;;  %v845_v53 = vmul.f32 %v1380_v32, %v844_v47  ;;  %vm848_vm9 = vweird.f32 %v1380_v32  ;;  %v429_v23 = vpop.f32.mrf.mxu2 }
  0xd7   : > { %v1742_v39 = vadd.f32 1.0, %v1382_v50  ;;  %v485_v56 = vsub.f32 0.0, %v1729_v22  ;;  %v462_v57 = vsub.f32 0.0, %v1732_v44  ;;  %v1747_v58 = vadd.f32 %v1567_v24, %v406_v49  ;;  %vm849_vm11 = vmor %vm847_vm8, %vm848_vm9 }
  0xd8   : > { %v527_v55 = vmul.f32 1.442695, %v477_v51  ;;  %1108 = vst [vmem:[%s1664_s14 + $0x48] sm:$0xff] %v1076_v52  ;;  %v846_v59 = vadd.f32 %v1380_v32, %v845_v53  ;;  %vm852_vm10 = vcmp.eq.f32.partialorder %v851_v43, 8.507059e+37  ;;  %v854_v60 = vor.u32 1.1754944e-38, %v853_v48  ;;  %v446_v21 = vpop.f32.mrf.mxu3 }
  0xd9   : > { %1387 = vrcp.f32 %v1742_v39  ;;  %v1384_v61 = vpop.eup %1383  ;;  %v971_v40 = vand.u32 2147483647, %v1705_v30  ;;  %v543_v27 = vmul.f32 1.442695, %v485_v56  ;;  %v497_v63 = vmul.f32 1.442695, %v462_v57 }
  0xda   : > { %1389 = vpow2.f32 %v527_v55  ;;  %v850_v0 = vsel %vm849_vm11, %v1380_v32, %v846_v59  ;;  %v963_v4 = vmul.f32 %v1384_v61, %v1705_v30  ;;  %v973_v28 = vand.u32 2147483648, %v1705_v30 }
  0xdb   : > { %v626_v7 = vand.u32 2147483647, %v1742_v39  ;;  %v1386_v8 = vpop.eup %1385  ;;  %v855_v9 = vsel %vm852_vm10, %v854_v60, %v850_v0  ;;  %v628_v10 = vand.u32 2147483648, %v1742_v39  ;;  %1391 = vpow2.f32 %v543_v27 }
  0xdc   : > { %v470_v62 = vsub.f32 0.0, %v1747_v58  ;;  %v1084_v12 = vmul.f32 %v855_v9, %v1600_v54  ;;  %v964_v1 = vsub.f32 1.0, %v963_v4  ;;  %v1760_v13 = vadd.f32 1.0, %v1386_v8 }
  0xdd   : > { %1393 = vpow2.f32 %v497_v63  ;;  %vm967_vm12 = vweird.f32 %v1705_v30  ;;  %vm968_vm13 = vweird.f32 %v1384_v61  ;;  %v1766_v17 = vadd.f32 %v1567_v24, %v426_v11 }
  0xde   : > { %v513_v14 = vmul.f32 1.442695, %v470_v62  ;;  %1116 = vst [vmem:[%s1664_s14 + $0x88] sm:$0xff] %v1084_v12  ;;  %v965_v16 = vmul.f32 %v1384_v61, %v964_v1  ;;  %1395 = vrcp.f32 %v1760_v13  ;;  %vm1768_vm14 = vcmp.eq.f32.partialorder %v971_v40, 8.507059e+37  ;;  %vm969_vm1 = vmor %vm967_vm12, %vm968_vm13 }
  0xdf   : > { %v1388_v15 = vpop.eup %1387  ;;  %v974_v54 = vor.u32 1.1754944e-38, %v973_v28  ;;  %vm622_vm15 = vweird.f32 %v1742_v39  ;;  %vm1774_vm0 = vcmp.eq.f32.partialorder %v626_v7, 8.507059e+37  ;;  %v629_v25 = vor.u32 1.1754944e-38, %v628_v10 }
  0xe0   : > { %v1390_v18 = vpop.eup %1389  ;;  %v618_v20 = vmul.f32 %v1388_v15, %v1742_v39  ;;  %v966_v5 = vadd.f32 %v1384_v61, %v965_v16  ;;  %v746_v33 = vand.u32 2147483647, %v1760_v13  ;;  %v748_v34 = vand.u32 2147483648, %v1760_v13 }
  0xe1   : > { %v1778_v35 = vadd.f32 1.0, %v1390_v18  ;;  %v1392_v31 = vpop.eup %1391  ;;  %1397 = vpow2.f32 %v513_v14  ;;  %v478_v42 = vsub.f32 0.0, %v1766_v17  ;;  %v1787_v43 = vadd.f32 %v1567_v24, %v446_v21 }
  0xe2   : > { %v619_v32 = vsub.f32 1.0, %v618_v20  ;;  %v970_v41 = vsel %vm969_vm1, %v1384_v61, %v966_v5  ;;  %vm623_vm2 = vweird.f32 %v1388_v15  ;;  %v1791_v45 = vadd.f32 1.0, %v1392_v31 }
  0xe3   : > { %v1394_v38 = vpop.eup %1393  ;;  %1399 = vrcp.f32 %v1778_v35  ;;  %v975_v30 = vsel %vm1768_vm14, %v974_v54, %v970_v41  ;;  %vm742_vm3 = vweird.f32 %v1760_v13  ;;  %v1798_v49 = vadd.f32 %v1567_v24, %v389_v37  ;;  %vm624_vm5 = vmor %vm622_vm15, %vm623_vm2 }
  0xe4   : > { %v620_v26 = vmul.f32 %v1388_v15, %v619_v32  ;;  %v1396_v46 = vpop.eup %1395  ;;  %v1092_v47 = vmul.f32 %v975_v30, %v1610_v2  ;;  %v1795_v48 = vadd.f32 1.0, %v1394_v38  ;;  %vm1801_vm4 = vcmp.eq.f32.partialorder %v746_v33, 8.507059e+37 }
  0xe5   : > { %v738_v29 = vmul.f32 %v1396_v46, %v1760_v13  ;;  %v749_v52 = vor.u32 1.1754944e-38, %v748_v34  ;;  %v866_v2 = vand.u32 2147483647, %v1778_v35  ;;  %1401 = vrcp.f32 %v1791_v45  ;;  %v409_v13 = vpop.f32.mrf.mxu1 }
  0xe6   : > { %v621_v50 = vadd.f32 %v1388_v15, %v620_v26  ;;  %1124 = vst [vmem:[%s1664_s14 + $0xc8] sm:$0xff] %v1092_v47  ;;  %v529_v53 = vmul.f32 1.442695, %v478_v42  ;;  %v486_v55 = vsub.f32 0.0, %v1787_v43  ;;  %v868_v60 = vand.u32 2147483648, %v1778_v35 }
  0xe7   : > { %v1398_v56 = vpop.eup %1397  ;;  %v739_v59 = vsub.f32 1.0, %v738_v29  ;;  %1403 = vrcp.f32 %v1795_v48  ;;  %vm743_vm6 = vweird.f32 %v1396_v46  ;;  %v988_v40 = vand.u32 2147483648, %v1791_v45 }
  0xe8   : > { %v625_v57 = vsel %vm624_vm5, %v1388_v15, %v621_v50  ;;  %v463_v27 = vsub.f32 0.0, %v1798_v49  ;;  %v986_v28 = vand.u32 2147483647, %v1791_v45  ;;  %vm862_vm7 = vweird.f32 %v1778_v35  ;;  %vm744_vm10 = vmor %vm742_vm3, %vm743_vm6 }
  0xe9   : > { %v1400_v61 = vpop.eup %1399  ;;  %v630_v39 = vsel %vm1774_vm0, %v629_v25, %v625_v57  ;;  %v740_v0 = vmul.f32 %v1396_v46, %v739_v59  ;;  %vm1821_vm8 = vcmp.eq.f32.partialorder %v866_v2, 8.507059e+37  ;;  %v1825_v8 = vadd.f32 1.0, %v1398_v56 }
  0xea   : > { %v1069_v63 = vmul.f32 %v630_v39, %v1613_v3  ;;  %v858_v4 = vmul.f32 %v1400_v61, %v1778_v35  ;;  %1405 = vpow2.f32 %v529_v53  ;;  %v869_v62 = vor.u32 1.1754944e-38, %v868_v60 }
  0xeb   : > { %v741_v9 = vadd.f32 %v1396_v46, %v740_v0  ;;  %vm982_vm9 = vweird.f32 %v1791_v45  ;;  %v1402_v3 = vpop.eup %1401  ;;  %v989_v11 = vor.u32 1.1754944e-38, %v988_v40  ;;  %vm637_vm11 = vweird.f32 %v1795_v48 }
  0xec   : > { %1101 = vst [vmem:[%s1664_s14 + $0x10] sm:$0xff] %v1069_v63  ;;  %v859_v10 = vsub.f32 1.0, %v858_v4  ;;  %v641_v12 = vand.u32 2147483647, %v1795_v48  ;;  %1407 = vrcp.f32 %v1825_v8  ;;  %v545_v1 = vmul.f32 1.442695, %v486_v55  ;;  %v391_v63 = vpop.f32.mrf.mxu0 }
  0xed   : > { %v1404_v14 = vpop.eup %1403  ;;  %v745_v15 = vsel %vm744_vm10, %v1396_v46, %v741_v9  ;;  %vm863_vm12 = vweird.f32 %v1400_v61  ;;  %v978_v18 = vmul.f32 %v1402_v3, %v1791_v45  ;;  %vm1836_vm13 = vcmp.eq.f32.partialorder %v986_v28, 8.507059e+37 }
  0xee   : > { %v860_v16 = vmul.f32 %v1400_v61, %v859_v10  ;;  %v750_v54 = vsel %vm1801_vm4, %v749_v52, %v745_v15  ;;  %v633_v20 = vmul.f32 %v1404_v14, %v1795_v48  ;;  %v643_v21 = vand.u32 2147483648, %v1795_v48  ;;  %vm864_vm15 = vmor %vm862_vm7, %vm863_vm12  ;;  %v411_v15 = vpop.f32.mrf.mxu1 }
  0xef   : > { %v499_v5 = vmul.f32 1.442695, %v463_v27  ;;  %v1077_v25 = vmul.f32 %v750_v54, %v1620_v6  ;;  %v979_v32 = vsub.f32 1.0, %v978_v18  ;;  %vm983_vm14 = vweird.f32 %v1402_v3  ;;  %v449_v27 = vpop.f32.mrf.mxu3 }
  0xf0   : > { %v861_v31 = vadd.f32 %v1400_v61, %v860_v16  ;;  %v1406_v33 = vpop.eup %1405  ;;  %v634_v34 = vsub.f32 1.0, %v633_v20  ;;  %vm638_vm0 = vweird.f32 %v1404_v14  ;;  %1409 = vpow2.f32 %v545_v1  ;;  %vm984_vm2 = vmor %vm982_vm9, %vm983_vm14 }
  0xf1   : > { %v1848_v37 = vadd.f32 %v1567_v24, %v409_v13  ;;  %1109 = vst [vmem:[%s1664_s14 + $0x50] sm:$0xff] %v1077_v25  ;;  %v980_v41 = vmul.f32 %v1402_v3, %v979_v32  ;;  %v1851_v42 = vadd.f32 1.0, %v1406_v33  ;;  %v1854_v6 = vadd.f32 %v1567_v24, %v429_v23  ;;  %vm639_vm3 = vmor %vm637_vm11, %vm638_vm0 }
  0xf2   : > { %v865_v38 = vsel %vm864_vm15, %v1400_v61, %v861_v31  ;;  %v1408_v30 = vpop.eup %1407  ;;  %v635_v26 = vmul.f32 %v1404_v14, %v634_v34  ;;  %1411 = vpow2.f32 %v499_v5  ;;  %vm1860_vm1 = vcmp.eq.f32.partialorder %v641_v12, 8.507059e+37 }
  0xf3   : > { %v870_v35 = vsel %vm1821_vm8, %v869_v62, %v865_v38  ;;  %v471_v46 = vsub.f32 0.0, %v1848_v37  ;;  %v981_v50 = vadd.f32 %v1402_v3, %v980_v41  ;;  %v753_v51 = vmul.f32 %v1408_v30, %v1825_v8 }
  0xf4   : > { %v1085_v47 = vmul.f32 %v870_v35, %v1717_v36  ;;  %v636_v52 = vadd.f32 %v1404_v14, %v635_v26  ;;  %v644_v2 = vor.u32 1.1754944e-38, %v643_v21  ;;  %v761_v53 = vand.u32 2147483647, %v1825_v8 }
  0xf5   : > { %1413 = vrcp.f32 %v1851_v42  ;;  %v985_v55 = vsel %vm984_vm2, %v1402_v3, %v981_v50  ;;  %v754_v36 = vsub.f32 1.0, %v753_v51  ;;  %v763_v56 = vand.u32 2147483648, %v1825_v8 }
  0xf6   : > { %1117 = vst [vmem:[%s1664_s14 + $0x90] sm:$0xff] %v1085_v47  ;;  %v515_v57 = vmul.f32 1.442695, %v471_v46  ;;  %v1410_v59 = vpop.eup %1409  ;;  %v990_v45 = vsel %vm1836_vm13, %v989_v11, %v985_v55  ;;  %v640_v60 = vsel %vm639_vm3, %v1404_v14, %v636_v52  ;;  %vm757_vm4 = vweird.f32 %v1825_v8  ;;  %v394_v46 = vpop.f32.mrf.mxu0 }
  0xf7   : > { %v479_v61 = vsub.f32 0.0, %v1854_v6  ;;  %v1093_v39 = vmul.f32 %v990_v45, %v1729_v22  ;;  %v645_v48 = vsel %vm1860_vm1, %v644_v2, %v640_v60  ;;  %v755_v40 = vmul.f32 %v1408_v30, %v754_v36 }
  0xf8   : > { %vm758_vm5 = vweird.f32 %v1408_v30  ;;  %v1412_v0 = vpop.eup %1411  ;;  %v1070_v4 = vmul.f32 %v645_v48, %v1732_v44  ;;  %v881_v28 = vand.u32 2147483647, %v1851_v42  ;;  %v1884_v7 = vadd.f32 1.0, %v1410_v59  ;;  %v451_v48 = vpop.f32.mrf.mxu3 }
  0xf9   : > { %1415 = vpow2.f32 %v515_v57  ;;  %1125 = vst [vmem:[%s1664_s14 + $0xd0] sm:$0xff] %v1093_v39  ;;  %v756_v9 = vadd.f32 %v1408_v30, %v755_v40  ;;  %vm762_vm6 = vcmp.eq.f32.partialorder %v761_v53, 8.507059e+37  ;;  %v764_v22 = vor.u32 1.1754944e-38, %v763_v56  ;;  %vm759_vm7 = vmor %vm757_vm4, %vm758_vm5 }
  0xfa   : > { %v1887_v10 = vadd.f32 1.0, %v1412_v0  ;;  %1102 = vst [vmem:[%s1664_s14 + $0x18] sm:$0xff] %v1070_v4  ;;  %1417 = vrcp.f32 %v1884_v7  ;;  %v531_v44 = vmul.f32 1.442695, %v479_v61  ;;  %v1895_v3 = vadd.f32 %v1567_v24, %v449_v27 }
  0xfb   : > { %v1414_v62 = vpop.eup %1413  ;;  %v1898_v11 = vadd.f32 %v1567_v24, %v391_v63  ;;  %v760_v12 = vsel %vm759_vm7, %v1408_v30, %v756_v9  ;;  %v883_v14 = vand.u32 2147483648, %v1851_v42  ;;  %vm877_vm8 = vweird.f32 %v1851_v42 }
  0xfc   : > { %v873_v1 = vmul.f32 %v1414_v62, %v1851_v42  ;;  %1419 = vrcp.f32 %v1887_v10  ;;  %v765_v8 = vsel %vm762_vm6, %v764_v22, %v760_v12  ;;  %vm1904_vm9 = vcmp.eq.f32.partialorder %v881_v28, 8.507059e+37 }
  0xfd   : > { %v1078_v18 = vmul.f32 %v765_v8, %v1747_v58  ;;  %v1001_v13 = vand.u32 2147483647, %v1884_v7  ;;  %v1003_v54 = vand.u32 2147483648, %v1884_v7  ;;  %1421 = vpow2.f32 %v531_v44  ;;  %v431_v58 = vpop.f32.mrf.mxu2 }
  0xfe   : > { %v874_v19 = vsub.f32 1.0, %v873_v1  ;;  %v487_v21 = vsub.f32 0.0, %v1895_v3  ;;  %v464_v5 = vsub.f32 0.0, %v1898_v11  ;;  %v1914_v23 = vadd.f32 %v1567_v24, %v411_v15 }
  0xff   : > { %v1416_v20 = vpop.eup %1415  ;;  %1110 = vst [vmem:[%s1664_s14 + $0x58] sm:$0xff] %v1078_v18  ;;  %vm878_vm10 = vweird.f32 %v1414_v62  ;;  %v884_v31 = vor.u32 1.1754944e-38, %v883_v14  ;;  %vm997_vm11 = vweird.f32 %v1884_v7  ;;  %v656_v34 = vand.u32 2147483647, %v1887_v10 }
 0x100   : > { %v875_v25 = vmul.f32 %v1414_v62, %v874_v19  ;;  %v1917_v32 = vadd.f32 1.0, %v1416_v20  ;;  %v1418_v33 = vpop.eup %1417  ;;  %v547_v38 = vmul.f32 1.442695, %v487_v21  ;;  %v501_v41 = vmul.f32 1.442695, %v464_v5  ;;  %vm879_vm13 = vmor %vm877_vm8, %vm878_vm10 }
 0x101   : > { %v993_v26 = vmul.f32 %v1418_v33, %v1884_v7  ;;  %vm1922_vm12 = vcmp.eq.f32.partialorder %v1001_v13, 8.507059e+37  ;;  %v1004_v47 = vor.u32 1.1754944e-38, %v1003_v54  ;;  %vm652_vm14 = vweird.f32 %v1887_v10 }
 0x102   : > { %v1420_v30 = vpop.eup %1419  ;;  %v876_v35 = vadd.f32 %v1414_v62, %v875_v25  ;;  %1423 = vrcp.f32 %v1917_v32  ;;  %v472_v29 = vsub.f32 0.0, %v1914_v23  ;;  %v1934_v51 = vadd.f32 %v1567_v24, %v431_v58 }
 0x103   : > { %v648_v50 = vmul.f32 %v1420_v30, %v1887_v10  ;;  %v994_v2 = vsub.f32 1.0, %v993_v26  ;;  %v658_v53 = vand.u32 2147483648, %v1887_v10  ;;  %1425 = vpow2.f32 %v547_v38  ;;  %v1422_v55 = vpop.eup %1421 }
 0x104   : > { %v880_v52 = vsel %vm879_vm13, %v1414_v62, %v876_v35  ;;  %vm1939_vm15 = vcmp.eq.f32.partialorder %v656_v34, 8.507059e+37  ;;  %1427 = vpow2.f32 %v501_v41  ;;  %vm998_vm0 = vweird.f32 %v1418_v33 }
 0x105   : > { %v885_v42 = vsel %vm1904_vm9, %v884_v31, %v880_v52  ;;  %v649_v36 = vsub.f32 1.0, %v648_v50  ;;  %v995_v59 = vmul.f32 %v1418_v33, %v994_v2  ;;  %v1944_v45 = vadd.f32 1.0, %v1422_v55  ;;  %vm999_vm3 = vmor %vm997_vm11, %vm998_vm0 }
 0x106   : > { %v1086_v57 = vmul.f32 %v885_v42, %v1766_v17  ;;  %vm653_vm1 = vweird.f32 %v1420_v30  ;;  %v517_v61 = vmul.f32 1.442695, %v472_v29  ;;  %v480_v39 = vsub.f32 0.0, %v1934_v51 }
 0x107   : > { %v650_v60 = vmul.f32 %v1420_v30, %v649_v36  ;;  %v996_v27 = vadd.f32 %v1418_v33, %v995_v59  ;;  %v659_v63 = vor.u32 1.1754944e-38, %v658_v53  ;;  %vm772_vm2 = vweird.f32 %v1917_v32  ;;  %vm654_vm4 = vmor %vm652_vm14, %vm653_vm1 }
 0x108   : > { %v1424_v40 = vpop.eup %1423  ;;  %1118 = vst [vmem:[%s1664_s14 + $0x98] sm:$0xff] %v1086_v57  ;;  %1429 = vrcp.f32 %v1944_v45  ;;  %v776_v4 = vand.u32 2147483647, %v1917_v32  ;;  %v778_v28 = vand.u32 2147483648, %v1917_v32  ;;  %v533_v62 = vmul.f32 1.442695, %v480_v39 }
 0x109   : > { %v651_v17 = vadd.f32 %v1420_v30, %v650_v60  ;;  %v768_v0 = vmul.f32 %v1424_v40, %v1917_v32  ;;  %v1426_v9 = vpop.eup %1425  ;;  %v1000_v22 = vsel %vm999_vm3, %v1418_v33, %v996_v27  ;;  %1431 = vpow2.f32 %v517_v61 }
 0x10a   : > { %v1959_v44 = vadd.f32 %v1567_v24, %v451_v48  ;;  %v1428_v7 = vpop.eup %1427  ;;  %v1005_v12 = vsel %vm1922_vm12, %v1004_v47, %v1000_v22  ;;  %v896_v15 = vand.u32 2147483647, %v1944_v45  ;;  %v1967_v16 = vadd.f32 1.0, %v1426_v9  ;;  %v414_v48 = vpop.f32.mrf.mxu1  ;;  %v2032_v22 = vld [vmem:[%s2198_s2] ss:$0 sm:$0xff] }
 0x10b   : > { %v655_v1 = vsel %vm654_vm4, %v1420_v30, %v651_v17  ;;  %v769_v14 = vsub.f32 1.0, %v768_v0  ;;  %v1094_v8 = vmul.f32 %v1005_v12, %v1787_v43  ;;  %v1969_v18 = vadd.f32 1.0, %v1428_v7  ;;  %v434_v7 = vpop.f32.mrf.mxu2 }
 0x10c   : > { %v660_v10 = vsel %vm1939_vm15, %v659_v63, %v655_v1  ;;  %vm773_vm5 = vweird.f32 %v1424_v40  ;;  %1433 = vpow2.f32 %v533_v62  ;;  %vm1973_vm6 = vcmp.eq.f32.partialorder %v776_v4, 8.507059e+37 }
 0x10d   : > { %v1071_v19 = vmul.f32 %v660_v10, %v1798_v49  ;;  %v770_v13 = vmul.f32 %v1424_v40, %v769_v14  ;;  %1126 = vst [vmem:[%s1664_s14 + $0xd8] sm:$0xff] %v1094_v8  ;;  %1435 = vrcp.f32 %v1967_v16  ;;  %v488_v43 = vsub.f32 0.0, %v1959_v44  ;;  %vm774_vm7 = vmor %vm772_vm2, %vm773_vm5 }
 0x10e   : > { %v1430_v54 = vpop.eup %1429  ;;  %v779_v5 = vor.u32 1.1754944e-38, %v778_v28  ;;  %1437 = vrcp.f32 %v1969_v18  ;;  %vm892_vm8 = vweird.f32 %v1944_v45  ;;  %vm1985_vm9 = vcmp.eq.f32.partialorder %v896_v15, 8.507059e+37 }
 0x10f   : > { %1103 = vst [vmem:[%s1664_s14 + $0x20] sm:$0xff] %v1071_v19  ;;  %v771_v21 = vadd.f32 %v1424_v40, %v770_v13  ;;  %v888_v25 = vmul.f32 %v1430_v54, %v1944_v45  ;;  %v1432_v49 = vpop.eup %1431  ;;  %v898_v58 = vand.u32 2147483648, %v1944_v45  ;;  %v1018_v33 = vand.u32 2147483648, %v1967_v16 }
 0x110   : > { %v1016_v41 = vand.u32 2147483647, %v1967_v16  ;;  %v1992_v30 = vadd.f32 1.0, %v1432_v49  ;;  %vm893_vm10 = vweird.f32 %v1430_v54  ;;  %v671_v35 = vand.u32 2147483647, %v1969_v18 }
 0x111   : > { %v775_v34 = vsel %vm774_vm7, %v1424_v40, %v771_v21  ;;  %v889_v38 = vsub.f32 1.0, %v888_v25  ;;  %v549_v26 = vmul.f32 1.442695, %v488_v43  ;;  %v673_v52 = vand.u32 2147483648, %v1969_v18  ;;  %vm894_vm13 = vmor %vm892_vm8, %vm893_vm10 }
 0x112   : > { %v780_v32 = vsel %vm1973_vm6, %v779_v5, %v775_v34  ;;  %v1434_v47 = vpop.eup %1433  ;;  %1439 = vrcp.f32 %v1992_v30  ;;  %v899_v53 = vor.u32 1.1754944e-38, %v898_v58  ;;  %vm1012_vm11 = vweird.f32 %v1967_v16 }
 0x113   : > { %v1079_v50 = vmul.f32 %v780_v32, %v1848_v37  ;;  %v890_v29 = vmul.f32 %v1430_v54, %v889_v38  ;;  %v1436_v2 = vpop.eup %1435  ;;  %v1019_v55 = vor.u32 1.1754944e-38, %v1018_v33  ;;  %v2001_v42 = vadd.f32 1.0, %v1434_v47 }
 0x114   : > { %v1438_v36 = vpop.eup %1437  ;;  %v1008_v57 = vmul.f32 %v1436_v2, %v1967_v16  ;;  %vm2005_vm12 = vcmp.eq.f32.partialorder %v1016_v41, 8.507059e+37  ;;  %1441 = vpow2.f32 %v549_v26  ;;  %v2010_v37 = vadd.f32 %v1567_v24, %v394_v46  ;;  %v396_v41 = vpop.f32.mrf.mxu0 }
 0x115   : > { %1111 = vst [vmem:[%s1664_s14 + $0x60] sm:$0xff] %v1079_v50  ;;  %v891_v56 = vadd.f32 %v1430_v54, %v890_v29  ;;  %v663_v60 = vmul.f32 %v1438_v36, %v1969_v18  ;;  %vm667_vm14 = vweird.f32 %v1969_v18  ;;  %vm2017_vm15 = vcmp.eq.f32.partialorder %v671_v35, 8.507059e+37 }
 0x116   : > { %v791_v39 = vand.u32 2147483647, %v1992_v30  ;;  %v1009_v27 = vsub.f32 1.0, %v1008_v57  ;;  %v674_v63 = vor.u32 1.1754944e-38, %v673_v52  ;;  %1443 = vrcp.f32 %v2001_v42 }
 0x117   : > { %v895_v40 = vsel %vm894_vm13, %v1430_v54, %v891_v56  ;;  %vm1013_vm0 = vweird.f32 %v1436_v2  ;;  %v664_v45 = vsub.f32 1.0, %v663_v60  ;;  %vm787_vm1 = vweird.f32 %v1992_v30  ;;  %v436_v60 = vpop.f32.mrf.mxu2 }
 0x118   : > { %v900_v24 = vsel %vm1985_vm9, %v899_v53, %v895_v40  ;;  %v793_v17 = vand.u32 2147483648, %v1992_v30  ;;  %v1440_v0 = vpop.eup %1439  ;;  %v1010_v28 = vmul.f32 %v1436_v2, %v1009_v27  ;;  %v465_v9 = vsub.f32 0.0, %v2010_v37  ;;  %vm1014_vm5 = vmor %vm1012_vm11, %vm1013_vm0 }
 0x119   : > { %v1087_v4 = vmul.f32 %v900_v24, %v1854_v6  ;;  %v2035_v62 = vadd.f32 %v2032_v22, %v414_v48  ;;  %v665_v12 = vmul.f32 %v1438_v36, %v664_v45  ;;  %vm668_vm2 = vweird.f32 %v1438_v36  ;;  %v454_v6 = vpop.f32.mrf.mxu3 }
 0x11a   : > { %v783_v1 = vmul.f32 %v1440_v0, %v1992_v30  ;;  %vm2038_vm3 = vcmp.eq.f32.partialorder %v791_v39, 8.507059e+37  ;;  %v1442_v15 = vpop.eup %1441  ;;  %v1011_v8 = vadd.f32 %v1436_v2, %v1010_v28  ;;  %vm788_vm4 = vweird.f32 %v1440_v0  ;;  %vm669_vm6 = vmor %vm667_vm14, %vm668_vm2 }
 0x11b   : > { %1119 = vst [vmem:[%s1664_s14 + $0xa0] sm:$0xff] %v1087_v4  ;;  %v503_v10 = vmul.f32 1.442695, %v465_v9  ;;  %v473_v19 = vsub.f32 0.0, %v2035_v62  ;;  %v666_v13 = vadd.f32 %v1438_v36, %v665_v12  ;;  %v2047_v20 = vadd.f32 1.0, %v1442_v15  ;;  %vm789_vm7 = vmor %vm787_vm1, %vm788_vm4 }
 0x11c   : > { %v784_v54 = vsub.f32 1.0, %v783_v1  ;;  %v2050_v43 = vadd.f32 %v2032_v22, %v434_v7  ;;  %v1444_v21 = vpop.eup %1443  ;;  %v1015_v5 = vsel %vm1014_vm5, %v1436_v2, %v1011_v8  ;;  %v2056_v49 = vadd.f32 %v2032_v22, %v454_v6  ;;  %v416_v2 = vpop.f32.mrf.mxu1 }
 0x11d   : > { %1445 = vpow2.f32 %v503_v10  ;;  %v519_v25 = vmul.f32 1.442695, %v473_v19  ;;  %v1020_v16 = vsel %vm2005_vm12, %v1019_v55, %v1015_v5  ;;  %v670_v31 = vsel %vm669_vm6, %v1438_v36, %v666_v13 }
 0x11e   : > { %v785_v58 = vmul.f32 %v1440_v0, %v784_v54  ;;  %v903_v33 = vmul.f32 %v1444_v21, %v2001_v42  ;;  %v1095_v34 = vmul.f32 %v1020_v16, %v1895_v3  ;;  %v675_v18 = vsel %vm2017_vm15, %v674_v63, %v670_v31 }
 0x11f   : > { %v794_v38 = vor.u32 1.1754944e-38, %v793_v17  ;;  %1447 = vrcp.f32 %v2047_v20  ;;  %v1072_v32 = vmul.f32 %v675_v18, %v1898_v11  ;;  %v911_v46 = vand.u32 2147483647, %v2001_v42 }
 0x120   : > { %v786_v35 = vadd.f32 %v1440_v0, %v785_v58  ;;  %v904_v26 = vsub.f32 1.0, %v903_v33  ;;  %1127 = vst [vmem:[%s1664_s14 + $0xe0] sm:$0xff] %v1095_v34  ;;  %vm908_vm8 = vweird.f32 %v1444_v21  ;;  %v913_v3 = vand.u32 2147483648, %v2001_v42 }
 0x121   : > { %1449 = vpow2.f32 %v519_v25  ;;  %v481_v47 = vsub.f32 0.0, %v2050_v43  ;;  %1104 = vst [vmem:[%s1664_s14 + $0x28] sm:$0xff] %v1072_v32  ;;  %v489_v11 = vsub.f32 0.0, %v2056_v49  ;;  %v2076_v52 = vadd.f32 %v2032_v22, %v396_v41  ;;  %v456_v13 = vpop.f32.mrf.mxu3 }
 0x122   : > { %v790_v50 = vsel %vm789_vm7, %v1440_v0, %v786_v35  ;;  %v905_v29 = vmul.f32 %v1444_v21, %v904_v26  ;;  %vm907_vm9 = vweird.f32 %v2001_v42  ;;  %v914_v39 = vor.u32 1.1754944e-38, %v913_v3 }
 0x123   : > { %v1446_v53 = vpop.eup %1445  ;;  %v795_v30 = vsel %vm2038_vm3, %v794_v38, %v790_v50  ;;  %v535_v55 = vmul.f32 1.442695, %v481_v47  ;;  %v551_v59 = vmul.f32 1.442695, %v489_v11  ;;  %vm909_vm10 = vmor %vm907_vm9, %vm908_vm8  ;;  %v466_v48 = vsub.f32 0.0, %v2076_v52 }
 0x124   : > { %v1080_v36 = vmul.f32 %v795_v30, %v1914_v23  ;;  %v906_v56 = vadd.f32 %v1444_v21, %v905_v29  ;;  %v2082_v57 = vadd.f32 1.0, %v1446_v53  ;;  %v2087_v40 = vadd.f32 %v2032_v22, %v416_v2 }
 0x125   : > { %v1448_v61 = vpop.eup %1447  ;;  %1451 = vpow2.f32 %v535_v55  ;;  %vm912_vm11 = vcmp.eq.f32.partialorder %v911_v46, 8.507059e+37  ;;  %v2093_v24 = vadd.f32 %v2032_v22, %v436_v60  ;;  %v1033_v4 = vand.u32 2147483648, %v2047_v20 }
 0x126   : > { %1112 = vst [vmem:[%s1664_s14 + $0x68] sm:$0xff] %v1080_v36  ;;  %v910_v42 = vsel %vm909_vm10, %v1444_v21, %v906_v56  ;;  %v1023_v23 = vmul.f32 %v1448_v61, %v2047_v20  ;;  %1453 = vrcp.f32 %v2082_v57  ;;  %v505_v28 = vmul.f32 1.442695, %v466_v48 }
 0x127   : > { %v1450_v27 = vpop.eup %1449  ;;  %v915_v63 = vsel %vm912_vm11, %v914_v39, %v910_v42  ;;  %1455 = vpow2.f32 %v551_v59  ;;  %v474_v9 = vsub.f32 0.0, %v2087_v40  ;;  %vm1028_vm12 = vweird.f32 %v1448_v61 }
 0x128   : > { %v1088_v45 = vmul.f32 %v915_v63, %v1934_v51  ;;  %v1024_v17 = vsub.f32 1.0, %v1023_v23  ;;  %v2096_v0 = vadd.f32 1.0, %v1450_v27  ;;  %v1031_v12 = vand.u32 2147483647, %v2047_v20 }
 0x129   : > { %v521_v14 = vmul.f32 1.442695, %v474_v9  ;;  %vm1027_vm13 = vweird.f32 %v2047_v20  ;;  %v482_v8 = vsub.f32 0.0, %v2093_v24  ;;  %v1034_v10 = vor.u32 1.1754944e-38, %v1033_v4 }
 0x12a   : > { %1120 = vst [vmem:[%s1664_s14 + $0xa8] sm:$0xff] %v1088_v45  ;;  %v1025_v7 = vmul.f32 %v1448_v61, %v1024_v17  ;;  %1457 = vrcp.f32 %v2096_v0  ;;  %vm1029_vm14 = vmor %vm1027_vm13, %vm1028_vm12  ;;  %vm1032_vm15 = vcmp.eq.f32.partialorder %v1031_v12, 8.507059e+37  ;;  %v686_v5 = vand.u32 2147483647, %v2082_v57 }
 0x12b   : > { %v1452_v1 = vpop.eup %1451  ;;  %1459 = vpow2.f32 %v505_v28  ;;  %v688_v33 = vand.u32 2147483648, %v2082_v57  ;;  %v537_v34 = vmul.f32 1.442695, %v482_v8  ;;  %v2115_v18 = vadd.f32 %v2032_v22, %v456_v13 }
 0x12c   : > { %v1454_v51 = vpop.eup %1453  ;;  %v1026_v6 = vadd.f32 %v1448_v61, %v1025_v7  ;;  %v2104_v15 = vadd.f32 1.0, %v1452_v1  ;;  %1461 = vpow2.f32 %v521_v14  ;;  %vm682_vm0 = vweird.f32 %v2082_v57 }
 0x12d   : > { %v678_v19 = vmul.f32 %v1454_v51, %v2082_v57  ;;  %v1456_v54 = vpop.eup %1455  ;;  %vm683_vm1 = vweird.f32 %v1454_v51  ;;  %vm2120_vm2 = vcmp.eq.f32.partialorder %v686_v5, 8.507059e+37  ;;  %v808_v26 = vand.u32 2147483648, %v2096_v0 }
 0x12e   : > { %v1030_v21 = vsel %vm1029_vm14, %v1448_v61, %v1026_v6  ;;  %1463 = vrcp.f32 %v2104_v15  ;;  %v2110_v16 = vadd.f32 1.0, %v1456_v54  ;;  %vm684_vm3 = vmor %vm682_vm0, %vm683_vm1  ;;  %v689_v29 = vor.u32 1.1754944e-38, %v688_v33 }
 0x12f   : > { %v1035_v25 = vsel %vm1032_vm15, %v1034_v10, %v1030_v21  ;;  %v679_v20 = vsub.f32 1.0, %v678_v19  ;;  %vm802_vm4 = vweird.f32 %v2096_v0  ;;  %v490_v2 = vsub.f32 0.0, %v2115_v18 }
 0x130   : > { %v1458_v31 = vpop.eup %1457  ;;  %v1096_v58 = vmul.f32 %v1035_v25, %v1959_v44  ;;  %v806_v44 = vand.u32 2147483647, %v2096_v0  ;;  %1465 = vrcp.f32 %v2110_v16  ;;  %v809_v60 = vor.u32 1.1754944e-38, %v808_v26 }
 0x131   : > { %v1460_v38 = vpop.eup %1459  ;;  %v680_v41 = vmul.f32 %v1454_v51, %v679_v20  ;;  %v798_v32 = vmul.f32 %v1458_v31, %v2096_v0  ;;  %1467 = vpow2.f32 %v537_v34  ;;  %vm803_vm5 = vweird.f32 %v1458_v31 }
 0x132   : > { %1128 = vst [vmem:[%s1664_s14 + $0xe8] sm:$0xff] %v1096_v58  ;;  %v1462_v22 = vpop.eup %1461  ;;  %v2127_v47 = vadd.f32 1.0, %v1460_v38  ;;  %vm2136_vm6 = vcmp.eq.f32.partialorder %v806_v44, 8.507059e+37  ;;  %vm804_vm7 = vmor %vm802_vm4, %vm803_vm5  ;;  %v926_v48 = vand.u32 2147483647, %v2104_v15  ;;  %v928_v42 = vand.u32 2147483648, %v2104_v15 }
 0x133   : > { %v681_v46 = vadd.f32 %v1454_v51, %v680_v41  ;;  %v799_v3 = vsub.f32 1.0, %v798_v32  ;;  %v2130_v11 = vadd.f32 1.0, %v1462_v22  ;;  %v553_v23 = vmul.f32 1.442695, %v490_v2 }
 0x134   : > { %v1464_v50 = vpop.eup %1463  ;;  %1469 = vrcp.f32 %v2127_v47  ;;  %vm922_vm9 = vweird.f32 %v2104_v15  ;;  %v1046_v0 = vand.u32 2147483647, %v2110_v16  ;;  %vm927_vm11 = vcmp.eq.f32.partialorder %v926_v48, 8.507059e+37 }
 0x135   : > { %v685_v53 = vsel %vm684_vm3, %v1454_v51, %v681_v46  ;;  %v800_v30 = vmul.f32 %v1458_v31, %v799_v3  ;;  %v918_v55 = vmul.f32 %v1464_v50, %v2104_v15  ;;  %1471 = vrcp.f32 %v2130_v11 }
 0x136   : > { %v690_v36 = vsel %vm2120_vm2, %v689_v29, %v685_v53  ;;  %v1466_v39 = vpop.eup %1465  ;;  %vm923_vm8 = vweird.f32 %v1464_v50  ;;  %v929_v1 = vor.u32 1.1754944e-38, %v928_v42  ;;  %v1048_v14 = vand.u32 2147483648, %v2110_v16 }
 0x137   : > { %v1073_v57 = vmul.f32 %v690_v36, %v2010_v37  ;;  %v801_v59 = vadd.f32 %v1458_v31, %v800_v30  ;;  %v919_v61 = vsub.f32 1.0, %v918_v55  ;;  %v1468_v27 = vpop.eup %1467  ;;  %v1038_v37 = vmul.f32 %v1466_v39, %v2110_v16  ;;  %vm924_vm10 = vmor %vm922_vm9, %vm923_vm8 }
 0x138   : > { %v2154_v7 = vadd.f32 1.0, %v1468_v27  ;;  %1473 = vpow2.f32 %v553_v23  ;;  %vm1043_vm12 = vweird.f32 %v1466_v39  ;;  %vm1042_vm13 = vweird.f32 %v2110_v16 }
 0x139   : > { %1105 = vst [vmem:[%s1664_s14 + $0x30] sm:$0xff] %v1073_v57  ;;  %v805_v63 = vsel %vm804_vm7, %v1458_v31, %v801_v59  ;;  %v920_v45 = vmul.f32 %v1464_v50, %v919_v61  ;;  %v1039_v9 = vsub.f32 1.0, %v1038_v37  ;;  %vm2160_vm14 = vcmp.eq.f32.partialorder %v1046_v0, 8.507059e+37  ;;  %vm1044_vm15 = vmor %vm1042_vm13, %vm1043_vm12 }
 0x13a   : > { %v810_v17 = vsel %vm2136_vm6, %v809_v60, %v805_v63  ;;  %v1470_v12 = vpop.eup %1469  ;;  %1475 = vrcp.f32 %v2154_v7  ;;  %v1049_v5 = vor.u32 1.1754944e-38, %v1048_v14  ;;  %vm697_vm0 = vweird.f32 %v2127_v47 }
 0x13b   : > { %v1081_v4 = vmul.f32 %v810_v17, %v2035_v62  ;;  %v921_v28 = vadd.f32 %v1464_v50, %v920_v45  ;;  %v1040_v6 = vmul.f32 %v1466_v39, %v1039_v9  ;;  %v693_v15 = vmul.f32 %v1470_v12, %v2127_v47  ;;  %v1472_v8 = vpop.eup %1471 }
 0x13c   : > { %v813_v21 = vmul.f32 %v1472_v8, %v2130_v11  ;;  %v701_v25 = vand.u32 2147483647, %v2127_v47  ;;  %v703_v20 = vand.u32 2147483648, %v2127_v47  ;;  %vm698_vm1 = vweird.f32 %v1470_v12 }
 0x13d   : > { %1113 = vst [vmem:[%s1664_s14 + $0x70] sm:$0xff] %v1081_v4  ;;  %v925_v51 = vsel %vm924_vm10, %v1464_v50, %v921_v28  ;;  %v1041_v13 = vadd.f32 %v1466_v39, %v1040_v6  ;;  %v694_v54 = vsub.f32 1.0, %v693_v15  ;;  %vm818_vm2 = vweird.f32 %v1472_v8  ;;  %vm699_vm3 = vmor %vm697_vm0, %vm698_vm1 }
 0x13e   : > { %v930_v62 = vsel %vm927_vm11, %v929_v1, %v925_v51  ;;  %v814_v58 = vsub.f32 1.0, %v813_v21  ;;  %v1474_v33 = vpop.eup %1473  ;;  %v821_v34 = vand.u32 2147483647, %v2130_v11  ;;  %v823_v38 = vand.u32 2147483648, %v2130_v11 }
 0x13f   : > { %v1089_v19 = vmul.f32 %v930_v62, %v2050_v43  ;;  %v1045_v16 = vsel %vm1044_vm15, %v1466_v39, %v1041_v13  ;;  %v695_v31 = vmul.f32 %v1470_v12, %v694_v54  ;;  %v586_v44 = vadd.f32 1.0, %v1474_v33 }
 0x140   : > { %v1050_v43 = vsel %vm2160_vm14, %v1049_v5, %v1045_v16  ;;  %v815_v35 = vmul.f32 %v1472_v8, %v814_v58  ;;  %v1476_v26 = vpop.eup %1475  ;;  %vm702_vm4 = vcmp.eq.f32.partialorder %v701_v25, 8.507059e+37  ;;  %v704_v22 = vor.u32 1.1754944e-38, %v703_v20 }
 0x141   : > { %1121 = vst [vmem:[%s1664_s14 + $0xb0] sm:$0xff] %v1089_v19  ;;  %v1097_v41 = vmul.f32 %v1050_v43, %v2056_v49  ;;  %v696_v32 = vadd.f32 %v1470_v12, %v695_v31  ;;  %vm817_vm5 = vweird.f32 %v2130_v11  ;;  %v933_v50 = vmul.f32 %v1476_v26, %v2154_v7 }
 0x142   : > { %v816_v3 = vadd.f32 %v1472_v8, %v815_v35  ;;  %vm819_vm6 = vmor %vm817_vm5, %vm818_vm2  ;;  %v824_v49 = vor.u32 1.1754944e-38, %v823_v38  ;;  %1477 = vrcp.f32 %v586_v44  ;;  %vm822_vm7 = vcmp.eq.f32.partialorder %v821_v34, 8.507059e+37 }
 0x143   : > { %1129 = vst [vmem:[%s1664_s14 + $0xf0] sm:$0xff] %v1097_v41  ;;  %v700_v46 = vsel %vm699_vm3, %v1470_v12, %v696_v32  ;;  %v934_v53 = vsub.f32 1.0, %v933_v50  ;;  %v943_v55 = vand.u32 2147483648, %v2154_v7  ;;  %vm938_vm8 = vweird.f32 %v1476_v26 }
 0x144   : > { %v705_v29 = vsel %vm702_vm4, %v704_v22, %v700_v46  ;;  %v820_v47 = vsel %vm819_vm6, %v1472_v8, %v816_v3  ;;  %v941_v56 = vand.u32 2147483647, %v2154_v7  ;;  %vm937_vm9 = vweird.f32 %v2154_v7 }
 0x145   : > { %v1074_v2 = vmul.f32 %v705_v29, %v2076_v52  ;;  %v825_v30 = vsel %vm822_vm7, %v824_v49, %v820_v47  ;;  %v935_v11 = vmul.f32 %v1476_v26, %v934_v53  ;;  %vm939_vm10 = vmor %vm937_vm9, %vm938_vm8  ;;  %v944_v52 = vor.u32 1.1754944e-38, %v943_v55 }
 0x146   : > { %v1082_v36 = vmul.f32 %v825_v30, %v2087_v40  ;;  %vm942_vm11 = vcmp.eq.f32.partialorder %v941_v56, 8.507059e+37  ;;  %v1063_v42 = vand.u32 2147483648, %v586_v44  ;;  %v1061_v27 = vand.u32 2147483647, %v586_v44 }
 0x147   : > { %1106 = vst [vmem:[%s1664_s14 + $0x38] sm:$0xff] %v1074_v2  ;;  %v936_v57 = vadd.f32 %v1476_v26, %v935_v11  ;;  %vm1057_vm13 = vweird.f32 %v586_v44 }
 0x148   : > { %1114 = vst [vmem:[%s1664_s14 + $0x78] sm:$0xff] %v1082_v36  ;;  %v1478_v59 = vpop.eup %1477  ;;  %v1064_v45 = vor.u32 1.1754944e-38, %v1063_v42  ;;  %vm1062_vm15 = vcmp.eq.f32.partialorder %v1061_v27, 8.507059e+37 }
 0x149   : > { %v940_v60 = vsel %vm939_vm10, %v1476_v26, %v936_v57  ;;  %v1053_v61 = vmul.f32 %v1478_v59, %v586_v44  ;;  %vm1058_vm12 = vweird.f32 %v1478_v59 }
 0x14a   : > { %v945_v39 = vsel %vm942_vm11, %v944_v52, %v940_v60  ;;  %vm1059_vm14 = vmor %vm1057_vm13, %vm1058_vm12 }
 0x14b   : > { %v1090_v48 = vmul.f32 %v945_v39, %v2093_v24  ;;  %v1054_v40 = vsub.f32 1.0, %v1053_v61 }
 0x14d   : > { %1122 = vst [vmem:[%s1664_s14 + $0xb8] sm:$0xff] %v1090_v48  ;;  %v1055_v23 = vmul.f32 %v1478_v59, %v1054_v40 }
 0x14f   : > { %v1056_v63 = vadd.f32 %v1478_v59, %v1055_v23 }
 0x151   : > { %v1060_v37 = vsel %vm1059_vm14, %v1478_v59, %v1056_v63 }
 0x152   : > { %v1065_v17 = vsel %vm1062_vm15, %v1064_v45, %v1060_v37 }
 0x153   : > { %v1098_v0 = vmul.f32 %v1065_v17, %v2115_v18 }
 0x155   : > { %1130 = vst [vmem:[%s1664_s14 + $0xf8] sm:$0xff] %v1098_v0 }
 0x156 PF: > { %s13_s12 = sadd.s32 1, %s1486_s12  }
 0x157   : > { %p10_p4 = scmp.ge.s32.totalorder %s13_s12, 10  }
 0x159   :  { %12 = sbr.rel (!%p10_p4) target bundleno = 1 (0x1), region = 62 }

// kernel: proto_forward.6
= control target key start
LH: loop header
LB: loop body
LE: loop exit
PB: predicated region body
PF: predicated region fallthrough
CT: control target
= control target key end

     0   :  { %s4590_s12 = smov 0   ;;  %s5854_s0 = inlined_call_operand.vmem [shape: bf16[2048,1152], index: 0, kind: input, shape index: {}]   ;;  %s5855_s1 = inlined_call_operand.vmem [shape: bf16[1152,128], index: 1, kind: input, shape index: {}]   ;;  %s5856_s2 = inlined_call_operand.vmem [shape: f32[1,128], index: 2, kind: input, shape index: {}]   ;;  %s5857_s3 = inlined_call_operand.vmem [shape: bf16[2048,128], index: 3, kind: output, shape index: {}]  }
   0x1 LB: > { %s3214_s13 = sadd.s32 4294967295, %s4568_s12   ;;  %p3218_p0 = scmp.ge.s32.totalorder %s4568_s12, 1  ;;  %s4568_s12 = sphi %s4590_s12, %s13_s12  }
   0x2   : > { %p139_p1 = scmp.lt.s32.totalorder %s4568_s12, 9 }
   0x4   : > { %p140_p2 = pnand %p3218_p0, %p139_p1 }
   0x6   : > { %143 = sbr.rel (%p140_p2) target bundleno = 784 (0x310), region = 32 }
   0xb   : > { %v4240_v0 = vld [vmem:[%s5855_s1 + $0x38] sm:$0xff]  ;;  %v4239_v1 = vld [vmem:[%s5855_s1 + $0x30] sm:$0xff]  ;;  %v4238_v2 = vld [vmem:[%s5855_s1 + $0x28] sm:$0xff]  ;;  %s3219_s20 = sshll.u32 %s3214_s13, 5 }
   0xc   : > { %4400 = vmatpush.bf16.msra.mxu1 %v4240_v0  ;;  %4401 = vmatpush.bf16.msra.mxu2 %v4240_v0  ;;  %v4237_v3 = vld [vmem:[%s5855_s1 + $0x20] sm:$0xff]  ;;  %p165_p3 = scmp.lt.s32.totalorder %s3219_s20, 255  ;;  %v4236_v4 = vld [vmem:[%s5855_s1 + $0x18] sm:$0xff]  ;;  %v4235_v5 = vld [vmem:[%s5855_s1 + $0x10] sm:$0xff] }
   0xd   : > { %4402 = vmatpush.bf16.msra.mxu3 %v4240_v0  ;;  %1653 = vmatpush.bf16.msra.mxu0 %v4240_v0  ;;  %v4234_v6 = vld [vmem:[%s5855_s1 + $0x8] sm:$0xff]  ;;  %v4233_v7 = vld [vmem:[%s5855_s1] sm:$0xff]  ;;  %v4256_v16 = vld [vmem:[%s5855_s1 + $0xb8] sm:$0xff] }
   0xe   : > { %s5891_s20 = smov (!%p165_p3, %s3219_s20), 255  ;;  %v4264_v17 = vld [vmem:[%s5855_s1 + $0xf8] sm:$0xff]  ;;  %v4255_v24 = vld [vmem:[%s5855_s1 + $0xb0] sm:$0xff]  ;;  %v4254_v28 = vld [vmem:[%s5855_s1 + $0xa8] sm:$0xff] }
   0xf   : > { %s4424_s27 = smul.u32 36, %s5891_s20  ;;  %v4248_v22 = vld [vmem:[%s5855_s1 + $0x78] sm:$0xff]  ;;  %v4263_v25 = vld [vmem:[%s5855_s1 + $0xf0] sm:$0xff]  ;;  %v4262_v29 = vld [vmem:[%s5855_s1 + $0xe8] sm:$0xff]  ;;  %s3222_s19 = sshll.u32 %s5891_s20, 2 }
  0x10   : > { %4403 = vmatpush.bf16.msra.mxu1 %v4239_v1  ;;  %4404 = vmatpush.bf16.msra.mxu2 %v4239_v1  ;;  %v4272_v23 = vld [vmem:[%s5855_s1 + $0x138] sm:$0xff]  ;;  %v4247_v26 = vld [vmem:[%s5855_s1 + $0x70] sm:$0xff]  ;;  %v4246_v30 = vld [vmem:[%s5855_s1 + $0x68] sm:$0xff]  ;;  %s5342_s22 = scalar_lea.vmem %s5857_s3, %s3222_s19 }
  0x11   : > { %4405 = vmatpush.bf16.msra.mxu3 %v4239_v1  ;;  %1654 = vmatpush.bf16.msra.mxu0 %v4239_v1  ;;  %s4625_s5 = scalar_lea.vmem %s5854_s0, %s4424_s27  ;;  %v4271_v27 = vld [vmem:[%s5855_s1 + $0x130] sm:$0xff]  ;;  %v4270_v31 = vld [vmem:[%s5855_s1 + $0x128] sm:$0xff]  ;;  %v4253_v33 = vld [vmem:[%s5855_s1 + $0xa0] sm:$0xff] }
  0x12   : > { %v3369_v8 = vld [vmem:[%s4625_s5 + $0x120] sm:$0xf]  ;;  %v4129_v9 = vld [vmem:[%s4625_s5 + $0x140] sm:$0xf0]  ;;  %v3405_v32 = vld [vmem:[%s4625_s5 + $0x168] sm:$0xf] }
  0x13   : > { %v3513_v10 = vld [vmem:[%s4625_s5 + $0x240] sm:$0xf]  ;;  %v4165_v11 = vld [vmem:[%s4625_s5 + $0x260] sm:$0xf0]  ;;  %v3370_v18 = vor.u32 %v4129_v9, %v3369_v8  ;;  %v4138_v35 = vld [vmem:[%s4625_s5 + $0x188] sm:$0xf0] }
  0x14   : > { %4406 = vmatpush.bf16.msra.mxu1 %v4238_v2  ;;  %4407 = vmatpush.bf16.msra.mxu2 %v4238_v2  ;;  %v3657_v12 = vld [vmem:[%s4625_s5 + $0x360] sm:$0xf]  ;;  %v4201_v13 = vld [vmem:[%s4625_s5 + $0x380] sm:$0xf0]  ;;  %v3514_v19 = vor.u32 %v4165_v11, %v3513_v10  ;;  %v3549_v36 = vld [vmem:[%s4625_s5 + $0x288] sm:$0xf]  ;;  %v3406_v46 = vor.u32 %v4138_v35, %v3405_v32 }
  0x15   : > { %4408 = vmatpush.bf16.msra.mxu3 %v4238_v2  ;;  %1655 = vmatpush.bf16.msra.mxu0 %v4238_v2  ;;  %v3225_v14 = vld [vmem:[%s4625_s5] sm:$0xf]  ;;  %v4093_v15 = vld [vmem:[%s4625_s5 + $0x20] sm:$0xf0]  ;;  %v3658_v20 = vor.u32 %v4201_v13, %v3657_v12  ;;  %v4174_v37 = vld [vmem:[%s4625_s5 + $0x2a8] sm:$0xf0] }
  0x16   : > { %v3226_v21 = vor.u32 %v4093_v15, %v3225_v14  ;;  %v4261_v34 = vld [vmem:[%s5855_s1 + $0xe0] sm:$0xff]  ;;  %v3693_v38 = vld [vmem:[%s4625_s5 + $0x3a8] sm:$0xf]  ;;  %v4210_v39 = vld [vmem:[%s4625_s5 + $0x3c8] sm:$0xf0]  ;;  %v3550_v47 = vor.u32 %v4174_v37, %v3549_v36 }
  0x17   : > { %v3261_v40 = vld [vmem:[%s4625_s5 + $0x48] sm:$0xf]  ;;  %v4102_v41 = vld [vmem:[%s4625_s5 + $0x68] sm:$0xf0]  ;;  %v4245_v42 = vld [vmem:[%s5855_s1 + $0x60] sm:$0xff]  ;;  %v3694_v48 = vor.u32 %v4210_v39, %v3693_v38 }
  0x18   : > { %4409 = vmatpush.bf16.msra.mxu1 %v4237_v3  ;;  %4410 = vmatpush.bf16.msra.mxu2 %v4237_v3  ;;  %v4269_v43 = vld [vmem:[%s5855_s1 + $0x120] sm:$0xff]  ;;  %v4252_v44 = vld [vmem:[%s5855_s1 + $0x98] sm:$0xff]  ;;  %v3262_v49 = vor.u32 %v4102_v41, %v3261_v40  ;;  %v4251_v52 = vld [vmem:[%s5855_s1 + $0x90] sm:$0xff] }
  0x19   : > { %4411 = vmatpush.bf16.msra.mxu3 %v4237_v3  ;;  %1656 = vmatpush.bf16.msra.mxu0 %v4237_v3  ;;  %v4260_v45 = vld [vmem:[%s5855_s1 + $0xd8] sm:$0xff]  ;;  %v4259_v53 = vld [vmem:[%s5855_s1 + $0xd0] sm:$0xff]  ;;  %v4250_v56 = vld [vmem:[%s5855_s1 + $0x88] sm:$0xff] }
  0x1a   : > { %v4244_v50 = vld [vmem:[%s5855_s1 + $0x58] sm:$0xff]  ;;  %v4243_v54 = vld [vmem:[%s5855_s1 + $0x50] sm:$0xff]  ;;  %v4258_v57 = vld [vmem:[%s5855_s1 + $0xc8] sm:$0xff] }
  0x1b   : > { %v4268_v51 = vld [vmem:[%s5855_s1 + $0x118] sm:$0xff]  ;;  %v4267_v55 = vld [vmem:[%s5855_s1 + $0x110] sm:$0xff]  ;;  %v4242_v58 = vld [vmem:[%s5855_s1 + $0x48] sm:$0xff] }
  0x1c   : > { %4412 = vmatpush.bf16.msra.mxu1 %v4236_v4  ;;  %4413 = vmatpush.bf16.msra.mxu2 %v4236_v4  ;;  %v4266_v59 = vld [vmem:[%s5855_s1 + $0x108] sm:$0xff]  ;;  %v3441_v60 = vld [vmem:[%s4625_s5 + $0x1b0] sm:$0xf]  ;;  %v4249_v61 = vld [vmem:[%s5855_s1 + $0x80] sm:$0xff] }
  0x1d   : > { %4414 = vmatpush.bf16.msra.mxu3 %v4236_v4  ;;  %1657 = vmatpush.bf16.msra.mxu0 %v4236_v4  ;;  %v4257_v62 = vld [vmem:[%s5855_s1 + $0xc0] sm:$0xff]  ;;  %v4147_v63 = vld [vmem:[%s4625_s5 + $0x1d0] sm:$0xf0]  ;;  %v3585_v0 = vld [vmem:[%s4625_s5 + $0x2d0] sm:$0xf] }
  0x1e   : > { %v4183_v1 = vld [vmem:[%s4625_s5 + $0x2f0] sm:$0xf0]  ;;  %v3729_v2 = vld [vmem:[%s4625_s5 + $0x3f0] sm:$0xf]  ;;  %v3442_v8 = vor.u32 %v4147_v63, %v3441_v60  ;;  %v4288_v12 = vld [vmem:[%s5855_s1 + $0x1b8] sm:$0xff] }
  0x1f   : > { %v4219_v3 = vld [vmem:[%s4625_s5 + $0x410] sm:$0xf0]  ;;  %v3297_v4 = vld [vmem:[%s4625_s5 + $0x90] sm:$0xf]  ;;  %v3586_v9 = vor.u32 %v4183_v1, %v3585_v0  ;;  %v4296_v13 = vld [vmem:[%s5855_s1 + $0x1f8] sm:$0xff] }
  0x20   : > { %4415 = vmatpush.bf16.msra.mxu1 %v4235_v5  ;;  %4416 = vmatpush.bf16.msra.mxu2 %v4235_v5  ;;  %v3730_v10 = vor.u32 %v4219_v3, %v3729_v2  ;;  %v4280_v14 = vld [vmem:[%s5855_s1 + $0x178] sm:$0xff]  ;;  %v4090_v32 = vld [vmem:[%s4625_s5 + $0xc] sm:$0xf]  ;;  %v4095_v35 = vld [vmem:[%s4625_s5 + $0x30] sm:$0xf0] }
  0x21   : > { %4417 = vmatpush.bf16.msra.mxu3 %v4235_v5  ;;  %1658 = vmatpush.bf16.msra.mxu0 %v4235_v5  ;;  %v4111_v5 = vld [vmem:[%s4625_s5 + $0xb0] sm:$0xf0]  ;;  %v4304_v15 = vld [vmem:[%s5855_s1 + $0x238] sm:$0xff]  ;;  %v4113_v63 = vld [vmem:[%s4625_s5 + $0xc0] sm:$0xf0] }
  0x22   : > { %v3298_v11 = vor.u32 %v4111_v5, %v3297_v4  ;;  %v4287_v40 = vld [vmem:[%s5855_s1 + $0x1b0] sm:$0xff]  ;;  %v4108_v60 = vld [vmem:[%s4625_s5 + $0x9c] sm:$0xf]  ;;  %v4286_v4 = vld [vmem:[%s5855_s1 + $0x1a8] sm:$0xff] }
  0x23   : > { %v4295_v41 = vld [vmem:[%s5855_s1 + $0x1f0] sm:$0xff]  ;;  %v4294_v5 = vld [vmem:[%s5855_s1 + $0x1e8] sm:$0xff] }
  0x24   : > { %4418 = vmatpush.bf16.msra.mxu1 %v4234_v6  ;;  %4419 = vmatpush.bf16.msra.mxu2 %v4234_v6 }
  0x25   : > { %4420 = vmatpush.bf16.msra.mxu3 %v4234_v6  ;;  %1659 = vmatpush.bf16.msra.mxu0 %v4234_v6  ;;  %v4241_v6 = vld [vmem:[%s5855_s1 + $0x40] sm:$0xff] }
  0x28   : > { %4421 = vmatpush.bf16.msra.mxu1 %v4233_v7  ;;  %4422 = vmatpush.bf16.msra.mxu2 %v4233_v7 }
  0x29   : > { %4423 = vmatpush.bf16.msra.mxu3 %v4233_v7  ;;  %1660 = vmatpush.bf16.msra.mxu0 %v4233_v7  ;;  %v4265_v7 = vld [vmem:[%s5855_s1 + $0x100] sm:$0xff] }
  0x2b   : > { %1681 = vmatmul.bf16.vlgmr.msra.gmra.mxu1 %v3370_v18  ;;  %1701 = vmatmul.bf16.vlgmr.msra.gmra.mxu2 %v3514_v19  ;;  %v3621_v18 = vld [vmem:[%s4625_s5 + $0x318] sm:$0xf]  ;;  %v4192_v19 = vld [vmem:[%s4625_s5 + $0x338] sm:$0xf0] }
  0x2c   : > { %1831 = vmatpush.bf16.msrb.mxu2 %v4256_v16  ;;  %1721 = vmatmul.bf16.vlgmr.msra.gmra.mxu3 %v3658_v20  ;;  %v3477_v16 = vld [vmem:[%s4625_s5 + $0x1f8] sm:$0xf] }
  0x2d   : > { %1920 = vmatpush.bf16.msrb.mxu3 %v4264_v17  ;;  %1661 = vmatmul.bf16.vlgmr.msra.gmra.mxu0 %v3226_v21  ;;  %v4156_v17 = vld [vmem:[%s4625_s5 + $0x218] sm:$0xf0]  ;;  %v3765_v20 = vld [vmem:[%s4625_s5 + $0x438] sm:$0xf] }
  0x2e   : > { %1742 = vmatpush.bf16.msrb.mxu1 %v4248_v22  ;;  %2009 = vmatpush.bf16.msrb.mxu0 %v4272_v23  ;;  %v4228_v21 = vld [vmem:[%s4625_s5 + $0x458] sm:$0xf0]  ;;  %v3333_v22 = vld [vmem:[%s4625_s5 + $0xd8] sm:$0xf] }
  0x2f   : > { %v4120_v23 = vld [vmem:[%s4625_s5 + $0xf8] sm:$0xf0] }
  0x30   : > { %1832 = vmatpush.bf16.msrb.mxu2 %v4255_v24  ;;  %v3478_v24 = vor.u32 %v4156_v17, %v3477_v16 }
  0x31   : > { %1921 = vmatpush.bf16.msrb.mxu3 %v4263_v25  ;;  %v3622_v25 = vor.u32 %v4192_v19, %v3621_v18 }
  0x32   : > { %1743 = vmatpush.bf16.msrb.mxu1 %v4247_v26  ;;  %2010 = vmatpush.bf16.msrb.mxu0 %v4271_v27  ;;  %v3766_v26 = vor.u32 %v4228_v21, %v3765_v20  ;;  %v3334_v27 = vor.u32 %v4120_v23, %v3333_v22  ;;  %v4829_v20 = vld [vmem:[%s5856_s2] ss:$0 sm:$0xff]  ;;  %v4125_v21 = vld [vmem:[%s4625_s5 + $0x124] sm:$0xf]  ;;  %v3371_v22 = vld [vmem:[%s4625_s5 + $0x144] sm:$0xf0] }
  0x33   : > { %v3377_v23 = vld [vmem:[%s4625_s5 + $0x128] sm:$0xf] }
  0x34   : > { %1833 = vmatpush.bf16.msrb.mxu2 %v4254_v28  ;;  %v4089_v28 = vld [vmem:[%s4625_s5 + $0x4] sm:$0xf] }
  0x35   : > { %1922 = vmatpush.bf16.msrb.mxu3 %v4262_v29  ;;  %v3227_v29 = vld [vmem:[%s4625_s5 + $0x24] sm:$0xf0] }
  0x36   : > { %1744 = vmatpush.bf16.msrb.mxu1 %v4246_v30  ;;  %2011 = vmatpush.bf16.msrb.mxu0 %v4270_v31  ;;  %v3233_v30 = vld [vmem:[%s4625_s5 + $0x8] sm:$0xf]  ;;  %v4094_v31 = vld [vmem:[%s4625_s5 + $0x28] sm:$0xf0]  ;;  %v3230_v36 = vor.u32 %v4089_v28, %v3227_v29  ;;  %v4131_v28 = vld [vmem:[%s4625_s5 + $0x150] sm:$0xf0]  ;;  %v3374_v29 = vor.u32 %v4125_v21, %v3371_v22 }
  0x37   : > { %v3234_v37 = vor.u32 %v4094_v31, %v3233_v30 }
  0x38   : > { %1834 = vmatpush.bf16.msrb.mxu2 %v4253_v33  ;;  %v3235_v33 = vld [vmem:[%s4625_s5 + $0x2c] sm:$0xf0] }
  0x39   : > { %1923 = vmatpush.bf16.msrb.mxu3 %v4261_v34  ;;  %v3241_v34 = vld [vmem:[%s4625_s5 + $0x10] sm:$0xf]  ;;  %v3238_v38 = vor.u32 %v4090_v32, %v3235_v33 }
  0x3a   : > { %1745 = vmatpush.bf16.msrb.mxu1 %v4245_v42  ;;  %2012 = vmatpush.bf16.msrb.mxu0 %v4269_v43  ;;  %v3242_v39 = vor.u32 %v4095_v35, %v3241_v34  ;;  %v4279_v42 = vld [vmem:[%s5855_s1 + $0x170] sm:$0xff] }
  0x3b   : > { %1686 = vmatmul.bf16.gmra.mxu1 %v3406_v46  ;;  %1706 = vmatmul.bf16.gmra.mxu2 %v3550_v47  ;;  %v4303_v43 = vld [vmem:[%s5855_s1 + $0x230] sm:$0xff] }
  0x3c   : > { %1835 = vmatpush.bf16.msrb.mxu2 %v4252_v44  ;;  %1726 = vmatmul.bf16.gmra.mxu3 %v3694_v48  ;;  %v4098_v44 = vld [vmem:[%s4625_s5 + $0x4c] sm:$0xf]  ;;  %v3269_v46 = vld [vmem:[%s4625_s5 + $0x50] sm:$0xf]  ;;  %v4103_v47 = vld [vmem:[%s4625_s5 + $0x70] sm:$0xf0] }
  0x3d   : > { %1924 = vmatpush.bf16.msrb.mxu3 %v4260_v45  ;;  %1666 = vmatmul.bf16.gmra.mxu0 %v3262_v49  ;;  %v3263_v45 = vld [vmem:[%s4625_s5 + $0x6c] sm:$0xf0]  ;;  %v4099_v48 = vld [vmem:[%s4625_s5 + $0x54] sm:$0xf]  ;;  %v3271_v49 = vld [vmem:[%s4625_s5 + $0x74] sm:$0xf0] }
  0x3e   : > { %1746 = vmatpush.bf16.msrb.mxu1 %v4244_v50  ;;  %2013 = vmatpush.bf16.msrb.mxu0 %v4268_v51  ;;  %v3277_v50 = vld [vmem:[%s4625_s5 + $0x58] sm:$0xf]  ;;  %v4104_v51 = vld [vmem:[%s4625_s5 + $0x78] sm:$0xf0] }
  0x40   : > { %1836 = vmatpush.bf16.msrb.mxu2 %v4251_v52  ;;  %v3266_v52 = vor.u32 %v4098_v44, %v3263_v45 }
  0x41   : > { %1925 = vmatpush.bf16.msrb.mxu3 %v4259_v53  ;;  %v3270_v53 = vor.u32 %v4103_v47, %v3269_v46  ;;  %v4301_v46 = vld [vmem:[%s5855_s1 + $0x220] sm:$0xff]  ;;  %v4134_v47 = vld [vmem:[%s4625_s5 + $0x16c] sm:$0xf] }
  0x42   : > { %1747 = vmatpush.bf16.msrb.mxu1 %v4243_v54  ;;  %2014 = vmatpush.bf16.msrb.mxu0 %v4267_v55  ;;  %v3274_v54 = vor.u32 %v4099_v48, %v3271_v49  ;;  %v3278_v55 = vor.u32 %v4104_v51, %v3277_v50  ;;  %v3407_v48 = vld [vmem:[%s4625_s5 + $0x18c] sm:$0xf0]  ;;  %v4139_v50 = vld [vmem:[%s4625_s5 + $0x190] sm:$0xf0] }
  0x43   : > { %v3413_v49 = vld [vmem:[%s4625_s5 + $0x170] sm:$0xf]  ;;  %v4135_v51 = vld [vmem:[%s4625_s5 + $0x174] sm:$0xf] }
  0x44   : > { %1837 = vmatpush.bf16.msrb.mxu2 %v4250_v56  ;;  %v4107_v56 = vld [vmem:[%s4625_s5 + $0x94] sm:$0xf] }
  0x45   : > { %1926 = vmatpush.bf16.msrb.mxu3 %v4258_v57  ;;  %v3299_v57 = vld [vmem:[%s4625_s5 + $0xb4] sm:$0xf0] }
  0x46   : > { %1748 = vmatpush.bf16.msrb.mxu1 %v4242_v58  ;;  %2015 = vmatpush.bf16.msrb.mxu0 %v4266_v59  ;;  %v3305_v58 = vld [vmem:[%s4625_s5 + $0x98] sm:$0xf]  ;;  %v4112_v59 = vld [vmem:[%s4625_s5 + $0xb8] sm:$0xf0]  ;;  %v3302_v0 = vor.u32 %v4107_v56, %v3299_v57 }
  0x47   : > { %v3306_v1 = vor.u32 %v4112_v59, %v3305_v58  ;;  %v3410_v58 = vor.u32 %v4134_v47, %v3407_v48  ;;  %v3414_v59 = vor.u32 %v4139_v50, %v3413_v49  ;;  %v3479_v47 = vld [vmem:[%s4625_s5 + $0x21c] sm:$0xf0]  ;;  %v4157_v49 = vld [vmem:[%s4625_s5 + $0x220] sm:$0xf0] }
  0x48   : > { %1838 = vmatpush.bf16.msrb.mxu2 %v4249_v61  ;;  %v3307_v61 = vld [vmem:[%s4625_s5 + $0xbc] sm:$0xf0]  ;;  %v4153_v50 = vld [vmem:[%s4625_s5 + $0x204] sm:$0xf] }
  0x49   : > { %1927 = vmatpush.bf16.msrb.mxu3 %v4257_v62  ;;  %v3313_v62 = vld [vmem:[%s4625_s5 + $0xa0] sm:$0xf]  ;;  %v3310_v2 = vor.u32 %v4108_v60, %v3307_v61 }
  0x4a   : > { %1749 = vmatpush.bf16.msrb.mxu1 %v4241_v6  ;;  %2016 = vmatpush.bf16.msrb.mxu0 %v4265_v7  ;;  %v3314_v3 = vor.u32 %v4113_v63, %v3313_v62  ;;  %v4278_v6 = vld [vmem:[%s5855_s1 + $0x168] sm:$0xff]  ;;  %v3485_v48 = vld [vmem:[%s4625_s5 + $0x200] sm:$0xf] }
  0x4b   : > { %1691 = vmatmul.bf16.gmra.mxu1 %v3442_v8  ;;  %1711 = vmatmul.bf16.gmra.mxu2 %v3586_v9  ;;  %v4302_v7 = vld [vmem:[%s5855_s1 + $0x228] sm:$0xff]  ;;  %v4116_v8 = vld [vmem:[%s4625_s5 + $0xdc] sm:$0xf]  ;;  %v3335_v9 = vld [vmem:[%s4625_s5 + $0xfc] sm:$0xf0] }
  0x4c   : > { %1731 = vmatmul.bf16.gmra.mxu3 %v3730_v10  ;;  %2187 = vmatpush.bf16.msra.mxu2 %v4288_v12  ;;  %v3341_v10 = vld [vmem:[%s4625_s5 + $0xe0] sm:$0xf]  ;;  %v4117_v12 = vld [vmem:[%s4625_s5 + $0xe4] sm:$0xf]  ;;  %v3338_v16 = vor.u32 %v4116_v8, %v3335_v9  ;;  %v4143_v9 = vld [vmem:[%s4625_s5 + $0x1b4] sm:$0xf] }
  0x4d   : > { %1671 = vmatmul.bf16.gmra.mxu0 %v3298_v11  ;;  %2276 = vmatpush.bf16.msra.mxu3 %v4296_v13  ;;  %v4121_v11 = vld [vmem:[%s4625_s5 + $0x100] sm:$0xf0]  ;;  %v3343_v13 = vld [vmem:[%s4625_s5 + $0x104] sm:$0xf0] }
  0x4e   : > { %2098 = vmatpush.bf16.msra.mxu1 %v4280_v14  ;;  %2365 = vmatpush.bf16.msra.mxu0 %v4304_v15  ;;  %v3349_v14 = vld [vmem:[%s4625_s5 + $0xe8] sm:$0xf]  ;;  %v4122_v15 = vld [vmem:[%s4625_s5 + $0x108] sm:$0xf0]  ;;  %v3342_v17 = vor.u32 %v4121_v11, %v3341_v10  ;;  %v3346_v18 = vor.u32 %v4117_v12, %v3343_v13  ;;  %v3443_v10 = vld [vmem:[%s4625_s5 + $0x1d4] sm:$0xf0] }
  0x4f   : > { %v3350_v19 = vor.u32 %v4122_v15, %v3349_v14  ;;  %v3449_v11 = vld [vmem:[%s4625_s5 + $0x1b8] sm:$0xf]  ;;  %v4148_v12 = vld [vmem:[%s4625_s5 + $0x1d8] sm:$0xf0]  ;;  %v3451_v14 = vld [vmem:[%s4625_s5 + $0x1dc] sm:$0xf0]  ;;  %v3446_v21 = vor.u32 %v4143_v9, %v3443_v10 }
  0x50   : > { %2188 = vmatpush.bf16.msra.mxu2 %v4287_v40  ;;  %v4144_v13 = vld [vmem:[%s4625_s5 + $0x1bc] sm:$0xf]  ;;  %v3457_v15 = vld [vmem:[%s4625_s5 + $0x1c0] sm:$0xf]  ;;  %v3450_v22 = vor.u32 %v4148_v12, %v3449_v11 }
  0x51   : > { %2277 = vmatpush.bf16.msra.mxu3 %v4295_v41 }
  0x52   : > { %2099 = vmatpush.bf16.msra.mxu1 %v4279_v42  ;;  %2366 = vmatpush.bf16.msra.mxu0 %v4303_v43  ;;  %v4277_v43 = vld [vmem:[%s5855_s1 + $0x160] sm:$0xff] }
  0x54   : > { %2189 = vmatpush.bf16.msra.mxu2 %v4286_v4 }
  0x55   : > { %2278 = vmatpush.bf16.msra.mxu3 %v4294_v5 }
  0x56   : > { %2100 = vmatpush.bf16.msra.mxu1 %v4278_v6  ;;  %2367 = vmatpush.bf16.msra.mxu0 %v4302_v7 }
  0x5a   : > { %2101 = vmatpush.bf16.msra.mxu1 %v4277_v43  ;;  %2368 = vmatpush.bf16.msra.mxu0 %v4301_v46  ;;  %v4300_v43 = vld [vmem:[%s5855_s1 + $0x218] sm:$0xff] }
  0x5b   : > { %1696 = vmatmul.bf16.gmra.mxu1 %v3478_v24  ;;  %1716 = vmatmul.bf16.gmra.mxu2 %v3622_v25  ;;  %v4130_v24 = vld [vmem:[%s4625_s5 + $0x148] sm:$0xf0]  ;;  %v4152_v46 = vld [vmem:[%s4625_s5 + $0x1fc] sm:$0xf] }
  0x5c   : > { %1736 = vmatmul.bf16.gmra.mxu3 %v3766_v26  ;;  %v4126_v25 = vld [vmem:[%s4625_s5 + $0x12c] sm:$0xf]  ;;  %v3379_v26 = vld [vmem:[%s4625_s5 + $0x14c] sm:$0xf0]  ;;  %v3378_v30 = vor.u32 %v4130_v24, %v3377_v23 }
  0x5d   : > { %1676 = vmatmul.bf16.gmra.mxu0 %v3334_v27  ;;  %v3385_v27 = vld [vmem:[%s4625_s5 + $0x130] sm:$0xf]  ;;  %v3382_v32 = vor.u32 %v4126_v25, %v3379_v26  ;;  %v3454_v25 = vor.u32 %v4144_v13, %v3451_v14 }
  0x5e   : > { %v3386_v33 = vor.u32 %v4131_v28, %v3385_v27  ;;  %2369 = vmatpush.bf16.msra.mxu0 %v4300_v43 }
  0x6b   : > { %1750 = vmatmul.bf16.vlgmr.msrb.gmra.mxu1 %v3230_v36  ;;  %1839 = vmatmul.bf16.vlgmr.msrb.gmra.mxu2 %v3234_v37  ;;  %v4285_v36 = vld [vmem:[%s5855_s1 + $0x1a0] sm:$0xff] }
  0x6c   : > { %1928 = vmatmul.bf16.vlgmr.msrb.gmra.mxu3 %v3238_v38  ;;  %v4293_v37 = vld [vmem:[%s5855_s1 + $0x1e0] sm:$0xff]  ;;  %2190 = vmatpush.bf16.msra.mxu2 %v4285_v36 }
  0x6d   : > { %2017 = vmatmul.bf16.vlgmr.msrb.gmra.mxu0 %v3242_v39  ;;  %2279 = vmatpush.bf16.msra.mxu3 %v4293_v37 }
  0x7b   : > { %1755 = vmatmul.bf16.gmra.mxu1 %v3266_v52  ;;  %1844 = vmatmul.bf16.gmra.mxu2 %v3270_v53  ;;  %v3415_v52 = vld [vmem:[%s4625_s5 + $0x194] sm:$0xf0] }
  0x7c   : > { %1933 = vmatmul.bf16.gmra.mxu3 %v3274_v54  ;;  %v3421_v53 = vld [vmem:[%s4625_s5 + $0x178] sm:$0xf]  ;;  %v4140_v54 = vld [vmem:[%s4625_s5 + $0x198] sm:$0xf0]  ;;  %v3418_v62 = vor.u32 %v4135_v51, %v3415_v52  ;;  %v3487_v51 = vld [vmem:[%s4625_s5 + $0x224] sm:$0xf0] }
  0x7d   : > { %2022 = vmatmul.bf16.gmra.mxu0 %v3278_v55  ;;  %v3422_v63 = vor.u32 %v4140_v54, %v3421_v53  ;;  %v3493_v52 = vld [vmem:[%s4625_s5 + $0x208] sm:$0xf]  ;;  %v4158_v53 = vld [vmem:[%s4625_s5 + $0x228] sm:$0xf0] }
  0x8b   : > { %1760 = vmatmul.bf16.gmra.mxu1 %v3302_v0  ;;  %1849 = vmatmul.bf16.gmra.mxu2 %v3306_v1 }
  0x8c   : > { %1938 = vmatmul.bf16.gmra.mxu3 %v3310_v2 }
  0x8d   : > { %2027 = vmatmul.bf16.gmra.mxu0 %v3314_v3 }
  0x9b   : > { %1765 = vmatmul.bf16.gmra.mxu1 %v3338_v16  ;;  %1854 = vmatmul.bf16.gmra.mxu2 %v3342_v17  ;;  %v4149_v16 = vld [vmem:[%s4625_s5 + $0x1e0] sm:$0xf0] }
  0x9c   : > { %1943 = vmatmul.bf16.gmra.mxu3 %v3346_v18  ;;  %v3458_v26 = vor.u32 %v4149_v16, %v3457_v15  ;;  %v4161_v16 = vld [vmem:[%s4625_s5 + $0x244] sm:$0xf] }
  0x9d   : > { %2032 = vmatmul.bf16.gmra.mxu0 %v3350_v19 }
  0xa8   : > { %v1682_v31 = vpop.f32.mrf.mxu1 }
  0xa9   : > { %v4840_v34 = vadd.f32 %v4829_v20, %v1682_v31 }
  0xaa   : > { %v4842_v35 = vpop.f32.mrf.mxu0 }
  0xab   : > { %1770 = vmatmul.bf16.gmra.mxu1 %v3374_v29  ;;  %1859 = vmatmul.bf16.gmra.mxu2 %v3378_v30  ;;  %v4284_v29 = vld [vmem:[%s5855_s1 + $0x198] sm:$0xff] }
  0xac   : > { %1948 = vmatmul.bf16.gmra.mxu3 %v3382_v32  ;;  %v4292_v30 = vld [vmem:[%s5855_s1 + $0x1d8] sm:$0xff]  ;;  %2191 = vmatpush.bf16.msra.mxu2 %v4284_v29 }
  0xad   : > { %2037 = vmatmul.bf16.gmra.mxu0 %v3386_v33  ;;  %2280 = vmatpush.bf16.msra.mxu3 %v4292_v30  ;;  %v1663_v30 = vadd.f32 %v4829_v20, %v4842_v35  ;;  %v4283_v35 = vld [vmem:[%s5855_s1 + $0x190] sm:$0xff] }
  0xae   : > { %v1702_v38 = vpop.f32.mrf.mxu2 }
  0xaf   : > { %v4851_v39 = vadd.f32 %v4829_v20, %v1702_v38  ;;  %v1722_v40 = vpop.f32.mrf.mxu3 }
  0xb0   : > { %v4854_v41 = vadd.f32 %v4829_v20, %v1722_v40  ;;  %v1684_v42 = vpop.f32.mrf.mxu1  ;;  %2192 = vmatpush.bf16.msra.mxu2 %v4283_v35 }
  0xb1   : > { %v4860_v44 = vadd.f32 %v4829_v20, %v1684_v42  ;;  %v4276_v42 = vld [vmem:[%s5855_s1 + $0x158] sm:$0xff] }
  0xb2   : > { %v4862_v45 = vpop.f32.mrf.mxu0  ;;  %2102 = vmatpush.bf16.msra.mxu1 %v4276_v42 }
  0xb6   : > { %v1704_v55 = vpop.f32.mrf.mxu2 }
  0xb7   : > { %v4876_v56 = vadd.f32 %v4829_v20, %v1704_v55  ;;  %v1724_v57 = vpop.f32.mrf.mxu3 }
  0xb8   : > { %v4879_v60 = vadd.f32 %v4829_v20, %v1724_v57  ;;  %v1687_v61 = vpop.f32.mrf.mxu1 }
  0xb9   : > { %v4882_v0 = vadd.f32 %v4829_v20, %v1687_v61 }
  0xba   : > { %v4884_v1 = vpop.f32.mrf.mxu0 }
  0xbb   : > { %1775 = vmatmul.bf16.gmra.mxu1 %v3410_v58  ;;  %1864 = vmatmul.bf16.gmra.mxu2 %v3414_v59  ;;  %v3482_v58 = vor.u32 %v4152_v46, %v3479_v47  ;;  %v3486_v59 = vor.u32 %v4157_v49, %v3485_v48 }
  0xbc   : > { %1953 = vmatmul.bf16.gmra.mxu3 %v3418_v62 }
  0xbd   : > { %2042 = vmatmul.bf16.gmra.mxu0 %v3422_v63  ;;  %v3490_v63 = vor.u32 %v4153_v50, %v3487_v51  ;;  %v4291_v51 = vld [vmem:[%s5855_s1 + $0x1d0] sm:$0xff] }
  0xbe   : > { %v1707_v2 = vpop.f32.mrf.mxu2  ;;  %2281 = vmatpush.bf16.msra.mxu3 %v4291_v51 }
  0xbf   : > { %v4887_v3 = vadd.f32 %v4829_v20, %v1707_v2  ;;  %v1727_v4 = vpop.f32.mrf.mxu3  ;;  %v3494_v2 = vor.u32 %v4158_v53, %v3493_v52  ;;  %v1665_v53 = vadd.f32 %v4829_v20, %v4862_v45  ;;  %v3551_v45 = vld [vmem:[%s4625_s5 + $0x2ac] sm:$0xf0] }
  0xc0   : > { %v4890_v5 = vadd.f32 %v4829_v20, %v1727_v4  ;;  %v1689_v6 = vpop.f32.mrf.mxu1 }
  0xc1   : > { %v4893_v7 = vadd.f32 %v4829_v20, %v1689_v6 }
  0xc2   : > { %v4895_v8 = vpop.f32.mrf.mxu0 }
  0xc3   : > { %v1670_v51 = vadd.f32 %v4829_v20, %v4895_v8 }
  0xc6   : > { %v1709_v17 = vpop.f32.mrf.mxu2 }
  0xc7   : > { %v4906_v18 = vadd.f32 %v4829_v20, %v1709_v17  ;;  %v1729_v19 = vpop.f32.mrf.mxu3  ;;  %v3515_v17 = vld [vmem:[%s4625_s5 + $0x264] sm:$0xf0] }
  0xc8   : > { %v4909_v23 = vadd.f32 %v4829_v20, %v1729_v19  ;;  %v1692_v24 = vpop.f32.mrf.mxu1  ;;  %v3521_v19 = vld [vmem:[%s4625_s5 + $0x248] sm:$0xf] }
  0xc9   : > { %v4912_v27 = vadd.f32 %v4829_v20, %v1692_v24  ;;  %v3523_v24 = vld [vmem:[%s4625_s5 + $0x26c] sm:$0xf0] }
  0xca   : > { %v4914_v28 = vpop.f32.mrf.mxu0 }
  0xcb   : > { %1780 = vmatmul.bf16.gmra.mxu1 %v3446_v21  ;;  %1869 = vmatmul.bf16.gmra.mxu2 %v3450_v22  ;;  %v4166_v21 = vld [vmem:[%s4625_s5 + $0x268] sm:$0xf0]  ;;  %v1673_v8 = vadd.f32 %v4829_v20, %v4914_v28 }
  0xcc   : > { %1958 = vmatmul.bf16.gmra.mxu3 %v3454_v25  ;;  %v4162_v22 = vld [vmem:[%s4625_s5 + $0x24c] sm:$0xf]  ;;  %v3529_v25 = vld [vmem:[%s4625_s5 + $0x250] sm:$0xf]  ;;  %v3522_v42 = vor.u32 %v4166_v21, %v3521_v19  ;;  %v4171_v19 = vld [vmem:[%s4625_s5 + $0x294] sm:$0xf] }
  0xcd   : > { %2047 = vmatmul.bf16.gmra.mxu0 %v3458_v26  ;;  %v4167_v26 = vld [vmem:[%s4625_s5 + $0x270] sm:$0xf0]  ;;  %v3526_v47 = vor.u32 %v4162_v22, %v3523_v24  ;;  %v3559_v21 = vld [vmem:[%s4625_s5 + $0x2b4] sm:$0xf0]  ;;  %v4176_v24 = vld [vmem:[%s4625_s5 + $0x2b8] sm:$0xf0] }
  0xce   : > { %v1712_v31 = vpop.f32.mrf.mxu2  ;;  %v3530_v48 = vor.u32 %v4167_v26, %v3529_v25  ;;  %v3565_v22 = vld [vmem:[%s4625_s5 + $0x298] sm:$0xf]  ;;  %v1668_v26 = vadd.f32 %v4829_v20, %v4884_v1  ;;  %v4282_v28 = vld [vmem:[%s5855_s1 + $0x188] sm:$0xff] }
  0xcf   : > { %v4923_v32 = vadd.f32 %v4829_v20, %v1712_v31  ;;  %v1732_v33 = vpop.f32.mrf.mxu3  ;;  %2193 = vmatpush.bf16.msra.mxu2 %v4282_v28 }
  0xd0   : > { %v4926_v36 = vadd.f32 %v4829_v20, %v1732_v33  ;;  %v1694_v37 = vpop.f32.mrf.mxu1 }
  0xd1   : > { %v4929_v38 = vadd.f32 %v4829_v20, %v1694_v37  ;;  %v3518_v37 = vor.u32 %v4161_v16, %v3515_v17  ;;  %v3557_v16 = vld [vmem:[%s4625_s5 + $0x290] sm:$0xf]  ;;  %v4175_v17 = vld [vmem:[%s4625_s5 + $0x2b0] sm:$0xf0] }
  0xd2   : > { %v4931_v40 = vpop.f32.mrf.mxu0 }
  0xd6   : > { %v1714_v54 = vpop.f32.mrf.mxu2 }
  0xd7   : > { %v4948_v55 = vadd.f32 %v4829_v20, %v1714_v54  ;;  %v1734_v57 = vpop.f32.mrf.mxu3 }
  0xd8   : > { %v4951_v61 = vadd.f32 %v4829_v20, %v1734_v57  ;;  %v1697_v62 = vpop.f32.mrf.mxu1 }
  0xd9   : > { %v4954_v4 = vadd.f32 %v4829_v20, %v1697_v62 }
  0xda   : > { %v4956_v6 = vpop.f32.mrf.mxu0 }
  0xdb   : > { %1785 = vmatmul.bf16.gmra.mxu1 %v3482_v58  ;;  %1874 = vmatmul.bf16.gmra.mxu2 %v3486_v59 }
  0xdc   : > { %1963 = vmatmul.bf16.gmra.mxu3 %v3490_v63 }
  0xdd   : > { %2052 = vmatmul.bf16.gmra.mxu0 %v3494_v2  ;;  %v4275_v2 = vld [vmem:[%s5855_s1 + $0x150] sm:$0xff] }
  0xde   : > { %v1717_v9 = vpop.f32.mrf.mxu2  ;;  %2103 = vmatpush.bf16.msra.mxu1 %v4275_v2  ;;  %v3587_v2 = vld [vmem:[%s4625_s5 + $0x2f4] sm:$0xf0] }
  0xdf   : > { %v4959_v10 = vadd.f32 %v4829_v20, %v1717_v9  ;;  %v1737_v11 = vpop.f32.mrf.mxu3  ;;  %v4299_v9 = vld [vmem:[%s5855_s1 + $0x210] sm:$0xff] }
  0xe0   : > { %v4962_v12 = vadd.f32 %v4829_v20, %v1737_v11  ;;  %v1699_v13 = vpop.f32.mrf.mxu1  ;;  %v4170_v11 = vld [vmem:[%s4625_s5 + $0x28c] sm:$0xf]  ;;  %2370 = vmatpush.bf16.msra.mxu0 %v4299_v9  ;;  %v3593_v9 = vld [vmem:[%s4625_s5 + $0x2d8] sm:$0xf] }
  0xe1   : > { %v4965_v14 = vadd.f32 %v4829_v20, %v1699_v13 }
  0xe2   : > { %v4967_v15 = vpop.f32.mrf.mxu0 }
  0xe6   : > { %v1719_v29 = vpop.f32.mrf.mxu2 }
  0xe7   : > { %v4980_v31 = vadd.f32 %v4829_v20, %v1719_v29  ;;  %v1739_v33 = vpop.f32.mrf.mxu3 }
  0xe8   : > { %v4983_v43 = vadd.f32 %v4829_v20, %v1739_v33  ;;  %v1751_v46 = vpop.f32.mrf.mxu1  ;;  %v3554_v33 = vor.u32 %v4170_v11, %v3551_v45  ;;  %v4184_v11 = vld [vmem:[%s4625_s5 + $0x2f8] sm:$0xf0] }
  0xe9   : > { %v1752_v49 = vadd.f32 %v1751_v46, %v1663_v30  ;;  %v3562_v46 = vor.u32 %v4171_v19, %v3559_v21  ;;  %v4180_v45 = vld [vmem:[%s4625_s5 + $0x2dc] sm:$0xf]  ;;  %v4185_v19 = vld [vmem:[%s4625_s5 + $0x300] sm:$0xf0] }
  0xea   : > { %v2018_v50 = vpop.f32.mrf.mxu0 }
  0xeb   : > { %1790 = vmatmul.bf16.gmra.mxu1 %v3518_v37  ;;  %1879 = vmatmul.bf16.gmra.mxu2 %v3522_v42  ;;  %v3558_v37 = vor.u32 %v4175_v17, %v3557_v16  ;;  %v3595_v16 = vld [vmem:[%s4625_s5 + $0x2fc] sm:$0xf0] }
  0xec   : > { %1968 = vmatmul.bf16.gmra.mxu3 %v3526_v47  ;;  %v3566_v47 = vor.u32 %v4176_v24, %v3565_v22  ;;  %v3601_v17 = vld [vmem:[%s4625_s5 + $0x2e0] sm:$0xf] }
  0xed   : > { %2057 = vmatmul.bf16.gmra.mxu0 %v3530_v48 }
  0xee   : > { %v1840_v52 = vpop.f32.mrf.mxu2 }
  0xef   : > { %v1841_v54 = vadd.f32 %v1840_v52, %v1752_v49  ;;  %v1929_v57 = vpop.f32.mrf.mxu3 }
  0xf0   : > { %v1753_v58 = vpop.f32.mrf.mxu1 }
  0xf1   : > { %v1930_v59 = vadd.f32 %v1929_v57, %v1841_v54  ;;  %v1754_v62 = vadd.f32 %v1753_v58, %v1665_v53 }
  0xf2   : > { %v2020_v63 = vpop.f32.mrf.mxu0 }
  0xf3   : > { %v5001_v13 = vadd.f32 %v2018_v50, %v1930_v59 }
  0xf6   : > { %v1842_v25 = vpop.f32.mrf.mxu2 }
  0xf7   : > { %v1843_v29 = vadd.f32 %v1842_v25, %v1754_v62  ;;  %v1931_v30 = vpop.f32.mrf.mxu3  ;;  %v4179_v62 = vld [vmem:[%s4625_s5 + $0x2d4] sm:$0xf] }
  0xf8   : > { %v1756_v42 = vpop.f32.mrf.mxu1  ;;  %v3590_v25 = vor.u32 %v4179_v62, %v3587_v2  ;;  %v4188_v62 = vld [vmem:[%s4625_s5 + $0x31c] sm:$0xf] }
  0xf9   : > { %v1932_v48 = vadd.f32 %v1931_v30, %v1843_v29  ;;  %v1757_v49 = vadd.f32 %v1756_v42, %v1668_v26  ;;  %v3594_v26 = vor.u32 %v4184_v11, %v3593_v9  ;;  %v3598_v30 = vor.u32 %v4180_v45, %v3595_v16  ;;  %v3629_v9 = vld [vmem:[%s4625_s5 + $0x320] sm:$0xf]  ;;  %v4193_v11 = vld [vmem:[%s4625_s5 + $0x340] sm:$0xf0]  ;;  %v3631_v16 = vld [vmem:[%s4625_s5 + $0x344] sm:$0xf0] }
  0xfa   : > { %v2023_v50 = vpop.f32.mrf.mxu0  ;;  %v4189_v45 = vld [vmem:[%s4625_s5 + $0x324] sm:$0xf] }
  0xfb   : > { %1795 = vmatmul.bf16.gmra.mxu1 %v3554_v33  ;;  %1884 = vmatmul.bf16.gmra.mxu2 %v3558_v37  ;;  %v5011_v35 = vadd.f32 %v2020_v63, %v1932_v48  ;;  %v3602_v33 = vor.u32 %v4185_v19, %v3601_v17  ;;  %v4290_v48 = vld [vmem:[%s5855_s1 + $0x1c8] sm:$0xff] }
  0xfc   : > { %1973 = vmatmul.bf16.gmra.mxu3 %v3562_v46  ;;  %v3637_v17 = vld [vmem:[%s4625_s5 + $0x328] sm:$0xf]  ;;  %v4194_v19 = vld [vmem:[%s4625_s5 + $0x348] sm:$0xf0] }
  0xfd   : > { %2062 = vmatmul.bf16.gmra.mxu0 %v3566_v47  ;;  %2282 = vmatpush.bf16.msra.mxu3 %v4290_v48  ;;  %v1680_v48 = vadd.f32 %v4829_v20, %v4967_v15 }
  0xfe   : > { %v1845_v1 = vpop.f32.mrf.mxu2 }
  0xff   : > { %v1846_v52 = vadd.f32 %v1845_v1, %v1757_v49  ;;  %v1934_v53 = vpop.f32.mrf.mxu3 }
 0x100   : > { %v1758_v54 = vpop.f32.mrf.mxu1 }
 0x101   : > { %v1935_v57 = vadd.f32 %v1934_v53, %v1846_v52  ;;  %v1759_v58 = vadd.f32 %v1758_v54, %v1670_v51 }
 0x102   : > { %v2025_v59 = vpop.f32.mrf.mxu0 }
 0x103   : > { %v5017_v63 = vadd.f32 %v2023_v50, %v1935_v57  ;;  %v1675_v50 = vadd.f32 %v4829_v20, %v4931_v40  ;;  %v3623_v40 = vld [vmem:[%s4625_s5 + $0x33c] sm:$0xf0] }
 0x106   : > { %v1847_v21 = vpop.f32.mrf.mxu2 }
 0x107   : > { %v1848_v22 = vadd.f32 %v1847_v21, %v1759_v58  ;;  %v1936_v24 = vpop.f32.mrf.mxu3  ;;  %v4274_v58 = vld [vmem:[%s5855_s1 + $0x148] sm:$0xff] }
 0x108   : > { %v1761_v29 = vpop.f32.mrf.mxu1  ;;  %2104 = vmatpush.bf16.msra.mxu1 %v4274_v58  ;;  %v3659_v58 = vld [vmem:[%s4625_s5 + $0x384] sm:$0xf0] }
 0x109   : > { %v1937_v37 = vadd.f32 %v1936_v24, %v1848_v22  ;;  %v1762_v42 = vadd.f32 %v1761_v29, %v1673_v8  ;;  %v1678_v8 = vadd.f32 %v4829_v20, %v4956_v6 }
 0x10a   : > { %v2028_v46 = vpop.f32.mrf.mxu0 }
 0x10b   : > { %1800 = vmatmul.bf16.gmra.mxu1 %v3590_v25  ;;  %1889 = vmatmul.bf16.gmra.mxu2 %v3594_v26  ;;  %v5027_v47 = vadd.f32 %v2025_v59, %v1937_v37  ;;  %v4298_v59 = vld [vmem:[%s5855_s1 + $0x208] sm:$0xff]  ;;  %v3626_v25 = vor.u32 %v4188_v62, %v3623_v40  ;;  %v3630_v26 = vor.u32 %v4193_v11, %v3629_v9  ;;  %v3667_v9 = vld [vmem:[%s4625_s5 + $0x38c] sm:$0xf0] }
 0x10c   : > { %1978 = vmatmul.bf16.gmra.mxu3 %v3598_v30  ;;  %2371 = vmatpush.bf16.msra.mxu0 %v4298_v59  ;;  %v3634_v30 = vor.u32 %v4189_v45, %v3631_v16  ;;  %v3665_v59 = vld [vmem:[%s4625_s5 + $0x368] sm:$0xf]  ;;  %v4202_v62 = vld [vmem:[%s4625_s5 + $0x388] sm:$0xf0]  ;;  %v3673_v11 = vld [vmem:[%s4625_s5 + $0x370] sm:$0xf] }
 0x10d   : > { %2067 = vmatmul.bf16.gmra.mxu0 %v3602_v33  ;;  %v3638_v33 = vor.u32 %v4194_v19, %v3637_v17  ;;  %v4198_v40 = vld [vmem:[%s4625_s5 + $0x36c] sm:$0xf]  ;;  %v4203_v45 = vld [vmem:[%s4625_s5 + $0x390] sm:$0xf0]  ;;  %v3666_v15 = vor.u32 %v4202_v62, %v3665_v59  ;;  %v3703_v62 = vld [vmem:[%s4625_s5 + $0x3d4] sm:$0xf0] }
 0x10e   : > { %v1850_v49 = vpop.f32.mrf.mxu2  ;;  %v4207_v59 = vld [vmem:[%s4625_s5 + $0x3b4] sm:$0xf] }
 0x10f   : > { %v1851_v1 = vadd.f32 %v1850_v49, %v1762_v42  ;;  %v1939_v51 = vpop.f32.mrf.mxu3 }
 0x110   : > { %v1763_v52 = vpop.f32.mrf.mxu1 }
 0x111   : > { %v1940_v53 = vadd.f32 %v1939_v51, %v1851_v1  ;;  %v1764_v54 = vadd.f32 %v1763_v52, %v1675_v50 }
 0x112   : > { %v2030_v57 = vpop.f32.mrf.mxu0 }
 0x113   : > { %v5045_v2 = vadd.f32 %v2028_v46, %v1940_v53 }
 0x116   : > { %v1852_v21 = vpop.f32.mrf.mxu2 }
 0x117   : > { %v1853_v22 = vadd.f32 %v1852_v21, %v1764_v54  ;;  %v1941_v24 = vpop.f32.mrf.mxu3  ;;  %v4197_v54 = vld [vmem:[%s4625_s5 + $0x364] sm:$0xf] }
 0x118   : > { %v1766_v29 = vpop.f32.mrf.mxu1  ;;  %v3662_v20 = vor.u32 %v4197_v54, %v3659_v58  ;;  %v3701_v54 = vld [vmem:[%s4625_s5 + $0x3b0] sm:$0xf]  ;;  %v4211_v58 = vld [vmem:[%s4625_s5 + $0x3d0] sm:$0xf0] }
 0x119   : > { %v1942_v37 = vadd.f32 %v1941_v24, %v1853_v22  ;;  %v1767_v42 = vadd.f32 %v1766_v29, %v1678_v8  ;;  %v3670_v8 = vor.u32 %v4198_v40, %v3667_v9  ;;  %v3674_v22 = vor.u32 %v4203_v45, %v3673_v11  ;;  %v4212_v40 = vld [vmem:[%s4625_s5 + $0x3d8] sm:$0xf0] }
 0x11a   : > { %v2033_v46 = vpop.f32.mrf.mxu0 }
 0x11b   : > { %1805 = vmatmul.bf16.gmra.mxu1 %v3626_v25  ;;  %1894 = vmatmul.bf16.gmra.mxu2 %v3630_v26  ;;  %v5055_v28 = vadd.f32 %v2030_v57, %v1942_v37 }
 0x11c   : > { %1983 = vmatmul.bf16.gmra.mxu3 %v3634_v30  ;;  %v4281_v30 = vld [vmem:[%s5855_s1 + $0x180] sm:$0xff] }
 0x11d   : > { %2072 = vmatmul.bf16.gmra.mxu0 %v3638_v33  ;;  %v4289_v33 = vld [vmem:[%s5855_s1 + $0x1c0] sm:$0xff]  ;;  %2194 = vmatpush.bf16.msra.mxu2 %v4281_v30 }
 0x11e   : > { %v1855_v6 = vpop.f32.mrf.mxu2  ;;  %2283 = vmatpush.bf16.msra.mxu3 %v4289_v33 }
 0x11f   : > { %v1856_v49 = vadd.f32 %v1855_v6, %v1767_v42  ;;  %v1944_v50 = vpop.f32.mrf.mxu3 }
 0x120   : > { %v1768_v1 = vpop.f32.mrf.mxu1 }
 0x121   : > { %v1945_v51 = vadd.f32 %v1944_v50, %v1856_v49  ;;  %v1769_v52 = vadd.f32 %v1768_v1, %v1680_v48  ;;  %v4273_v50 = vld [vmem:[%s5855_s1 + $0x140] sm:$0xff] }
 0x122   : > { %v2035_v53 = vpop.f32.mrf.mxu0  ;;  %v4297_v1 = vld [vmem:[%s5855_s1 + $0x200] sm:$0xff]  ;;  %2105 = vmatpush.bf16.msra.mxu1 %v4273_v50  ;;  %v4216_v50 = vld [vmem:[%s4625_s5 + $0x3fc] sm:$0xf] }
 0x123   : > { %v5061_v57 = vadd.f32 %v2033_v46, %v1945_v51  ;;  %v4206_v51 = vld [vmem:[%s4625_s5 + $0x3ac] sm:$0xf]  ;;  %2372 = vmatpush.bf16.msra.mxu0 %v4297_v1  ;;  %v3739_v1 = vld [vmem:[%s4625_s5 + $0x41c] sm:$0xf0] }
 0x126   : > { %v1857_v16 = vpop.f32.mrf.mxu2 }
 0x127   : > { %v1858_v17 = vadd.f32 %v1857_v16, %v1769_v52  ;;  %v1946_v19 = vpop.f32.mrf.mxu3  ;;  %v3695_v52 = vld [vmem:[%s4625_s5 + $0x3cc] sm:$0xf0] }
 0x128   : > { %v1771_v21 = vpop.f32.mrf.mxu1  ;;  %v3698_v16 = vor.u32 %v4206_v51, %v3695_v52  ;;  %v3745_v51 = vld [vmem:[%s4625_s5 + $0x400] sm:$0xf]  ;;  %v4221_v52 = vld [vmem:[%s4625_s5 + $0x420] sm:$0xf0] }
 0x129   : > { %v1947_v24 = vadd.f32 %v1946_v19, %v1858_v17  ;;  %v1772_v25 = vadd.f32 %v1771_v21, %v4840_v34  ;;  %v3702_v17 = vor.u32 %v4211_v58, %v3701_v54 }
 0x12a   : > { %v2038_v26 = vpop.f32.mrf.mxu0 }
 0x12b   : > { %1810 = vmatmul.bf16.gmra.mxu1 %v3662_v20  ;;  %1899 = vmatmul.bf16.gmra.mxu2 %v3666_v15  ;;  %v5070_v29 = vadd.f32 %v2035_v53, %v1947_v24  ;;  %v3706_v20 = vor.u32 %v4207_v59, %v3703_v62 }
 0x12c   : > { %1988 = vmatmul.bf16.gmra.mxu3 %v3670_v8 }
 0x12d   : > { %2077 = vmatmul.bf16.gmra.mxu0 %v3674_v22 }
 0x12e   : > { %v1860_v37 = vpop.f32.mrf.mxu2 }
 0x12f   : > { %v1861_v34 = vadd.f32 %v1860_v37, %v1772_v25  ;;  %v1949_v42 = vpop.f32.mrf.mxu3 }
 0x130   : > { %v1773_v46 = vpop.f32.mrf.mxu1 }
 0x131   : > { %v1950_v6 = vadd.f32 %v1949_v42, %v1861_v34  ;;  %v1774_v48 = vadd.f32 %v1773_v46, %v4860_v44  ;;  %v3709_v44 = vld [vmem:[%s4625_s5 + $0x3b8] sm:$0xf]  ;;  %v4215_v42 = vld [vmem:[%s4625_s5 + $0x3f4] sm:$0xf] }
 0x132   : > { %v2040_v49 = vpop.f32.mrf.mxu0  ;;  %v3710_v15 = vor.u32 %v4212_v40, %v3709_v44  ;;  %v3731_v46 = vld [vmem:[%s4625_s5 + $0x414] sm:$0xf0] }
 0x133   : > { %v5087_v53 = vadd.f32 %v2038_v26, %v1950_v6  ;;  %v3734_v62 = vor.u32 %v4215_v42, %v3731_v46  ;;  %v3781_v42 = vld [vmem:[%s4625_s5 + $0x448] sm:$0xf]  ;;  %v4230_v46 = vld [vmem:[%s4625_s5 + $0x468] sm:$0xf0] }
 0x136   : > { %v1862_v9 = vpop.f32.mrf.mxu2 }
 0x137   : > { %v1863_v11 = vadd.f32 %v1862_v9, %v1774_v48  ;;  %v1951_v45 = vpop.f32.mrf.mxu3  ;;  %v3737_v48 = vld [vmem:[%s4625_s5 + $0x3f8] sm:$0xf]  ;;  %v3742_v9 = vor.u32 %v4216_v50, %v3739_v1 }
 0x138   : > { %v1776_v19 = vpop.f32.mrf.mxu1 }
 0x139   : > { %v1952_v21 = vadd.f32 %v1951_v45, %v1863_v11  ;;  %v1777_v8 = vadd.f32 %v1776_v19, %v4882_v0  ;;  %v3746_v11 = vor.u32 %v4221_v52, %v3745_v51 }
 0x13a   : > { %v2043_v22 = vpop.f32.mrf.mxu0 }
 0x13b   : > { %1815 = vmatmul.bf16.gmra.mxu1 %v3698_v16  ;;  %1904 = vmatmul.bf16.gmra.mxu2 %v3702_v17  ;;  %v5096_v24 = vadd.f32 %v2040_v49, %v1952_v21  ;;  %v4220_v49 = vld [vmem:[%s4625_s5 + $0x418] sm:$0xf0] }
 0x13c   : > { %1993 = vmatmul.bf16.gmra.mxu3 %v3706_v20  ;;  %v3738_v44 = vor.u32 %v4220_v49, %v3737_v48 }
 0x13d   : > { %2082 = vmatmul.bf16.gmra.mxu0 %v3710_v15 }
 0x13e   : > { %v1865_v25 = vpop.f32.mrf.mxu2 }
 0x13f   : > { %v1866_v26 = vadd.f32 %v1865_v25, %v1777_v8  ;;  %v1954_v30 = vpop.f32.mrf.mxu3  ;;  %v4224_v25 = vld [vmem:[%s4625_s5 + $0x43c] sm:$0xf] }
 0x140   : > { %v1778_v33 = vpop.f32.mrf.mxu1 }
 0x141   : > { %v1955_v37 = vadd.f32 %v1954_v30, %v1866_v26  ;;  %v1779_v0 = vadd.f32 %v1778_v33, %v4893_v7  ;;  %v3767_v26 = vld [vmem:[%s4625_s5 + $0x45c] sm:$0xf0] }
 0x142   : > { %v2045_v34 = vpop.f32.mrf.mxu0  ;;  %v3773_v33 = vld [vmem:[%s4625_s5 + $0x440] sm:$0xf]  ;;  %v3770_v1 = vor.u32 %v4224_v25, %v3767_v26  ;;  %v4097_v26 = vld [vmem:[%s4625_s5 + $0x40] sm:$0xf0] }
 0x143   : > { %v5101_v6 = vadd.f32 %v2043_v22, %v1955_v37  ;;  %v4229_v37 = vld [vmem:[%s4625_s5 + $0x460] sm:$0xf0]  ;;  %v3257_v25 = vld [vmem:[%s4625_s5 + $0x20] sm:$0xf] }
 0x144   : > { %v3774_v51 = vor.u32 %v4229_v37, %v3773_v33 }
 0x146   : > { %v1867_v54 = vpop.f32.mrf.mxu2 }
 0x147   : > { %v1868_v58 = vadd.f32 %v1867_v54, %v1779_v0  ;;  %v1956_v59 = vpop.f32.mrf.mxu3  ;;  %v4225_v0 = vld [vmem:[%s4625_s5 + $0x444] sm:$0xf] }
 0x148   : > { %v1781_v40 = vpop.f32.mrf.mxu1 }
 0x149   : > { %v1957_v7 = vadd.f32 %v1956_v59, %v1868_v58  ;;  %v1782_v45 = vadd.f32 %v1781_v40, %v4912_v27  ;;  %v3782_v58 = vor.u32 %v4230_v46, %v3781_v42 }
 0x14a   : > { %v2048_v16 = vpop.f32.mrf.mxu0 }
 0x14b   : > { %1820 = vmatmul.bf16.gmra.mxu1 %v3734_v62  ;;  %1909 = vmatmul.bf16.gmra.mxu2 %v3738_v44  ;;  %v5110_v17 = vadd.f32 %v2045_v34, %v1957_v7  ;;  %v3775_v34 = vld [vmem:[%s4625_s5 + $0x464] sm:$0xf0] }
 0x14c   : > { %1998 = vmatmul.bf16.gmra.mxu3 %v3742_v9  ;;  %v3778_v54 = vor.u32 %v4225_v0, %v3775_v34 }
 0x14d   : > { %2087 = vmatmul.bf16.gmra.mxu0 %v3746_v11 }
 0x14e   : > { %v1870_v19 = vpop.f32.mrf.mxu2 }
 0x14f   : > { %v1871_v20 = vadd.f32 %v1870_v19, %v1782_v45  ;;  %v1959_v15 = vpop.f32.mrf.mxu3  ;;  %v4091_v19 = vld [vmem:[%s4625_s5 + $0x14] sm:$0xf] }
 0x150   : > { %v1783_v21 = vpop.f32.mrf.mxu1 }
 0x151   : > { %v1960_v8 = vadd.f32 %v1959_v15, %v1871_v20  ;;  %v1784_v27 = vadd.f32 %v1783_v21, %v4929_v38  ;;  %v3243_v20 = vld [vmem:[%s4625_s5 + $0x34] sm:$0xf0] }
 0x152   : > { %v2050_v22 = vpop.f32.mrf.mxu0  ;;  %v3249_v21 = vld [vmem:[%s4625_s5 + $0x18] sm:$0xf]  ;;  %v3246_v34 = vor.u32 %v4091_v19, %v3243_v20  ;;  %v3293_v19 = vld [vmem:[%s4625_s5 + $0x68] sm:$0xf]  ;;  %v4106_v20 = vld [vmem:[%s4625_s5 + $0x88] sm:$0xf0] }
 0x153   : > { %v5115_v30 = vadd.f32 %v2048_v16, %v1960_v8  ;;  %v4096_v8 = vld [vmem:[%s4625_s5 + $0x38] sm:$0xf0] }
 0x154   : > { %v3250_v42 = vor.u32 %v4096_v8, %v3249_v21 }
 0x156   : > { %v1872_v48 = vpop.f32.mrf.mxu2 }
 0x157   : > { %v1873_v49 = vadd.f32 %v1872_v48, %v1784_v27  ;;  %v1961_v50 = vpop.f32.mrf.mxu3  ;;  %v4092_v27 = vld [vmem:[%s4625_s5 + $0x1c] sm:$0xf] }
 0x158   : > { %v1786_v52 = vpop.f32.mrf.mxu1 }
 0x159   : > { %v1962_v38 = vadd.f32 %v1961_v50, %v1873_v49  ;;  %v1787_v59 = vadd.f32 %v1786_v52, %v4954_v4  ;;  %v3258_v49 = vor.u32 %v4097_v26, %v3257_v25 }
 0x15a   : > { %v2053_v62 = vpop.f32.mrf.mxu0 }
 0x15b   : > { %1825 = vmatmul.bf16.gmra.mxu1 %v3770_v1  ;;  %1914 = vmatmul.bf16.gmra.mxu2 %v3774_v51  ;;  %v5124_v44 = vadd.f32 %v2050_v22, %v1962_v38  ;;  %v3251_v22 = vld [vmem:[%s4625_s5 + $0x3c] sm:$0xf0] }
 0x15c   : > { %2003 = vmatmul.bf16.gmra.mxu3 %v3778_v54  ;;  %v3254_v48 = vor.u32 %v4092_v27, %v3251_v22 }
 0x15d   : > { %2092 = vmatmul.bf16.gmra.mxu0 %v3782_v58 }
 0x15e   : > { %v1875_v40 = vpop.f32.mrf.mxu2 }
 0x15f   : > { %v1876_v9 = vadd.f32 %v1875_v40, %v1787_v59  ;;  %v1964_v11 = vpop.f32.mrf.mxu3  ;;  %v4100_v40 = vld [vmem:[%s4625_s5 + $0x5c] sm:$0xf] }
 0x160   : > { %v1788_v7 = vpop.f32.mrf.mxu1 }
 0x161   : > { %v1965_v45 = vadd.f32 %v1964_v11, %v1876_v9  ;;  %v1789_v4 = vadd.f32 %v1788_v7, %v4965_v14  ;;  %v3279_v9 = vld [vmem:[%s4625_s5 + $0x7c] sm:$0xf0] }
 0x162   : > { %v2055_v16 = vpop.f32.mrf.mxu0  ;;  %v3285_v7 = vld [vmem:[%s4625_s5 + $0x60] sm:$0xf]  ;;  %v3282_v22 = vor.u32 %v4100_v40, %v3279_v9  ;;  %v3329_v40 = vld [vmem:[%s4625_s5 + $0xb0] sm:$0xf]  ;;  %v4115_v9 = vld [vmem:[%s4625_s5 + $0xd0] sm:$0xf0] }
 0x163   : > { %v5129_v15 = vadd.f32 %v2053_v62, %v1965_v45  ;;  %v4105_v45 = vld [vmem:[%s4625_s5 + $0x80] sm:$0xf0] }
 0x164   : > { %v3286_v25 = vor.u32 %v4105_v45, %v3285_v7 }
 0x166   : > { %v1877_v33 = vpop.f32.mrf.mxu2 }
 0x167   : > { %v1878_v37 = vadd.f32 %v1877_v33, %v1789_v4  ;;  %v1966_v0 = vpop.f32.mrf.mxu3  ;;  %v4101_v4 = vld [vmem:[%s4625_s5 + $0x64] sm:$0xf] }
 0x168   : > { %v1791_v46 = vpop.f32.mrf.mxu1 }
 0x169   : > { %v1967_v14 = vadd.f32 %v1966_v0, %v1878_v37  ;;  %v1792_v50 = vadd.f32 %v1791_v46, %v4851_v39  ;;  %v3294_v37 = vor.u32 %v4106_v20, %v3293_v19 }
 0x16a   : > { %v2058_v1 = vpop.f32.mrf.mxu0 }
 0x16b   : > { %2106 = vmatmul.bf16.vlgmr.msra.gmra.mxu1 %v3246_v34  ;;  %2195 = vmatmul.bf16.vlgmr.msra.gmra.mxu2 %v3250_v42  ;;  %v5138_v51 = vadd.f32 %v2055_v16, %v1967_v14  ;;  %v3287_v16 = vld [vmem:[%s4625_s5 + $0x84] sm:$0xf0] }
 0x16c   : > { %2284 = vmatmul.bf16.vlgmr.msra.gmra.mxu3 %v3254_v48  ;;  %v3290_v33 = vor.u32 %v4101_v4, %v3287_v16 }
 0x16d   : > { %2373 = vmatmul.bf16.vlgmr.msra.gmra.mxu0 %v3258_v49 }
 0x16e   : > { %v1880_v52 = vpop.f32.mrf.mxu2 }
 0x16f   : > { %v1881_v54 = vadd.f32 %v1880_v52, %v1792_v50  ;;  %v1969_v58 = vpop.f32.mrf.mxu3  ;;  %v4109_v52 = vld [vmem:[%s4625_s5 + $0xa4] sm:$0xf] }
 0x170   : > { %v1793_v38 = vpop.f32.mrf.mxu1 }
 0x171   : > { %v1970_v59 = vadd.f32 %v1969_v58, %v1881_v54  ;;  %v1794_v39 = vadd.f32 %v1793_v38, %v4876_v56  ;;  %v3315_v54 = vld [vmem:[%s4625_s5 + $0xc4] sm:$0xf0] }
 0x172   : > { %v2060_v62 = vpop.f32.mrf.mxu0  ;;  %v3321_v38 = vld [vmem:[%s4625_s5 + $0xa8] sm:$0xf]  ;;  %v3318_v16 = vor.u32 %v4109_v52, %v3315_v54  ;;  %v3365_v52 = vld [vmem:[%s4625_s5 + $0xf8] sm:$0xf]  ;;  %v4124_v54 = vld [vmem:[%s4625_s5 + $0x118] sm:$0xf0] }
 0x173   : > { %v5143_v11 = vadd.f32 %v2058_v1, %v1970_v59  ;;  %v4114_v59 = vld [vmem:[%s4625_s5 + $0xc8] sm:$0xf0] }
 0x174   : > { %v3322_v19 = vor.u32 %v4114_v59, %v3321_v38 }
 0x176   : > { %v1882_v21 = vpop.f32.mrf.mxu2 }
 0x177   : > { %v1883_v8 = vadd.f32 %v1882_v21, %v1794_v39  ;;  %v1971_v27 = vpop.f32.mrf.mxu3  ;;  %v4110_v39 = vld [vmem:[%s4625_s5 + $0xac] sm:$0xf] }
 0x178   : > { %v1796_v26 = vpop.f32.mrf.mxu1 }
 0x179   : > { %v1972_v56 = vadd.f32 %v1971_v27, %v1883_v8  ;;  %v1797_v0 = vadd.f32 %v1796_v26, %v4887_v3  ;;  %v3330_v8 = vor.u32 %v4115_v9, %v3329_v40 }
 0x17a   : > { %v2063_v34 = vpop.f32.mrf.mxu0 }
 0x17b   : > { %2111 = vmatmul.bf16.gmra.mxu1 %v3282_v22  ;;  %2200 = vmatmul.bf16.gmra.mxu2 %v3286_v25  ;;  %v5152_v42 = vadd.f32 %v2060_v62, %v1972_v56  ;;  %v3323_v62 = vld [vmem:[%s4625_s5 + $0xcc] sm:$0xf0] }
 0x17c   : > { %2289 = vmatmul.bf16.gmra.mxu3 %v3290_v33  ;;  %v3326_v21 = vor.u32 %v4110_v39, %v3323_v62 }
 0x17d   : > { %2378 = vmatmul.bf16.gmra.mxu0 %v3294_v37 }
 0x17e   : > { %v1885_v46 = vpop.f32.mrf.mxu2 }
 0x17f   : > { %v1886_v48 = vadd.f32 %v1885_v46, %v1797_v0  ;;  %v1974_v49 = vpop.f32.mrf.mxu3  ;;  %v4118_v46 = vld [vmem:[%s4625_s5 + $0xec] sm:$0xf] }
 0x180   : > { %v1798_v14 = vpop.f32.mrf.mxu1 }
 0x181   : > { %v1975_v50 = vadd.f32 %v1974_v49, %v1886_v48  ;;  %v1799_v3 = vadd.f32 %v1798_v14, %v4906_v18  ;;  %v3351_v48 = vld [vmem:[%s4625_s5 + $0x10c] sm:$0xf0] }
 0x182   : > { %v2065_v1 = vpop.f32.mrf.mxu0  ;;  %v3357_v14 = vld [vmem:[%s4625_s5 + $0xf0] sm:$0xf]  ;;  %v3354_v62 = vor.u32 %v4118_v46, %v3351_v48  ;;  %v3401_v46 = vld [vmem:[%s4625_s5 + $0x140] sm:$0xf]  ;;  %v4133_v48 = vld [vmem:[%s4625_s5 + $0x160] sm:$0xf0] }
 0x183   : > { %v5157_v58 = vadd.f32 %v2063_v34, %v1975_v50  ;;  %v4123_v50 = vld [vmem:[%s4625_s5 + $0x110] sm:$0xf0] }
 0x184   : > { %v3358_v40 = vor.u32 %v4123_v50, %v3357_v14 }
 0x186   : > { %v1887_v7 = vpop.f32.mrf.mxu2 }
 0x187   : > { %v1888_v45 = vadd.f32 %v1887_v7, %v1799_v3  ;;  %v1976_v4 = vpop.f32.mrf.mxu3  ;;  %v4119_v3 = vld [vmem:[%s4625_s5 + $0xf4] sm:$0xf] }
 0x188   : > { %v1801_v20 = vpop.f32.mrf.mxu1 }
 0x189   : > { %v1977_v18 = vadd.f32 %v1976_v4, %v1888_v45  ;;  %v1802_v27 = vadd.f32 %v1801_v20, %v4923_v32  ;;  %v3366_v45 = vor.u32 %v4124_v54, %v3365_v52 }
 0x18a   : > { %v2068_v22 = vpop.f32.mrf.mxu0 }
 0x18b   : > { %2116 = vmatmul.bf16.gmra.mxu1 %v3318_v16  ;;  %2205 = vmatmul.bf16.gmra.mxu2 %v3322_v19  ;;  %v5166_v25 = vadd.f32 %v2065_v1, %v1977_v18  ;;  %v3359_v1 = vld [vmem:[%s4625_s5 + $0x114] sm:$0xf0] }
 0x18c   : > { %2294 = vmatmul.bf16.gmra.mxu3 %v3326_v21  ;;  %v3362_v7 = vor.u32 %v4119_v3, %v3359_v1 }
 0x18d   : > { %2383 = vmatmul.bf16.gmra.mxu0 %v3330_v8 }
 0x18e   : > { %v1890_v26 = vpop.f32.mrf.mxu2 }
 0x18f   : > { %v1891_v33 = vadd.f32 %v1890_v26, %v1802_v27  ;;  %v1979_v37 = vpop.f32.mrf.mxu3  ;;  %v4127_v26 = vld [vmem:[%s4625_s5 + $0x134] sm:$0xf] }
 0x190   : > { %v1803_v56 = vpop.f32.mrf.mxu1 }
 0x191   : > { %v1980_v0 = vadd.f32 %v1979_v37, %v1891_v33  ;;  %v1804_v32 = vadd.f32 %v1803_v56, %v4948_v55  ;;  %v3387_v33 = vld [vmem:[%s4625_s5 + $0x154] sm:$0xf0] }
 0x192   : > { %v2070_v34 = vpop.f32.mrf.mxu0  ;;  %v3393_v56 = vld [vmem:[%s4625_s5 + $0x138] sm:$0xf]  ;;  %v3390_v1 = vor.u32 %v4127_v26, %v3387_v33  ;;  %v3437_v26 = vld [vmem:[%s4625_s5 + $0x188] sm:$0xf]  ;;  %v4142_v33 = vld [vmem:[%s4625_s5 + $0x1a8] sm:$0xf0] }
 0x193   : > { %v5171_v49 = vadd.f32 %v2068_v22, %v1980_v0  ;;  %v4132_v0 = vld [vmem:[%s4625_s5 + $0x158] sm:$0xf0] }
 0x194   : > { %v3394_v52 = vor.u32 %v4132_v0, %v3393_v56 }
 0x196   : > { %v1892_v38 = vpop.f32.mrf.mxu2 }
 0x197   : > { %v1893_v59 = vadd.f32 %v1892_v38, %v1804_v32  ;;  %v1981_v39 = vpop.f32.mrf.mxu3  ;;  %v4128_v32 = vld [vmem:[%s4625_s5 + $0x13c] sm:$0xf] }
 0x198   : > { %v1806_v9 = vpop.f32.mrf.mxu1 }
 0x199   : > { %v1982_v55 = vadd.f32 %v1981_v39, %v1893_v59  ;;  %v1807_v4 = vadd.f32 %v1806_v9, %v4959_v10  ;;  %v3402_v59 = vor.u32 %v4133_v48, %v3401_v46 }
 0x19a   : > { %v2073_v16 = vpop.f32.mrf.mxu0 }
 0x19b   : > { %2121 = vmatmul.bf16.gmra.mxu1 %v3354_v62  ;;  %2210 = vmatmul.bf16.gmra.mxu2 %v3358_v40  ;;  %v5180_v19 = vadd.f32 %v2070_v34, %v1982_v55  ;;  %v3395_v34 = vld [vmem:[%s4625_s5 + $0x15c] sm:$0xf0] }
 0x19c   : > { %2299 = vmatmul.bf16.gmra.mxu3 %v3362_v7  ;;  %v3398_v38 = vor.u32 %v4128_v32, %v3395_v34 }
 0x19d   : > { %2388 = vmatmul.bf16.gmra.mxu0 %v3366_v45 }
 0x19e   : > { %v1895_v20 = vpop.f32.mrf.mxu2 }
 0x19f   : > { %v1896_v21 = vadd.f32 %v1895_v20, %v1807_v4  ;;  %v1984_v8 = vpop.f32.mrf.mxu3  ;;  %v4136_v20 = vld [vmem:[%s4625_s5 + $0x17c] sm:$0xf] }
 0x1a0   : > { %v1808_v18 = vpop.f32.mrf.mxu1 }
 0x1a1   : > { %v1985_v27 = vadd.f32 %v1984_v8, %v1896_v21  ;;  %v1809_v10 = vadd.f32 %v1808_v18, %v4980_v31  ;;  %v3423_v21 = vld [vmem:[%s4625_s5 + $0x19c] sm:$0xf0] }
 0x1a2   : > { %v2075_v22 = vpop.f32.mrf.mxu0  ;;  %v3429_v18 = vld [vmem:[%s4625_s5 + $0x180] sm:$0xf]  ;;  %v3426_v34 = vor.u32 %v4136_v20, %v3423_v21  ;;  %v3473_v20 = vld [vmem:[%s4625_s5 + $0x1d0] sm:$0xf]  ;;  %v4151_v21 = vld [vmem:[%s4625_s5 + $0x1f0] sm:$0xf0] }
 0x1a3   : > { %v5185_v37 = vadd.f32 %v2073_v16, %v1985_v27  ;;  %v4141_v27 = vld [vmem:[%s4625_s5 + $0x1a0] sm:$0xf0] }
 0x1a4   : > { %v3430_v46 = vor.u32 %v4141_v27, %v3429_v18 }
 0x1a6   : > { %v1897_v14 = vpop.f32.mrf.mxu2 }
 0x1a7   : > { %v1898_v50 = vadd.f32 %v1897_v14, %v1809_v10  ;;  %v1986_v3 = vpop.f32.mrf.mxu3  ;;  %v4137_v10 = vld [vmem:[%s4625_s5 + $0x184] sm:$0xf] }
 0x1a8   : > { %v1811_v54 = vpop.f32.mrf.mxu1 }
 0x1a9   : > { %v1987_v31 = vadd.f32 %v1986_v3, %v1898_v50  ;;  %v1812_v39 = vadd.f32 %v1811_v54, %v4854_v41  ;;  %v3438_v50 = vor.u32 %v4142_v33, %v3437_v26 }
 0x1aa   : > { %v2078_v62 = vpop.f32.mrf.mxu0 }
 0x1ab   : > { %2126 = vmatmul.bf16.gmra.mxu1 %v3390_v1  ;;  %2215 = vmatmul.bf16.gmra.mxu2 %v3394_v52  ;;  %v5194_v40 = vadd.f32 %v2075_v22, %v1987_v31  ;;  %v3431_v22 = vld [vmem:[%s4625_s5 + $0x1a4] sm:$0xf0] }
 0x1ac   : > { %2304 = vmatmul.bf16.gmra.mxu3 %v3398_v38  ;;  %v3434_v14 = vor.u32 %v4137_v10, %v3431_v22 }
 0x1ad   : > { %2393 = vmatmul.bf16.gmra.mxu0 %v3402_v59 }
 0x1ae   : > { %v1900_v9 = vpop.f32.mrf.mxu2 }
 0x1af   : > { %v1901_v7 = vadd.f32 %v1900_v9, %v1812_v39  ;;  %v1989_v45 = vpop.f32.mrf.mxu3  ;;  %v4145_v9 = vld [vmem:[%s4625_s5 + $0x1c4] sm:$0xf] }
 0x1b0   : > { %v1813_v55 = vpop.f32.mrf.mxu1 }
 0x1b1   : > { %v1990_v4 = vadd.f32 %v1989_v45, %v1901_v7  ;;  %v1814_v41 = vadd.f32 %v1813_v55, %v4879_v60  ;;  %v3459_v7 = vld [vmem:[%s4625_s5 + $0x1e4] sm:$0xf0] }
 0x1b2   : > { %v2080_v16 = vpop.f32.mrf.mxu0  ;;  %v3465_v55 = vld [vmem:[%s4625_s5 + $0x1c8] sm:$0xf]  ;;  %v3462_v22 = vor.u32 %v4145_v9, %v3459_v7  ;;  %v3509_v9 = vld [vmem:[%s4625_s5 + $0x218] sm:$0xf]  ;;  %v4160_v7 = vld [vmem:[%s4625_s5 + $0x238] sm:$0xf0] }
 0x1b3   : > { %v5199_v8 = vadd.f32 %v2078_v62, %v1990_v4  ;;  %v4150_v4 = vld [vmem:[%s4625_s5 + $0x1e8] sm:$0xf0] }
 0x1b4   : > { %v3466_v26 = vor.u32 %v4150_v4, %v3465_v55 }
 0x1b6   : > { %v1902_v56 = vpop.f32.mrf.mxu2 }
 0x1b7   : > { %v1903_v0 = vadd.f32 %v1902_v56, %v1814_v41  ;;  %v1991_v32 = vpop.f32.mrf.mxu3  ;;  %v4146_v41 = vld [vmem:[%s4625_s5 + $0x1cc] sm:$0xf] }
 0x1b8   : > { %v1816_v48 = vpop.f32.mrf.mxu1 }
 0x1b9   : > { %v1992_v60 = vadd.f32 %v1991_v32, %v1903_v0  ;;  %v1817_v3 = vadd.f32 %v1816_v48, %v4890_v5  ;;  %v3474_v0 = vor.u32 %v4151_v21, %v3473_v20 }
 0x1ba   : > { %v2083_v1 = vpop.f32.mrf.mxu0 }
 0x1bb   : > { %2131 = vmatmul.bf16.gmra.mxu1 %v3426_v34  ;;  %2220 = vmatmul.bf16.gmra.mxu2 %v3430_v46  ;;  %v5208_v52 = vadd.f32 %v2080_v16, %v1992_v60  ;;  %v3467_v16 = vld [vmem:[%s4625_s5 + $0x1ec] sm:$0xf0] }
 0x1bc   : > { %2309 = vmatmul.bf16.gmra.mxu3 %v3434_v14  ;;  %v3470_v56 = vor.u32 %v4146_v41, %v3467_v16 }
 0x1bd   : > { %2398 = vmatmul.bf16.gmra.mxu0 %v3438_v50 }
 0x1be   : > { %v1905_v54 = vpop.f32.mrf.mxu2 }
 0x1bf   : > { %v1906_v38 = vadd.f32 %v1905_v54, %v1817_v3  ;;  %v1994_v59 = vpop.f32.mrf.mxu3  ;;  %v4154_v54 = vld [vmem:[%s4625_s5 + $0x20c] sm:$0xf] }
 0x1c0   : > { %v1818_v31 = vpop.f32.mrf.mxu1 }
 0x1c1   : > { %v1995_v39 = vadd.f32 %v1994_v59, %v1906_v38  ;;  %v1819_v5 = vadd.f32 %v1818_v31, %v4909_v23  ;;  %v3495_v38 = vld [vmem:[%s4625_s5 + $0x22c] sm:$0xf0] }
 0x1c2   : > { %v2085_v62 = vpop.f32.mrf.mxu0  ;;  %v3501_v31 = vld [vmem:[%s4625_s5 + $0x210] sm:$0xf]  ;;  %v3498_v16 = vor.u32 %v4154_v54, %v3495_v38  ;;  %v3545_v54 = vld [vmem:[%s4625_s5 + $0x260] sm:$0xf]  ;;  %v4169_v38 = vld [vmem:[%s4625_s5 + $0x280] sm:$0xf0] }
 0x1c3   : > { %v5213_v45 = vadd.f32 %v2083_v1, %v1995_v39  ;;  %v4159_v39 = vld [vmem:[%s4625_s5 + $0x230] sm:$0xf0] }
 0x1c4   : > { %v3502_v20 = vor.u32 %v4159_v39, %v3501_v31 }
 0x1c6   : > { %v1907_v18 = vpop.f32.mrf.mxu2 }
 0x1c7   : > { %v1908_v27 = vadd.f32 %v1907_v18, %v1819_v5  ;;  %v1996_v10 = vpop.f32.mrf.mxu3  ;;  %v4155_v5 = vld [vmem:[%s4625_s5 + $0x214] sm:$0xf] }
 0x1c8   : > { %v1821_v33 = vpop.f32.mrf.mxu1 }
 0x1c9   : > { %v1997_v23 = vadd.f32 %v1996_v10, %v1908_v27  ;;  %v1822_v32 = vadd.f32 %v1821_v33, %v4926_v36  ;;  %v3510_v27 = vor.u32 %v4160_v7, %v3509_v9 }
 0x1ca   : > { %v2088_v34 = vpop.f32.mrf.mxu0 }
 0x1cb   : > { %2136 = vmatmul.bf16.gmra.mxu1 %v3462_v22  ;;  %2225 = vmatmul.bf16.gmra.mxu2 %v3466_v26  ;;  %v5222_v46 = vadd.f32 %v2085_v62, %v1997_v23  ;;  %v3503_v62 = vld [vmem:[%s4625_s5 + $0x234] sm:$0xf0] }
 0x1cc   : > { %2314 = vmatmul.bf16.gmra.mxu3 %v3470_v56  ;;  %v3506_v18 = vor.u32 %v4155_v5, %v3503_v62 }
 0x1cd   : > { %2403 = vmatmul.bf16.gmra.mxu0 %v3474_v0 }
 0x1ce   : > { %v1910_v48 = vpop.f32.mrf.mxu2 }
 0x1cf   : > { %v1911_v14 = vadd.f32 %v1910_v48, %v1822_v32  ;;  %v1999_v50 = vpop.f32.mrf.mxu3  ;;  %v4163_v48 = vld [vmem:[%s4625_s5 + $0x254] sm:$0xf] }
 0x1d0   : > { %v1823_v60 = vpop.f32.mrf.mxu1 }
 0x1d1   : > { %v2000_v3 = vadd.f32 %v1999_v50, %v1911_v14  ;;  %v1824_v36 = vadd.f32 %v1823_v60, %v4951_v61  ;;  %v3531_v14 = vld [vmem:[%s4625_s5 + $0x274] sm:$0xf0] }
 0x1d2   : > { %v2090_v1 = vpop.f32.mrf.mxu0  ;;  %v3537_v60 = vld [vmem:[%s4625_s5 + $0x258] sm:$0xf]  ;;  %v3534_v62 = vor.u32 %v4163_v48, %v3531_v14  ;;  %v3581_v14 = vld [vmem:[%s4625_s5 + $0x2a8] sm:$0xf] }
 0x1d3   : > { %v5227_v59 = vadd.f32 %v2088_v34, %v2000_v3  ;;  %v4168_v3 = vld [vmem:[%s4625_s5 + $0x278] sm:$0xf0] }
 0x1d4   : > { %v3538_v9 = vor.u32 %v4168_v3, %v3537_v60  ;;  %v4178_v60 = vld [vmem:[%s4625_s5 + $0x2c8] sm:$0xf0] }
 0x1d6   : > { %v1912_v55 = vpop.f32.mrf.mxu2 }
 0x1d7   : > { %v1913_v4 = vadd.f32 %v1912_v55, %v1824_v36  ;;  %v2001_v41 = vpop.f32.mrf.mxu3  ;;  %v4164_v36 = vld [vmem:[%s4625_s5 + $0x25c] sm:$0xf] }
 0x1d8   : > { %v1826_v21 = vpop.f32.mrf.mxu1 }
 0x1d9   : > { %v2002_v61 = vadd.f32 %v2001_v41, %v1913_v4  ;;  %v1827_v10 = vadd.f32 %v1826_v21, %v4962_v12  ;;  %v3546_v4 = vor.u32 %v4169_v38, %v3545_v54 }
 0x1da   : > { %v2093_v22 = vpop.f32.mrf.mxu0 }
 0x1db   : > { %2141 = vmatmul.bf16.gmra.mxu1 %v3498_v16  ;;  %2230 = vmatmul.bf16.gmra.mxu2 %v3502_v20  ;;  %v5236_v26 = vadd.f32 %v2090_v1, %v2002_v61  ;;  %v3539_v1 = vld [vmem:[%s4625_s5 + $0x27c] sm:$0xf0] }
 0x1dc   : > { %2319 = vmatmul.bf16.gmra.mxu3 %v3506_v18  ;;  %v3542_v55 = vor.u32 %v4164_v36, %v3539_v1 }
 0x1dd   : > { %2408 = vmatmul.bf16.gmra.mxu0 %v3510_v27 }
 0x1de   : > { %v1915_v33 = vpop.f32.mrf.mxu2 }
 0x1df   : > { %v1916_v56 = vadd.f32 %v1915_v33, %v1827_v10  ;;  %v2004_v0 = vpop.f32.mrf.mxu3 }
 0x1e0   : > { %v1828_v23 = vpop.f32.mrf.mxu1 }
 0x1e1   : > { %v2005_v32 = vadd.f32 %v2004_v0, %v1916_v56  ;;  %v1829_v12 = vadd.f32 %v1828_v23, %v4983_v43  ;;  %v4172_v56 = vld [vmem:[%s4625_s5 + $0x29c] sm:$0xf]  ;;  %v3567_v0 = vld [vmem:[%s4625_s5 + $0x2bc] sm:$0xf0] }
 0x1e2   : > { %v2095_v34 = vpop.f32.mrf.mxu0  ;;  %v3573_v23 = vld [vmem:[%s4625_s5 + $0x2a0] sm:$0xf]  ;;  %v3570_v38 = vor.u32 %v4172_v56, %v3567_v0  ;;  %v3603_v0 = vld [vmem:[%s4625_s5 + $0x304] sm:$0xf0] }
 0x1e3   : > { %v5241_v50 = vadd.f32 %v2093_v22, %v2005_v32  ;;  %v4177_v32 = vld [vmem:[%s4625_s5 + $0x2c0] sm:$0xf0] }
 0x1e5   : > { %5858 = vst [vmem:[#allocation2_spill] sm:$0xff] %v5241_v50 }
 0x1e6   : > { %v1917_v31 = vpop.f32.mrf.mxu2 }
 0x1e7   : > { %v1918_v39 = vadd.f32 %v1917_v31, %v1829_v12  ;;  %v2006_v5 = vpop.f32.mrf.mxu3  ;;  %v4173_v12 = vld [vmem:[%s4625_s5 + $0x2a4] sm:$0xf]  ;;  %v3574_v31 = vor.u32 %v4177_v32, %v3573_v23  ;;  %v3609_v23 = vld [vmem:[%s4625_s5 + $0x2e8] sm:$0xf]  ;;  %v4186_v32 = vld [vmem:[%s4625_s5 + $0x308] sm:$0xf0] }
 0x1e8   : > { %v2107_v7 = vpop.f32.mrf.mxu1 }
 0x1e9   : > { %v2007_v43 = vadd.f32 %v2006_v5, %v1918_v39  ;;  %v2108_v20 = vadd.f32 %v2107_v7, %v5001_v13 }
 0x1ea   : > { %v2374_v41 = vpop.f32.mrf.mxu0 }
 0x1eb   : > { %2146 = vmatmul.bf16.gmra.mxu1 %v3534_v62  ;;  %2235 = vmatmul.bf16.gmra.mxu2 %v3538_v9  ;;  %v5249_v16 = vadd.f32 %v2095_v34, %v2007_v43  ;;  %v3575_v34 = vld [vmem:[%s4625_s5 + $0x2c4] sm:$0xf0]  ;;  %v3582_v62 = vor.u32 %v4178_v60, %v3581_v14  ;;  %v3617_v14 = vld [vmem:[%s4625_s5 + $0x2f0] sm:$0xf]  ;;  %v4187_v60 = vld [vmem:[%s4625_s5 + $0x310] sm:$0xf0] }
 0x1ec   : > { %2324 = vmatmul.bf16.gmra.mxu3 %v3542_v55  ;;  %v3578_v5 = vor.u32 %v4173_v12, %v3575_v34  ;;  %v4182_v12 = vld [vmem:[%s4625_s5 + $0x2ec] sm:$0xf]  ;;  %v3611_v34 = vld [vmem:[%s4625_s5 + $0x30c] sm:$0xf0] }
 0x1ed   : > { %5859 = vst [vmem:[#allocation3_spill] sm:$0xff] %v5249_v16  ;;  %2413 = vmatmul.bf16.gmra.mxu0 %v3546_v4 }
 0x1ee   : > { %v2196_v21 = vpop.f32.mrf.mxu2 }
 0x1ef   : > { %v2197_v18 = vadd.f32 %v2196_v21, %v2108_v20  ;;  %v2285_v27 = vpop.f32.mrf.mxu3 }
 0x1f0   : > { %v2109_v61 = vpop.f32.mrf.mxu1 }
 0x1f1   : > { %v2286_v10 = vadd.f32 %v2285_v27, %v2197_v18  ;;  %v2110_v13 = vadd.f32 %v2109_v61, %v5011_v35 }
 0x1f2   : > { %v2376_v22 = vpop.f32.mrf.mxu0 }
 0x1f3   : > { %v5252_v33 = vadd.f32 %v2374_v41, %v2286_v10 }
 0x1f5   : > { %v2454_v48 = vsub.f32 0.0, %v5252_v33 }
 0x1f6   : > { %v2198_v3 = vpop.f32.mrf.mxu2 }
 0x1f7   : > { %v2486_v36 = vmul.f32 1.442695, %v2454_v48  ;;  %v2199_v1 = vadd.f32 %v2198_v3, %v2110_v13  ;;  %v2287_v54 = vpop.f32.mrf.mxu3 }
 0x1f8   : > { %v2112_v39 = vpop.f32.mrf.mxu1 }
 0x1f9   : > { %4434 = vpow2.f32 %v2486_v36  ;;  %v2288_v9 = vadd.f32 %v2287_v54, %v2199_v1  ;;  %v2113_v4 = vadd.f32 %v2112_v39, %v5017_v63  ;;  %v4181_v63 = vld [vmem:[%s4625_s5 + $0x2e4] sm:$0xf]  ;;  %v3610_v39 = vor.u32 %v4186_v32, %v3609_v23 }
 0x1fa   : > { %v2379_v7 = vpop.f32.mrf.mxu0 }
 0x1fb   : > { %v5264_v55 = vadd.f32 %v2376_v22, %v2288_v9  ;;  %2151 = vmatmul.bf16.gmra.mxu1 %v3570_v38  ;;  %2240 = vmatmul.bf16.gmra.mxu2 %v3574_v31  ;;  %v3606_v31 = vor.u32 %v4181_v63, %v3603_v0 }
 0x1fc   : > { %2329 = vmatmul.bf16.gmra.mxu3 %v3578_v5 }
 0x1fd   : > { %2418 = vmatmul.bf16.gmra.mxu0 %v3582_v62  ;;  %v2455_v35 = vsub.f32 0.0, %v5264_v55 }
 0x1fe   : > { %v2201_v43 = vpop.f32.mrf.mxu2 }
 0x1ff   : > { %v4435_v41 = vpop.eup %4434  ;;  %v2488_v20 = vmul.f32 1.442695, %v2455_v35  ;;  %v2202_v21 = vadd.f32 %v2201_v43, %v2113_v4  ;;  %v2290_v18 = vpop.f32.mrf.mxu3  ;;  %v3618_v35 = vor.u32 %v4187_v60, %v3617_v14 }
 0x200   : > { %v5268_v27 = vadd.f32 1.0, %v4435_v41  ;;  %v2114_v61 = vpop.f32.mrf.mxu1 }
 0x201   : > { %4436 = vpow2.f32 %v2488_v20  ;;  %v2291_v10 = vadd.f32 %v2290_v18, %v2202_v21  ;;  %v2115_v13 = vadd.f32 %v2114_v61, %v5027_v47 }
 0x202   : > { %v2381_v22 = vpop.f32.mrf.mxu0  ;;  %4438 = vrcp.f32 %v5268_v27  ;;  %vm2587_vm1 = vweird.f32 %v5268_v27 }
 0x203   : > { %v5271_v56 = vadd.f32 %v2379_v7, %v2291_v10  ;;  %v3614_v7 = vor.u32 %v4182_v12, %v3611_v34 }
 0x205   : > { %v2456_v48 = vsub.f32 0.0, %v5271_v56 }
 0x206   : > { %v2203_v3 = vpop.f32.mrf.mxu2 }
 0x207   : > { %v4437_v36 = vpop.eup %4436  ;;  %v2490_v1 = vmul.f32 1.442695, %v2456_v48  ;;  %v2204_v54 = vadd.f32 %v2203_v3, %v2115_v13  ;;  %v2292_v38 = vpop.f32.mrf.mxu3  ;;  %v4190_v48 = vld [vmem:[%s4625_s5 + $0x32c] sm:$0xf]  ;;  %v3639_v13 = vld [vmem:[%s4625_s5 + $0x34c] sm:$0xf0] }
 0x208   : > { %v5283_v5 = vpop.eup %4438  ;;  %v5285_v62 = vadd.f32 1.0, %v4437_v36  ;;  %v2117_v9 = vpop.f32.mrf.mxu1  ;;  %v3645_v3 = vld [vmem:[%s4625_s5 + $0x330] sm:$0xf]  ;;  %v4195_v36 = vld [vmem:[%s4625_s5 + $0x350] sm:$0xf0] }
 0x209   : > { %v2583_v4 = vmul.f32 %v5283_v5, %v5268_v27  ;;  %4440 = vpow2.f32 %v2490_v1  ;;  %v2293_v47 = vadd.f32 %v2292_v38, %v2204_v54  ;;  %v2118_v61 = vadd.f32 %v2117_v9, %v5045_v2  ;;  %v4191_v1 = vld [vmem:[%s4625_s5 + $0x334] sm:$0xf]  ;;  %v3647_v38 = vld [vmem:[%s4625_s5 + $0x354] sm:$0xf0] }
 0x20a   : > { %v2384_v43 = vpop.f32.mrf.mxu0  ;;  %4442 = vrcp.f32 %v5285_v62  ;;  %vm2588_vm0 = vweird.f32 %v5283_v5  ;;  %v2593_v54 = vand.u32 2147483648, %v5268_v27  ;;  %vm2602_vm5 = vweird.f32 %v5285_v62 }
 0x20b   : > { %v2584_v41 = vsub.f32 1.0, %v2583_v4  ;;  %v5290_v20 = vadd.f32 %v2381_v22, %v2293_v47  ;;  %2156 = vmatmul.bf16.gmra.mxu1 %v3606_v31  ;;  %2245 = vmatmul.bf16.gmra.mxu2 %v3610_v39  ;;  %v3653_v31 = vld [vmem:[%s4625_s5 + $0x338] sm:$0xf]  ;;  %v2591_v39 = vand.u32 2147483647, %v5268_v27  ;;  %vm5314_vm2 = vmor %vm2587_vm1, %vm2588_vm0 }
 0x20c   : > { %2334 = vmatmul.bf16.gmra.mxu3 %v3614_v7  ;;  %v2606_v47 = vand.u32 2147483647, %v5285_v62 }
 0x20d   : > { %2423 = vmatmul.bf16.gmra.mxu0 %v3618_v35  ;;  %v2585_v21 = vmul.f32 %v5283_v5, %v2584_v41  ;;  %v2457_v18 = vsub.f32 0.0, %v5290_v20  ;;  %v4196_v35 = vld [vmem:[%s4625_s5 + $0x358] sm:$0xf0]  ;;  %v2608_v41 = vand.u32 2147483648, %v5285_v62  ;;  %vm2592_vm4 = vcmp.eq.f32.partialorder %v2591_v39, 8.507059e+37 }
 0x20e   : > { %v2206_v10 = vpop.f32.mrf.mxu2  ;;  %vm2607_vm7 = vcmp.eq.f32.partialorder %v2606_v47, 8.507059e+37 }
 0x20f   : > { %v4441_v63 = vpop.eup %4440  ;;  %v2492_v0 = vmul.f32 1.442695, %v2457_v18  ;;  %v2207_v22 = vadd.f32 %v2206_v10, %v2118_v61  ;;  %v2295_v23 = vpop.f32.mrf.mxu3  ;;  %v2586_v14 = vadd.f32 %v5283_v5, %v2585_v21  ;;  %v3642_v21 = vor.u32 %v4190_v48, %v3639_v13 }
 0x210   : > { %v4443_v32 = vpop.eup %4442  ;;  %v5295_v12 = vadd.f32 1.0, %v4441_v63  ;;  %v2119_v34 = vpop.f32.mrf.mxu1  ;;  %v3646_v18 = vor.u32 %v4195_v36, %v3645_v3  ;;  %v2594_v63 = vor.u32 1.1754944e-38, %v2593_v54 }
 0x211   : > { %v2598_v2 = vmul.f32 %v4443_v32, %v5285_v62  ;;  %4444 = vpow2.f32 %v2492_v0  ;;  %v2296_v7 = vadd.f32 %v2295_v23, %v2207_v22  ;;  %v2590_v61 = vsel %vm5314_vm2, %v5283_v5, %v2586_v14 }
 0x212   : > { %v2386_v60 = vpop.f32.mrf.mxu0  ;;  %4446 = vrcp.f32 %v5295_v12  ;;  %vm2603_vm3 = vweird.f32 %v4443_v32  ;;  %v2120_v0 = vadd.f32 %v2119_v34, %v5055_v28  ;;  %v3650_v23 = vor.u32 %v4191_v1, %v3647_v38 }
 0x213   : > { %v2599_v9 = vsub.f32 1.0, %v2598_v2  ;;  %v5323_v10 = vadd.f32 %v2384_v43, %v2296_v7  ;;  %v3654_v2 = vor.u32 %v4196_v35, %v3653_v31  ;;  %v2595_v14 = vsel %vm2592_vm4, %v2594_v63, %v2590_v61  ;;  %vm2604_vm6 = vmor %vm2602_vm5, %vm2603_vm3 }
 0x214   : > { %v2609_v43 = vor.u32 1.1754944e-38, %v2608_v41  ;;  %v3062_v31 = vmul.f32 %v2595_v14, %v5252_v33  ;;  %v2623_v35 = vand.u32 2147483648, %v5295_v12  ;;  %vm2617_vm9 = vweird.f32 %v5295_v12 }
 0x215   : > { %v2600_v27 = vmul.f32 %v4443_v32, %v2599_v9  ;;  %v2458_v48 = vsub.f32 0.0, %v5323_v10 }
 0x216   : > { %v2208_v22 = vpop.f32.mrf.mxu2 }
 0x217   : > { %v4445_v16 = vpop.eup %4444  ;;  %v2601_v50 = vadd.f32 %v4443_v32, %v2600_v27  ;;  %v2297_v13 = vpop.f32.mrf.mxu3  ;;  %v2209_v28 = vadd.f32 %v2208_v22, %v2120_v0  ;;  %v2494_v62 = vmul.f32 1.442695, %v2458_v48  ;;  %v4199_v0 = vld [vmem:[%s4625_s5 + $0x374] sm:$0xf]  ;;  %v3675_v22 = vld [vmem:[%s4625_s5 + $0x394] sm:$0xf0] }
 0x218   : > { %v5328_v5 = vpop.eup %4446  ;;  %v5331_v3 = vadd.f32 1.0, %v4445_v16  ;;  %v2122_v34 = vpop.f32.mrf.mxu1 }
 0x219   : > { %v2605_v36 = vsel %vm2604_vm6, %v4443_v32, %v2601_v50  ;;  %v2613_v1 = vmul.f32 %v5328_v5, %v5295_v12  ;;  %v2298_v50 = vadd.f32 %v2297_v13, %v2209_v28  ;;  %v2123_v33 = vadd.f32 %v2122_v34, %v5061_v57 }
 0x21a   : > { %v2389_v54 = vpop.f32.mrf.mxu0  ;;  %v2610_v38 = vsel %vm2607_vm7, %v2609_v43, %v2605_v36  ;;  %4448 = vrcp.f32 %v5331_v3  ;;  %vm2618_vm8 = vweird.f32 %v5328_v5  ;;  %v2624_v43 = vor.u32 1.1754944e-38, %v2623_v35 }
 0x21b   : > { %v3063_v39 = vmul.f32 %v2610_v38, %v5264_v55  ;;  %v2614_v9 = vsub.f32 1.0, %v2613_v1  ;;  %4450 = vpow2.f32 %v2494_v62  ;;  %2161 = vmatmul.bf16.gmra.mxu1 %v3642_v21  ;;  %2250 = vmatmul.bf16.gmra.mxu2 %v3646_v18  ;;  %v5346_v55 = vadd.f32 %v2386_v60, %v2298_v50  ;;  %vm5361_vm10 = vmor %vm2617_vm9, %vm2618_vm8  ;;  %v4204_v1 = vld [vmem:[%s4625_s5 + $0x398] sm:$0xf0] }
 0x21c   : > { %2339 = vmatmul.bf16.gmra.mxu3 %v3650_v23  ;;  %v3681_v23 = vld [vmem:[%s4625_s5 + $0x378] sm:$0xf]  ;;  %v2636_v34 = vand.u32 2147483647, %v5331_v3  ;;  %v2638_v62 = vand.u32 2147483648, %v5331_v3  ;;  %vm2632_vm13 = vweird.f32 %v5331_v3 }
 0x21d   : > { %2428 = vmatmul.bf16.gmra.mxu0 %v3654_v2  ;;  %v4308_v16 = vpack.c.bf16 %v3063_v39, %v3062_v31  ;;  %v2615_v32 = vmul.f32 %v5328_v5, %v2614_v9  ;;  %v2459_v18 = vsub.f32 0.0, %v5346_v55  ;;  %v2621_v2 = vand.u32 2147483647, %v5295_v12  ;;  %v4200_v38 = vld [vmem:[%s4625_s5 + $0x37c] sm:$0xf] }
 0x21e   : > { %v2211_v7 = vpop.f32.mrf.mxu2  ;;  %v3683_v31 = vld [vmem:[%s4625_s5 + $0x39c] sm:$0xf0]  ;;  %vm2637_vm15 = vcmp.eq.f32.partialorder %v2636_v34, 8.507059e+37 }
 0x21f   : > { %4309 = vst [vmem:[%s5342_s22] sm:$0xff] %v4308_v16   ;;  %v2212_v4 = vadd.f32 %v2211_v7, %v2123_v33  ;;  %v2300_v47 = vpop.f32.mrf.mxu3  ;;  %v2616_v21 = vadd.f32 %v5328_v5, %v2615_v32  ;;  %v2496_v13 = vmul.f32 1.442695, %v2459_v18  ;;  %v4205_v16 = vld [vmem:[%s4625_s5 + $0x3a0] sm:$0xf0]  ;;  %vm2622_vm12 = vcmp.eq.f32.partialorder %v2621_v2, 8.507059e+37 }
 0x220   : > { %v4449_v41 = vpop.eup %4448  ;;  %v2124_v61 = vpop.f32.mrf.mxu1  ;;  %v3682_v33 = vor.u32 %v4204_v1, %v3681_v23  ;;  %v2639_v18 = vor.u32 1.1754944e-38, %v2638_v62 }
 0x221   : > { %v4451_v57 = vpop.eup %4450  ;;  %v2628_v60 = vmul.f32 %v4449_v41, %v5331_v3  ;;  %v2301_v27 = vadd.f32 %v2300_v47, %v2212_v4  ;;  %v2620_v12 = vsel %vm5361_vm10, %v5328_v5, %v2616_v21  ;;  %vm2633_vm11 = vweird.f32 %v4449_v41 }
 0x222   : > { %v2391_v63 = vpop.f32.mrf.mxu0  ;;  %v5359_v48 = vadd.f32 1.0, %v4451_v57  ;;  %v2125_v50 = vadd.f32 %v2124_v61, %v5070_v29  ;;  %v3678_v5 = vor.u32 %v4199_v0, %v3675_v22  ;;  %v2625_v7 = vsel %vm2622_vm12, %v2624_v43, %v2620_v12  ;;  %vm2634_vm14 = vmor %vm2632_vm13, %vm2633_vm11 }
 0x223   : > { %v2629_v28 = vsub.f32 1.0, %v2628_v60  ;;  %v5366_v36 = vadd.f32 %v2389_v54, %v2301_v27  ;;  %v3689_v54 = vld [vmem:[%s4625_s5 + $0x380] sm:$0xf]  ;;  %v3686_v60 = vor.u32 %v4200_v38, %v3683_v31  ;;  %v3064_v0 = vmul.f32 %v2625_v7, %v5271_v56  ;;  %v4209_v7 = vld [vmem:[%s4625_s5 + $0x3c4] sm:$0xf] }
 0x224   : > { %4452 = vrcp.f32 %v5359_v48  ;;  %v3690_v27 = vor.u32 %v4205_v16, %v3689_v54  ;;  %v4208_v54 = vld [vmem:[%s4625_s5 + $0x3bc] sm:$0xf]  ;;  %v3711_v16 = vld [vmem:[%s4625_s5 + $0x3dc] sm:$0xf0]  ;;  %vm2647_vm1 = vweird.f32 %v5359_v48 }
 0x225   : > { %v2630_v39 = vmul.f32 %v4449_v41, %v2629_v28  ;;  %4454 = vpow2.f32 %v2496_v13  ;;  %v2460_v9 = vsub.f32 0.0, %v5366_v36 }
 0x226   : > { %v2213_v32 = vpop.f32.mrf.mxu2 }
 0x227   : > { %v2631_v35 = vadd.f32 %v4449_v41, %v2630_v39  ;;  %v2498_v4 = vmul.f32 1.442695, %v2460_v9  ;;  %v2214_v47 = vadd.f32 %v2213_v32, %v2125_v50  ;;  %v2302_v21 = vpop.f32.mrf.mxu3  ;;  %v3717_v32 = vld [vmem:[%s4625_s5 + $0x3c0] sm:$0xf] }
 0x228   : > { %v2127_v57 = vpop.f32.mrf.mxu1 }
 0x229   : > { %v2635_v29 = vsel %vm2634_vm14, %v4449_v41, %v2631_v35  ;;  %4456 = vpow2.f32 %v2498_v4  ;;  %v2303_v61 = vadd.f32 %v2302_v21, %v2214_v47  ;;  %v2128_v1 = vadd.f32 %v2127_v57, %v5087_v53  ;;  %v3719_v35 = vld [vmem:[%s4625_s5 + $0x3e4] sm:$0xf0]  ;;  %v4214_v57 = vld [vmem:[%s4625_s5 + $0x3e8] sm:$0xf0] }
 0x22a   : > { %v2394_v2 = vpop.f32.mrf.mxu0  ;;  %v5382_v3 = vpop.eup %4452  ;;  %v2640_v22 = vsel %vm2637_vm15, %v2639_v18, %v2635_v29  ;;  %v3714_v21 = vor.u32 %v4208_v54, %v3711_v16  ;;  %v3725_v18 = vld [vmem:[%s4625_s5 + $0x3c8] sm:$0xf] }
 0x22b   : > { %v4455_v23 = vpop.eup %4454  ;;  %v3065_v13 = vmul.f32 %v2640_v22, %v5290_v20  ;;  %v2643_v14 = vmul.f32 %v5382_v3, %v5359_v48  ;;  %v5388_v43 = vadd.f32 %v2391_v63, %v2303_v61  ;;  %2166 = vmatmul.bf16.gmra.mxu1 %v3678_v5  ;;  %2255 = vmatmul.bf16.gmra.mxu2 %v3682_v33  ;;  %v4213_v5 = vld [vmem:[%s4625_s5 + $0x3e0] sm:$0xf0]  ;;  %vm2648_vm0 = vweird.f32 %v5382_v3 }
 0x22c   : > { %v5390_v41 = vadd.f32 1.0, %v4455_v23  ;;  %2344 = vmatmul.bf16.gmra.mxu3 %v3686_v60  ;;  %v3718_v61 = vor.u32 %v4213_v5, %v3717_v32  ;;  %v3722_v23 = vor.u32 %v4209_v7, %v3719_v35  ;;  %vm5418_vm2 = vmor %vm2647_vm1, %vm2648_vm0 }
 0x22d   : > { %2433 = vmatmul.bf16.gmra.mxu0 %v3690_v27  ;;  %v4313_v28 = vpack.c.bf16 %v3065_v13, %v3064_v0  ;;  %v2644_v34 = vsub.f32 1.0, %v2643_v14  ;;  %v2461_v56 = vsub.f32 0.0, %v5388_v43  ;;  %v2653_v0 = vand.u32 2147483648, %v5359_v48 }
 0x22e   : > { %4458 = vrcp.f32 %v5390_v41  ;;  %v2216_v20 = vpop.f32.mrf.mxu2  ;;  %vm2662_vm5 = vweird.f32 %v5390_v41 }
 0x22f   : > { %v4457_v63 = vpop.eup %4456  ;;  %4385 = vst [vmem:[%s5342_s22 + $0x8] sm:$0xff] %v4313_v28   ;;  %v2500_v12 = vmul.f32 1.442695, %v2461_v56  ;;  %v2217_v62 = vadd.f32 %v2216_v20, %v2128_v1  ;;  %v2305_v38 = vpop.f32.mrf.mxu3  ;;  %v2645_v31 = vmul.f32 %v5382_v3, %v2644_v34  ;;  %v3726_v20 = vor.u32 %v4214_v57, %v3725_v18 }
 0x230   : > { %v5397_v39 = vadd.f32 1.0, %v4457_v63  ;;  %v2129_v9 = vpop.f32.mrf.mxu1  ;;  %v2654_v54 = vor.u32 1.1754944e-38, %v2653_v0 }
 0x231   : > { %4460 = vpow2.f32 %v2500_v12  ;;  %v2306_v53 = vadd.f32 %v2305_v38, %v2217_v62  ;;  %v2646_v47 = vadd.f32 %v5382_v3, %v2645_v31  ;;  %v2130_v29 = vadd.f32 %v2129_v9, %v5096_v24 }
 0x232   : > { %v2396_v50 = vpop.f32.mrf.mxu0  ;;  %4462 = vrcp.f32 %v5397_v39  ;;  %v2668_v12 = vand.u32 2147483648, %v5390_v41  ;;  %vm2677_vm9 = vweird.f32 %v5397_v39 }
 0x233   : > { %v5404_v33 = vadd.f32 %v2394_v2, %v2306_v53  ;;  %v2651_v2 = vand.u32 2147483647, %v5359_v48  ;;  %v2650_v63 = vsel %vm5418_vm2, %v5382_v3, %v2646_v47  ;;  %v2666_v48 = vand.u32 2147483647, %v5390_v41 }
 0x234   : > { %v4459_v4 = vpop.eup %4458  ;;  %v2669_v7 = vor.u32 1.1754944e-38, %v2668_v12 }
 0x235   : > { %v2658_v60 = vmul.f32 %v4459_v4, %v5390_v41  ;;  %v2462_v27 = vsub.f32 0.0, %v5404_v33  ;;  %vm2663_vm3 = vweird.f32 %v4459_v4  ;;  %vm2652_vm4 = vcmp.eq.f32.partialorder %v2651_v2, 8.507059e+37 }
 0x236   : > { %v2218_v22 = vpop.f32.mrf.mxu2  ;;  %v2655_v5 = vsel %vm2652_vm4, %v2654_v54, %v2650_v63  ;;  %vm2664_vm6 = vmor %vm2662_vm5, %vm2663_vm3  ;;  %vm2667_vm7 = vcmp.eq.f32.partialorder %v2666_v48, 8.507059e+37  ;;  %v2681_v48 = vand.u32 2147483647, %v5397_v39 }
 0x237   : > { %v4461_v13 = vpop.eup %4460  ;;  %v2659_v28 = vsub.f32 1.0, %v2658_v60  ;;  %v2502_v34 = vmul.f32 1.442695, %v2462_v27  ;;  %v2219_v56 = vadd.f32 %v2218_v22, %v2130_v29  ;;  %v2307_v1 = vpop.f32.mrf.mxu3 }
 0x238   : > { %v5422_v24 = vpop.eup %4462  ;;  %v5429_v62 = vadd.f32 1.0, %v4461_v13  ;;  %v2132_v38 = vpop.f32.mrf.mxu1  ;;  %vm2682_vm12 = vcmp.eq.f32.partialorder %v2681_v48, 8.507059e+37 }
 0x239   : > { %v2660_v31 = vmul.f32 %v4459_v4, %v2659_v28  ;;  %v2673_v9 = vmul.f32 %v5422_v24, %v5397_v39  ;;  %4464 = vpow2.f32 %v2502_v34  ;;  %v2308_v32 = vadd.f32 %v2307_v1, %v2219_v56  ;;  %v3753_v28 = vld [vmem:[%s4625_s5 + $0x408] sm:$0xf]  ;;  %v4222_v34 = vld [vmem:[%s4625_s5 + $0x428] sm:$0xf0] }
 0x23a   : > { %v2399_v53 = vpop.f32.mrf.mxu0  ;;  %4466 = vrcp.f32 %v5429_v62  ;;  %v2133_v41 = vadd.f32 %v2132_v38, %v5101_v6  ;;  %vm2678_vm8 = vweird.f32 %v5422_v24  ;;  %v2683_v56 = vand.u32 2147483648, %v5397_v39  ;;  %v4218_v1 = vld [vmem:[%s4625_s5 + $0x40c] sm:$0xf] }
 0x23b   : > { %v2661_v16 = vadd.f32 %v4459_v4, %v2660_v31  ;;  %v2674_v3 = vsub.f32 1.0, %v2673_v9  ;;  %2171 = vmatmul.bf16.gmra.mxu1 %v3714_v21  ;;  %2260 = vmatmul.bf16.gmra.mxu2 %v3718_v61  ;;  %v5436_v18 = vadd.f32 %v2396_v50, %v2308_v32  ;;  %v3066_v21 = vmul.f32 %v2655_v5, %v5323_v10  ;;  %v3747_v10 = vld [vmem:[%s4625_s5 + $0x424] sm:$0xf0]  ;;  %vm5459_vm10 = vmor %vm2677_vm9, %vm2678_vm8 }
 0x23c   : > { %2349 = vmatmul.bf16.gmra.mxu3 %v3722_v23  ;;  %v4217_v23 = vld [vmem:[%s4625_s5 + $0x404] sm:$0xf]  ;;  %v2696_v54 = vand.u32 2147483647, %v5429_v62  ;;  %v2684_v39 = vor.u32 1.1754944e-38, %v2683_v56  ;;  %vm2692_vm13 = vweird.f32 %v5429_v62 }
 0x23d   : > { %2438 = vmatmul.bf16.gmra.mxu0 %v3726_v20  ;;  %v2665_v35 = vsel %vm2664_vm6, %v4459_v4, %v2661_v16  ;;  %v2675_v47 = vmul.f32 %v5422_v24, %v2674_v3  ;;  %v2463_v4 = vsub.f32 0.0, %v5436_v18  ;;  %v3755_v20 = vld [vmem:[%s4625_s5 + $0x42c] sm:$0xf0]  ;;  %v3750_v31 = vor.u32 %v4217_v23, %v3747_v10 }
 0x23e   : > { %v2670_v57 = vsel %vm2667_vm7, %v2669_v7, %v2665_v35  ;;  %v2221_v60 = vpop.f32.mrf.mxu2  ;;  %v2698_v16 = vand.u32 2147483648, %v5429_v62  ;;  %v3761_v7 = vld [vmem:[%s4625_s5 + $0x410] sm:$0xf]  ;;  %v4223_v35 = vld [vmem:[%s4625_s5 + $0x430] sm:$0xf0]  ;;  %vm2697_vm15 = vcmp.eq.f32.partialorder %v2696_v54, 8.507059e+37 }
 0x23f   : > { %v4465_v27 = vpop.eup %4464  ;;  %v3067_v29 = vmul.f32 %v2670_v57, %v5346_v55  ;;  %v2310_v61 = vpop.f32.mrf.mxu3  ;;  %v2676_v50 = vadd.f32 %v5422_v24, %v2675_v47  ;;  %v2222_v0 = vadd.f32 %v2221_v60, %v2133_v41  ;;  %v2504_v38 = vmul.f32 1.442695, %v2463_v4 }
 0x240   : > { %v4467_v2 = vpop.eup %4466  ;;  %v5444_v6 = vadd.f32 1.0, %v4465_v27  ;;  %v2134_v22 = vpop.f32.mrf.mxu1  ;;  %v3754_v41 = vor.u32 %v4222_v34, %v3753_v28  ;;  %v3758_v60 = vor.u32 %v4218_v1, %v3755_v20 }
 0x241   : > { %v4318_v13 = vpack.c.bf16 %v3067_v29, %v3066_v21  ;;  %v2688_v55 = vmul.f32 %v4467_v2, %v5429_v62  ;;  %v2680_v9 = vsel %vm5459_vm10, %v5422_v24, %v2676_v50  ;;  %v2311_v3 = vadd.f32 %v2310_v61, %v2222_v0 }
 0x242   : > { %v2401_v14 = vpop.f32.mrf.mxu0  ;;  %4468 = vrcp.f32 %v5444_v6  ;;  %vm2693_vm11 = vweird.f32 %v4467_v2  ;;  %v2135_v5 = vadd.f32 %v2134_v22, %v5110_v17  ;;  %v2685_v4 = vsel %vm2682_vm12, %v2684_v39, %v2680_v9  ;;  %v4227_v39 = vld [vmem:[%s4625_s5 + $0x454] sm:$0xf] }
 0x243   : > { %4386 = vst [vmem:[%s5342_s22 + $0x10] sm:$0xff] %v4318_v13   ;;  %v2689_v12 = vsub.f32 1.0, %v2688_v55  ;;  %4470 = vpow2.f32 %v2504_v38  ;;  %v5472_v47 = vadd.f32 %v2399_v53, %v2311_v3  ;;  %vm2694_vm14 = vmor %vm2692_vm13, %vm2693_vm11  ;;  %v2699_v17 = vor.u32 1.1754944e-38, %v2698_v16  ;;  %v3783_v3 = vld [vmem:[%s4625_s5 + $0x46c] sm:$0xf0] }
 0x244   : > { %v3762_v53 = vor.u32 %v4223_v35, %v3761_v7  ;;  %v3068_v28 = vmul.f32 %v2685_v4, %v5366_v36  ;;  %vm2707_vm1 = vweird.f32 %v5444_v6 }
 0x245   : > { %v2690_v32 = vmul.f32 %v4467_v2, %v2689_v12  ;;  %v2464_v61 = vsub.f32 0.0, %v5472_v47 }
 0x246   : > { %v2223_v57 = vpop.f32.mrf.mxu2 }
 0x247   : > { %v2691_v24 = vadd.f32 %v4467_v2, %v2690_v32  ;;  %v2224_v27 = vadd.f32 %v2223_v57, %v2135_v5  ;;  %v2312_v21 = vpop.f32.mrf.mxu3  ;;  %v2506_v13 = vmul.f32 1.442695, %v2464_v61  ;;  %v4231_v32 = vld [vmem:[%s4625_s5 + $0x470] sm:$0xf0]  ;;  %v3791_v57 = vld [vmem:[%s4625_s5 + $0x474] sm:$0xf0] }
 0x248   : > { %v5475_v29 = vpop.eup %4468  ;;  %v2137_v50 = vpop.f32.mrf.mxu1 }
 0x249   : > { %v2695_v0 = vsel %vm2694_vm14, %v4467_v2, %v2691_v24  ;;  %v2703_v22 = vmul.f32 %v5475_v29, %v5444_v6  ;;  %v2313_v23 = vadd.f32 %v2312_v21, %v2224_v27  ;;  %v4471_v55 = vpop.eup %4470  ;;  %4472 = vpow2.f32 %v2506_v13  ;;  %v3797_v27 = vld [vmem:[%s4625_s5 + $0x458] sm:$0xf]  ;;  %v4232_v21 = vld [vmem:[%s4625_s5 + $0x478] sm:$0xf0] }
 0x24a   : > { %v2404_v10 = vpop.f32.mrf.mxu0  ;;  %v2700_v62 = vsel %vm2697_vm15, %v2699_v17, %v2695_v0  ;;  %v5485_v2 = vadd.f32 1.0, %v4471_v55  ;;  %v2138_v36 = vadd.f32 %v2137_v50, %v5115_v30  ;;  %v3789_v30 = vld [vmem:[%s4625_s5 + $0x450] sm:$0xf]  ;;  %vm2708_vm0 = vweird.f32 %v5475_v29 }
 0x24b   : > { %v3069_v34 = vmul.f32 %v2700_v62, %v5388_v43  ;;  %v5483_v56 = vadd.f32 %v2401_v14, %v2313_v23  ;;  %2176 = vmatmul.bf16.gmra.mxu1 %v3750_v31  ;;  %2265 = vmatmul.bf16.gmra.mxu2 %v3754_v41  ;;  %v2704_v20 = vsub.f32 1.0, %v2703_v22  ;;  %v4226_v31 = vld [vmem:[%s4625_s5 + $0x44c] sm:$0xf]  ;;  %v3790_v24 = vor.u32 %v4231_v32, %v3789_v30  ;;  %vm5515_vm2 = vmor %vm2707_vm1, %vm2708_vm0 }
 0x24c   : > { %2354 = vmatmul.bf16.gmra.mxu3 %v3758_v60  ;;  %4474 = vrcp.f32 %v5485_v2  ;;  %v3786_v60 = vor.u32 %v4226_v31, %v3783_v3  ;;  %v2711_v50 = vand.u32 2147483647, %v5444_v6  ;;  %v3794_v23 = vor.u32 %v4227_v39, %v3791_v57 }
 0x24d   : > { %2443 = vmatmul.bf16.gmra.mxu0 %v3762_v53  ;;  %v4323_v1 = vpack.c.bf16 %v3069_v34, %v3068_v28  ;;  %v2465_v63 = vsub.f32 0.0, %v5483_v56  ;;  %v2705_v9 = vmul.f32 %v5475_v29, %v2704_v20  ;;  %v2713_v53 = vand.u32 2147483648, %v5444_v6 }
 0x24e   : > { %v2226_v43 = vpop.f32.mrf.mxu2  ;;  %v3798_v28 = vor.u32 %v4232_v21, %v3797_v27  ;;  %vm2712_vm4 = vcmp.eq.f32.partialorder %v2711_v50, 8.507059e+37  ;;  %vm2722_vm5 = vweird.f32 %v5485_v2 }
 0x24f   : > { %4387 = vst [vmem:[%s5342_s22 + $0x18] sm:$0xff] %v4323_v1   ;;  %v2508_v14 = vmul.f32 1.442695, %v2465_v63  ;;  %v2227_v48 = vadd.f32 %v2226_v43, %v2138_v36  ;;  %v2315_v12 = vpop.f32.mrf.mxu3  ;;  %v4473_v5 = vpop.eup %4472  ;;  %v2706_v4 = vadd.f32 %v5475_v29, %v2705_v9  ;;  %v2728_v1 = vand.u32 2147483648, %v5485_v2 }
 0x250   : > { %v2139_v38 = vpop.f32.mrf.mxu1  ;;  %v5496_v7 = vadd.f32 1.0, %v4473_v5 }
 0x251   : > { %4476 = vpow2.f32 %v2508_v14  ;;  %v2316_v54 = vadd.f32 %v2315_v12, %v2227_v48  ;;  %v2140_v61 = vadd.f32 %v2139_v38, %v5124_v44  ;;  %v2726_v44 = vand.u32 2147483647, %v5485_v2 }
 0x252   : > { %v2406_v16 = vpop.f32.mrf.mxu0  ;;  %v4475_v41 = vpop.eup %4474  ;;  %4478 = vrcp.f32 %v5496_v7  ;;  %v2710_v6 = vsel %vm5515_vm2, %v5475_v29, %v2706_v4  ;;  %v2714_v12 = vor.u32 1.1754944e-38, %v2713_v53  ;;  %v2729_v29 = vor.u32 1.1754944e-38, %v2728_v1 }
 0x253   : > { %v5498_v35 = vadd.f32 %v2404_v10, %v2316_v54  ;;  %v2718_v17 = vmul.f32 %v4475_v41, %v5485_v2  ;;  %vm2723_vm3 = vweird.f32 %v4475_v41  ;;  %vm2727_vm7 = vcmp.eq.f32.partialorder %v2726_v44, 8.507059e+37 }
 0x254   : > { %v2715_v54 = vsel %vm2712_vm4, %v2714_v12, %v2710_v6  ;;  %vm2724_vm6 = vmor %vm2722_vm5, %vm2723_vm3  ;;  %vm2737_vm9 = vweird.f32 %v5496_v7 }
 0x255   : > { %v2466_v0 = vsub.f32 0.0, %v5498_v35  ;;  %v2719_v62 = vsub.f32 1.0, %v2718_v17 }
 0x256   : > { %v2228_v22 = vpop.f32.mrf.mxu2 }
 0x257   : > { %v4477_v10 = vpop.eup %4476  ;;  %v2229_v13 = vadd.f32 %v2228_v22, %v2140_v61  ;;  %v2317_v55 = vpop.f32.mrf.mxu3  ;;  %v2510_v63 = vmul.f32 1.442695, %v2466_v0  ;;  %v2720_v43 = vmul.f32 %v4475_v41, %v2719_v62 }
 0x258   : > { %v5521_v20 = vadd.f32 1.0, %v4477_v10  ;;  %v2142_v36 = vpop.f32.mrf.mxu1  ;;  %v4479_v38 = vpop.eup %4478 }
 0x259   : > { %v2318_v14 = vadd.f32 %v2317_v55, %v2229_v13  ;;  %v2721_v31 = vadd.f32 %v4475_v41, %v2720_v43  ;;  %v2733_v3 = vmul.f32 %v4479_v38, %v5496_v7  ;;  %v2143_v5 = vadd.f32 %v2142_v36, %v5129_v15 }
 0x25a   : > { %v2409_v48 = vpop.f32.mrf.mxu0  ;;  %4480 = vrcp.f32 %v5521_v20  ;;  %vm2738_vm8 = vweird.f32 %v4479_v38  ;;  %v2756_v13 = vand.u32 2147483647, %v5521_v20  ;;  %v2758_v55 = vand.u32 2147483648, %v5521_v20 }
 0x25b   : > { %4482 = vpow2.f32 %v2510_v63  ;;  %v5528_v9 = vadd.f32 %v2406_v16, %v2318_v14  ;;  %2181 = vmatmul.bf16.gmra.mxu1 %v3786_v60  ;;  %2270 = vmatmul.bf16.gmra.mxu2 %v3790_v24  ;;  %v2725_v30 = vsel %vm2724_vm6, %v4475_v41, %v2721_v31  ;;  %v2734_v2 = vsub.f32 1.0, %v2733_v3  ;;  %vm5542_vm10 = vmor %vm2737_vm9, %vm2738_vm8 }
 0x25c   : > { %2359 = vmatmul.bf16.gmra.mxu3 %v3794_v23  ;;  %v2730_v39 = vsel %vm2727_vm7, %v2729_v29, %v2725_v30  ;;  %v3070_v16 = vmul.f32 %v2715_v54, %v5404_v33  ;;  %v2741_v41 = vand.u32 2147483647, %v5496_v7  ;;  %v2743_v33 = vand.u32 2147483648, %v5496_v7 }
 0x25d   : > { %2448 = vmatmul.bf16.gmra.mxu0 %v3798_v28  ;;  %v2467_v32 = vsub.f32 0.0, %v5528_v9  ;;  %v3071_v60 = vmul.f32 %v2730_v39, %v5436_v18  ;;  %v2735_v17 = vmul.f32 %v4479_v38, %v2734_v2  ;;  %vm2752_vm13 = vweird.f32 %v5521_v20 }
 0x25e   : > { %v2231_v57 = vpop.f32.mrf.mxu2  ;;  %vm2742_vm12 = vcmp.eq.f32.partialorder %v2741_v41, 8.507059e+37  ;;  %v2744_v1 = vor.u32 1.1754944e-38, %v2743_v33  ;;  %vm2757_vm15 = vcmp.eq.f32.partialorder %v2756_v13, 8.507059e+37 }
 0x25f   : > { %v2512_v24 = vmul.f32 1.442695, %v2467_v32  ;;  %v2232_v27 = vadd.f32 %v2231_v57, %v2143_v5  ;;  %v2320_v21 = vpop.f32.mrf.mxu3  ;;  %v4328_v53 = vpack.c.bf16 %v3071_v60, %v3070_v16  ;;  %v2736_v22 = vadd.f32 %v4479_v38, %v2735_v17 }
 0x260   : > { %v4481_v4 = vpop.eup %4480  ;;  %v2144_v61 = vpop.f32.mrf.mxu1 }
 0x261   : > { %v4483_v50 = vpop.eup %4482  ;;  %v2748_v15 = vmul.f32 %v4481_v4, %v5521_v20  ;;  %4484 = vpow2.f32 %v2512_v24  ;;  %v2321_v23 = vadd.f32 %v2320_v21, %v2232_v27  ;;  %4388 = vst [vmem:[%s5342_s22 + $0x20] sm:$0xff] %v4328_v53   ;;  %vm2753_vm11 = vweird.f32 %v4481_v4 }
 0x262   : > { %v2411_v0 = vpop.f32.mrf.mxu0  ;;  %v5538_v18 = vadd.f32 1.0, %v4483_v50  ;;  %v2740_v28 = vsel %vm5542_vm10, %v4479_v38, %v2736_v22  ;;  %v2145_v7 = vadd.f32 %v2144_v61, %v5138_v51  ;;  %vm2754_vm14 = vmor %vm2752_vm13, %vm2753_vm11  ;;  %v2759_v38 = vor.u32 1.1754944e-38, %v2758_v55 }
 0x263   : > { %v2749_v10 = vsub.f32 1.0, %v2748_v15  ;;  %v5551_v44 = vadd.f32 %v2409_v48, %v2321_v23  ;;  %v2745_v31 = vsel %vm2742_vm12, %v2744_v1, %v2740_v28 }
 0x264   : > { %4486 = vrcp.f32 %v5538_v18  ;;  %v3072_v20 = vmul.f32 %v2745_v31, %v5472_v47  ;;  %vm2767_vm1 = vweird.f32 %v5538_v18  ;;  %v2771_v33 = vand.u32 2147483647, %v5538_v18 }
 0x265   : > { %v2750_v34 = vmul.f32 %v4481_v4, %v2749_v10  ;;  %v2468_v43 = vsub.f32 0.0, %v5551_v44 }
 0x266   : > { %v2233_v63 = vpop.f32.mrf.mxu2  ;;  %vm2772_vm4 = vcmp.eq.f32.partialorder %v2771_v33, 8.507059e+37 }
 0x267   : > { %v4485_v36 = vpop.eup %4484  ;;  %v2751_v6 = vadd.f32 %v4481_v4, %v2750_v34  ;;  %v2234_v14 = vadd.f32 %v2233_v63, %v2145_v7  ;;  %v2322_v12 = vpop.f32.mrf.mxu3  ;;  %v2514_v51 = vmul.f32 1.442695, %v2468_v43 }
 0x268   : > { %v5557_v54 = vadd.f32 1.0, %v4485_v36  ;;  %v2147_v48 = vpop.f32.mrf.mxu1 }
 0x269   : > { %v2755_v29 = vsel %vm2754_vm14, %v4481_v4, %v2751_v6  ;;  %v2323_v3 = vadd.f32 %v2322_v12, %v2234_v14  ;;  %v2148_v24 = vadd.f32 %v2147_v48, %v5143_v11  ;;  %v2773_v11 = vand.u32 2147483648, %v5538_v18 }
 0x26a   : > { %v2414_v30 = vpop.f32.mrf.mxu0  ;;  %v4487_v32 = vpop.eup %4486  ;;  %v2760_v5 = vsel %vm2757_vm15, %v2759_v38, %v2755_v29  ;;  %4488 = vrcp.f32 %v5557_v54  ;;  %v2786_v55 = vand.u32 2147483647, %v5557_v54  ;;  %v2788_v28 = vand.u32 2147483648, %v5557_v54 }
 0x26b   : > { %v3073_v39 = vmul.f32 %v2760_v5, %v5483_v56  ;;  %v2763_v2 = vmul.f32 %v4487_v32, %v5538_v18  ;;  %4490 = vpow2.f32 %v2514_v51  ;;  %v5563_v57 = vadd.f32 %v2411_v0, %v2323_v3 }
 0x26c   : > { %vm2768_vm0 = vweird.f32 %v4487_v32  ;;  %v2774_v1 = vor.u32 1.1754944e-38, %v2773_v11  ;;  %vm2782_vm5 = vweird.f32 %v5557_v54  ;;  %v2789_v38 = vor.u32 1.1754944e-38, %v2788_v28 }
 0x26d   : > { %v4333_v16 = vpack.c.bf16 %v3073_v39, %v3072_v20  ;;  %v2764_v60 = vsub.f32 1.0, %v2763_v2  ;;  %v2469_v27 = vsub.f32 0.0, %v5563_v57  ;;  %vm5576_vm2 = vmor %vm2767_vm1, %vm2768_vm0  ;;  %vm2787_vm7 = vcmp.eq.f32.partialorder %v2786_v55, 8.507059e+37 }
 0x26e   : > { %v2236_v21 = vpop.f32.mrf.mxu2 }
 0x26f   : > { %4389 = vst [vmem:[%s5342_s22 + $0x28] sm:$0xff] %v4333_v16   ;;  %v2765_v4 = vmul.f32 %v4487_v32, %v2764_v60  ;;  %v2237_v17 = vadd.f32 %v2236_v21, %v2148_v24  ;;  %v2325_v41 = vpop.f32.mrf.mxu3  ;;  %v2516_v47 = vmul.f32 1.442695, %v2469_v27 }
 0x270   : > { %v4489_v61 = vpop.eup %4488  ;;  %v2149_v50 = vpop.f32.mrf.mxu1 }
 0x271   : > { %v2766_v56 = vadd.f32 %v4487_v32, %v2765_v4  ;;  %v2778_v53 = vmul.f32 %v4489_v61, %v5557_v54  ;;  %v2326_v15 = vadd.f32 %v2325_v41, %v2237_v17  ;;  %v4491_v22 = vpop.eup %4490  ;;  %4492 = vpow2.f32 %v2516_v47 }
 0x272   : > { %v2416_v0 = vpop.f32.mrf.mxu0  ;;  %v5572_v10 = vadd.f32 1.0, %v4491_v22  ;;  %vm2783_vm3 = vweird.f32 %v4489_v61  ;;  %v2150_v18 = vadd.f32 %v2149_v50, %v5152_v42 }
 0x273   : > { %v2779_v23 = vsub.f32 1.0, %v2778_v53  ;;  %v5574_v62 = vadd.f32 %v2414_v30, %v2326_v15  ;;  %v2770_v34 = vsel %vm5576_vm2, %v4487_v32, %v2766_v56  ;;  %vm2784_vm6 = vmor %vm2782_vm5, %vm2783_vm3 }
 0x274   : > { %4494 = vrcp.f32 %v5572_v10  ;;  %v2775_v31 = vsel %vm2772_vm4, %v2774_v1, %v2770_v34  ;;  %vm2797_vm9 = vweird.f32 %v5572_v10  ;;  %v2801_v22 = vand.u32 2147483647, %v5572_v10 }
 0x275   : > { %v2780_v7 = vmul.f32 %v4489_v61, %v2779_v23  ;;  %v2470_v63 = vsub.f32 0.0, %v5574_v62  ;;  %v3074_v54 = vmul.f32 %v2775_v31, %v5498_v35 }
 0x276   : > { %v2238_v36 = vpop.f32.mrf.mxu2  ;;  %vm2802_vm12 = vcmp.eq.f32.partialorder %v2801_v22, 8.507059e+37 }
 0x277   : > { %v2781_v6 = vadd.f32 %v4489_v61, %v2780_v7  ;;  %v2239_v43 = vadd.f32 %v2238_v36, %v2150_v18  ;;  %v2327_v14 = vpop.f32.mrf.mxu3  ;;  %v4493_v12 = vpop.eup %4492  ;;  %v2518_v48 = vmul.f32 1.442695, %v2470_v63 }
 0x278   : > { %v2152_v29 = vpop.f32.mrf.mxu1  ;;  %v5589_v42 = vadd.f32 1.0, %v4493_v12 }
 0x279   : > { %v2785_v51 = vsel %vm2784_vm6, %v4489_v61, %v2781_v6  ;;  %v2328_v3 = vadd.f32 %v2327_v14, %v2239_v43  ;;  %4496 = vpow2.f32 %v2518_v48  ;;  %v2153_v60 = vadd.f32 %v2152_v29, %v5157_v58 }
 0x27a   : > { %v2419_v30 = vpop.f32.mrf.mxu0  ;;  %v2790_v32 = vsel %vm2787_vm7, %v2789_v38, %v2785_v51  ;;  %v4495_v5 = vpop.eup %4494  ;;  %4498 = vrcp.f32 %v5589_v42  ;;  %v2816_v13 = vand.u32 2147483647, %v5589_v42  ;;  %v2818_v55 = vand.u32 2147483648, %v5589_v42 }
 0x27b   : > { %v3075_v20 = vmul.f32 %v2790_v32, %v5528_v9  ;;  %v2793_v39 = vmul.f32 %v4495_v5, %v5572_v10  ;;  %v5595_v2 = vadd.f32 %v2416_v0, %v2328_v3  ;;  %vm2798_vm8 = vweird.f32 %v4495_v5 }
 0x27c   : > { %v2803_v0 = vand.u32 2147483648, %v5572_v10  ;;  %vm5609_vm10 = vmor %vm2797_vm9, %vm2798_vm8  ;;  %vm2812_vm13 = vweird.f32 %v5589_v42  ;;  %v2819_v38 = vor.u32 1.1754944e-38, %v2818_v55  ;;  %vm2817_vm15 = vcmp.eq.f32.partialorder %v2816_v13, 8.507059e+37 }
 0x27d   : > { %v4338_v16 = vpack.c.bf16 %v3075_v20, %v3074_v54  ;;  %v2794_v24 = vsub.f32 1.0, %v2793_v39  ;;  %v2471_v27 = vsub.f32 0.0, %v5595_v2 }
 0x27e   : > { %v2241_v21 = vpop.f32.mrf.mxu2  ;;  %v2804_v1 = vor.u32 1.1754944e-38, %v2803_v0 }
 0x27f   : > { %4390 = vst [vmem:[%s5342_s22 + $0x30] sm:$0xff] %v4338_v16   ;;  %v2242_v4 = vadd.f32 %v2241_v21, %v2153_v60  ;;  %v2330_v17 = vpop.f32.mrf.mxu3  ;;  %v4497_v41 = vpop.eup %4496  ;;  %v2795_v35 = vmul.f32 %v4495_v5, %v2794_v24  ;;  %v2520_v61 = vmul.f32 1.442695, %v2471_v27 }
 0x280   : > { %v2154_v9 = vpop.f32.mrf.mxu1  ;;  %v4499_v47 = vpop.eup %4498  ;;  %v5600_v50 = vadd.f32 1.0, %v4497_v41 }
 0x281   : > { %v2331_v56 = vadd.f32 %v2330_v17, %v2242_v4  ;;  %v2796_v15 = vadd.f32 %v4495_v5, %v2795_v35  ;;  %v2808_v58 = vmul.f32 %v4499_v47, %v5589_v42  ;;  %4500 = vpow2.f32 %v2520_v61 }
 0x282   : > { %v2421_v53 = vpop.f32.mrf.mxu0  ;;  %4502 = vrcp.f32 %v5600_v50  ;;  %v2155_v28 = vadd.f32 %v2154_v9, %v5166_v25  ;;  %vm2813_vm11 = vweird.f32 %v4499_v47  ;;  %vm2827_vm1 = vweird.f32 %v5600_v50 }
 0x283   : > { %v2809_v11 = vsub.f32 1.0, %v2808_v58  ;;  %v5607_v33 = vadd.f32 %v2419_v30, %v2331_v56  ;;  %v2800_v34 = vsel %vm5609_vm10, %v4495_v5, %v2796_v15  ;;  %vm2814_vm14 = vmor %vm2812_vm13, %vm2813_vm11  ;;  %v2833_v56 = vand.u32 2147483648, %v5600_v50 }
 0x284   : > { %v2805_v25 = vsel %vm2802_vm12, %v2804_v1, %v2800_v34 }
 0x285   : > { %v2810_v7 = vmul.f32 %v4499_v47, %v2809_v11  ;;  %v2472_v10 = vsub.f32 0.0, %v5607_v33  ;;  %v3076_v42 = vmul.f32 %v2805_v25, %v5551_v44  ;;  %v2834_v34 = vor.u32 1.1754944e-38, %v2833_v56 }
 0x286   : > { %v2243_v18 = vpop.f32.mrf.mxu2 }
 0x287   : > { %v2244_v63 = vadd.f32 %v2243_v18, %v2155_v28  ;;  %v2332_v36 = vpop.f32.mrf.mxu3  ;;  %v4501_v6 = vpop.eup %4500  ;;  %v2811_v43 = vadd.f32 %v4499_v47, %v2810_v7  ;;  %v2522_v14 = vmul.f32 1.442695, %v2472_v10 }
 0x288   : > { %v2157_v12 = vpop.f32.mrf.mxu1  ;;  %v5620_v31 = vpop.eup %4502  ;;  %v5622_v48 = vadd.f32 1.0, %v4501_v6 }
 0x289   : > { %v2333_v29 = vadd.f32 %v2332_v36, %v2244_v63  ;;  %v2815_v3 = vsel %vm2814_vm14, %v4499_v47, %v2811_v43  ;;  %v2823_v30 = vmul.f32 %v5620_v31, %v5600_v50  ;;  %4504 = vpow2.f32 %v2522_v14 }
 0x28a   : > { %v2424_v51 = vpop.f32.mrf.mxu0  ;;  %v2820_v32 = vsel %vm2817_vm15, %v2819_v38, %v2815_v3  ;;  %4506 = vrcp.f32 %v5622_v48  ;;  %v2158_v39 = vadd.f32 %v2157_v12, %v5171_v49  ;;  %vm2828_vm0 = vweird.f32 %v5620_v31 }
 0x28b   : > { %v3077_v5 = vmul.f32 %v2820_v32, %v5563_v57  ;;  %v2824_v54 = vsub.f32 1.0, %v2823_v30  ;;  %v5629_v20 = vadd.f32 %v2421_v53, %v2333_v29  ;;  %v2831_v53 = vand.u32 2147483647, %v5600_v50  ;;  %vm5646_vm2 = vmor %vm2827_vm1, %vm2828_vm0 }
 0x28c   : > { %v2846_v22 = vand.u32 2147483647, %v5622_v48  ;;  %v2848_v11 = vand.u32 2147483648, %v5622_v48  ;;  %vm2842_vm5 = vweird.f32 %v5622_v48 }
 0x28d   : > { %v4343_v16 = vpack.c.bf16 %v3077_v5, %v3076_v42  ;;  %v2825_v60 = vmul.f32 %v5620_v31, %v2824_v54  ;;  %v2473_v24 = vsub.f32 0.0, %v5629_v20  ;;  %vm2832_vm4 = vcmp.eq.f32.partialorder %v2831_v53, 8.507059e+37 }
 0x28e   : > { %v2246_v27 = vpop.f32.mrf.mxu2  ;;  %v2849_v43 = vor.u32 1.1754944e-38, %v2848_v11  ;;  %vm2847_vm7 = vcmp.eq.f32.partialorder %v2846_v22, 8.507059e+37 }
 0x28f   : > { %v2247_v21 = vadd.f32 %v2246_v27, %v2158_v39  ;;  %v2335_v4 = vpop.f32.mrf.mxu3  ;;  %v4505_v17 = vpop.eup %4504  ;;  %4391 = vst [vmem:[%s5342_s22 + $0x38] sm:$0xff] %v4343_v16   ;;  %v2524_v41 = vmul.f32 1.442695, %v2473_v24  ;;  %v2826_v47 = vadd.f32 %v5620_v31, %v2825_v60 }
 0x290   : > { %v2159_v35 = vpop.f32.mrf.mxu1  ;;  %v4507_v44 = vpop.eup %4506  ;;  %v5635_v61 = vadd.f32 1.0, %v4505_v17 }
 0x291   : > { %v2336_v57 = vadd.f32 %v2335_v4, %v2247_v21  ;;  %v2838_v49 = vmul.f32 %v4507_v44, %v5622_v48  ;;  %4508 = vpow2.f32 %v2524_v41  ;;  %v2160_v23 = vadd.f32 %v2159_v35, %v5180_v19 }
 0x292   : > { %v2426_v9 = vpop.f32.mrf.mxu0  ;;  %4510 = vrcp.f32 %v5635_v61  ;;  %v2830_v13 = vsel %vm5646_vm2, %v5620_v31, %v2826_v47  ;;  %vm2843_vm3 = vweird.f32 %v4507_v44  ;;  %v2863_v35 = vand.u32 2147483648, %v5635_v61 }
 0x293   : > { %v2839_v15 = vsub.f32 1.0, %v2838_v49  ;;  %v5644_v58 = vadd.f32 %v2424_v51, %v2336_v57  ;;  %v2835_v6 = vsel %vm2832_vm4, %v2834_v34, %v2830_v13  ;;  %vm2844_vm6 = vmor %vm2842_vm5, %vm2843_vm3  ;;  %vm2857_vm9 = vweird.f32 %v5635_v61 }
 0x294   : > { %v3078_v48 = vmul.f32 %v2835_v6, %v5574_v62  ;;  %v2864_v11 = vor.u32 1.1754944e-38, %v2863_v35 }
 0x295   : > { %v2840_v55 = vmul.f32 %v4507_v44, %v2839_v15  ;;  %v2474_v50 = vsub.f32 0.0, %v5644_v58 }
 0x296   : > { %v2248_v28 = vpop.f32.mrf.mxu2 }
 0x297   : > { %v2249_v7 = vadd.f32 %v2248_v28, %v2160_v23  ;;  %v2337_v10 = vpop.f32.mrf.mxu3  ;;  %v4509_v18 = vpop.eup %4508  ;;  %v2841_v1 = vadd.f32 %v4507_v44, %v2840_v55  ;;  %v2526_v63 = vmul.f32 1.442695, %v2474_v50 }
 0x298   : > { %v2162_v36 = vpop.f32.mrf.mxu1  ;;  %v5658_v19 = vpop.eup %4510  ;;  %v5660_v14 = vadd.f32 1.0, %v4509_v18 }
 0x299   : > { %v2338_v12 = vadd.f32 %v2337_v10, %v2249_v7  ;;  %v2845_v25 = vsel %vm2844_vm6, %v4507_v44, %v2841_v1  ;;  %v2853_v38 = vmul.f32 %v5658_v19, %v5635_v61  ;;  %4512 = vpow2.f32 %v2526_v63 }
 0x29a   : > { %v2429_v31 = vpop.f32.mrf.mxu0  ;;  %v2850_v29 = vsel %vm2847_vm7, %v2849_v43, %v2845_v25  ;;  %4514 = vrcp.f32 %v5660_v14  ;;  %v2163_v32 = vadd.f32 %v2162_v36, %v5185_v37  ;;  %vm2858_vm8 = vweird.f32 %v5658_v19 }
 0x29b   : > { %v3079_v51 = vmul.f32 %v2850_v29, %v5595_v2  ;;  %v2854_v3 = vsub.f32 1.0, %v2853_v38  ;;  %v5667_v30 = vadd.f32 %v2426_v9, %v2338_v12  ;;  %v2861_v44 = vand.u32 2147483647, %v5635_v61  ;;  %vm5684_vm10 = vmor %vm2857_vm9, %vm2858_vm8 }
 0x29c   : > { %v2876_v49 = vand.u32 2147483647, %v5660_v14  ;;  %v2878_v56 = vand.u32 2147483648, %v5660_v14  ;;  %vm2872_vm13 = vweird.f32 %v5660_v14 }
 0x29d   : > { %v4348_v42 = vpack.c.bf16 %v3079_v51, %v3078_v48  ;;  %v2855_v5 = vmul.f32 %v5658_v19, %v2854_v3  ;;  %v2475_v54 = vsub.f32 0.0, %v5667_v30  ;;  %vm2862_vm12 = vcmp.eq.f32.partialorder %v2861_v44, 8.507059e+37 }
 0x29e   : > { %v2251_v39 = vpop.f32.mrf.mxu2  ;;  %v2879_v10 = vor.u32 1.1754944e-38, %v2878_v56  ;;  %vm2877_vm15 = vcmp.eq.f32.partialorder %v2876_v49, 8.507059e+37 }
 0x29f   : > { %v2252_v16 = vadd.f32 %v2251_v39, %v2163_v32  ;;  %v2340_v60 = vpop.f32.mrf.mxu3  ;;  %v4513_v24 = vpop.eup %4512  ;;  %4392 = vst [vmem:[%s5342_s22 + $0x40] sm:$0xff] %v4348_v42   ;;  %v2528_v27 = vmul.f32 1.442695, %v2475_v54  ;;  %v2856_v41 = vadd.f32 %v5658_v19, %v2855_v5 }
 0x2a0   : > { %v2164_v21 = vpop.f32.mrf.mxu1  ;;  %v4515_v62 = vpop.eup %4514  ;;  %v5673_v4 = vadd.f32 1.0, %v4513_v24 }
 0x2a1   : > { %v2341_v2 = vadd.f32 %v2340_v60, %v2252_v16  ;;  %v2868_v37 = vmul.f32 %v4515_v62, %v5660_v14  ;;  %4516 = vpow2.f32 %v2528_v27  ;;  %v2165_v53 = vadd.f32 %v2164_v21, %v5194_v40 }
 0x2a2   : > { %v2431_v17 = vpop.f32.mrf.mxu0  ;;  %4518 = vrcp.f32 %v5673_v4  ;;  %v2860_v15 = vsel %vm5684_vm10, %v5658_v19, %v2856_v41  ;;  %vm2873_vm11 = vweird.f32 %v4515_v62  ;;  %v2893_v24 = vand.u32 2147483648, %v5673_v4 }
 0x2a3   : > { %v2869_v57 = vsub.f32 1.0, %v2868_v37  ;;  %v5682_v9 = vadd.f32 %v2429_v31, %v2341_v2  ;;  %v2865_v7 = vsel %vm2862_vm12, %v2864_v11, %v2860_v15  ;;  %vm2874_vm14 = vmor %vm2872_vm13, %vm2873_vm11  ;;  %vm2887_vm1 = vweird.f32 %v5673_v4 }
 0x2a4   : > { %v3080_v43 = vmul.f32 %v2865_v7, %v5607_v33  ;;  %v2891_v27 = vand.u32 2147483647, %v5673_v4  ;;  %v2894_v47 = vor.u32 1.1754944e-38, %v2893_v24 }
 0x2a5   : > { %v2870_v0 = vmul.f32 %v4515_v62, %v2869_v57  ;;  %v2476_v61 = vsub.f32 0.0, %v5682_v9 }
 0x2a6   : > { %v2253_v22 = vpop.f32.mrf.mxu2  ;;  %vm2892_vm4 = vcmp.eq.f32.partialorder %v2891_v27, 8.507059e+37 }
 0x2a7   : > { %v2254_v23 = vadd.f32 %v2253_v22, %v2165_v53  ;;  %v2342_v13 = vpop.f32.mrf.mxu3  ;;  %v4517_v55 = vpop.eup %4516  ;;  %v2871_v50 = vadd.f32 %v4515_v62, %v2870_v0  ;;  %v2530_v28 = vmul.f32 1.442695, %v2476_v61 }
 0x2a8   : > { %v2167_v34 = vpop.f32.mrf.mxu1  ;;  %v5696_v40 = vpop.eup %4518  ;;  %v5698_v18 = vadd.f32 1.0, %v4517_v55 }
 0x2a9   : > { %v2343_v1 = vadd.f32 %v2342_v13, %v2254_v23  ;;  %v2875_v36 = vsel %vm2874_vm14, %v4515_v62, %v2871_v50  ;;  %v2883_v19 = vmul.f32 %v5696_v40, %v5673_v4  ;;  %4520 = vpow2.f32 %v2530_v28 }
 0x2aa   : > { %v2434_v63 = vpop.f32.mrf.mxu0  ;;  %v2880_v6 = vsel %vm2877_vm15, %v2879_v10, %v2875_v36  ;;  %4522 = vrcp.f32 %v5698_v18  ;;  %v2168_v25 = vadd.f32 %v2167_v34, %v5199_v8  ;;  %vm2888_vm0 = vweird.f32 %v5696_v40 }
 0x2ab   : > { %v3081_v14 = vmul.f32 %v2880_v6, %v5629_v20  ;;  %v2884_v12 = vsub.f32 1.0, %v2883_v19  ;;  %v5705_v31 = vadd.f32 %v2431_v17, %v2343_v1  ;;  %vm5722_vm2 = vmor %vm2887_vm1, %vm2888_vm0  ;;  %v2906_v17 = vand.u32 2147483647, %v5698_v18 }
 0x2ac   : > { %v2908_v41 = vand.u32 2147483648, %v5698_v18  ;;  %vm2902_vm5 = vweird.f32 %v5698_v18 }
 0x2ad   : > { %v4353_v38 = vpack.c.bf16 %v3081_v14, %v3080_v43  ;;  %v2885_v29 = vmul.f32 %v5696_v40, %v2884_v12  ;;  %v2477_v48 = vsub.f32 0.0, %v5705_v31  ;;  %vm2907_vm7 = vcmp.eq.f32.partialorder %v2906_v17, 8.507059e+37 }
 0x2ae   : > { %v2256_v51 = vpop.f32.mrf.mxu2  ;;  %v2909_v11 = vor.u32 1.1754944e-38, %v2908_v41 }
 0x2af   : > { %v2257_v3 = vadd.f32 %v2256_v51, %v2168_v25  ;;  %v2345_v32 = vpop.f32.mrf.mxu3  ;;  %v4521_v42 = vpop.eup %4520  ;;  %4393 = vst [vmem:[%s5342_s22 + $0x48] sm:$0xff] %v4353_v38   ;;  %v2532_v5 = vmul.f32 1.442695, %v2477_v48  ;;  %v2886_v60 = vadd.f32 %v5696_v40, %v2885_v29 }
 0x2b0   : > { %v2169_v54 = vpop.f32.mrf.mxu1  ;;  %v4523_v33 = vpop.eup %4522  ;;  %v5711_v39 = vadd.f32 1.0, %v4521_v42 }
 0x2b1   : > { %v2346_v20 = vadd.f32 %v2345_v32, %v2257_v3  ;;  %v2898_v8 = vmul.f32 %v4523_v33, %v5698_v18  ;;  %4524 = vpow2.f32 %v2532_v5  ;;  %v2170_v37 = vadd.f32 %v2169_v54, %v5208_v52 }
 0x2b2   : > { %v2436_v16 = vpop.f32.mrf.mxu0  ;;  %4526 = vrcp.f32 %v5711_v39  ;;  %v2890_v35 = vsel %vm5722_vm2, %v5696_v40, %v2886_v60  ;;  %vm2903_vm3 = vweird.f32 %v4523_v33  ;;  %v2923_v51 = vand.u32 2147483648, %v5711_v39 }
 0x2b3   : > { %v2899_v21 = vsub.f32 1.0, %v2898_v8  ;;  %v5720_v62 = vadd.f32 %v2434_v63, %v2346_v20  ;;  %v2895_v22 = vsel %vm2892_vm4, %v2894_v47, %v2890_v35  ;;  %vm2904_vm6 = vmor %vm2902_vm5, %vm2903_vm3  ;;  %vm2917_vm9 = vweird.f32 %v5711_v39 }
 0x2b4   : > { %v3082_v40 = vmul.f32 %v2895_v22, %v5644_v58  ;;  %v2921_v32 = vand.u32 2147483647, %v5711_v39  ;;  %v2924_v27 = vor.u32 1.1754944e-38, %v2923_v51 }
 0x2b5   : > { %v2900_v44 = vmul.f32 %v4523_v33, %v2899_v21  ;;  %v2478_v4 = vsub.f32 0.0, %v5720_v62 }
 0x2b6   : > { %v2258_v57 = vpop.f32.mrf.mxu2  ;;  %vm2922_vm12 = vcmp.eq.f32.partialorder %v2921_v32, 8.507059e+37 }
 0x2b7   : > { %v2259_v49 = vadd.f32 %v2258_v57, %v2170_v37  ;;  %v2347_v56 = vpop.f32.mrf.mxu3  ;;  %v4525_v53 = vpop.eup %4524  ;;  %v2901_v15 = vadd.f32 %v4523_v33, %v2900_v44  ;;  %v2534_v0 = vmul.f32 1.442695, %v2478_v4 }
 0x2b8   : > { %v2172_v61 = vpop.f32.mrf.mxu1  ;;  %v5734_v52 = vpop.eup %4526  ;;  %v5736_v23 = vadd.f32 1.0, %v4525_v53 }
 0x2b9   : > { %v2348_v13 = vadd.f32 %v2347_v56, %v2259_v49  ;;  %v2905_v50 = vsel %vm2904_vm6, %v4523_v33, %v2901_v15  ;;  %v2913_v28 = vmul.f32 %v5734_v52, %v5711_v39  ;;  %4528 = vpow2.f32 %v2534_v0 }
 0x2ba   : > { %v2439_v55 = vpop.f32.mrf.mxu0  ;;  %v2910_v34 = vsel %vm2907_vm7, %v2909_v11, %v2905_v50  ;;  %4530 = vrcp.f32 %v5736_v23  ;;  %v2173_v1 = vadd.f32 %v2172_v61, %v5213_v45  ;;  %vm2918_vm8 = vweird.f32 %v5734_v52 }
 0x2bb   : > { %v3083_v7 = vmul.f32 %v2910_v34, %v5667_v30  ;;  %v2914_v10 = vsub.f32 1.0, %v2913_v28  ;;  %v5743_v18 = vadd.f32 %v2436_v16, %v2348_v13  ;;  %vm5760_vm10 = vmor %vm2917_vm9, %vm2918_vm8  ;;  %v2936_v33 = vand.u32 2147483647, %v5736_v23 }
 0x2bc   : > { %v2938_v20 = vand.u32 2147483648, %v5736_v23  ;;  %vm2932_vm13 = vweird.f32 %v5736_v23 }
 0x2bd   : > { %v4358_v63 = vpack.c.bf16 %v3083_v7, %v3082_v40  ;;  %v2915_v36 = vmul.f32 %v5734_v52, %v2914_v10  ;;  %v2479_v19 = vsub.f32 0.0, %v5743_v18  ;;  %vm2937_vm15 = vcmp.eq.f32.partialorder %v2936_v33, 8.507059e+37 }
 0x2be   : > { %v2261_v6 = vpop.f32.mrf.mxu2  ;;  %v2939_v4 = vor.u32 1.1754944e-38, %v2938_v20 }
 0x2bf   : > { %v2262_v43 = vadd.f32 %v2261_v6, %v2173_v1  ;;  %v2350_v14 = vpop.f32.mrf.mxu3  ;;  %v4529_v12 = vpop.eup %4528  ;;  %4394 = vst [vmem:[%s5342_s22 + $0x50] sm:$0xff] %v4358_v63   ;;  %v2536_v25 = vmul.f32 1.442695, %v2479_v19  ;;  %v2916_v48 = vadd.f32 %v5734_v52, %v2915_v36 }
 0x2c0   : > { %v2174_v38 = vpop.f32.mrf.mxu1  ;;  %v4531_v58 = vpop.eup %4530  ;;  %v5749_v29 = vadd.f32 1.0, %v4529_v12 }
 0x2c1   : > { %v2351_v30 = vadd.f32 %v2350_v14, %v2262_v43  ;;  %v2928_v45 = vmul.f32 %v4531_v58, %v5736_v23  ;;  %4532 = vpow2.f32 %v2536_v25  ;;  %v2175_v16 = vadd.f32 %v2174_v38, %v5222_v46 }
 0x2c2   : > { %4534 = vrcp.f32 %v5749_v29  ;;  %v2441_v3 = vpop.f32.mrf.mxu0  ;;  %v2920_v60 = vsel %vm5760_vm10, %v5734_v52, %v2916_v48  ;;  %vm2933_vm11 = vweird.f32 %v4531_v58  ;;  %v2953_v36 = vand.u32 2147483648, %v5749_v29 }
 0x2c3   : > { %v2929_v42 = vsub.f32 1.0, %v2928_v45  ;;  %v5758_v5 = vadd.f32 %v2439_v55, %v2351_v30  ;;  %v2925_v44 = vsel %vm2922_vm12, %v2924_v27, %v2920_v60  ;;  %vm2934_vm14 = vmor %vm2932_vm13, %vm2933_vm11  ;;  %vm2947_vm1 = vweird.f32 %v5749_v29 }
 0x2c4   : > { %v3084_v15 = vmul.f32 %v2925_v44, %v5682_v9  ;;  %v2951_v19 = vand.u32 2147483647, %v5749_v29  ;;  %v2954_v45 = vor.u32 1.1754944e-38, %v2953_v36 }
 0x2c5   : > { %v2930_v8 = vmul.f32 %v4531_v58, %v2929_v42  ;;  %v2480_v39 = vsub.f32 0.0, %v5758_v5 }
 0x2c6   : > { %v2263_v24 = vpop.f32.mrf.mxu2  ;;  %vm2952_vm4 = vcmp.eq.f32.partialorder %v2951_v19, 8.507059e+37 }
 0x2c7   : > { %v2264_v21 = vadd.f32 %v2263_v24, %v2175_v16  ;;  %v2352_v2 = vpop.f32.mrf.mxu3  ;;  %v4533_v17 = vpop.eup %4532  ;;  %v2931_v41 = vadd.f32 %v4531_v58, %v2930_v8  ;;  %v2538_v37 = vmul.f32 1.442695, %v2480_v39 }
 0x2c8   : > { %v2177_v35 = vpop.f32.mrf.mxu1  ;;  %v5772_v46 = vpop.eup %4534  ;;  %v5774_v57 = vadd.f32 1.0, %v4533_v17 }
 0x2c9   : > { %v2353_v47 = vadd.f32 %v2352_v2, %v2264_v21  ;;  %v2935_v49 = vsel %vm2934_vm14, %v4531_v58, %v2931_v41  ;;  %v2943_v56 = vmul.f32 %v5772_v46, %v5749_v29  ;;  %4536 = vpow2.f32 %v2538_v37 }
 0x2ca   : > { %v2940_v53 = vsel %vm2937_vm15, %v2939_v4, %v2935_v49  ;;  %4538 = vrcp.f32 %v5774_v57  ;;  %v2178_v22 = vadd.f32 %v2177_v35, %v5227_v59  ;;  %v2444_v11 = vpop.f32.mrf.mxu0  ;;  %vm2948_vm0 = vweird.f32 %v5772_v46  ;;  %v5886_v35 = vld [vmem:[#allocation2_spill] sm:$0xff] }
 0x2cb   : > { %v3085_v0 = vmul.f32 %v2940_v53, %v5705_v31  ;;  %v2944_v61 = vsub.f32 1.0, %v2943_v56  ;;  %v5781_v52 = vadd.f32 %v2441_v3, %v2353_v47  ;;  %vm5798_vm2 = vmor %vm2947_vm1, %vm2948_vm0  ;;  %v2966_v12 = vand.u32 2147483647, %v5774_v57 }
 0x2cc   : > { %v2968_v25 = vand.u32 2147483648, %v5774_v57  ;;  %vm2962_vm5 = vweird.f32 %v5774_v57 }
 0x2cd   : > { %v4363_v23 = vpack.c.bf16 %v3085_v0, %v3084_v15  ;;  %v2945_v13 = vmul.f32 %v5772_v46, %v2944_v61  ;;  %v2481_v55 = vsub.f32 0.0, %v5781_v52  ;;  %vm2967_vm7 = vcmp.eq.f32.partialorder %v2966_v12, 8.507059e+37 }
 0x2ce   : > { %v2266_v50 = vpop.f32.mrf.mxu2  ;;  %v2969_v60 = vor.u32 1.1754944e-38, %v2968_v25 }
 0x2cf   : > { %v2267_v28 = vadd.f32 %v2266_v50, %v2178_v22  ;;  %v2355_v34 = vpop.f32.mrf.mxu3  ;;  %v4537_v40 = vpop.eup %4536  ;;  %4395 = vst [vmem:[%s5342_s22 + $0x58] sm:$0xff] %v4363_v23   ;;  %v2540_v7 = vmul.f32 1.442695, %v2481_v55  ;;  %v2946_v63 = vadd.f32 %v5772_v46, %v2945_v13 }
 0x2d0   : > { %v2179_v9 = vpop.f32.mrf.mxu1  ;;  %v4539_v10 = vpop.eup %4538  ;;  %v5787_v31 = vadd.f32 1.0, %v4537_v40 }
 0x2d1   : > { %v2356_v1 = vadd.f32 %v2355_v34, %v2267_v28  ;;  %v2958_v59 = vmul.f32 %v4539_v10, %v5774_v57  ;;  %4540 = vpow2.f32 %v2540_v7  ;;  %v2180_v38 = vadd.f32 %v2179_v9, %v5236_v26  ;;  %v5889_v9 = vld [vmem:[#allocation3_spill] sm:$0xff] }
 0x2d2   : > { %4542 = vrcp.f32 %v5787_v31  ;;  %v2950_v58 = vsel %vm5798_vm2, %v5772_v46, %v2946_v63  ;;  %vm2963_vm3 = vweird.f32 %v4539_v10  ;;  %v2446_v51 = vpop.f32.mrf.mxu0  ;;  %v2983_v13 = vand.u32 2147483648, %v5787_v31 }
 0x2d3   : > { %v2959_v6 = vsub.f32 1.0, %v2958_v59  ;;  %v5796_v43 = vadd.f32 %v2444_v11, %v2356_v1  ;;  %v2955_v16 = vsel %vm2952_vm4, %v2954_v45, %v2950_v58  ;;  %vm2964_vm6 = vmor %vm2962_vm5, %vm2963_vm3  ;;  %vm2977_vm9 = vweird.f32 %v5787_v31 }
 0x2d4   : > { %v3086_v2 = vmul.f32 %v2955_v16, %v5720_v62  ;;  %v2981_v55 = vand.u32 2147483647, %v5787_v31 }
 0x2d5   : > { %v2960_v30 = vmul.f32 %v4539_v10, %v2959_v6  ;;  %v2482_v29 = vsub.f32 0.0, %v5796_v43 }
 0x2d6   : > { %v2268_v48 = vpop.f32.mrf.mxu2  ;;  %vm2982_vm12 = vcmp.eq.f32.partialorder %v2981_v55, 8.507059e+37 }
 0x2d7   : > { %v2269_v3 = vadd.f32 %v2268_v48, %v2180_v38  ;;  %v2357_v32 = vpop.f32.mrf.mxu3  ;;  %v4541_v42 = vpop.eup %4540  ;;  %v2961_v54 = vadd.f32 %v4539_v10, %v2960_v30  ;;  %v2542_v33 = vmul.f32 1.442695, %v2482_v29 }
 0x2d8   : > { %v2182_v26 = vpop.f32.mrf.mxu1  ;;  %v4543_v20 = vpop.eup %4542  ;;  %v2577_v8 = vadd.f32 1.0, %v4541_v42 }
 0x2d9   : > { %v2358_v39 = vadd.f32 %v2357_v32, %v2269_v3  ;;  %v2965_v24 = vsel %vm2964_vm6, %v4539_v10, %v2961_v54  ;;  %v2973_v27 = vmul.f32 %v4543_v20, %v5787_v31  ;;  %4544 = vpow2.f32 %v2542_v33 }
 0x2da   : > { %v2970_v21 = vsel %vm2967_vm7, %v2969_v60, %v2965_v24  ;;  %4546 = vrcp.f32 %v2577_v8  ;;  %v2183_v46 = vadd.f32 %v2182_v26, %v5886_v35  ;;  %v2449_v62 = vpop.f32.mrf.mxu0  ;;  %vm2978_vm8 = vweird.f32 %v4543_v20 }
 0x2db   : > { %v3087_v17 = vmul.f32 %v2970_v21, %v5743_v18  ;;  %v2974_v41 = vsub.f32 1.0, %v2973_v27  ;;  %v5814_v37 = vadd.f32 %v2446_v51, %v2358_v39  ;;  %vm5827_vm10 = vmor %vm2977_vm9, %vm2978_vm8  ;;  %v2996_v40 = vand.u32 2147483647, %v2577_v8 }
 0x2dc   : > { %v2998_v7 = vand.u32 2147483648, %v2577_v8  ;;  %v2984_v31 = vor.u32 1.1754944e-38, %v2983_v13  ;;  %vm2992_vm13 = vweird.f32 %v2577_v8 }
 0x2dd   : > { %v4368_v44 = vpack.c.bf16 %v3087_v17, %v3086_v2  ;;  %v2975_v4 = vmul.f32 %v4543_v20, %v2974_v41  ;;  %v2483_v57 = vsub.f32 0.0, %v5814_v37  ;;  %vm2997_vm15 = vcmp.eq.f32.partialorder %v2996_v40, 8.507059e+37 }
 0x2de   : > { %v2271_v47 = vpop.f32.mrf.mxu2  ;;  %v2999_v30 = vor.u32 1.1754944e-38, %v2998_v7 }
 0x2df   : > { %v2272_v49 = vadd.f32 %v2271_v47, %v2183_v46  ;;  %v2360_v56 = vpop.f32.mrf.mxu3  ;;  %v4545_v53 = vpop.eup %4544  ;;  %4396 = vst [vmem:[%s5342_s22 + $0x60] sm:$0xff] %v4368_v44   ;;  %v2544_v15 = vmul.f32 1.442695, %v2483_v57  ;;  %v2976_v22 = vadd.f32 %v4543_v20, %v2975_v4 }
 0x2e0   : > { %v4547_v0 = vpop.eup %4546  ;;  %v5819_v61 = vadd.f32 1.0, %v4545_v53  ;;  %v2184_v23 = vpop.f32.mrf.mxu1 }
 0x2e1   : > { %v2361_v18 = vadd.f32 %v2360_v56, %v2272_v49  ;;  %v2988_v11 = vmul.f32 %v4547_v0, %v2577_v8  ;;  %4548 = vpow2.f32 %v2544_v15  ;;  %v2185_v10 = vadd.f32 %v2184_v23, %v5889_v9 }
 0x2e2   : > { %4550 = vrcp.f32 %v5819_v61  ;;  %v2980_v1 = vsel %vm5827_vm10, %v4543_v20, %v2976_v22  ;;  %vm2993_vm11 = vweird.f32 %v4547_v0  ;;  %v2451_v32 = vpop.f32.mrf.mxu0  ;;  %vm3007_vm1 = vweird.f32 %v5819_v61 }
 0x2e3   : > { %v2989_v50 = vsub.f32 1.0, %v2988_v11  ;;  %v5825_v28 = vadd.f32 %v2449_v62, %v2361_v18  ;;  %v2985_v58 = vsel %vm2982_vm12, %v2984_v31, %v2980_v1  ;;  %vm2994_vm14 = vmor %vm2992_vm13, %vm2993_vm11 }
 0x2e4   : > { %v3088_v42 = vmul.f32 %v2985_v58, %v5758_v5  ;;  %v3013_v5 = vand.u32 2147483648, %v5819_v61 }
 0x2e5   : > { %v2990_v63 = vmul.f32 %v4547_v0, %v2989_v50  ;;  %v2484_v59 = vsub.f32 0.0, %v5825_v28 }
 0x2e6   : > { %v2273_v36 = vpop.f32.mrf.mxu2  ;;  %v3014_v4 = vor.u32 1.1754944e-38, %v3013_v5 }
 0x2e7   : > { %v2274_v19 = vadd.f32 %v2273_v36, %v2185_v10  ;;  %v4549_v6 = vpop.eup %4548  ;;  %v2991_v14 = vadd.f32 %v4547_v0, %v2990_v63  ;;  %v2546_v12 = vmul.f32 1.442695, %v2484_v59  ;;  %v2362_v25 = vpop.f32.mrf.mxu3 }
 0x2e8   : > { %v4551_v38 = vpop.eup %4550  ;;  %v2579_v29 = vadd.f32 1.0, %v4549_v6 }
 0x2e9   : > { %v2363_v48 = vadd.f32 %v2362_v25, %v2274_v19  ;;  %v2995_v45 = vsel %vm2994_vm14, %v4547_v0, %v2991_v14  ;;  %v3003_v51 = vmul.f32 %v4551_v38, %v5819_v61  ;;  %4552 = vpow2.f32 %v2546_v12 }
 0x2ea   : > { %v3000_v3 = vsel %vm2997_vm15, %v2999_v30, %v2995_v45  ;;  %4554 = vrcp.f32 %v2579_v29  ;;  %vm3008_vm0 = vweird.f32 %v4551_v38  ;;  %v3028_v41 = vand.u32 2147483648, %v2579_v29 }
 0x2eb   : > { %v3089_v54 = vmul.f32 %v3000_v3, %v5781_v52  ;;  %v3004_v33 = vsub.f32 1.0, %v3003_v51  ;;  %v5838_v26 = vadd.f32 %v2451_v32, %v2363_v48  ;;  %v3011_v52 = vand.u32 2147483647, %v5819_v61  ;;  %vm3009_vm2 = vmor %vm3007_vm1, %vm3008_vm0 }
 0x2ec   : > { %v3026_v44 = vand.u32 2147483647, %v2579_v29  ;;  %vm3022_vm5 = vweird.f32 %v2579_v29  ;;  %v3029_v53 = vor.u32 1.1754944e-38, %v3028_v41 }
 0x2ed   : > { %v4373_v20 = vpack.c.bf16 %v3089_v54, %v3088_v42  ;;  %v3005_v16 = vmul.f32 %v4551_v38, %v3004_v33  ;;  %v2485_v60 = vsub.f32 0.0, %v5838_v26  ;;  %vm3012_vm4 = vcmp.eq.f32.partialorder %v3011_v52, 8.507059e+37 }
 0x2ee   : > { %vm3027_vm7 = vcmp.eq.f32.partialorder %v3026_v44, 8.507059e+37 }
 0x2ef   : > { %v4553_v8 = vpop.eup %4552  ;;  %4397 = vst [vmem:[%s5342_s22 + $0x68] sm:$0xff] %v4373_v20   ;;  %v2548_v39 = vmul.f32 1.442695, %v2485_v60  ;;  %v3006_v21 = vadd.f32 %v4551_v38, %v3005_v16 }
 0x2f0   : > { %v4555_v24 = vpop.eup %4554  ;;  %v2580_v27 = vadd.f32 1.0, %v4553_v8 }
 0x2f1   : > { %v3018_v2 = vmul.f32 %v4555_v24, %v2579_v29  ;;  %4556 = vpow2.f32 %v2548_v39  ;;  %v3010_v35 = vsel %vm3009_vm2, %v4551_v38, %v3006_v21  ;;  %vm3023_vm3 = vweird.f32 %v4555_v24 }
 0x2f2   : > { %4558 = vrcp.f32 %v2580_v27  ;;  %v3015_v56 = vsel %vm3012_vm4, %v3014_v4, %v3010_v35  ;;  %vm3024_vm6 = vmor %vm3022_vm5, %vm3023_vm3  ;;  %v3043_v40 = vand.u32 2147483648, %v2580_v27  ;;  %vm3037_vm9 = vweird.f32 %v2580_v27 }
 0x2f3   : > { %v3019_v17 = vsub.f32 1.0, %v3018_v2  ;;  %v3090_v18 = vmul.f32 %v3015_v56, %v5796_v43  ;;  %v3041_v7 = vand.u32 2147483647, %v2580_v27 }
 0x2f5   : > { %v3020_v46 = vmul.f32 %v4555_v24, %v3019_v17  ;;  %vm3042_vm12 = vcmp.eq.f32.partialorder %v3041_v7, 8.507059e+37 }
 0x2f7   : > { %v4557_v57 = vpop.eup %4556  ;;  %v3021_v47 = vadd.f32 %v4555_v24, %v3020_v46 }
 0x2f8   : > { %v4559_v49 = vpop.eup %4558  ;;  %v2581_v15 = vadd.f32 1.0, %v4557_v57 }
 0x2f9   : > { %v3025_v0 = vsel %vm3024_vm6, %v4555_v24, %v3021_v47  ;;  %v3033_v61 = vmul.f32 %v4559_v49, %v2580_v27  ;;  %vm3038_vm8 = vweird.f32 %v4559_v49 }
 0x2fa   : > { %v3030_v62 = vsel %vm3027_vm7, %v3029_v53, %v3025_v0  ;;  %4560 = vrcp.f32 %v2581_v15  ;;  %vm3039_vm10 = vmor %vm3037_vm9, %vm3038_vm8  ;;  %v3058_v10 = vand.u32 2147483648, %v2581_v15  ;;  %v3056_v43 = vand.u32 2147483647, %v2581_v15 }
 0x2fb   : > { %v3091_v22 = vmul.f32 %v3030_v62, %v5814_v37  ;;  %v3034_v11 = vsub.f32 1.0, %v3033_v61  ;;  %v3044_v37 = vor.u32 1.1754944e-38, %v3043_v40  ;;  %vm3052_vm13 = vweird.f32 %v2581_v15 }
 0x2fc   : > { %v3059_v31 = vor.u32 1.1754944e-38, %v3058_v10  ;;  %vm3057_vm15 = vcmp.eq.f32.partialorder %v3056_v43, 8.507059e+37 }
 0x2fd   : > { %v4378_v23 = vpack.c.bf16 %v3091_v22, %v3090_v18  ;;  %v3035_v13 = vmul.f32 %v4559_v49, %v3034_v11 }
 0x2ff   : > { %4398 = vst [vmem:[%s5342_s22 + $0x70] sm:$0xff] %v4378_v23   ;;  %v3036_v50 = vadd.f32 %v4559_v49, %v3035_v13 }
 0x300   : > { %v4561_v55 = vpop.eup %4560 }
 0x301   : > { %v3048_v34 = vmul.f32 %v4561_v55, %v2581_v15  ;;  %v3040_v1 = vsel %vm3039_vm10, %v4559_v49, %v3036_v50  ;;  %vm3053_vm11 = vweird.f32 %v4561_v55 }
 0x302   : > { %v3045_v36 = vsel %vm3042_vm12, %v3044_v37, %v3040_v1  ;;  %vm3054_vm14 = vmor %vm3052_vm13, %vm3053_vm11 }
 0x303   : > { %v3049_v9 = vsub.f32 1.0, %v3048_v34  ;;  %v3092_v14 = vmul.f32 %v3045_v36, %v5825_v28 }
 0x305   : > { %v3050_v63 = vmul.f32 %v4561_v55, %v3049_v9 }
 0x307   : > { %v3051_v59 = vadd.f32 %v4561_v55, %v3050_v63 }
 0x309   : > { %v3055_v19 = vsel %vm3054_vm14, %v4561_v55, %v3051_v59 }
 0x30a   : > { %v3060_v6 = vsel %vm3057_vm15, %v3059_v31, %v3055_v19 }
 0x30b   : > { %v3093_v12 = vmul.f32 %v3060_v6, %v5838_v26 }
 0x30d   : > { %v4383_v25 = vpack.c.bf16 %v3093_v12, %v3092_v14 }
 0x30f   : > { %4399 = vst [vmem:[%s5342_s22 + $0x78] sm:$0xff] %v4383_v25  }
 0x310 PF: > { %s13_s12 = sadd.s32 1, %s4568_s12  }
 0x311   : > { %p10_p4 = scmp.ge.s32.totalorder %s13_s12, 10  }
 0x313   :  { %12 = sbr.rel (!%p10_p4) target bundleno = 1 (0x1), region = 62 }

</bundles_post_ra>
